<compile_context>
chip_gen: v5e
topology: v5e:2x2
jax: 0.10.0
libtpu: 0.0.40
codegen_flags: <defaults>
</compile_context>

<pallas_src>
import math
from functools import partial

import jax
import jax.numpy as jnp
from jax.experimental import pallas as pl
from jax.experimental.pallas import tpu as pltpu

NEG_INF = -1e9
LN_EPS = 1e-5


# ----------------------------- fused whole-model kernel -----------------------------

def _spec2psm_kernel(*refs, nhead, n_enc, n_dec, d_model):
    (src_ref, y_ref, skb_ref, tkb_ref, causal_ref,
     in_w, in_b, lns_g, lns_b, pe_spec,
     e_wqkv, e_bqkv, e_wo, e_bo, e_n1g, e_n1b,
     e_w1, e_b1, e_w2, e_b2, e_n2g, e_n2b,
     enc_ng, enc_nb,
     d_sa_wqkv, d_sa_bqkv, d_sa_wo, d_sa_bo, d_n1g, d_n1b,
     d_ca_wq, d_ca_bq, d_ca_wkv, d_ca_bkv, d_ca_wo, d_ca_bo, d_n2g, d_n2b,
     d_w1, d_b1, d_w2, d_b2, d_n3g, d_n3b,
     dec_ng, dec_nb, fc_w, fc_b,
     o_ref) = refs

    D = d_model
    Dh = D // nhead
    scale = 1.0 / math.sqrt(Dh)
    bf16 = jnp.bfloat16
    f32 = jnp.float32

    def mm(a, w):
        # MXU matmul: bf16 operands, f32 accumulate.
        return jnp.dot(a.astype(bf16), w.astype(bf16), preferred_element_type=f32)

    def ln(x, g, b):
        mu = jnp.mean(x, axis=-1, keepdims=True)
        xc = x - mu
        var = jnp.mean(xc * xc, axis=-1, keepdims=True)
        return xc * jax.lax.rsqrt(var + LN_EPS) * g + b

    def mha(q, k, v, wo, bias):
        """q pre-scaled (Tq, D) f32; k, v (Tk, D) f32; wo (D, D) f32; bias additive f32.
        Accumulates per-head output projection into a lane-dense (Tq, D) buffer."""
        acc = jnp.zeros((q.shape[0], D), f32)
        for h in range(nhead):                       # static unroll
            lo = h * Dh
            qh = q[:, lo:lo + Dh].astype(bf16)
            kh = k[:, lo:lo + Dh].astype(bf16)
            vh = v[:, lo:lo + Dh].astype(bf16)
            s = jax.lax.dot_general(qh, kh, (((1,), (1,)), ((), ())),
                                    preferred_element_type=f32) + bias
            m = jnp.max(s, axis=-1, keepdims=True)
            p = jnp.exp(s - m)
            denom = jnp.sum(p, axis=-1, keepdims=True)
            oh = jnp.dot(p.astype(bf16), vh, preferred_element_type=f32)
            oh = oh * pl.reciprocal(denom, approx=True)
            acc = acc + jnp.dot(oh.astype(bf16), wo[lo:lo + Dh, :].astype(bf16),
                                preferred_element_type=f32)
        return acc

    # ---------------- encoder ----------------
    skb = skb_ref[0]                                          # (1, Ss) key-padding bias
    x = mm(src_ref[0], in_w[...]) + in_b[...]                 # input embedding (4 -> D)
    x = ln(x, lns_g[...], lns_b[...]) + pe_spec[...]          # layer_norm_src + spectra PE

    for l in range(n_enc):                                    # static unroll over layers
        qkv = mm(x, e_wqkv[l]) + e_bqkv[l]                    # packed q|k|v
        q = qkv[:, :D] * scale
        k = qkv[:, D:2 * D]
        v = qkv[:, 2 * D:]
        attn = mha(q, k, v, e_wo[l], skb) + e_bo[l]
        x = ln(x + attn, e_n1g[l], e_n1b[l])
        h1 = jnp.maximum(mm(x, e_w1[l]) + e_b1[l], 0.0)
        ff = mm(h1, e_w2[l]) + e_b2[l]
        x = ln(x + ff, e_n2g[l], e_n2b[l])

    mem = ln(x, enc_ng[...], enc_nb[...])                     # encoder final norm (Ss, D)

    # ---------------- decoder ----------------
    sa_bias = tkb_ref[0] + causal_ref[...]                    # (Tt, Tt) pad + causal bias
    out = y_ref[0]                                            # tgt embedding + peptide PE

    for l in range(n_dec):
        # masked self-attention
        qkv = mm(out, d_sa_wqkv[l]) + d_sa_bqkv[l]
        q = qkv[:, :D] * scale
        k = qkv[:, D:2 * D]
        v = qkv[:, 2 * D:]
        attn = mha(q, k, v, d_sa_wo[l], sa_bias) + d_sa_bo[l]
        out = ln(out + attn, d_n1g[l], d_n1b[l])

        # cross-attention over encoder memory (resident in VMEM/vregs)
        q = (mm(out, d_ca_wq[l]) + d_ca_bq[l]) * scale
        kv = mm(mem, d_ca_wkv[l]) + d_ca_bkv[l]               # packed k|v
        attn = mha(q, kv[:, :D], kv[:, D:], d_ca_wo[l], skb) + d_ca_bo[l]
        out = ln(out + attn, d_n2g[l], d_n2b[l])

        # feed-forward
        h1 = jnp.maximum(mm(out, d_w1[l]) + d_b1[l], 0.0)
        ff = mm(h1, d_w2[l]) + d_b2[l]
        out = ln(out + ff, d_n3g[l], d_n3b[l])

    out = ln(out, dec_ng[...], dec_nb[...])                   # decoder final norm
    logits = mm(out, fc_w[...]) + fc_b[...]                   # (Tt, Vp) lane-dense (Vp=128k)
    o_ref[0] = logits.astype(o_ref.dtype)


def _spec2psm_call(params, src, y, skb, tkb, causal, nhead):
    B, Ss, _ = src.shape
    Tt, D = y.shape[1], y.shape[2]
    Vp = params['fc_w'].shape[1]
    n_enc = params['e_wqkv'].shape[0]
    n_dec = params['d_sa_wqkv'].shape[0]

    def bspec(a):
        r = a.ndim - 1
        return pl.BlockSpec((1,) + a.shape[1:], lambda i, _r=r: (i,) + (0,) * _r)

    def sspec(a):
        r = a.ndim
        return pl.BlockSpec(a.shape, lambda i, _r=r: (0,) * _r)

    p = params
    batch_args = [src, y, skb, tkb]
    shared_args = [
        causal,
        p['in_w'], p['in_b'], p['lns_g'], p['lns_b'], p['pe_spec'][:Ss],
        p['e_wqkv'], p['e_bqkv'], p['e_wo'], p['e_bo'], p['e_n1g'], p['e_n1b'],
        p['e_w1'], p['e_b1'], p['e_w2'], p['e_b2'], p['e_n2g'], p['e_n2b'],
        p['enc_ng'], p['enc_nb'],
        p['d_sa_wqkv'], p['d_sa_bqkv'], p['d_sa_wo'], p['d_sa_bo'], p['d_n1g'], p['d_n1b'],
        p['d_ca_wq'], p['d_ca_bq'], p['d_ca_wkv'], p['d_ca_bkv'],
        p['d_ca_wo'], p['d_ca_bo'], p['d_n2g'], p['d_n2b'],
        p['d_w1'], p['d_b1'], p['d_w2'], p['d_b2'], p['d_n3g'], p['d_n3b'],
        p['dec_ng'], p['dec_nb'], p['fc_w'], p['fc_b'],
    ]
    args = batch_args + shared_args
    in_specs = [bspec(a) for a in batch_args] + [sspec(a) for a in shared_args]

    kernel = partial(_spec2psm_kernel, nhead=nhead, n_enc=n_enc, n_dec=n_dec, d_model=D)
    return pl.pallas_call(
        kernel,
        out_shape=jax.ShapeDtypeStruct((B, Tt, Vp), jnp.float32),
        grid=(B,),
        in_specs=in_specs,
        out_specs=pl.BlockSpec((1, Tt, Vp), lambda i: (i, 0, 0)),
        compiler_params=pltpu.CompilerParams(dimension_semantics=("parallel",)),
    )(*args)


# ----------------------------- model (JAX glue) -----------------------------

def sinusoidal_encoding(max_len, d_model):
    pos = jnp.arange(max_len, dtype=jnp.float32)[:, None]
    i = jnp.arange(0, d_model, 2, dtype=jnp.float32)[None, :]
    angle = pos / jnp.power(10000.0, i / d_model)
    enc = jnp.zeros((max_len, d_model), jnp.float32)
    enc = enc.at[:, 0::2].set(jnp.sin(angle))
    enc = enc.at[:, 1::2].set(jnp.cos(angle))
    return enc


def spec2psm_forward(params, src, tgt, src_pad, tgt_pad, tgt_mask, nhead):
    B, Ss, _ = src.shape
    Tt = tgt.shape[1]
    V = params['out_emb'].shape[0]

    # target token embedding (tiny gather -> plain JAX) + peptide positional encoding
    y = jnp.take(params['out_emb'], tgt, axis=0) + params['pe_pep'][None, :Tt, :]

    # compact additive masks (no [B, H, Tq, Tk] materialisation, no zero biases)
    skb = jnp.where(src_pad, NEG_INF, 0.0).astype(jnp.float32).reshape(B, 1, Ss)
    tkb = jnp.where(tgt_pad, NEG_INF, 0.0).astype(jnp.float32).reshape(B, 1, Tt)
    causal = jnp.where(tgt_mask, NEG_INF, 0.0).astype(jnp.float32)        # (Tt, Tt)

    logits_padded = _spec2psm_call(params, src, y, skb, tkb, causal, nhead)
    return logits_padded[:, :, :V]


# ----------------------------- parameter init -----------------------------

def init_params(key, vocab_size, d_model, nhead, n_enc, n_dec, ff_dim, max_seq_len):
    D, F, V = d_model, ff_dim, vocab_size
    Vp = max(128, -(-V // 128) * 128)                  # vocab projection padded to 128 lanes
    keys = iter(jax.random.split(key, 1024))
    nk = lambda: next(keys)

    def xav(din, dout):
        lim = math.sqrt(6.0 / (din + dout))
        return jax.random.uniform(nk(), (din, dout), jnp.float32, -lim, lim)

    def stack_xav(n, din, dout, dtype=jnp.bfloat16):
        return jnp.stack([xav(din, dout) for _ in range(n)]).astype(dtype)

    def stack_qkv(n):   # packed [wq | wk | wv] per layer, concatenated once at init
        return jnp.stack([jnp.concatenate([xav(D, D), xav(D, D), xav(D, D)], axis=1)
                          for _ in range(n)]).astype(jnp.bfloat16)

    def stack_kv(n):    # packed [wk | wv] per layer (cross-attention)
        return jnp.stack([jnp.concatenate([xav(D, D), xav(D, D)], axis=1)
                          for _ in range(n)]).astype(jnp.bfloat16)

    ones = lambda n, shape: jnp.ones((n,) + shape, jnp.float32)
    zeros = lambda n, shape: jnp.zeros((n,) + shape, jnp.float32)

    fc_w = jnp.zeros((D, Vp), jnp.float32).at[:, :V].set(xav(D, V)).astype(jnp.bfloat16)

    return dict(
        in_w=xav(4, D), in_b=jnp.zeros((1, D), jnp.float32),
        lns_g=jnp.ones((1, D), jnp.float32), lns_b=jnp.zeros((1, D), jnp.float32),
        out_emb=jax.random.normal(nk(), (V, D), jnp.float32),
        pe_spec=sinusoidal_encoding(100, D),
        pe_pep=sinusoidal_encoding(max_seq_len, D),
        # ----- encoder (stacked over layers) -----
        e_wqkv=stack_qkv(n_enc), e_bqkv=zeros(n_enc, (1, 3 * D)),
        e_wo=stack_xav(n_enc, D, D, jnp.float32), e_bo=zeros(n_enc, (1, D)),
        e_n1g=ones(n_enc, (1, D)), e_n1b=zeros(n_enc, (1, D)),
        e_w1=stack_xav(n_enc, D, F), e_b1=zeros(n_enc, (1, F)),
        e_w2=stack_xav(n_enc, F, D), e_b2=zeros(n_enc, (1, D)),
        e_n2g=ones(n_enc, (1, D)), e_n2b=zeros(n_enc, (1, D)),
        enc_ng=jnp.ones((1, D), jnp.float32), enc_nb=jnp.zeros((1, D), jnp.float32),
        # ----- decoder (stacked over layers) -----
        d_sa_wqkv=stack_qkv(n_dec), d_sa_bqkv=zeros(n_dec, (1, 3 * D)),
        d_sa_wo=stack_xav(n_dec, D, D, jnp.float32), d_sa_bo=zeros(n_dec, (1, D)),
        d_n1g=ones(n_dec, (1, D)), d_n1b=zeros(n_dec, (1, D)),
        d_ca_wq=stack_xav(n_dec, D, D), d_ca_bq=zeros(n_dec, (1, D)),
        d_ca_wkv=stack_kv(n_dec), d_ca_bkv=zeros(n_dec, (1, 2 * D)),
        d_ca_wo=stack_xav(n_dec, D, D, jnp.float32), d_ca_bo=zeros(n_dec, (1, D)),
        d_n2g=ones(n_dec, (1, D)), d_n2b=zeros(n_dec, (1, D)),
        d_w1=stack_xav(n_dec, D, F), d_b1=zeros(n_dec, (1, F)),
        d_w2=stack_xav(n_dec, F, D), d_b2=zeros(n_dec, (1, D)),
        d_n3g=ones(n_dec, (1, D)), d_n3b=zeros(n_dec, (1, D)),
        dec_ng=jnp.ones((1, D), jnp.float32), dec_nb=jnp.zeros((1, D), jnp.float32),
        fc_w=fc_w, fc_b=jnp.zeros((1, Vp), jnp.float32),
    )


# ----------------------------- main -----------------------------

if __name__ == "__main__":
    vocab_size = 16
    d_model = 32
    max_seq_len = 16
    nhead = 4
    num_encoder_layers = 2
    num_decoder_layers = 2
    ff_dim = 64

    B, S_src, S_tgt = 2, 8, 8

    key = jax.random.PRNGKey(0)
    k_param, k_src, k_tgt = jax.random.split(key, 3)

    params = init_params(k_param, vocab_size, d_model, nhead,
                         num_encoder_layers, num_decoder_layers, ff_dim, max_seq_len)

    src = jax.random.normal(k_src, (B, S_src, 4), jnp.float32)
    tgt = jax.random.randint(k_tgt, (B, S_tgt), 1, vocab_size).astype(jnp.int32)

    # padding masks: True = pad position (PyTorch key_padding_mask convention)
    src_padding_mask = jnp.zeros((B, S_src), bool).at[:, -2:].set(True)
    tgt_padding_mask = jnp.zeros((B, S_tgt), bool).at[:, -1:].set(True)
    # causal mask: True = disallowed (strict upper triangle)
    tgt_mask = jnp.triu(jnp.ones((S_tgt, S_tgt), bool), k=1)

    fwd = jax.jit(lambda p, s, t, sp, tp, tm: spec2psm_forward(p, s, t, sp, tp, tm, nhead))
    logits = fwd(params, src, tgt, src_padding_mask, tgt_padding_mask, tgt_mask)
    jax.block_until_ready(logits)

    assert logits.shape == (B, S_tgt, vocab_size), logits.shape
    assert bool(jnp.all(jnp.isfinite(logits)))
    print("KERNEL_OK")
</pallas_src>

<mosaic_0001>
module attributes {stable_mosaic.version = 11 : i64} {
  func.func @_spec2psm_kernel(%arg0: i32, %arg1: memref<1x8x4xf32, #tpu.memory_space<vmem>>, %arg2: memref<1x8x32xf32, #tpu.memory_space<vmem>>, %arg3: memref<1x1x8xf32, #tpu.memory_space<vmem>>, %arg4: memref<1x1x8xf32, #tpu.memory_space<vmem>>, %arg5: memref<8x8xf32, #tpu.memory_space<vmem>>, %arg6: memref<4x32xf32, #tpu.memory_space<vmem>>, %arg7: memref<1x32xf32, #tpu.memory_space<vmem>>, %arg8: memref<1x32xf32, #tpu.memory_space<vmem>>, %arg9: memref<1x32xf32, #tpu.memory_space<vmem>>, %arg10: memref<8x32xf32, #tpu.memory_space<vmem>>, %arg11: memref<2x32x96xbf16, #tpu.memory_space<vmem>>, %arg12: memref<2x1x96xf32, #tpu.memory_space<vmem>>, %arg13: memref<2x32x32xf32, #tpu.memory_space<vmem>>, %arg14: memref<2x1x32xf32, #tpu.memory_space<vmem>>, %arg15: memref<2x1x32xf32, #tpu.memory_space<vmem>>, %arg16: memref<2x1x32xf32, #tpu.memory_space<vmem>>, %arg17: memref<2x32x64xbf16, #tpu.memory_space<vmem>>, %arg18: memref<2x1x64xf32, #tpu.memory_space<vmem>>, %arg19: memref<2x64x32xbf16, #tpu.memory_space<vmem>>, %arg20: memref<2x1x32xf32, #tpu.memory_space<vmem>>, %arg21: memref<2x1x32xf32, #tpu.memory_space<vmem>>, %arg22: memref<2x1x32xf32, #tpu.memory_space<vmem>>, %arg23: memref<1x32xf32, #tpu.memory_space<vmem>>, %arg24: memref<1x32xf32, #tpu.memory_space<vmem>>, %arg25: memref<2x32x96xbf16, #tpu.memory_space<vmem>>, %arg26: memref<2x1x96xf32, #tpu.memory_space<vmem>>, %arg27: memref<2x32x32xf32, #tpu.memory_space<vmem>>, %arg28: memref<2x1x32xf32, #tpu.memory_space<vmem>>, %arg29: memref<2x1x32xf32, #tpu.memory_space<vmem>>, %arg30: memref<2x1x32xf32, #tpu.memory_space<vmem>>, %arg31: memref<2x32x32xbf16, #tpu.memory_space<vmem>>, %arg32: memref<2x1x32xf32, #tpu.memory_space<vmem>>, %arg33: memref<2x32x64xbf16, #tpu.memory_space<vmem>>, %arg34: memref<2x1x64xf32, #tpu.memory_space<vmem>>, %arg35: memref<2x32x32xf32, #tpu.memory_space<vmem>>, %arg36: memref<2x1x32xf32, #tpu.memory_space<vmem>>, %arg37: memref<2x1x32xf32, #tpu.memory_space<vmem>>, %arg38: memref<2x1x32xf32, #tpu.memory_space<vmem>>, %arg39: memref<2x32x64xbf16, #tpu.memory_space<vmem>>, %arg40: memref<2x1x64xf32, #tpu.memory_space<vmem>>, %arg41: memref<2x64x32xbf16, #tpu.memory_space<vmem>>, %arg42: memref<2x1x32xf32, #tpu.memory_space<vmem>>, %arg43: memref<2x1x32xf32, #tpu.memory_space<vmem>>, %arg44: memref<2x1x32xf32, #tpu.memory_space<vmem>>, %arg45: memref<1x32xf32, #tpu.memory_space<vmem>>, %arg46: memref<1x32xf32, #tpu.memory_space<vmem>>, %arg47: memref<32x128xbf16, #tpu.memory_space<vmem>>, %arg48: memref<1x128xf32, #tpu.memory_space<vmem>>, %arg49: memref<1x8x128xf32, #tpu.memory_space<vmem>>) attributes {dimension_semantics = [#tpu.dimension_semantics<parallel>], iteration_bounds = array<i64: 2>, scalar_prefetch = 0 : i64, scratch_operands = 0 : i64, tpu.core_type = #tpu.core_type<tc>, window_params = [{transform_indices = @transform_0, window_bounds = array<i64: 1, 8, 4>}, {transform_indices = @transform_1, window_bounds = array<i64: 1, 8, 32>}, {transform_indices = @transform_2, window_bounds = array<i64: 1, 1, 8>}, {transform_indices = @transform_3, window_bounds = array<i64: 1, 1, 8>}, {pipeline_mode = #tpu.pipeline_mode<synchronous>, transform_indices = @transform_4, window_bounds = array<i64: 8, 8>}, {pipeline_mode = #tpu.pipeline_mode<synchronous>, transform_indices = @transform_5, window_bounds = array<i64: 4, 32>}, {pipeline_mode = #tpu.pipeline_mode<synchronous>, transform_indices = @transform_6, window_bounds = array<i64: 1, 32>}, {pipeline_mode = #tpu.pipeline_mode<synchronous>, transform_indices = @transform_7, window_bounds = array<i64: 1, 32>}, {pipeline_mode = #tpu.pipeline_mode<synchronous>, transform_indices = @transform_8, window_bounds = array<i64: 1, 32>}, {pipeline_mode = #tpu.pipeline_mode<synchronous>, transform_indices = @transform_9, window_bounds = array<i64: 8, 32>}, {pipeline_mode = #tpu.pipeline_mode<synchronous>, transform_indices = @transform_10, window_bounds = array<i64: 2, 32, 96>}, {pipeline_mode = #tpu.pipeline_mode<synchronous>, transform_indices = @transform_11, window_bounds = array<i64: 2, 1, 96>}, {pipeline_mode = #tpu.pipeline_mode<synchronous>, transform_indices = @transform_12, window_bounds = array<i64: 2, 32, 32>}, {pipeline_mode = #tpu.pipeline_mode<synchronous>, transform_indices = @transform_13, window_bounds = array<i64: 2, 1, 32>}, {pipeline_mode = #tpu.pipeline_mode<synchronous>, transform_indices = @transform_14, window_bounds = array<i64: 2, 1, 32>}, {pipeline_mode = #tpu.pipeline_mode<synchronous>, transform_indices = @transform_15, window_bounds = array<i64: 2, 1, 32>}, {pipeline_mode = #tpu.pipeline_mode<synchronous>, transform_indices = @transform_16, window_bounds = array<i64: 2, 32, 64>}, {pipeline_mode = #tpu.pipeline_mode<synchronous>, transform_indices = @transform_17, window_bounds = array<i64: 2, 1, 64>}, {pipeline_mode = #tpu.pipeline_mode<synchronous>, transform_indices = @transform_18, window_bounds = array<i64: 2, 64, 32>}, {pipeline_mode = #tpu.pipeline_mode<synchronous>, transform_indices = @transform_19, window_bounds = array<i64: 2, 1, 32>}, {pipeline_mode = #tpu.pipeline_mode<synchronous>, transform_indices = @transform_20, window_bounds = array<i64: 2, 1, 32>}, {pipeline_mode = #tpu.pipeline_mode<synchronous>, transform_indices = @transform_21, window_bounds = array<i64: 2, 1, 32>}, {pipeline_mode = #tpu.pipeline_mode<synchronous>, transform_indices = @transform_22, window_bounds = array<i64: 1, 32>}, {pipeline_mode = #tpu.pipeline_mode<synchronous>, transform_indices = @transform_23, window_bounds = array<i64: 1, 32>}, {pipeline_mode = #tpu.pipeline_mode<synchronous>, transform_indices = @transform_24, window_bounds = array<i64: 2, 32, 96>}, {pipeline_mode = #tpu.pipeline_mode<synchronous>, transform_indices = @transform_25, window_bounds = array<i64: 2, 1, 96>}, {pipeline_mode = #tpu.pipeline_mode<synchronous>, transform_indices = @transform_26, window_bounds = array<i64: 2, 32, 32>}, {pipeline_mode = #tpu.pipeline_mode<synchronous>, transform_indices = @transform_27, window_bounds = array<i64: 2, 1, 32>}, {pipeline_mode = #tpu.pipeline_mode<synchronous>, transform_indices = @transform_28, window_bounds = array<i64: 2, 1, 32>}, {pipeline_mode = #tpu.pipeline_mode<synchronous>, transform_indices = @transform_29, window_bounds = array<i64: 2, 1, 32>}, {pipeline_mode = #tpu.pipeline_mode<synchronous>, transform_indices = @transform_30, window_bounds = array<i64: 2, 32, 32>}, {pipeline_mode = #tpu.pipeline_mode<synchronous>, transform_indices = @transform_31, window_bounds = array<i64: 2, 1, 32>}, {pipeline_mode = #tpu.pipeline_mode<synchronous>, transform_indices = @transform_32, window_bounds = array<i64: 2, 32, 64>}, {pipeline_mode = #tpu.pipeline_mode<synchronous>, transform_indices = @transform_33, window_bounds = array<i64: 2, 1, 64>}, {pipeline_mode = #tpu.pipeline_mode<synchronous>, transform_indices = @transform_34, window_bounds = array<i64: 2, 32, 32>}, {pipeline_mode = #tpu.pipeline_mode<synchronous>, transform_indices = @transform_35, window_bounds = array<i64: 2, 1, 32>}, {pipeline_mode = #tpu.pipeline_mode<synchronous>, transform_indices = @transform_36, window_bounds = array<i64: 2, 1, 32>}, {pipeline_mode = #tpu.pipeline_mode<synchronous>, transform_indices = @transform_37, window_bounds = array<i64: 2, 1, 32>}, {pipeline_mode = #tpu.pipeline_mode<synchronous>, transform_indices = @transform_38, window_bounds = array<i64: 2, 32, 64>}, {pipeline_mode = #tpu.pipeline_mode<synchronous>, transform_indices = @transform_39, window_bounds = array<i64: 2, 1, 64>}, {pipeline_mode = #tpu.pipeline_mode<synchronous>, transform_indices = @transform_40, window_bounds = array<i64: 2, 64, 32>}, {pipeline_mode = #tpu.pipeline_mode<synchronous>, transform_indices = @transform_41, window_bounds = array<i64: 2, 1, 32>}, {pipeline_mode = #tpu.pipeline_mode<synchronous>, transform_indices = @transform_42, window_bounds = array<i64: 2, 1, 32>}, {pipeline_mode = #tpu.pipeline_mode<synchronous>, transform_indices = @transform_43, window_bounds = array<i64: 2, 1, 32>}, {pipeline_mode = #tpu.pipeline_mode<synchronous>, transform_indices = @transform_44, window_bounds = array<i64: 1, 32>}, {pipeline_mode = #tpu.pipeline_mode<synchronous>, transform_indices = @transform_45, window_bounds = array<i64: 1, 32>}, {pipeline_mode = #tpu.pipeline_mode<synchronous>, transform_indices = @transform_46, window_bounds = array<i64: 32, 128>}, {pipeline_mode = #tpu.pipeline_mode<synchronous>, transform_indices = @transform_47, window_bounds = array<i64: 1, 128>}, {transform_indices = @transform_48, window_bounds = array<i64: 1, 8, 128>}]} {
    %c0 = arith.constant 0 : index
    %c0_0 = arith.constant 0 : index
    %c0_1 = arith.constant 0 : index
    %0 = vector.load %arg3[%c0, %c0_0, %c0_1] : memref<1x1x8xf32, #tpu.memory_space<vmem>>, vector<1x1x8xf32>
    %1 = vector.shape_cast %0 : vector<1x1x8xf32> to vector<1x8xf32>
    %c0_2 = arith.constant 0 : index
    %c0_3 = arith.constant 0 : index
    %c0_4 = arith.constant 0 : index
    %2 = vector.load %arg1[%c0_2, %c0_3, %c0_4] : memref<1x8x4xf32, #tpu.memory_space<vmem>>, vector<1x8x4xf32>
    %3 = vector.shape_cast %2 : vector<1x8x4xf32> to vector<8x4xf32>
    %c0_5 = arith.constant 0 : index
    %c0_6 = arith.constant 0 : index
    %4 = vector.load %arg6[%c0_5, %c0_6] : memref<4x32xf32, #tpu.memory_space<vmem>>, vector<4x32xf32>
    %5 = arith.truncf %3 : vector<8x4xf32> to vector<8x4xbf16>
    %6 = arith.truncf %4 : vector<4x32xf32> to vector<4x32xbf16>
    %cst = arith.constant dense<0.000000e+00> : vector<8x32xf32>
    %7 = tpu.matmul %5, %6, %cst {dimension_numbers = #tpu.dot_dimension_numbers<[1], [0], [0], [1], [0, 0, 1, 1], [], []>} : vector<8x4xbf16>, vector<4x32xbf16>, vector<8x32xf32> -> vector<8x32xf32>
    %c0_7 = arith.constant 0 : index
    %c0_8 = arith.constant 0 : index
    %8 = vector.load %arg7[%c0_7, %c0_8] : memref<1x32xf32, #tpu.memory_space<vmem>>, vector<1x32xf32>
    %9 = vector.broadcast %8 : vector<1x32xf32> to vector<8x32xf32>
    %10 = arith.addf %7, %9 : vector<8x32xf32>
    %c0_9 = arith.constant 0 : index
    %c0_10 = arith.constant 0 : index
    %11 = vector.load %arg8[%c0_9, %c0_10] : memref<1x32xf32, #tpu.memory_space<vmem>>, vector<1x32xf32>
    %c0_11 = arith.constant 0 : index
    %c0_12 = arith.constant 0 : index
    %12 = vector.load %arg9[%c0_11, %c0_12] : memref<1x32xf32, #tpu.memory_space<vmem>>, vector<1x32xf32>
    %cst_13 = arith.constant dense<0.000000e+00> : vector<8xf32>
    %13 = vector.multi_reduction <add>, %10, %cst_13 [1] : vector<8x32xf32> to vector<8xf32>
    %14 = vector.shape_cast %13 : vector<8xf32> to vector<8x1xf32>
    %cst_14 = arith.constant 3.200000e+01 : f32
    %15 = vector.broadcast %cst_14 : f32 to vector<8x1xf32>
    %16 = arith.divf %14, %15 : vector<8x1xf32>
    %17 = vector.broadcast %16 : vector<8x1xf32> to vector<8x32xf32>
    %18 = arith.subf %10, %17 : vector<8x32xf32>
    %19 = arith.mulf %18, %18 : vector<8x32xf32>
    %cst_15 = arith.constant dense<0.000000e+00> : vector<8xf32>
    %20 = vector.multi_reduction <add>, %19, %cst_15 [1] : vector<8x32xf32> to vector<8xf32>
    %21 = vector.shape_cast %20 : vector<8xf32> to vector<8x1xf32>
    %cst_16 = arith.constant 3.200000e+01 : f32
    %22 = vector.broadcast %cst_16 : f32 to vector<8x1xf32>
    %23 = arith.divf %21, %22 : vector<8x1xf32>
    %cst_17 = arith.constant 9.99999974E-6 : f32
    %24 = vector.broadcast %cst_17 : f32 to vector<8x1xf32>
    %25 = arith.addf %23, %24 : vector<8x1xf32>
    %26 = math.rsqrt %25 : vector<8x1xf32>
    %27 = vector.broadcast %26 : vector<8x1xf32> to vector<8x32xf32>
    %28 = arith.mulf %18, %27 : vector<8x32xf32>
    %29 = vector.broadcast %11 : vector<1x32xf32> to vector<8x32xf32>
    %30 = arith.mulf %28, %29 : vector<8x32xf32>
    %31 = vector.broadcast %12 : vector<1x32xf32> to vector<8x32xf32>
    %32 = arith.addf %30, %31 : vector<8x32xf32>
    %c0_18 = arith.constant 0 : index
    %c0_19 = arith.constant 0 : index
    %33 = vector.load %arg10[%c0_18, %c0_19] : memref<8x32xf32, #tpu.memory_space<vmem>>, vector<8x32xf32>
    %34 = arith.addf %32, %33 : vector<8x32xf32>
    %c0_20 = arith.constant 0 : index
    %c0_21 = arith.constant 0 : index
    %c0_22 = arith.constant 0 : index
    %35 = vector.load %arg11[%c0_20, %c0_21, %c0_22] : memref<2x32x96xbf16, #tpu.memory_space<vmem>>, vector<1x32x96xbf16>
    %36 = vector.shape_cast %35 : vector<1x32x96xbf16> to vector<32x96xbf16>
    %37 = arith.truncf %34 : vector<8x32xf32> to vector<8x32xbf16>
    %cst_23 = arith.constant dense<0.000000e+00> : vector<8x96xf32>
    %38 = tpu.matmul %37, %36, %cst_23 {dimension_numbers = #tpu.dot_dimension_numbers<[1], [0], [0], [1], [0, 0, 1, 1], [], []>} : vector<8x32xbf16>, vector<32x96xbf16>, vector<8x96xf32> -> vector<8x96xf32>
    %c0_24 = arith.constant 0 : index
    %c0_25 = arith.constant 0 : index
    %c0_26 = arith.constant 0 : index
    %39 = vector.load %arg12[%c0_24, %c0_25, %c0_26] : memref<2x1x96xf32, #tpu.memory_space<vmem>>, vector<1x1x96xf32>
    %40 = vector.shape_cast %39 : vector<1x1x96xf32> to vector<1x96xf32>
    %41 = vector.broadcast %40 : vector<1x96xf32> to vector<8x96xf32>
    %42 = arith.addf %38, %41 : vector<8x96xf32>
    %43 = vector.extract_strided_slice %42 {offsets = [0, 0], sizes = [8, 32], strides = [1, 1]} : vector<8x96xf32> to vector<8x32xf32>
    %cst_27 = arith.constant 0.353553385 : f32
    %44 = vector.broadcast %cst_27 : f32 to vector<8x32xf32>
    %45 = arith.mulf %43, %44 : vector<8x32xf32>
    %46 = vector.extract_strided_slice %42 {offsets = [0, 32], sizes = [8, 32], strides = [1, 1]} : vector<8x96xf32> to vector<8x32xf32>
    %47 = vector.extract_strided_slice %42 {offsets = [0, 64], sizes = [8, 32], strides = [1, 1]} : vector<8x96xf32> to vector<8x32xf32>
    %c0_28 = arith.constant 0 : index
    %c0_29 = arith.constant 0 : index
    %c0_30 = arith.constant 0 : index
    %48 = vector.load %arg13[%c0_28, %c0_29, %c0_30] : memref<2x32x32xf32, #tpu.memory_space<vmem>>, vector<1x32x32xf32>
    %49 = vector.shape_cast %48 : vector<1x32x32xf32> to vector<32x32xf32>
    %cst_31 = arith.constant 0.000000e+00 : f32
    %50 = vector.broadcast %cst_31 : f32 to vector<8x32xf32>
    %51 = vector.extract_strided_slice %45 {offsets = [0, 0], sizes = [8, 8], strides = [1, 1]} : vector<8x32xf32> to vector<8x8xf32>
    %52 = arith.truncf %51 : vector<8x8xf32> to vector<8x8xbf16>
    %53 = vector.extract_strided_slice %46 {offsets = [0, 0], sizes = [8, 8], strides = [1, 1]} : vector<8x32xf32> to vector<8x8xf32>
    %54 = arith.truncf %53 : vector<8x8xf32> to vector<8x8xbf16>
    %55 = vector.extract_strided_slice %47 {offsets = [0, 0], sizes = [8, 8], strides = [1, 1]} : vector<8x32xf32> to vector<8x8xf32>
    %56 = arith.truncf %55 : vector<8x8xf32> to vector<8x8xbf16>
    %cst_32 = arith.constant dense<0.000000e+00> : vector<8x8xf32>
    %57 = tpu.matmul %52, %54, %cst_32 {dimension_numbers = #tpu.dot_dimension_numbers<[1], [1], [0], [0], [0, 0, 1, 0], [], []>} : vector<8x8xbf16>, vector<8x8xbf16>, vector<8x8xf32> -> vector<8x8xf32>
    %58 = vector.broadcast %1 : vector<1x8xf32> to vector<8x8xf32>
    %59 = arith.addf %57, %58 : vector<8x8xf32>
    %cst_33 = arith.constant dense<0xFF800000> : vector<8xf32>
    %60 = vector.multi_reduction <maximumf>, %59, %cst_33 [1] : vector<8x8xf32> to vector<8xf32>
    %61 = vector.shape_cast %60 : vector<8xf32> to vector<8x1xf32>
    %62 = vector.broadcast %61 : vector<8x1xf32> to vector<8x8xf32>
    %63 = arith.subf %59, %62 : vector<8x8xf32>
    %64 = math.exp %63 : vector<8x8xf32>
    %cst_34 = arith.constant dense<0.000000e+00> : vector<8xf32>
    %65 = vector.multi_reduction <add>, %64, %cst_34 [1] : vector<8x8xf32> to vector<8xf32>
    %66 = vector.shape_cast %65 : vector<8xf32> to vector<8x1xf32>
    %67 = arith.truncf %64 : vector<8x8xf32> to vector<8x8xbf16>
    %cst_35 = arith.constant dense<0.000000e+00> : vector<8x8xf32>
    %68 = tpu.matmul %67, %56, %cst_35 {dimension_numbers = #tpu.dot_dimension_numbers<[1], [0], [0], [1], [0, 0, 1, 1], [], []>} : vector<8x8xbf16>, vector<8x8xbf16>, vector<8x8xf32> -> vector<8x8xf32>
    %69 = tpu.reciprocal %66 {approx = true} : vector<8x1xf32> -> vector<8x1xf32>
    %70 = vector.broadcast %69 : vector<8x1xf32> to vector<8x8xf32>
    %71 = arith.mulf %68, %70 : vector<8x8xf32>
    %72 = arith.truncf %71 : vector<8x8xf32> to vector<8x8xbf16>
    %73 = vector.extract_strided_slice %49 {offsets = [0, 0], sizes = [8, 32], strides = [1, 1]} : vector<32x32xf32> to vector<8x32xf32>
    %74 = arith.truncf %73 : vector<8x32xf32> to vector<8x32xbf16>
    %cst_36 = arith.constant dense<0.000000e+00> : vector<8x32xf32>
    %75 = tpu.matmul %72, %74, %cst_36 {dimension_numbers = #tpu.dot_dimension_numbers<[1], [0], [0], [1], [0, 0, 1, 1], [], []>} : vector<8x8xbf16>, vector<8x32xbf16>, vector<8x32xf32> -> vector<8x32xf32>
    %76 = arith.addf %50, %75 : vector<8x32xf32>
    %77 = vector.extract_strided_slice %45 {offsets = [0, 8], sizes = [8, 8], strides = [1, 1]} : vector<8x32xf32> to vector<8x8xf32>
    %78 = arith.truncf %77 : vector<8x8xf32> to vector<8x8xbf16>
    %79 = vector.extract_strided_slice %46 {offsets = [0, 8], sizes = [8, 8], strides = [1, 1]} : vector<8x32xf32> to vector<8x8xf32>
    %80 = arith.truncf %79 : vector<8x8xf32> to vector<8x8xbf16>
    %81 = vector.extract_strided_slice %47 {offsets = [0, 8], sizes = [8, 8], strides = [1, 1]} : vector<8x32xf32> to vector<8x8xf32>
    %82 = arith.truncf %81 : vector<8x8xf32> to vector<8x8xbf16>
    %cst_37 = arith.constant dense<0.000000e+00> : vector<8x8xf32>
    %83 = tpu.matmul %78, %80, %cst_37 {dimension_numbers = #tpu.dot_dimension_numbers<[1], [1], [0], [0], [0, 0, 1, 0], [], []>} : vector<8x8xbf16>, vector<8x8xbf16>, vector<8x8xf32> -> vector<8x8xf32>
    %84 = vector.broadcast %1 : vector<1x8xf32> to vector<8x8xf32>
    %85 = arith.addf %83, %84 : vector<8x8xf32>
    %cst_38 = arith.constant dense<0xFF800000> : vector<8xf32>
    %86 = vector.multi_reduction <maximumf>, %85, %cst_38 [1] : vector<8x8xf32> to vector<8xf32>
    %87 = vector.shape_cast %86 : vector<8xf32> to vector<8x1xf32>
    %88 = vector.broadcast %87 : vector<8x1xf32> to vector<8x8xf32>
    %89 = arith.subf %85, %88 : vector<8x8xf32>
    %90 = math.exp %89 : vector<8x8xf32>
    %cst_39 = arith.constant dense<0.000000e+00> : vector<8xf32>
    %91 = vector.multi_reduction <add>, %90, %cst_39 [1] : vector<8x8xf32> to vector<8xf32>
    %92 = vector.shape_cast %91 : vector<8xf32> to vector<8x1xf32>
    %93 = arith.truncf %90 : vector<8x8xf32> to vector<8x8xbf16>
    %cst_40 = arith.constant dense<0.000000e+00> : vector<8x8xf32>
    %94 = tpu.matmul %93, %82, %cst_40 {dimension_numbers = #tpu.dot_dimension_numbers<[1], [0], [0], [1], [0, 0, 1, 1], [], []>} : vector<8x8xbf16>, vector<8x8xbf16>, vector<8x8xf32> -> vector<8x8xf32>
    %95 = tpu.reciprocal %92 {approx = true} : vector<8x1xf32> -> vector<8x1xf32>
    %96 = vector.broadcast %95 : vector<8x1xf32> to vector<8x8xf32>
    %97 = arith.mulf %94, %96 : vector<8x8xf32>
    %98 = arith.truncf %97 : vector<8x8xf32> to vector<8x8xbf16>
    %99 = vector.extract_strided_slice %49 {offsets = [8, 0], sizes = [8, 32], strides = [1, 1]} : vector<32x32xf32> to vector<8x32xf32>
    %100 = arith.truncf %99 : vector<8x32xf32> to vector<8x32xbf16>
    %cst_41 = arith.constant dense<0.000000e+00> : vector<8x32xf32>
    %101 = tpu.matmul %98, %100, %cst_41 {dimension_numbers = #tpu.dot_dimension_numbers<[1], [0], [0], [1], [0, 0, 1, 1], [], []>} : vector<8x8xbf16>, vector<8x32xbf16>, vector<8x32xf32> -> vector<8x32xf32>
    %102 = arith.addf %76, %101 : vector<8x32xf32>
    %103 = vector.extract_strided_slice %45 {offsets = [0, 16], sizes = [8, 8], strides = [1, 1]} : vector<8x32xf32> to vector<8x8xf32>
    %104 = arith.truncf %103 : vector<8x8xf32> to vector<8x8xbf16>
    %105 = vector.extract_strided_slice %46 {offsets = [0, 16], sizes = [8, 8], strides = [1, 1]} : vector<8x32xf32> to vector<8x8xf32>
    %106 = arith.truncf %105 : vector<8x8xf32> to vector<8x8xbf16>
    %107 = vector.extract_strided_slice %47 {offsets = [0, 16], sizes = [8, 8], strides = [1, 1]} : vector<8x32xf32> to vector<8x8xf32>
    %108 = arith.truncf %107 : vector<8x8xf32> to vector<8x8xbf16>
    %cst_42 = arith.constant dense<0.000000e+00> : vector<8x8xf32>
    %109 = tpu.matmul %104, %106, %cst_42 {dimension_numbers = #tpu.dot_dimension_numbers<[1], [1], [0], [0], [0, 0, 1, 0], [], []>} : vector<8x8xbf16>, vector<8x8xbf16>, vector<8x8xf32> -> vector<8x8xf32>
    %110 = vector.broadcast %1 : vector<1x8xf32> to vector<8x8xf32>
    %111 = arith.addf %109, %110 : vector<8x8xf32>
    %cst_43 = arith.constant dense<0xFF800000> : vector<8xf32>
    %112 = vector.multi_reduction <maximumf>, %111, %cst_43 [1] : vector<8x8xf32> to vector<8xf32>
    %113 = vector.shape_cast %112 : vector<8xf32> to vector<8x1xf32>
    %114 = vector.broadcast %113 : vector<8x1xf32> to vector<8x8xf32>
    %115 = arith.subf %111, %114 : vector<8x8xf32>
    %116 = math.exp %115 : vector<8x8xf32>
    %cst_44 = arith.constant dense<0.000000e+00> : vector<8xf32>
    %117 = vector.multi_reduction <add>, %116, %cst_44 [1] : vector<8x8xf32> to vector<8xf32>
    %118 = vector.shape_cast %117 : vector<8xf32> to vector<8x1xf32>
    %119 = arith.truncf %116 : vector<8x8xf32> to vector<8x8xbf16>
    %cst_45 = arith.constant dense<0.000000e+00> : vector<8x8xf32>
    %120 = tpu.matmul %119, %108, %cst_45 {dimension_numbers = #tpu.dot_dimension_numbers<[1], [0], [0], [1], [0, 0, 1, 1], [], []>} : vector<8x8xbf16>, vector<8x8xbf16>, vector<8x8xf32> -> vector<8x8xf32>
    %121 = tpu.reciprocal %118 {approx = true} : vector<8x1xf32> -> vector<8x1xf32>
    %122 = vector.broadcast %121 : vector<8x1xf32> to vector<8x8xf32>
    %123 = arith.mulf %120, %122 : vector<8x8xf32>
    %124 = arith.truncf %123 : vector<8x8xf32> to vector<8x8xbf16>
    %125 = vector.extract_strided_slice %49 {offsets = [16, 0], sizes = [8, 32], strides = [1, 1]} : vector<32x32xf32> to vector<8x32xf32>
    %126 = arith.truncf %125 : vector<8x32xf32> to vector<8x32xbf16>
    %cst_46 = arith.constant dense<0.000000e+00> : vector<8x32xf32>
    %127 = tpu.matmul %124, %126, %cst_46 {dimension_numbers = #tpu.dot_dimension_numbers<[1], [0], [0], [1], [0, 0, 1, 1], [], []>} : vector<8x8xbf16>, vector<8x32xbf16>, vector<8x32xf32> -> vector<8x32xf32>
    %128 = arith.addf %102, %127 : vector<8x32xf32>
    %129 = vector.extract_strided_slice %45 {offsets = [0, 24], sizes = [8, 8], strides = [1, 1]} : vector<8x32xf32> to vector<8x8xf32>
    %130 = arith.truncf %129 : vector<8x8xf32> to vector<8x8xbf16>
    %131 = vector.extract_strided_slice %46 {offsets = [0, 24], sizes = [8, 8], strides = [1, 1]} : vector<8x32xf32> to vector<8x8xf32>
    %132 = arith.truncf %131 : vector<8x8xf32> to vector<8x8xbf16>
    %133 = vector.extract_strided_slice %47 {offsets = [0, 24], sizes = [8, 8], strides = [1, 1]} : vector<8x32xf32> to vector<8x8xf32>
    %134 = arith.truncf %133 : vector<8x8xf32> to vector<8x8xbf16>
    %cst_47 = arith.constant dense<0.000000e+00> : vector<8x8xf32>
    %135 = tpu.matmul %130, %132, %cst_47 {dimension_numbers = #tpu.dot_dimension_numbers<[1], [1], [0], [0], [0, 0, 1, 0], [], []>} : vector<8x8xbf16>, vector<8x8xbf16>, vector<8x8xf32> -> vector<8x8xf32>
    %136 = vector.broadcast %1 : vector<1x8xf32> to vector<8x8xf32>
    %137 = arith.addf %135, %136 : vector<8x8xf32>
    %cst_48 = arith.constant dense<0xFF800000> : vector<8xf32>
    %138 = vector.multi_reduction <maximumf>, %137, %cst_48 [1] : vector<8x8xf32> to vector<8xf32>
    %139 = vector.shape_cast %138 : vector<8xf32> to vector<8x1xf32>
    %140 = vector.broadcast %139 : vector<8x1xf32> to vector<8x8xf32>
    %141 = arith.subf %137, %140 : vector<8x8xf32>
    %142 = math.exp %141 : vector<8x8xf32>
    %cst_49 = arith.constant dense<0.000000e+00> : vector<8xf32>
    %143 = vector.multi_reduction <add>, %142, %cst_49 [1] : vector<8x8xf32> to vector<8xf32>
    %144 = vector.shape_cast %143 : vector<8xf32> to vector<8x1xf32>
    %145 = arith.truncf %142 : vector<8x8xf32> to vector<8x8xbf16>
    %cst_50 = arith.constant dense<0.000000e+00> : vector<8x8xf32>
    %146 = tpu.matmul %145, %134, %cst_50 {dimension_numbers = #tpu.dot_dimension_numbers<[1], [0], [0], [1], [0, 0, 1, 1], [], []>} : vector<8x8xbf16>, vector<8x8xbf16>, vector<8x8xf32> -> vector<8x8xf32>
    %147 = tpu.reciprocal %144 {approx = true} : vector<8x1xf32> -> vector<8x1xf32>
    %148 = vector.broadcast %147 : vector<8x1xf32> to vector<8x8xf32>
    %149 = arith.mulf %146, %148 : vector<8x8xf32>
    %150 = arith.truncf %149 : vector<8x8xf32> to vector<8x8xbf16>
    %151 = vector.extract_strided_slice %49 {offsets = [24, 0], sizes = [8, 32], strides = [1, 1]} : vector<32x32xf32> to vector<8x32xf32>
    %152 = arith.truncf %151 : vector<8x32xf32> to vector<8x32xbf16>
    %cst_51 = arith.constant dense<0.000000e+00> : vector<8x32xf32>
    %153 = tpu.matmul %150, %152, %cst_51 {dimension_numbers = #tpu.dot_dimension_numbers<[1], [0], [0], [1], [0, 0, 1, 1], [], []>} : vector<8x8xbf16>, vector<8x32xbf16>, vector<8x32xf32> -> vector<8x32xf32>
    %154 = arith.addf %128, %153 : vector<8x32xf32>
    %c0_52 = arith.constant 0 : index
    %c0_53 = arith.constant 0 : index
    %c0_54 = arith.constant 0 : index
    %155 = vector.load %arg14[%c0_52, %c0_53, %c0_54] : memref<2x1x32xf32, #tpu.memory_space<vmem>>, vector<1x1x32xf32>
    %156 = vector.shape_cast %155 : vector<1x1x32xf32> to vector<1x32xf32>
    %157 = vector.broadcast %156 : vector<1x32xf32> to vector<8x32xf32>
    %158 = arith.addf %154, %157 : vector<8x32xf32>
    %159 = arith.addf %34, %158 : vector<8x32xf32>
    %c0_55 = arith.constant 0 : index
    %c0_56 = arith.constant 0 : index
    %c0_57 = arith.constant 0 : index
    %160 = vector.load %arg15[%c0_55, %c0_56, %c0_57] : memref<2x1x32xf32, #tpu.memory_space<vmem>>, vector<1x1x32xf32>
    %161 = vector.shape_cast %160 : vector<1x1x32xf32> to vector<1x32xf32>
    %c0_58 = arith.constant 0 : index
    %c0_59 = arith.constant 0 : index
    %c0_60 = arith.constant 0 : index
    %162 = vector.load %arg16[%c0_58, %c0_59, %c0_60] : memref<2x1x32xf32, #tpu.memory_space<vmem>>, vector<1x1x32xf32>
    %163 = vector.shape_cast %162 : vector<1x1x32xf32> to vector<1x32xf32>
    %cst_61 = arith.constant dense<0.000000e+00> : vector<8xf32>
    %164 = vector.multi_reduction <add>, %159, %cst_61 [1] : vector<8x32xf32> to vector<8xf32>
    %165 = vector.shape_cast %164 : vector<8xf32> to vector<8x1xf32>
    %cst_62 = arith.constant 3.200000e+01 : f32
    %166 = vector.broadcast %cst_62 : f32 to vector<8x1xf32>
    %167 = arith.divf %165, %166 : vector<8x1xf32>
    %168 = vector.broadcast %167 : vector<8x1xf32> to vector<8x32xf32>
    %169 = arith.subf %159, %168 : vector<8x32xf32>
    %170 = arith.mulf %169, %169 : vector<8x32xf32>
    %cst_63 = arith.constant dense<0.000000e+00> : vector<8xf32>
    %171 = vector.multi_reduction <add>, %170, %cst_63 [1] : vector<8x32xf32> to vector<8xf32>
    %172 = vector.shape_cast %171 : vector<8xf32> to vector<8x1xf32>
    %cst_64 = arith.constant 3.200000e+01 : f32
    %173 = vector.broadcast %cst_64 : f32 to vector<8x1xf32>
    %174 = arith.divf %172, %173 : vector<8x1xf32>
    %cst_65 = arith.constant 9.99999974E-6 : f32
    %175 = vector.broadcast %cst_65 : f32 to vector<8x1xf32>
    %176 = arith.addf %174, %175 : vector<8x1xf32>
    %177 = math.rsqrt %176 : vector<8x1xf32>
    %178 = vector.broadcast %177 : vector<8x1xf32> to vector<8x32xf32>
    %179 = arith.mulf %169, %178 : vector<8x32xf32>
    %180 = vector.broadcast %161 : vector<1x32xf32> to vector<8x32xf32>
    %181 = arith.mulf %179, %180 : vector<8x32xf32>
    %182 = vector.broadcast %163 : vector<1x32xf32> to vector<8x32xf32>
    %183 = arith.addf %181, %182 : vector<8x32xf32>
    %c0_66 = arith.constant 0 : index
    %c0_67 = arith.constant 0 : index
    %c0_68 = arith.constant 0 : index
    %184 = vector.load %arg17[%c0_66, %c0_67, %c0_68] : memref<2x32x64xbf16, #tpu.memory_space<vmem>>, vector<1x32x64xbf16>
    %185 = vector.shape_cast %184 : vector<1x32x64xbf16> to vector<32x64xbf16>
    %186 = arith.truncf %183 : vector<8x32xf32> to vector<8x32xbf16>
    %cst_69 = arith.constant dense<0.000000e+00> : vector<8x64xf32>
    %187 = tpu.matmul %186, %185, %cst_69 {dimension_numbers = #tpu.dot_dimension_numbers<[1], [0], [0], [1], [0, 0, 1, 1], [], []>} : vector<8x32xbf16>, vector<32x64xbf16>, vector<8x64xf32> -> vector<8x64xf32>
    %c0_70 = arith.constant 0 : index
    %c0_71 = arith.constant 0 : index
    %c0_72 = arith.constant 0 : index
    %188 = vector.load %arg18[%c0_70, %c0_71, %c0_72] : memref<2x1x64xf32, #tpu.memory_space<vmem>>, vector<1x1x64xf32>
    %189 = vector.shape_cast %188 : vector<1x1x64xf32> to vector<1x64xf32>
    %190 = vector.broadcast %189 : vector<1x64xf32> to vector<8x64xf32>
    %191 = arith.addf %187, %190 : vector<8x64xf32>
    %cst_73 = arith.constant 0.000000e+00 : f32
    %192 = vector.broadcast %cst_73 : f32 to vector<8x64xf32>
    %193 = arith.maximumf %191, %192 : vector<8x64xf32>
    %c0_74 = arith.constant 0 : index
    %c0_75 = arith.constant 0 : index
    %c0_76 = arith.constant 0 : index
    %194 = vector.load %arg19[%c0_74, %c0_75, %c0_76] : memref<2x64x32xbf16, #tpu.memory_space<vmem>>, vector<1x64x32xbf16>
    %195 = vector.shape_cast %194 : vector<1x64x32xbf16> to vector<64x32xbf16>
    %196 = arith.truncf %193 : vector<8x64xf32> to vector<8x64xbf16>
    %cst_77 = arith.constant dense<0.000000e+00> : vector<8x32xf32>
    %197 = tpu.matmul %196, %195, %cst_77 {dimension_numbers = #tpu.dot_dimension_numbers<[1], [0], [0], [1], [0, 0, 1, 1], [], []>} : vector<8x64xbf16>, vector<64x32xbf16>, vector<8x32xf32> -> vector<8x32xf32>
    %c0_78 = arith.constant 0 : index
    %c0_79 = arith.constant 0 : index
    %c0_80 = arith.constant 0 : index
    %198 = vector.load %arg20[%c0_78, %c0_79, %c0_80] : memref<2x1x32xf32, #tpu.memory_space<vmem>>, vector<1x1x32xf32>
    %199 = vector.shape_cast %198 : vector<1x1x32xf32> to vector<1x32xf32>
    %200 = vector.broadcast %199 : vector<1x32xf32> to vector<8x32xf32>
    %201 = arith.addf %197, %200 : vector<8x32xf32>
    %202 = arith.addf %183, %201 : vector<8x32xf32>
    %c0_81 = arith.constant 0 : index
    %c0_82 = arith.constant 0 : index
    %c0_83 = arith.constant 0 : index
    %203 = vector.load %arg21[%c0_81, %c0_82, %c0_83] : memref<2x1x32xf32, #tpu.memory_space<vmem>>, vector<1x1x32xf32>
    %204 = vector.shape_cast %203 : vector<1x1x32xf32> to vector<1x32xf32>
    %c0_84 = arith.constant 0 : index
    %c0_85 = arith.constant 0 : index
    %c0_86 = arith.constant 0 : index
    %205 = vector.load %arg22[%c0_84, %c0_85, %c0_86] : memref<2x1x32xf32, #tpu.memory_space<vmem>>, vector<1x1x32xf32>
    %206 = vector.shape_cast %205 : vector<1x1x32xf32> to vector<1x32xf32>
    %cst_87 = arith.constant dense<0.000000e+00> : vector<8xf32>
    %207 = vector.multi_reduction <add>, %202, %cst_87 [1] : vector<8x32xf32> to vector<8xf32>
    %208 = vector.shape_cast %207 : vector<8xf32> to vector<8x1xf32>
    %cst_88 = arith.constant 3.200000e+01 : f32
    %209 = vector.broadcast %cst_88 : f32 to vector<8x1xf32>
    %210 = arith.divf %208, %209 : vector<8x1xf32>
    %211 = vector.broadcast %210 : vector<8x1xf32> to vector<8x32xf32>
    %212 = arith.subf %202, %211 : vector<8x32xf32>
    %213 = arith.mulf %212, %212 : vector<8x32xf32>
    %cst_89 = arith.constant dense<0.000000e+00> : vector<8xf32>
    %214 = vector.multi_reduction <add>, %213, %cst_89 [1] : vector<8x32xf32> to vector<8xf32>
    %215 = vector.shape_cast %214 : vector<8xf32> to vector<8x1xf32>
    %cst_90 = arith.constant 3.200000e+01 : f32
    %216 = vector.broadcast %cst_90 : f32 to vector<8x1xf32>
    %217 = arith.divf %215, %216 : vector<8x1xf32>
    %cst_91 = arith.constant 9.99999974E-6 : f32
    %218 = vector.broadcast %cst_91 : f32 to vector<8x1xf32>
    %219 = arith.addf %217, %218 : vector<8x1xf32>
    %220 = math.rsqrt %219 : vector<8x1xf32>
    %221 = vector.broadcast %220 : vector<8x1xf32> to vector<8x32xf32>
    %222 = arith.mulf %212, %221 : vector<8x32xf32>
    %223 = vector.broadcast %204 : vector<1x32xf32> to vector<8x32xf32>
    %224 = arith.mulf %222, %223 : vector<8x32xf32>
    %225 = vector.broadcast %206 : vector<1x32xf32> to vector<8x32xf32>
    %226 = arith.addf %224, %225 : vector<8x32xf32>
    %c1 = arith.constant 1 : index
    %c0_92 = arith.constant 0 : index
    %c0_93 = arith.constant 0 : index
    %227 = vector.load %arg11[%c1, %c0_92, %c0_93] : memref<2x32x96xbf16, #tpu.memory_space<vmem>>, vector<1x32x96xbf16>
    %228 = vector.shape_cast %227 : vector<1x32x96xbf16> to vector<32x96xbf16>
    %229 = arith.truncf %226 : vector<8x32xf32> to vector<8x32xbf16>
    %cst_94 = arith.constant dense<0.000000e+00> : vector<8x96xf32>
    %230 = tpu.matmul %229, %228, %cst_94 {dimension_numbers = #tpu.dot_dimension_numbers<[1], [0], [0], [1], [0, 0, 1, 1], [], []>} : vector<8x32xbf16>, vector<32x96xbf16>, vector<8x96xf32> -> vector<8x96xf32>
    %c1_95 = arith.constant 1 : index
    %c0_96 = arith.constant 0 : index
    %c0_97 = arith.constant 0 : index
    %231 = vector.load %arg12[%c1_95, %c0_96, %c0_97] : memref<2x1x96xf32, #tpu.memory_space<vmem>>, vector<1x1x96xf32>
    %232 = vector.shape_cast %231 : vector<1x1x96xf32> to vector<1x96xf32>
    %233 = vector.broadcast %232 : vector<1x96xf32> to vector<8x96xf32>
    %234 = arith.addf %230, %233 : vector<8x96xf32>
    %235 = vector.extract_strided_slice %234 {offsets = [0, 0], sizes = [8, 32], strides = [1, 1]} : vector<8x96xf32> to vector<8x32xf32>
    %cst_98 = arith.constant 0.353553385 : f32
    %236 = vector.broadcast %cst_98 : f32 to vector<8x32xf32>
    %237 = arith.mulf %235, %236 : vector<8x32xf32>
    %238 = vector.extract_strided_slice %234 {offsets = [0, 32], sizes = [8, 32], strides = [1, 1]} : vector<8x96xf32> to vector<8x32xf32>
    %239 = vector.extract_strided_slice %234 {offsets = [0, 64], sizes = [8, 32], strides = [1, 1]} : vector<8x96xf32> to vector<8x32xf32>
    %c1_99 = arith.constant 1 : index
    %c0_100 = arith.constant 0 : index
    %c0_101 = arith.constant 0 : index
    %240 = vector.load %arg13[%c1_99, %c0_100, %c0_101] : memref<2x32x32xf32, #tpu.memory_space<vmem>>, vector<1x32x32xf32>
    %241 = vector.shape_cast %240 : vector<1x32x32xf32> to vector<32x32xf32>
    %cst_102 = arith.constant 0.000000e+00 : f32
    %242 = vector.broadcast %cst_102 : f32 to vector<8x32xf32>
    %243 = vector.extract_strided_slice %237 {offsets = [0, 0], sizes = [8, 8], strides = [1, 1]} : vector<8x32xf32> to vector<8x8xf32>
    %244 = arith.truncf %243 : vector<8x8xf32> to vector<8x8xbf16>
    %245 = vector.extract_strided_slice %238 {offsets = [0, 0], sizes = [8, 8], strides = [1, 1]} : vector<8x32xf32> to vector<8x8xf32>
    %246 = arith.truncf %245 : vector<8x8xf32> to vector<8x8xbf16>
    %247 = vector.extract_strided_slice %239 {offsets = [0, 0], sizes = [8, 8], strides = [1, 1]} : vector<8x32xf32> to vector<8x8xf32>
    %248 = arith.truncf %247 : vector<8x8xf32> to vector<8x8xbf16>
    %cst_103 = arith.constant dense<0.000000e+00> : vector<8x8xf32>
    %249 = tpu.matmul %244, %246, %cst_103 {dimension_numbers = #tpu.dot_dimension_numbers<[1], [1], [0], [0], [0, 0, 1, 0], [], []>} : vector<8x8xbf16>, vector<8x8xbf16>, vector<8x8xf32> -> vector<8x8xf32>
    %250 = vector.broadcast %1 : vector<1x8xf32> to vector<8x8xf32>
    %251 = arith.addf %249, %250 : vector<8x8xf32>
    %cst_104 = arith.constant dense<0xFF800000> : vector<8xf32>
    %252 = vector.multi_reduction <maximumf>, %251, %cst_104 [1] : vector<8x8xf32> to vector<8xf32>
    %253 = vector.shape_cast %252 : vector<8xf32> to vector<8x1xf32>
    %254 = vector.broadcast %253 : vector<8x1xf32> to vector<8x8xf32>
    %255 = arith.subf %251, %254 : vector<8x8xf32>
    %256 = math.exp %255 : vector<8x8xf32>
    %cst_105 = arith.constant dense<0.000000e+00> : vector<8xf32>
    %257 = vector.multi_reduction <add>, %256, %cst_105 [1] : vector<8x8xf32> to vector<8xf32>
    %258 = vector.shape_cast %257 : vector<8xf32> to vector<8x1xf32>
    %259 = arith.truncf %256 : vector<8x8xf32> to vector<8x8xbf16>
    %cst_106 = arith.constant dense<0.000000e+00> : vector<8x8xf32>
    %260 = tpu.matmul %259, %248, %cst_106 {dimension_numbers = #tpu.dot_dimension_numbers<[1], [0], [0], [1], [0, 0, 1, 1], [], []>} : vector<8x8xbf16>, vector<8x8xbf16>, vector<8x8xf32> -> vector<8x8xf32>
    %261 = tpu.reciprocal %258 {approx = true} : vector<8x1xf32> -> vector<8x1xf32>
    %262 = vector.broadcast %261 : vector<8x1xf32> to vector<8x8xf32>
    %263 = arith.mulf %260, %262 : vector<8x8xf32>
    %264 = arith.truncf %263 : vector<8x8xf32> to vector<8x8xbf16>
    %265 = vector.extract_strided_slice %241 {offsets = [0, 0], sizes = [8, 32], strides = [1, 1]} : vector<32x32xf32> to vector<8x32xf32>
    %266 = arith.truncf %265 : vector<8x32xf32> to vector<8x32xbf16>
    %cst_107 = arith.constant dense<0.000000e+00> : vector<8x32xf32>
    %267 = tpu.matmul %264, %266, %cst_107 {dimension_numbers = #tpu.dot_dimension_numbers<[1], [0], [0], [1], [0, 0, 1, 1], [], []>} : vector<8x8xbf16>, vector<8x32xbf16>, vector<8x32xf32> -> vector<8x32xf32>
    %268 = arith.addf %242, %267 : vector<8x32xf32>
    %269 = vector.extract_strided_slice %237 {offsets = [0, 8], sizes = [8, 8], strides = [1, 1]} : vector<8x32xf32> to vector<8x8xf32>
    %270 = arith.truncf %269 : vector<8x8xf32> to vector<8x8xbf16>
    %271 = vector.extract_strided_slice %238 {offsets = [0, 8], sizes = [8, 8], strides = [1, 1]} : vector<8x32xf32> to vector<8x8xf32>
    %272 = arith.truncf %271 : vector<8x8xf32> to vector<8x8xbf16>
    %273 = vector.extract_strided_slice %239 {offsets = [0, 8], sizes = [8, 8], strides = [1, 1]} : vector<8x32xf32> to vector<8x8xf32>
    %274 = arith.truncf %273 : vector<8x8xf32> to vector<8x8xbf16>
    %cst_108 = arith.constant dense<0.000000e+00> : vector<8x8xf32>
    %275 = tpu.matmul %270, %272, %cst_108 {dimension_numbers = #tpu.dot_dimension_numbers<[1], [1], [0], [0], [0, 0, 1, 0], [], []>} : vector<8x8xbf16>, vector<8x8xbf16>, vector<8x8xf32> -> vector<8x8xf32>
    %276 = vector.broadcast %1 : vector<1x8xf32> to vector<8x8xf32>
    %277 = arith.addf %275, %276 : vector<8x8xf32>
    %cst_109 = arith.constant dense<0xFF800000> : vector<8xf32>
    %278 = vector.multi_reduction <maximumf>, %277, %cst_109 [1] : vector<8x8xf32> to vector<8xf32>
    %279 = vector.shape_cast %278 : vector<8xf32> to vector<8x1xf32>
    %280 = vector.broadcast %279 : vector<8x1xf32> to vector<8x8xf32>
    %281 = arith.subf %277, %280 : vector<8x8xf32>
    %282 = math.exp %281 : vector<8x8xf32>
    %cst_110 = arith.constant dense<0.000000e+00> : vector<8xf32>
    %283 = vector.multi_reduction <add>, %282, %cst_110 [1] : vector<8x8xf32> to vector<8xf32>
    %284 = vector.shape_cast %283 : vector<8xf32> to vector<8x1xf32>
    %285 = arith.truncf %282 : vector<8x8xf32> to vector<8x8xbf16>
    %cst_111 = arith.constant dense<0.000000e+00> : vector<8x8xf32>
    %286 = tpu.matmul %285, %274, %cst_111 {dimension_numbers = #tpu.dot_dimension_numbers<[1], [0], [0], [1], [0, 0, 1, 1], [], []>} : vector<8x8xbf16>, vector<8x8xbf16>, vector<8x8xf32> -> vector<8x8xf32>
    %287 = tpu.reciprocal %284 {approx = true} : vector<8x1xf32> -> vector<8x1xf32>
    %288 = vector.broadcast %287 : vector<8x1xf32> to vector<8x8xf32>
    %289 = arith.mulf %286, %288 : vector<8x8xf32>
    %290 = arith.truncf %289 : vector<8x8xf32> to vector<8x8xbf16>
    %291 = vector.extract_strided_slice %241 {offsets = [8, 0], sizes = [8, 32], strides = [1, 1]} : vector<32x32xf32> to vector<8x32xf32>
    %292 = arith.truncf %291 : vector<8x32xf32> to vector<8x32xbf16>
    %cst_112 = arith.constant dense<0.000000e+00> : vector<8x32xf32>
    %293 = tpu.matmul %290, %292, %cst_112 {dimension_numbers = #tpu.dot_dimension_numbers<[1], [0], [0], [1], [0, 0, 1, 1], [], []>} : vector<8x8xbf16>, vector<8x32xbf16>, vector<8x32xf32> -> vector<8x32xf32>
    %294 = arith.addf %268, %293 : vector<8x32xf32>
    %295 = vector.extract_strided_slice %237 {offsets = [0, 16], sizes = [8, 8], strides = [1, 1]} : vector<8x32xf32> to vector<8x8xf32>
    %296 = arith.truncf %295 : vector<8x8xf32> to vector<8x8xbf16>
    %297 = vector.extract_strided_slice %238 {offsets = [0, 16], sizes = [8, 8], strides = [1, 1]} : vector<8x32xf32> to vector<8x8xf32>
    %298 = arith.truncf %297 : vector<8x8xf32> to vector<8x8xbf16>
    %299 = vector.extract_strided_slice %239 {offsets = [0, 16], sizes = [8, 8], strides = [1, 1]} : vector<8x32xf32> to vector<8x8xf32>
    %300 = arith.truncf %299 : vector<8x8xf32> to vector<8x8xbf16>
    %cst_113 = arith.constant dense<0.000000e+00> : vector<8x8xf32>
    %301 = tpu.matmul %296, %298, %cst_113 {dimension_numbers = #tpu.dot_dimension_numbers<[1], [1], [0], [0], [0, 0, 1, 0], [], []>} : vector<8x8xbf16>, vector<8x8xbf16>, vector<8x8xf32> -> vector<8x8xf32>
    %302 = vector.broadcast %1 : vector<1x8xf32> to vector<8x8xf32>
    %303 = arith.addf %301, %302 : vector<8x8xf32>
    %cst_114 = arith.constant dense<0xFF800000> : vector<8xf32>
    %304 = vector.multi_reduction <maximumf>, %303, %cst_114 [1] : vector<8x8xf32> to vector<8xf32>
    %305 = vector.shape_cast %304 : vector<8xf32> to vector<8x1xf32>
    %306 = vector.broadcast %305 : vector<8x1xf32> to vector<8x8xf32>
    %307 = arith.subf %303, %306 : vector<8x8xf32>
    %308 = math.exp %307 : vector<8x8xf32>
    %cst_115 = arith.constant dense<0.000000e+00> : vector<8xf32>
    %309 = vector.multi_reduction <add>, %308, %cst_115 [1] : vector<8x8xf32> to vector<8xf32>
    %310 = vector.shape_cast %309 : vector<8xf32> to vector<8x1xf32>
    %311 = arith.truncf %308 : vector<8x8xf32> to vector<8x8xbf16>
    %cst_116 = arith.constant dense<0.000000e+00> : vector<8x8xf32>
    %312 = tpu.matmul %311, %300, %cst_116 {dimension_numbers = #tpu.dot_dimension_numbers<[1], [0], [0], [1], [0, 0, 1, 1], [], []>} : vector<8x8xbf16>, vector<8x8xbf16>, vector<8x8xf32> -> vector<8x8xf32>
    %313 = tpu.reciprocal %310 {approx = true} : vector<8x1xf32> -> vector<8x1xf32>
    %314 = vector.broadcast %313 : vector<8x1xf32> to vector<8x8xf32>
    %315 = arith.mulf %312, %314 : vector<8x8xf32>
    %316 = arith.truncf %315 : vector<8x8xf32> to vector<8x8xbf16>
    %317 = vector.extract_strided_slice %241 {offsets = [16, 0], sizes = [8, 32], strides = [1, 1]} : vector<32x32xf32> to vector<8x32xf32>
    %318 = arith.truncf %317 : vector<8x32xf32> to vector<8x32xbf16>
    %cst_117 = arith.constant dense<0.000000e+00> : vector<8x32xf32>
    %319 = tpu.matmul %316, %318, %cst_117 {dimension_numbers = #tpu.dot_dimension_numbers<[1], [0], [0], [1], [0, 0, 1, 1], [], []>} : vector<8x8xbf16>, vector<8x32xbf16>, vector<8x32xf32> -> vector<8x32xf32>
    %320 = arith.addf %294, %319 : vector<8x32xf32>
    %321 = vector.extract_strided_slice %237 {offsets = [0, 24], sizes = [8, 8], strides = [1, 1]} : vector<8x32xf32> to vector<8x8xf32>
    %322 = arith.truncf %321 : vector<8x8xf32> to vector<8x8xbf16>
    %323 = vector.extract_strided_slice %238 {offsets = [0, 24], sizes = [8, 8], strides = [1, 1]} : vector<8x32xf32> to vector<8x8xf32>
    %324 = arith.truncf %323 : vector<8x8xf32> to vector<8x8xbf16>
    %325 = vector.extract_strided_slice %239 {offsets = [0, 24], sizes = [8, 8], strides = [1, 1]} : vector<8x32xf32> to vector<8x8xf32>
    %326 = arith.truncf %325 : vector<8x8xf32> to vector<8x8xbf16>
    %cst_118 = arith.constant dense<0.000000e+00> : vector<8x8xf32>
    %327 = tpu.matmul %322, %324, %cst_118 {dimension_numbers = #tpu.dot_dimension_numbers<[1], [1], [0], [0], [0, 0, 1, 0], [], []>} : vector<8x8xbf16>, vector<8x8xbf16>, vector<8x8xf32> -> vector<8x8xf32>
    %328 = vector.broadcast %1 : vector<1x8xf32> to vector<8x8xf32>
    %329 = arith.addf %327, %328 : vector<8x8xf32>
    %cst_119 = arith.constant dense<0xFF800000> : vector<8xf32>
    %330 = vector.multi_reduction <maximumf>, %329, %cst_119 [1] : vector<8x8xf32> to vector<8xf32>
    %331 = vector.shape_cast %330 : vector<8xf32> to vector<8x1xf32>
    %332 = vector.broadcast %331 : vector<8x1xf32> to vector<8x8xf32>
    %333 = arith.subf %329, %332 : vector<8x8xf32>
    %334 = math.exp %333 : vector<8x8xf32>
    %cst_120 = arith.constant dense<0.000000e+00> : vector<8xf32>
    %335 = vector.multi_reduction <add>, %334, %cst_120 [1] : vector<8x8xf32> to vector<8xf32>
    %336 = vector.shape_cast %335 : vector<8xf32> to vector<8x1xf32>
    %337 = arith.truncf %334 : vector<8x8xf32> to vector<8x8xbf16>
    %cst_121 = arith.constant dense<0.000000e+00> : vector<8x8xf32>
    %338 = tpu.matmul %337, %326, %cst_121 {dimension_numbers = #tpu.dot_dimension_numbers<[1], [0], [0], [1], [0, 0, 1, 1], [], []>} : vector<8x8xbf16>, vector<8x8xbf16>, vector<8x8xf32> -> vector<8x8xf32>
    %339 = tpu.reciprocal %336 {approx = true} : vector<8x1xf32> -> vector<8x1xf32>
    %340 = vector.broadcast %339 : vector<8x1xf32> to vector<8x8xf32>
    %341 = arith.mulf %338, %340 : vector<8x8xf32>
    %342 = arith.truncf %341 : vector<8x8xf32> to vector<8x8xbf16>
    %343 = vector.extract_strided_slice %241 {offsets = [24, 0], sizes = [8, 32], strides = [1, 1]} : vector<32x32xf32> to vector<8x32xf32>
    %344 = arith.truncf %343 : vector<8x32xf32> to vector<8x32xbf16>
    %cst_122 = arith.constant dense<0.000000e+00> : vector<8x32xf32>
    %345 = tpu.matmul %342, %344, %cst_122 {dimension_numbers = #tpu.dot_dimension_numbers<[1], [0], [0], [1], [0, 0, 1, 1], [], []>} : vector<8x8xbf16>, vector<8x32xbf16>, vector<8x32xf32> -> vector<8x32xf32>
    %346 = arith.addf %320, %345 : vector<8x32xf32>
    %c1_123 = arith.constant 1 : index
    %c0_124 = arith.constant 0 : index
    %c0_125 = arith.constant 0 : index
    %347 = vector.load %arg14[%c1_123, %c0_124, %c0_125] : memref<2x1x32xf32, #tpu.memory_space<vmem>>, vector<1x1x32xf32>
    %348 = vector.shape_cast %347 : vector<1x1x32xf32> to vector<1x32xf32>
    %349 = vector.broadcast %348 : vector<1x32xf32> to vector<8x32xf32>
    %350 = arith.addf %346, %349 : vector<8x32xf32>
    %351 = arith.addf %226, %350 : vector<8x32xf32>
    %c1_126 = arith.constant 1 : index
    %c0_127 = arith.constant 0 : index
    %c0_128 = arith.constant 0 : index
    %352 = vector.load %arg15[%c1_126, %c0_127, %c0_128] : memref<2x1x32xf32, #tpu.memory_space<vmem>>, vector<1x1x32xf32>
    %353 = vector.shape_cast %352 : vector<1x1x32xf32> to vector<1x32xf32>
    %c1_129 = arith.constant 1 : index
    %c0_130 = arith.constant 0 : index
    %c0_131 = arith.constant 0 : index
    %354 = vector.load %arg16[%c1_129, %c0_130, %c0_131] : memref<2x1x32xf32, #tpu.memory_space<vmem>>, vector<1x1x32xf32>
    %355 = vector.shape_cast %354 : vector<1x1x32xf32> to vector<1x32xf32>
    %cst_132 = arith.constant dense<0.000000e+00> : vector<8xf32>
    %356 = vector.multi_reduction <add>, %351, %cst_132 [1] : vector<8x32xf32> to vector<8xf32>
    %357 = vector.shape_cast %356 : vector<8xf32> to vector<8x1xf32>
    %cst_133 = arith.constant 3.200000e+01 : f32
    %358 = vector.broadcast %cst_133 : f32 to vector<8x1xf32>
    %359 = arith.divf %357, %358 : vector<8x1xf32>
    %360 = vector.broadcast %359 : vector<8x1xf32> to vector<8x32xf32>
    %361 = arith.subf %351, %360 : vector<8x32xf32>
    %362 = arith.mulf %361, %361 : vector<8x32xf32>
    %cst_134 = arith.constant dense<0.000000e+00> : vector<8xf32>
    %363 = vector.multi_reduction <add>, %362, %cst_134 [1] : vector<8x32xf32> to vector<8xf32>
    %364 = vector.shape_cast %363 : vector<8xf32> to vector<8x1xf32>
    %cst_135 = arith.constant 3.200000e+01 : f32
    %365 = vector.broadcast %cst_135 : f32 to vector<8x1xf32>
    %366 = arith.divf %364, %365 : vector<8x1xf32>
    %cst_136 = arith.constant 9.99999974E-6 : f32
    %367 = vector.broadcast %cst_136 : f32 to vector<8x1xf32>
    %368 = arith.addf %366, %367 : vector<8x1xf32>
    %369 = math.rsqrt %368 : vector<8x1xf32>
    %370 = vector.broadcast %369 : vector<8x1xf32> to vector<8x32xf32>
    %371 = arith.mulf %361, %370 : vector<8x32xf32>
    %372 = vector.broadcast %353 : vector<1x32xf32> to vector<8x32xf32>
    %373 = arith.mulf %371, %372 : vector<8x32xf32>
    %374 = vector.broadcast %355 : vector<1x32xf32> to vector<8x32xf32>
    %375 = arith.addf %373, %374 : vector<8x32xf32>
    %c1_137 = arith.constant 1 : index
    %c0_138 = arith.constant 0 : index
    %c0_139 = arith.constant 0 : index
    %376 = vector.load %arg17[%c1_137, %c0_138, %c0_139] : memref<2x32x64xbf16, #tpu.memory_space<vmem>>, vector<1x32x64xbf16>
    %377 = vector.shape_cast %376 : vector<1x32x64xbf16> to vector<32x64xbf16>
    %378 = arith.truncf %375 : vector<8x32xf32> to vector<8x32xbf16>
    %cst_140 = arith.constant dense<0.000000e+00> : vector<8x64xf32>
    %379 = tpu.matmul %378, %377, %cst_140 {dimension_numbers = #tpu.dot_dimension_numbers<[1], [0], [0], [1], [0, 0, 1, 1], [], []>} : vector<8x32xbf16>, vector<32x64xbf16>, vector<8x64xf32> -> vector<8x64xf32>
    %c1_141 = arith.constant 1 : index
    %c0_142 = arith.constant 0 : index
    %c0_143 = arith.constant 0 : index
    %380 = vector.load %arg18[%c1_141, %c0_142, %c0_143] : memref<2x1x64xf32, #tpu.memory_space<vmem>>, vector<1x1x64xf32>
    %381 = vector.shape_cast %380 : vector<1x1x64xf32> to vector<1x64xf32>
    %382 = vector.broadcast %381 : vector<1x64xf32> to vector<8x64xf32>
    %383 = arith.addf %379, %382 : vector<8x64xf32>
    %cst_144 = arith.constant 0.000000e+00 : f32
    %384 = vector.broadcast %cst_144 : f32 to vector<8x64xf32>
    %385 = arith.maximumf %383, %384 : vector<8x64xf32>
    %c1_145 = arith.constant 1 : index
    %c0_146 = arith.constant 0 : index
    %c0_147 = arith.constant 0 : index
    %386 = vector.load %arg19[%c1_145, %c0_146, %c0_147] : memref<2x64x32xbf16, #tpu.memory_space<vmem>>, vector<1x64x32xbf16>
    %387 = vector.shape_cast %386 : vector<1x64x32xbf16> to vector<64x32xbf16>
    %388 = arith.truncf %385 : vector<8x64xf32> to vector<8x64xbf16>
    %cst_148 = arith.constant dense<0.000000e+00> : vector<8x32xf32>
    %389 = tpu.matmul %388, %387, %cst_148 {dimension_numbers = #tpu.dot_dimension_numbers<[1], [0], [0], [1], [0, 0, 1, 1], [], []>} : vector<8x64xbf16>, vector<64x32xbf16>, vector<8x32xf32> -> vector<8x32xf32>
    %c1_149 = arith.constant 1 : index
    %c0_150 = arith.constant 0 : index
    %c0_151 = arith.constant 0 : index
    %390 = vector.load %arg20[%c1_149, %c0_150, %c0_151] : memref<2x1x32xf32, #tpu.memory_space<vmem>>, vector<1x1x32xf32>
    %391 = vector.shape_cast %390 : vector<1x1x32xf32> to vector<1x32xf32>
    %392 = vector.broadcast %391 : vector<1x32xf32> to vector<8x32xf32>
    %393 = arith.addf %389, %392 : vector<8x32xf32>
    %394 = arith.addf %375, %393 : vector<8x32xf32>
    %c1_152 = arith.constant 1 : index
    %c0_153 = arith.constant 0 : index
    %c0_154 = arith.constant 0 : index
    %395 = vector.load %arg21[%c1_152, %c0_153, %c0_154] : memref<2x1x32xf32, #tpu.memory_space<vmem>>, vector<1x1x32xf32>
    %396 = vector.shape_cast %395 : vector<1x1x32xf32> to vector<1x32xf32>
    %c1_155 = arith.constant 1 : index
    %c0_156 = arith.constant 0 : index
    %c0_157 = arith.constant 0 : index
    %397 = vector.load %arg22[%c1_155, %c0_156, %c0_157] : memref<2x1x32xf32, #tpu.memory_space<vmem>>, vector<1x1x32xf32>
    %398 = vector.shape_cast %397 : vector<1x1x32xf32> to vector<1x32xf32>
    %cst_158 = arith.constant dense<0.000000e+00> : vector<8xf32>
    %399 = vector.multi_reduction <add>, %394, %cst_158 [1] : vector<8x32xf32> to vector<8xf32>
    %400 = vector.shape_cast %399 : vector<8xf32> to vector<8x1xf32>
    %cst_159 = arith.constant 3.200000e+01 : f32
    %401 = vector.broadcast %cst_159 : f32 to vector<8x1xf32>
    %402 = arith.divf %400, %401 : vector<8x1xf32>
    %403 = vector.broadcast %402 : vector<8x1xf32> to vector<8x32xf32>
    %404 = arith.subf %394, %403 : vector<8x32xf32>
    %405 = arith.mulf %404, %404 : vector<8x32xf32>
    %cst_160 = arith.constant dense<0.000000e+00> : vector<8xf32>
    %406 = vector.multi_reduction <add>, %405, %cst_160 [1] : vector<8x32xf32> to vector<8xf32>
    %407 = vector.shape_cast %406 : vector<8xf32> to vector<8x1xf32>
    %cst_161 = arith.constant 3.200000e+01 : f32
    %408 = vector.broadcast %cst_161 : f32 to vector<8x1xf32>
    %409 = arith.divf %407, %408 : vector<8x1xf32>
    %cst_162 = arith.constant 9.99999974E-6 : f32
    %410 = vector.broadcast %cst_162 : f32 to vector<8x1xf32>
    %411 = arith.addf %409, %410 : vector<8x1xf32>
    %412 = math.rsqrt %411 : vector<8x1xf32>
    %413 = vector.broadcast %412 : vector<8x1xf32> to vector<8x32xf32>
    %414 = arith.mulf %404, %413 : vector<8x32xf32>
    %415 = vector.broadcast %396 : vector<1x32xf32> to vector<8x32xf32>
    %416 = arith.mulf %414, %415 : vector<8x32xf32>
    %417 = vector.broadcast %398 : vector<1x32xf32> to vector<8x32xf32>
    %418 = arith.addf %416, %417 : vector<8x32xf32>
    %c0_163 = arith.constant 0 : index
    %c0_164 = arith.constant 0 : index
    %419 = vector.load %arg23[%c0_163, %c0_164] : memref<1x32xf32, #tpu.memory_space<vmem>>, vector<1x32xf32>
    %c0_165 = arith.constant 0 : index
    %c0_166 = arith.constant 0 : index
    %420 = vector.load %arg24[%c0_165, %c0_166] : memref<1x32xf32, #tpu.memory_space<vmem>>, vector<1x32xf32>
    %cst_167 = arith.constant dense<0.000000e+00> : vector<8xf32>
    %421 = vector.multi_reduction <add>, %418, %cst_167 [1] : vector<8x32xf32> to vector<8xf32>
    %422 = vector.shape_cast %421 : vector<8xf32> to vector<8x1xf32>
    %cst_168 = arith.constant 3.200000e+01 : f32
    %423 = vector.broadcast %cst_168 : f32 to vector<8x1xf32>
    %424 = arith.divf %422, %423 : vector<8x1xf32>
    %425 = vector.broadcast %424 : vector<8x1xf32> to vector<8x32xf32>
    %426 = arith.subf %418, %425 : vector<8x32xf32>
    %427 = arith.mulf %426, %426 : vector<8x32xf32>
    %cst_169 = arith.constant dense<0.000000e+00> : vector<8xf32>
    %428 = vector.multi_reduction <add>, %427, %cst_169 [1] : vector<8x32xf32> to vector<8xf32>
    %429 = vector.shape_cast %428 : vector<8xf32> to vector<8x1xf32>
    %cst_170 = arith.constant 3.200000e+01 : f32
    %430 = vector.broadcast %cst_170 : f32 to vector<8x1xf32>
    %431 = arith.divf %429, %430 : vector<8x1xf32>
    %cst_171 = arith.constant 9.99999974E-6 : f32
    %432 = vector.broadcast %cst_171 : f32 to vector<8x1xf32>
    %433 = arith.addf %431, %432 : vector<8x1xf32>
    %434 = math.rsqrt %433 : vector<8x1xf32>
    %435 = vector.broadcast %434 : vector<8x1xf32> to vector<8x32xf32>
    %436 = arith.mulf %426, %435 : vector<8x32xf32>
    %437 = vector.broadcast %419 : vector<1x32xf32> to vector<8x32xf32>
    %438 = arith.mulf %436, %437 : vector<8x32xf32>
    %439 = vector.broadcast %420 : vector<1x32xf32> to vector<8x32xf32>
    %440 = arith.addf %438, %439 : vector<8x32xf32>
    %c0_172 = arith.constant 0 : index
    %c0_173 = arith.constant 0 : index
    %c0_174 = arith.constant 0 : index
    %441 = vector.load %arg4[%c0_172, %c0_173, %c0_174] : memref<1x1x8xf32, #tpu.memory_space<vmem>>, vector<1x1x8xf32>
    %442 = vector.shape_cast %441 : vector<1x1x8xf32> to vector<1x8xf32>
    %c0_175 = arith.constant 0 : index
    %c0_176 = arith.constant 0 : index
    %443 = vector.load %arg5[%c0_175, %c0_176] : memref<8x8xf32, #tpu.memory_space<vmem>>, vector<8x8xf32>
    %444 = vector.broadcast %442 : vector<1x8xf32> to vector<8x8xf32>
    %445 = arith.addf %444, %443 : vector<8x8xf32>
    %c0_177 = arith.constant 0 : index
    %c0_178 = arith.constant 0 : index
    %c0_179 = arith.constant 0 : index
    %446 = vector.load %arg2[%c0_177, %c0_178, %c0_179] : memref<1x8x32xf32, #tpu.memory_space<vmem>>, vector<1x8x32xf32>
    %447 = vector.shape_cast %446 : vector<1x8x32xf32> to vector<8x32xf32>
    %c0_180 = arith.constant 0 : index
    %c0_181 = arith.constant 0 : index
    %c0_182 = arith.constant 0 : index
    %448 = vector.load %arg25[%c0_180, %c0_181, %c0_182] : memref<2x32x96xbf16, #tpu.memory_space<vmem>>, vector<1x32x96xbf16>
    %449 = vector.shape_cast %448 : vector<1x32x96xbf16> to vector<32x96xbf16>
    %450 = arith.truncf %447 : vector<8x32xf32> to vector<8x32xbf16>
    %cst_183 = arith.constant dense<0.000000e+00> : vector<8x96xf32>
    %451 = tpu.matmul %450, %449, %cst_183 {dimension_numbers = #tpu.dot_dimension_numbers<[1], [0], [0], [1], [0, 0, 1, 1], [], []>} : vector<8x32xbf16>, vector<32x96xbf16>, vector<8x96xf32> -> vector<8x96xf32>
    %c0_184 = arith.constant 0 : index
    %c0_185 = arith.constant 0 : index
    %c0_186 = arith.constant 0 : index
    %452 = vector.load %arg26[%c0_184, %c0_185, %c0_186] : memref<2x1x96xf32, #tpu.memory_space<vmem>>, vector<1x1x96xf32>
    %453 = vector.shape_cast %452 : vector<1x1x96xf32> to vector<1x96xf32>
    %454 = vector.broadcast %453 : vector<1x96xf32> to vector<8x96xf32>
    %455 = arith.addf %451, %454 : vector<8x96xf32>
    %456 = vector.extract_strided_slice %455 {offsets = [0, 0], sizes = [8, 32], strides = [1, 1]} : vector<8x96xf32> to vector<8x32xf32>
    %cst_187 = arith.constant 0.353553385 : f32
    %457 = vector.broadcast %cst_187 : f32 to vector<8x32xf32>
    %458 = arith.mulf %456, %457 : vector<8x32xf32>
    %459 = vector.extract_strided_slice %455 {offsets = [0, 32], sizes = [8, 32], strides = [1, 1]} : vector<8x96xf32> to vector<8x32xf32>
    %460 = vector.extract_strided_slice %455 {offsets = [0, 64], sizes = [8, 32], strides = [1, 1]} : vector<8x96xf32> to vector<8x32xf32>
    %c0_188 = arith.constant 0 : index
    %c0_189 = arith.constant 0 : index
    %c0_190 = arith.constant 0 : index
    %461 = vector.load %arg27[%c0_188, %c0_189, %c0_190] : memref<2x32x32xf32, #tpu.memory_space<vmem>>, vector<1x32x32xf32>
    %462 = vector.shape_cast %461 : vector<1x32x32xf32> to vector<32x32xf32>
    %cst_191 = arith.constant 0.000000e+00 : f32
    %463 = vector.broadcast %cst_191 : f32 to vector<8x32xf32>
    %464 = vector.extract_strided_slice %458 {offsets = [0, 0], sizes = [8, 8], strides = [1, 1]} : vector<8x32xf32> to vector<8x8xf32>
    %465 = arith.truncf %464 : vector<8x8xf32> to vector<8x8xbf16>
    %466 = vector.extract_strided_slice %459 {offsets = [0, 0], sizes = [8, 8], strides = [1, 1]} : vector<8x32xf32> to vector<8x8xf32>
    %467 = arith.truncf %466 : vector<8x8xf32> to vector<8x8xbf16>
    %468 = vector.extract_strided_slice %460 {offsets = [0, 0], sizes = [8, 8], strides = [1, 1]} : vector<8x32xf32> to vector<8x8xf32>
    %469 = arith.truncf %468 : vector<8x8xf32> to vector<8x8xbf16>
    %cst_192 = arith.constant dense<0.000000e+00> : vector<8x8xf32>
    %470 = tpu.matmul %465, %467, %cst_192 {dimension_numbers = #tpu.dot_dimension_numbers<[1], [1], [0], [0], [0, 0, 1, 0], [], []>} : vector<8x8xbf16>, vector<8x8xbf16>, vector<8x8xf32> -> vector<8x8xf32>
    %471 = arith.addf %470, %445 : vector<8x8xf32>
    %cst_193 = arith.constant dense<0xFF800000> : vector<8xf32>
    %472 = vector.multi_reduction <maximumf>, %471, %cst_193 [1] : vector<8x8xf32> to vector<8xf32>
    %473 = vector.shape_cast %472 : vector<8xf32> to vector<8x1xf32>
    %474 = vector.broadcast %473 : vector<8x1xf32> to vector<8x8xf32>
    %475 = arith.subf %471, %474 : vector<8x8xf32>
    %476 = math.exp %475 : vector<8x8xf32>
    %cst_194 = arith.constant dense<0.000000e+00> : vector<8xf32>
    %477 = vector.multi_reduction <add>, %476, %cst_194 [1] : vector<8x8xf32> to vector<8xf32>
    %478 = vector.shape_cast %477 : vector<8xf32> to vector<8x1xf32>
    %479 = arith.truncf %476 : vector<8x8xf32> to vector<8x8xbf16>
    %cst_195 = arith.constant dense<0.000000e+00> : vector<8x8xf32>
    %480 = tpu.matmul %479, %469, %cst_195 {dimension_numbers = #tpu.dot_dimension_numbers<[1], [0], [0], [1], [0, 0, 1, 1], [], []>} : vector<8x8xbf16>, vector<8x8xbf16>, vector<8x8xf32> -> vector<8x8xf32>
    %481 = tpu.reciprocal %478 {approx = true} : vector<8x1xf32> -> vector<8x1xf32>
    %482 = vector.broadcast %481 : vector<8x1xf32> to vector<8x8xf32>
    %483 = arith.mulf %480, %482 : vector<8x8xf32>
    %484 = arith.truncf %483 : vector<8x8xf32> to vector<8x8xbf16>
    %485 = vector.extract_strided_slice %462 {offsets = [0, 0], sizes = [8, 32], strides = [1, 1]} : vector<32x32xf32> to vector<8x32xf32>
    %486 = arith.truncf %485 : vector<8x32xf32> to vector<8x32xbf16>
    %cst_196 = arith.constant dense<0.000000e+00> : vector<8x32xf32>
    %487 = tpu.matmul %484, %486, %cst_196 {dimension_numbers = #tpu.dot_dimension_numbers<[1], [0], [0], [1], [0, 0, 1, 1], [], []>} : vector<8x8xbf16>, vector<8x32xbf16>, vector<8x32xf32> -> vector<8x32xf32>
    %488 = arith.addf %463, %487 : vector<8x32xf32>
    %489 = vector.extract_strided_slice %458 {offsets = [0, 8], sizes = [8, 8], strides = [1, 1]} : vector<8x32xf32> to vector<8x8xf32>
    %490 = arith.truncf %489 : vector<8x8xf32> to vector<8x8xbf16>
    %491 = vector.extract_strided_slice %459 {offsets = [0, 8], sizes = [8, 8], strides = [1, 1]} : vector<8x32xf32> to vector<8x8xf32>
    %492 = arith.truncf %491 : vector<8x8xf32> to vector<8x8xbf16>
    %493 = vector.extract_strided_slice %460 {offsets = [0, 8], sizes = [8, 8], strides = [1, 1]} : vector<8x32xf32> to vector<8x8xf32>
    %494 = arith.truncf %493 : vector<8x8xf32> to vector<8x8xbf16>
    %cst_197 = arith.constant dense<0.000000e+00> : vector<8x8xf32>
    %495 = tpu.matmul %490, %492, %cst_197 {dimension_numbers = #tpu.dot_dimension_numbers<[1], [1], [0], [0], [0, 0, 1, 0], [], []>} : vector<8x8xbf16>, vector<8x8xbf16>, vector<8x8xf32> -> vector<8x8xf32>
    %496 = arith.addf %495, %445 : vector<8x8xf32>
    %cst_198 = arith.constant dense<0xFF800000> : vector<8xf32>
    %497 = vector.multi_reduction <maximumf>, %496, %cst_198 [1] : vector<8x8xf32> to vector<8xf32>
    %498 = vector.shape_cast %497 : vector<8xf32> to vector<8x1xf32>
    %499 = vector.broadcast %498 : vector<8x1xf32> to vector<8x8xf32>
    %500 = arith.subf %496, %499 : vector<8x8xf32>
    %501 = math.exp %500 : vector<8x8xf32>
    %cst_199 = arith.constant dense<0.000000e+00> : vector<8xf32>
    %502 = vector.multi_reduction <add>, %501, %cst_199 [1] : vector<8x8xf32> to vector<8xf32>
    %503 = vector.shape_cast %502 : vector<8xf32> to vector<8x1xf32>
    %504 = arith.truncf %501 : vector<8x8xf32> to vector<8x8xbf16>
    %cst_200 = arith.constant dense<0.000000e+00> : vector<8x8xf32>
    %505 = tpu.matmul %504, %494, %cst_200 {dimension_numbers = #tpu.dot_dimension_numbers<[1], [0], [0], [1], [0, 0, 1, 1], [], []>} : vector<8x8xbf16>, vector<8x8xbf16>, vector<8x8xf32> -> vector<8x8xf32>
    %506 = tpu.reciprocal %503 {approx = true} : vector<8x1xf32> -> vector<8x1xf32>
    %507 = vector.broadcast %506 : vector<8x1xf32> to vector<8x8xf32>
    %508 = arith.mulf %505, %507 : vector<8x8xf32>
    %509 = arith.truncf %508 : vector<8x8xf32> to vector<8x8xbf16>
    %510 = vector.extract_strided_slice %462 {offsets = [8, 0], sizes = [8, 32], strides = [1, 1]} : vector<32x32xf32> to vector<8x32xf32>
    %511 = arith.truncf %510 : vector<8x32xf32> to vector<8x32xbf16>
    %cst_201 = arith.constant dense<0.000000e+00> : vector<8x32xf32>
    %512 = tpu.matmul %509, %511, %cst_201 {dimension_numbers = #tpu.dot_dimension_numbers<[1], [0], [0], [1], [0, 0, 1, 1], [], []>} : vector<8x8xbf16>, vector<8x32xbf16>, vector<8x32xf32> -> vector<8x32xf32>
    %513 = arith.addf %488, %512 : vector<8x32xf32>
    %514 = vector.extract_strided_slice %458 {offsets = [0, 16], sizes = [8, 8], strides = [1, 1]} : vector<8x32xf32> to vector<8x8xf32>
    %515 = arith.truncf %514 : vector<8x8xf32> to vector<8x8xbf16>
    %516 = vector.extract_strided_slice %459 {offsets = [0, 16], sizes = [8, 8], strides = [1, 1]} : vector<8x32xf32> to vector<8x8xf32>
    %517 = arith.truncf %516 : vector<8x8xf32> to vector<8x8xbf16>
    %518 = vector.extract_strided_slice %460 {offsets = [0, 16], sizes = [8, 8], strides = [1, 1]} : vector<8x32xf32> to vector<8x8xf32>
    %519 = arith.truncf %518 : vector<8x8xf32> to vector<8x8xbf16>
    %cst_202 = arith.constant dense<0.000000e+00> : vector<8x8xf32>
    %520 = tpu.matmul %515, %517, %cst_202 {dimension_numbers = #tpu.dot_dimension_numbers<[1], [1], [0], [0], [0, 0, 1, 0], [], []>} : vector<8x8xbf16>, vector<8x8xbf16>, vector<8x8xf32> -> vector<8x8xf32>
    %521 = arith.addf %520, %445 : vector<8x8xf32>
    %cst_203 = arith.constant dense<0xFF800000> : vector<8xf32>
    %522 = vector.multi_reduction <maximumf>, %521, %cst_203 [1] : vector<8x8xf32> to vector<8xf32>
    %523 = vector.shape_cast %522 : vector<8xf32> to vector<8x1xf32>
    %524 = vector.broadcast %523 : vector<8x1xf32> to vector<8x8xf32>
    %525 = arith.subf %521, %524 : vector<8x8xf32>
    %526 = math.exp %525 : vector<8x8xf32>
    %cst_204 = arith.constant dense<0.000000e+00> : vector<8xf32>
    %527 = vector.multi_reduction <add>, %526, %cst_204 [1] : vector<8x8xf32> to vector<8xf32>
    %528 = vector.shape_cast %527 : vector<8xf32> to vector<8x1xf32>
    %529 = arith.truncf %526 : vector<8x8xf32> to vector<8x8xbf16>
    %cst_205 = arith.constant dense<0.000000e+00> : vector<8x8xf32>
    %530 = tpu.matmul %529, %519, %cst_205 {dimension_numbers = #tpu.dot_dimension_numbers<[1], [0], [0], [1], [0, 0, 1, 1], [], []>} : vector<8x8xbf16>, vector<8x8xbf16>, vector<8x8xf32> -> vector<8x8xf32>
    %531 = tpu.reciprocal %528 {approx = true} : vector<8x1xf32> -> vector<8x1xf32>
    %532 = vector.broadcast %531 : vector<8x1xf32> to vector<8x8xf32>
    %533 = arith.mulf %530, %532 : vector<8x8xf32>
    %534 = arith.truncf %533 : vector<8x8xf32> to vector<8x8xbf16>
    %535 = vector.extract_strided_slice %462 {offsets = [16, 0], sizes = [8, 32], strides = [1, 1]} : vector<32x32xf32> to vector<8x32xf32>
    %536 = arith.truncf %535 : vector<8x32xf32> to vector<8x32xbf16>
    %cst_206 = arith.constant dense<0.000000e+00> : vector<8x32xf32>
    %537 = tpu.matmul %534, %536, %cst_206 {dimension_numbers = #tpu.dot_dimension_numbers<[1], [0], [0], [1], [0, 0, 1, 1], [], []>} : vector<8x8xbf16>, vector<8x32xbf16>, vector<8x32xf32> -> vector<8x32xf32>
    %538 = arith.addf %513, %537 : vector<8x32xf32>
    %539 = vector.extract_strided_slice %458 {offsets = [0, 24], sizes = [8, 8], strides = [1, 1]} : vector<8x32xf32> to vector<8x8xf32>
    %540 = arith.truncf %539 : vector<8x8xf32> to vector<8x8xbf16>
    %541 = vector.extract_strided_slice %459 {offsets = [0, 24], sizes = [8, 8], strides = [1, 1]} : vector<8x32xf32> to vector<8x8xf32>
    %542 = arith.truncf %541 : vector<8x8xf32> to vector<8x8xbf16>
    %543 = vector.extract_strided_slice %460 {offsets = [0, 24], sizes = [8, 8], strides = [1, 1]} : vector<8x32xf32> to vector<8x8xf32>
    %544 = arith.truncf %543 : vector<8x8xf32> to vector<8x8xbf16>
    %cst_207 = arith.constant dense<0.000000e+00> : vector<8x8xf32>
    %545 = tpu.matmul %540, %542, %cst_207 {dimension_numbers = #tpu.dot_dimension_numbers<[1], [1], [0], [0], [0, 0, 1, 0], [], []>} : vector<8x8xbf16>, vector<8x8xbf16>, vector<8x8xf32> -> vector<8x8xf32>
    %546 = arith.addf %545, %445 : vector<8x8xf32>
    %cst_208 = arith.constant dense<0xFF800000> : vector<8xf32>
    %547 = vector.multi_reduction <maximumf>, %546, %cst_208 [1] : vector<8x8xf32> to vector<8xf32>
    %548 = vector.shape_cast %547 : vector<8xf32> to vector<8x1xf32>
    %549 = vector.broadcast %548 : vector<8x1xf32> to vector<8x8xf32>
    %550 = arith.subf %546, %549 : vector<8x8xf32>
    %551 = math.exp %550 : vector<8x8xf32>
    %cst_209 = arith.constant dense<0.000000e+00> : vector<8xf32>
    %552 = vector.multi_reduction <add>, %551, %cst_209 [1] : vector<8x8xf32> to vector<8xf32>
    %553 = vector.shape_cast %552 : vector<8xf32> to vector<8x1xf32>
    %554 = arith.truncf %551 : vector<8x8xf32> to vector<8x8xbf16>
    %cst_210 = arith.constant dense<0.000000e+00> : vector<8x8xf32>
    %555 = tpu.matmul %554, %544, %cst_210 {dimension_numbers = #tpu.dot_dimension_numbers<[1], [0], [0], [1], [0, 0, 1, 1], [], []>} : vector<8x8xbf16>, vector<8x8xbf16>, vector<8x8xf32> -> vector<8x8xf32>
    %556 = tpu.reciprocal %553 {approx = true} : vector<8x1xf32> -> vector<8x1xf32>
    %557 = vector.broadcast %556 : vector<8x1xf32> to vector<8x8xf32>
    %558 = arith.mulf %555, %557 : vector<8x8xf32>
    %559 = arith.truncf %558 : vector<8x8xf32> to vector<8x8xbf16>
    %560 = vector.extract_strided_slice %462 {offsets = [24, 0], sizes = [8, 32], strides = [1, 1]} : vector<32x32xf32> to vector<8x32xf32>
    %561 = arith.truncf %560 : vector<8x32xf32> to vector<8x32xbf16>
    %cst_211 = arith.constant dense<0.000000e+00> : vector<8x32xf32>
    %562 = tpu.matmul %559, %561, %cst_211 {dimension_numbers = #tpu.dot_dimension_numbers<[1], [0], [0], [1], [0, 0, 1, 1], [], []>} : vector<8x8xbf16>, vector<8x32xbf16>, vector<8x32xf32> -> vector<8x32xf32>
    %563 = arith.addf %538, %562 : vector<8x32xf32>
    %c0_212 = arith.constant 0 : index
    %c0_213 = arith.constant 0 : index
    %c0_214 = arith.constant 0 : index
    %564 = vector.load %arg28[%c0_212, %c0_213, %c0_214] : memref<2x1x32xf32, #tpu.memory_space<vmem>>, vector<1x1x32xf32>
    %565 = vector.shape_cast %564 : vector<1x1x32xf32> to vector<1x32xf32>
    %566 = vector.broadcast %565 : vector<1x32xf32> to vector<8x32xf32>
    %567 = arith.addf %563, %566 : vector<8x32xf32>
    %568 = arith.addf %447, %567 : vector<8x32xf32>
    %c0_215 = arith.constant 0 : index
    %c0_216 = arith.constant 0 : index
    %c0_217 = arith.constant 0 : index
    %569 = vector.load %arg29[%c0_215, %c0_216, %c0_217] : memref<2x1x32xf32, #tpu.memory_space<vmem>>, vector<1x1x32xf32>
    %570 = vector.shape_cast %569 : vector<1x1x32xf32> to vector<1x32xf32>
    %c0_218 = arith.constant 0 : index
    %c0_219 = arith.constant 0 : index
    %c0_220 = arith.constant 0 : index
    %571 = vector.load %arg30[%c0_218, %c0_219, %c0_220] : memref<2x1x32xf32, #tpu.memory_space<vmem>>, vector<1x1x32xf32>
    %572 = vector.shape_cast %571 : vector<1x1x32xf32> to vector<1x32xf32>
    %cst_221 = arith.constant dense<0.000000e+00> : vector<8xf32>
    %573 = vector.multi_reduction <add>, %568, %cst_221 [1] : vector<8x32xf32> to vector<8xf32>
    %574 = vector.shape_cast %573 : vector<8xf32> to vector<8x1xf32>
    %cst_222 = arith.constant 3.200000e+01 : f32
    %575 = vector.broadcast %cst_222 : f32 to vector<8x1xf32>
    %576 = arith.divf %574, %575 : vector<8x1xf32>
    %577 = vector.broadcast %576 : vector<8x1xf32> to vector<8x32xf32>
    %578 = arith.subf %568, %577 : vector<8x32xf32>
    %579 = arith.mulf %578, %578 : vector<8x32xf32>
    %cst_223 = arith.constant dense<0.000000e+00> : vector<8xf32>
    %580 = vector.multi_reduction <add>, %579, %cst_223 [1] : vector<8x32xf32> to vector<8xf32>
    %581 = vector.shape_cast %580 : vector<8xf32> to vector<8x1xf32>
    %cst_224 = arith.constant 3.200000e+01 : f32
    %582 = vector.broadcast %cst_224 : f32 to vector<8x1xf32>
    %583 = arith.divf %581, %582 : vector<8x1xf32>
    %cst_225 = arith.constant 9.99999974E-6 : f32
    %584 = vector.broadcast %cst_225 : f32 to vector<8x1xf32>
    %585 = arith.addf %583, %584 : vector<8x1xf32>
    %586 = math.rsqrt %585 : vector<8x1xf32>
    %587 = vector.broadcast %586 : vector<8x1xf32> to vector<8x32xf32>
    %588 = arith.mulf %578, %587 : vector<8x32xf32>
    %589 = vector.broadcast %570 : vector<1x32xf32> to vector<8x32xf32>
    %590 = arith.mulf %588, %589 : vector<8x32xf32>
    %591 = vector.broadcast %572 : vector<1x32xf32> to vector<8x32xf32>
    %592 = arith.addf %590, %591 : vector<8x32xf32>
    %c0_226 = arith.constant 0 : index
    %c0_227 = arith.constant 0 : index
    %c0_228 = arith.constant 0 : index
    %593 = vector.load %arg31[%c0_226, %c0_227, %c0_228] : memref<2x32x32xbf16, #tpu.memory_space<vmem>>, vector<1x32x32xbf16>
    %594 = vector.shape_cast %593 : vector<1x32x32xbf16> to vector<32x32xbf16>
    %595 = arith.truncf %592 : vector<8x32xf32> to vector<8x32xbf16>
    %cst_229 = arith.constant dense<0.000000e+00> : vector<8x32xf32>
    %596 = tpu.matmul %595, %594, %cst_229 {dimension_numbers = #tpu.dot_dimension_numbers<[1], [0], [0], [1], [0, 0, 1, 1], [], []>} : vector<8x32xbf16>, vector<32x32xbf16>, vector<8x32xf32> -> vector<8x32xf32>
    %c0_230 = arith.constant 0 : index
    %c0_231 = arith.constant 0 : index
    %c0_232 = arith.constant 0 : index
    %597 = vector.load %arg32[%c0_230, %c0_231, %c0_232] : memref<2x1x32xf32, #tpu.memory_space<vmem>>, vector<1x1x32xf32>
    %598 = vector.shape_cast %597 : vector<1x1x32xf32> to vector<1x32xf32>
    %599 = vector.broadcast %598 : vector<1x32xf32> to vector<8x32xf32>
    %600 = arith.addf %596, %599 : vector<8x32xf32>
    %cst_233 = arith.constant 0.353553385 : f32
    %601 = vector.broadcast %cst_233 : f32 to vector<8x32xf32>
    %602 = arith.mulf %600, %601 : vector<8x32xf32>
    %c0_234 = arith.constant 0 : index
    %c0_235 = arith.constant 0 : index
    %c0_236 = arith.constant 0 : index
    %603 = vector.load %arg33[%c0_234, %c0_235, %c0_236] : memref<2x32x64xbf16, #tpu.memory_space<vmem>>, vector<1x32x64xbf16>
    %604 = vector.shape_cast %603 : vector<1x32x64xbf16> to vector<32x64xbf16>
    %605 = arith.truncf %440 : vector<8x32xf32> to vector<8x32xbf16>
    %cst_237 = arith.constant dense<0.000000e+00> : vector<8x64xf32>
    %606 = tpu.matmul %605, %604, %cst_237 {dimension_numbers = #tpu.dot_dimension_numbers<[1], [0], [0], [1], [0, 0, 1, 1], [], []>} : vector<8x32xbf16>, vector<32x64xbf16>, vector<8x64xf32> -> vector<8x64xf32>
    %c0_238 = arith.constant 0 : index
    %c0_239 = arith.constant 0 : index
    %c0_240 = arith.constant 0 : index
    %607 = vector.load %arg34[%c0_238, %c0_239, %c0_240] : memref<2x1x64xf32, #tpu.memory_space<vmem>>, vector<1x1x64xf32>
    %608 = vector.shape_cast %607 : vector<1x1x64xf32> to vector<1x64xf32>
    %609 = vector.broadcast %608 : vector<1x64xf32> to vector<8x64xf32>
    %610 = arith.addf %606, %609 : vector<8x64xf32>
    %611 = vector.extract_strided_slice %610 {offsets = [0, 0], sizes = [8, 32], strides = [1, 1]} : vector<8x64xf32> to vector<8x32xf32>
    %612 = vector.extract_strided_slice %610 {offsets = [0, 32], sizes = [8, 32], strides = [1, 1]} : vector<8x64xf32> to vector<8x32xf32>
    %c0_241 = arith.constant 0 : index
    %c0_242 = arith.constant 0 : index
    %c0_243 = arith.constant 0 : index
    %613 = vector.load %arg35[%c0_241, %c0_242, %c0_243] : memref<2x32x32xf32, #tpu.memory_space<vmem>>, vector<1x32x32xf32>
    %614 = vector.shape_cast %613 : vector<1x32x32xf32> to vector<32x32xf32>
    %cst_244 = arith.constant 0.000000e+00 : f32
    %615 = vector.broadcast %cst_244 : f32 to vector<8x32xf32>
    %616 = vector.extract_strided_slice %602 {offsets = [0, 0], sizes = [8, 8], strides = [1, 1]} : vector<8x32xf32> to vector<8x8xf32>
    %617 = arith.truncf %616 : vector<8x8xf32> to vector<8x8xbf16>
    %618 = vector.extract_strided_slice %611 {offsets = [0, 0], sizes = [8, 8], strides = [1, 1]} : vector<8x32xf32> to vector<8x8xf32>
    %619 = arith.truncf %618 : vector<8x8xf32> to vector<8x8xbf16>
    %620 = vector.extract_strided_slice %612 {offsets = [0, 0], sizes = [8, 8], strides = [1, 1]} : vector<8x32xf32> to vector<8x8xf32>
    %621 = arith.truncf %620 : vector<8x8xf32> to vector<8x8xbf16>
    %cst_245 = arith.constant dense<0.000000e+00> : vector<8x8xf32>
    %622 = tpu.matmul %617, %619, %cst_245 {dimension_numbers = #tpu.dot_dimension_numbers<[1], [1], [0], [0], [0, 0, 1, 0], [], []>} : vector<8x8xbf16>, vector<8x8xbf16>, vector<8x8xf32> -> vector<8x8xf32>
    %623 = vector.broadcast %1 : vector<1x8xf32> to vector<8x8xf32>
    %624 = arith.addf %622, %623 : vector<8x8xf32>
    %cst_246 = arith.constant dense<0xFF800000> : vector<8xf32>
    %625 = vector.multi_reduction <maximumf>, %624, %cst_246 [1] : vector<8x8xf32> to vector<8xf32>
    %626 = vector.shape_cast %625 : vector<8xf32> to vector<8x1xf32>
    %627 = vector.broadcast %626 : vector<8x1xf32> to vector<8x8xf32>
    %628 = arith.subf %624, %627 : vector<8x8xf32>
    %629 = math.exp %628 : vector<8x8xf32>
    %cst_247 = arith.constant dense<0.000000e+00> : vector<8xf32>
    %630 = vector.multi_reduction <add>, %629, %cst_247 [1] : vector<8x8xf32> to vector<8xf32>
    %631 = vector.shape_cast %630 : vector<8xf32> to vector<8x1xf32>
    %632 = arith.truncf %629 : vector<8x8xf32> to vector<8x8xbf16>
    %cst_248 = arith.constant dense<0.000000e+00> : vector<8x8xf32>
    %633 = tpu.matmul %632, %621, %cst_248 {dimension_numbers = #tpu.dot_dimension_numbers<[1], [0], [0], [1], [0, 0, 1, 1], [], []>} : vector<8x8xbf16>, vector<8x8xbf16>, vector<8x8xf32> -> vector<8x8xf32>
    %634 = tpu.reciprocal %631 {approx = true} : vector<8x1xf32> -> vector<8x1xf32>
    %635 = vector.broadcast %634 : vector<8x1xf32> to vector<8x8xf32>
    %636 = arith.mulf %633, %635 : vector<8x8xf32>
    %637 = arith.truncf %636 : vector<8x8xf32> to vector<8x8xbf16>
    %638 = vector.extract_strided_slice %614 {offsets = [0, 0], sizes = [8, 32], strides = [1, 1]} : vector<32x32xf32> to vector<8x32xf32>
    %639 = arith.truncf %638 : vector<8x32xf32> to vector<8x32xbf16>
    %cst_249 = arith.constant dense<0.000000e+00> : vector<8x32xf32>
    %640 = tpu.matmul %637, %639, %cst_249 {dimension_numbers = #tpu.dot_dimension_numbers<[1], [0], [0], [1], [0, 0, 1, 1], [], []>} : vector<8x8xbf16>, vector<8x32xbf16>, vector<8x32xf32> -> vector<8x32xf32>
    %641 = arith.addf %615, %640 : vector<8x32xf32>
    %642 = vector.extract_strided_slice %602 {offsets = [0, 8], sizes = [8, 8], strides = [1, 1]} : vector<8x32xf32> to vector<8x8xf32>
    %643 = arith.truncf %642 : vector<8x8xf32> to vector<8x8xbf16>
    %644 = vector.extract_strided_slice %611 {offsets = [0, 8], sizes = [8, 8], strides = [1, 1]} : vector<8x32xf32> to vector<8x8xf32>
    %645 = arith.truncf %644 : vector<8x8xf32> to vector<8x8xbf16>
    %646 = vector.extract_strided_slice %612 {offsets = [0, 8], sizes = [8, 8], strides = [1, 1]} : vector<8x32xf32> to vector<8x8xf32>
    %647 = arith.truncf %646 : vector<8x8xf32> to vector<8x8xbf16>
    %cst_250 = arith.constant dense<0.000000e+00> : vector<8x8xf32>
    %648 = tpu.matmul %643, %645, %cst_250 {dimension_numbers = #tpu.dot_dimension_numbers<[1], [1], [0], [0], [0, 0, 1, 0], [], []>} : vector<8x8xbf16>, vector<8x8xbf16>, vector<8x8xf32> -> vector<8x8xf32>
    %649 = vector.broadcast %1 : vector<1x8xf32> to vector<8x8xf32>
    %650 = arith.addf %648, %649 : vector<8x8xf32>
    %cst_251 = arith.constant dense<0xFF800000> : vector<8xf32>
    %651 = vector.multi_reduction <maximumf>, %650, %cst_251 [1] : vector<8x8xf32> to vector<8xf32>
    %652 = vector.shape_cast %651 : vector<8xf32> to vector<8x1xf32>
    %653 = vector.broadcast %652 : vector<8x1xf32> to vector<8x8xf32>
    %654 = arith.subf %650, %653 : vector<8x8xf32>
    %655 = math.exp %654 : vector<8x8xf32>
    %cst_252 = arith.constant dense<0.000000e+00> : vector<8xf32>
    %656 = vector.multi_reduction <add>, %655, %cst_252 [1] : vector<8x8xf32> to vector<8xf32>
    %657 = vector.shape_cast %656 : vector<8xf32> to vector<8x1xf32>
    %658 = arith.truncf %655 : vector<8x8xf32> to vector<8x8xbf16>
    %cst_253 = arith.constant dense<0.000000e+00> : vector<8x8xf32>
    %659 = tpu.matmul %658, %647, %cst_253 {dimension_numbers = #tpu.dot_dimension_numbers<[1], [0], [0], [1], [0, 0, 1, 1], [], []>} : vector<8x8xbf16>, vector<8x8xbf16>, vector<8x8xf32> -> vector<8x8xf32>
    %660 = tpu.reciprocal %657 {approx = true} : vector<8x1xf32> -> vector<8x1xf32>
    %661 = vector.broadcast %660 : vector<8x1xf32> to vector<8x8xf32>
    %662 = arith.mulf %659, %661 : vector<8x8xf32>
    %663 = arith.truncf %662 : vector<8x8xf32> to vector<8x8xbf16>
    %664 = vector.extract_strided_slice %614 {offsets = [8, 0], sizes = [8, 32], strides = [1, 1]} : vector<32x32xf32> to vector<8x32xf32>
    %665 = arith.truncf %664 : vector<8x32xf32> to vector<8x32xbf16>
    %cst_254 = arith.constant dense<0.000000e+00> : vector<8x32xf32>
    %666 = tpu.matmul %663, %665, %cst_254 {dimension_numbers = #tpu.dot_dimension_numbers<[1], [0], [0], [1], [0, 0, 1, 1], [], []>} : vector<8x8xbf16>, vector<8x32xbf16>, vector<8x32xf32> -> vector<8x32xf32>
    %667 = arith.addf %641, %666 : vector<8x32xf32>
    %668 = vector.extract_strided_slice %602 {offsets = [0, 16], sizes = [8, 8], strides = [1, 1]} : vector<8x32xf32> to vector<8x8xf32>
    %669 = arith.truncf %668 : vector<8x8xf32> to vector<8x8xbf16>
    %670 = vector.extract_strided_slice %611 {offsets = [0, 16], sizes = [8, 8], strides = [1, 1]} : vector<8x32xf32> to vector<8x8xf32>
    %671 = arith.truncf %670 : vector<8x8xf32> to vector<8x8xbf16>
    %672 = vector.extract_strided_slice %612 {offsets = [0, 16], sizes = [8, 8], strides = [1, 1]} : vector<8x32xf32> to vector<8x8xf32>
    %673 = arith.truncf %672 : vector<8x8xf32> to vector<8x8xbf16>
    %cst_255 = arith.constant dense<0.000000e+00> : vector<8x8xf32>
    %674 = tpu.matmul %669, %671, %cst_255 {dimension_numbers = #tpu.dot_dimension_numbers<[1], [1], [0], [0], [0, 0, 1, 0], [], []>} : vector<8x8xbf16>, vector<8x8xbf16>, vector<8x8xf32> -> vector<8x8xf32>
    %675 = vector.broadcast %1 : vector<1x8xf32> to vector<8x8xf32>
    %676 = arith.addf %674, %675 : vector<8x8xf32>
    %cst_256 = arith.constant dense<0xFF800000> : vector<8xf32>
    %677 = vector.multi_reduction <maximumf>, %676, %cst_256 [1] : vector<8x8xf32> to vector<8xf32>
    %678 = vector.shape_cast %677 : vector<8xf32> to vector<8x1xf32>
    %679 = vector.broadcast %678 : vector<8x1xf32> to vector<8x8xf32>
    %680 = arith.subf %676, %679 : vector<8x8xf32>
    %681 = math.exp %680 : vector<8x8xf32>
    %cst_257 = arith.constant dense<0.000000e+00> : vector<8xf32>
    %682 = vector.multi_reduction <add>, %681, %cst_257 [1] : vector<8x8xf32> to vector<8xf32>
    %683 = vector.shape_cast %682 : vector<8xf32> to vector<8x1xf32>
    %684 = arith.truncf %681 : vector<8x8xf32> to vector<8x8xbf16>
    %cst_258 = arith.constant dense<0.000000e+00> : vector<8x8xf32>
    %685 = tpu.matmul %684, %673, %cst_258 {dimension_numbers = #tpu.dot_dimension_numbers<[1], [0], [0], [1], [0, 0, 1, 1], [], []>} : vector<8x8xbf16>, vector<8x8xbf16>, vector<8x8xf32> -> vector<8x8xf32>
    %686 = tpu.reciprocal %683 {approx = true} : vector<8x1xf32> -> vector<8x1xf32>
    %687 = vector.broadcast %686 : vector<8x1xf32> to vector<8x8xf32>
    %688 = arith.mulf %685, %687 : vector<8x8xf32>
    %689 = arith.truncf %688 : vector<8x8xf32> to vector<8x8xbf16>
    %690 = vector.extract_strided_slice %614 {offsets = [16, 0], sizes = [8, 32], strides = [1, 1]} : vector<32x32xf32> to vector<8x32xf32>
    %691 = arith.truncf %690 : vector<8x32xf32> to vector<8x32xbf16>
    %cst_259 = arith.constant dense<0.000000e+00> : vector<8x32xf32>
    %692 = tpu.matmul %689, %691, %cst_259 {dimension_numbers = #tpu.dot_dimension_numbers<[1], [0], [0], [1], [0, 0, 1, 1], [], []>} : vector<8x8xbf16>, vector<8x32xbf16>, vector<8x32xf32> -> vector<8x32xf32>
    %693 = arith.addf %667, %692 : vector<8x32xf32>
    %694 = vector.extract_strided_slice %602 {offsets = [0, 24], sizes = [8, 8], strides = [1, 1]} : vector<8x32xf32> to vector<8x8xf32>
    %695 = arith.truncf %694 : vector<8x8xf32> to vector<8x8xbf16>
    %696 = vector.extract_strided_slice %611 {offsets = [0, 24], sizes = [8, 8], strides = [1, 1]} : vector<8x32xf32> to vector<8x8xf32>
    %697 = arith.truncf %696 : vector<8x8xf32> to vector<8x8xbf16>
    %698 = vector.extract_strided_slice %612 {offsets = [0, 24], sizes = [8, 8], strides = [1, 1]} : vector<8x32xf32> to vector<8x8xf32>
    %699 = arith.truncf %698 : vector<8x8xf32> to vector<8x8xbf16>
    %cst_260 = arith.constant dense<0.000000e+00> : vector<8x8xf32>
    %700 = tpu.matmul %695, %697, %cst_260 {dimension_numbers = #tpu.dot_dimension_numbers<[1], [1], [0], [0], [0, 0, 1, 0], [], []>} : vector<8x8xbf16>, vector<8x8xbf16>, vector<8x8xf32> -> vector<8x8xf32>
    %701 = vector.broadcast %1 : vector<1x8xf32> to vector<8x8xf32>
    %702 = arith.addf %700, %701 : vector<8x8xf32>
    %cst_261 = arith.constant dense<0xFF800000> : vector<8xf32>
    %703 = vector.multi_reduction <maximumf>, %702, %cst_261 [1] : vector<8x8xf32> to vector<8xf32>
    %704 = vector.shape_cast %703 : vector<8xf32> to vector<8x1xf32>
    %705 = vector.broadcast %704 : vector<8x1xf32> to vector<8x8xf32>
    %706 = arith.subf %702, %705 : vector<8x8xf32>
    %707 = math.exp %706 : vector<8x8xf32>
    %cst_262 = arith.constant dense<0.000000e+00> : vector<8xf32>
    %708 = vector.multi_reduction <add>, %707, %cst_262 [1] : vector<8x8xf32> to vector<8xf32>
    %709 = vector.shape_cast %708 : vector<8xf32> to vector<8x1xf32>
    %710 = arith.truncf %707 : vector<8x8xf32> to vector<8x8xbf16>
    %cst_263 = arith.constant dense<0.000000e+00> : vector<8x8xf32>
    %711 = tpu.matmul %710, %699, %cst_263 {dimension_numbers = #tpu.dot_dimension_numbers<[1], [0], [0], [1], [0, 0, 1, 1], [], []>} : vector<8x8xbf16>, vector<8x8xbf16>, vector<8x8xf32> -> vector<8x8xf32>
    %712 = tpu.reciprocal %709 {approx = true} : vector<8x1xf32> -> vector<8x1xf32>
    %713 = vector.broadcast %712 : vector<8x1xf32> to vector<8x8xf32>
    %714 = arith.mulf %711, %713 : vector<8x8xf32>
    %715 = arith.truncf %714 : vector<8x8xf32> to vector<8x8xbf16>
    %716 = vector.extract_strided_slice %614 {offsets = [24, 0], sizes = [8, 32], strides = [1, 1]} : vector<32x32xf32> to vector<8x32xf32>
    %717 = arith.truncf %716 : vector<8x32xf32> to vector<8x32xbf16>
    %cst_264 = arith.constant dense<0.000000e+00> : vector<8x32xf32>
    %718 = tpu.matmul %715, %717, %cst_264 {dimension_numbers = #tpu.dot_dimension_numbers<[1], [0], [0], [1], [0, 0, 1, 1], [], []>} : vector<8x8xbf16>, vector<8x32xbf16>, vector<8x32xf32> -> vector<8x32xf32>
    %719 = arith.addf %693, %718 : vector<8x32xf32>
    %c0_265 = arith.constant 0 : index
    %c0_266 = arith.constant 0 : index
    %c0_267 = arith.constant 0 : index
    %720 = vector.load %arg36[%c0_265, %c0_266, %c0_267] : memref<2x1x32xf32, #tpu.memory_space<vmem>>, vector<1x1x32xf32>
    %721 = vector.shape_cast %720 : vector<1x1x32xf32> to vector<1x32xf32>
    %722 = vector.broadcast %721 : vector<1x32xf32> to vector<8x32xf32>
    %723 = arith.addf %719, %722 : vector<8x32xf32>
    %724 = arith.addf %592, %723 : vector<8x32xf32>
    %c0_268 = arith.constant 0 : index
    %c0_269 = arith.constant 0 : index
    %c0_270 = arith.constant 0 : index
    %725 = vector.load %arg37[%c0_268, %c0_269, %c0_270] : memref<2x1x32xf32, #tpu.memory_space<vmem>>, vector<1x1x32xf32>
    %726 = vector.shape_cast %725 : vector<1x1x32xf32> to vector<1x32xf32>
    %c0_271 = arith.constant 0 : index
    %c0_272 = arith.constant 0 : index
    %c0_273 = arith.constant 0 : index
    %727 = vector.load %arg38[%c0_271, %c0_272, %c0_273] : memref<2x1x32xf32, #tpu.memory_space<vmem>>, vector<1x1x32xf32>
    %728 = vector.shape_cast %727 : vector<1x1x32xf32> to vector<1x32xf32>
    %cst_274 = arith.constant dense<0.000000e+00> : vector<8xf32>
    %729 = vector.multi_reduction <add>, %724, %cst_274 [1] : vector<8x32xf32> to vector<8xf32>
    %730 = vector.shape_cast %729 : vector<8xf32> to vector<8x1xf32>
    %cst_275 = arith.constant 3.200000e+01 : f32
    %731 = vector.broadcast %cst_275 : f32 to vector<8x1xf32>
    %732 = arith.divf %730, %731 : vector<8x1xf32>
    %733 = vector.broadcast %732 : vector<8x1xf32> to vector<8x32xf32>
    %734 = arith.subf %724, %733 : vector<8x32xf32>
    %735 = arith.mulf %734, %734 : vector<8x32xf32>
    %cst_276 = arith.constant dense<0.000000e+00> : vector<8xf32>
    %736 = vector.multi_reduction <add>, %735, %cst_276 [1] : vector<8x32xf32> to vector<8xf32>
    %737 = vector.shape_cast %736 : vector<8xf32> to vector<8x1xf32>
    %cst_277 = arith.constant 3.200000e+01 : f32
    %738 = vector.broadcast %cst_277 : f32 to vector<8x1xf32>
    %739 = arith.divf %737, %738 : vector<8x1xf32>
    %cst_278 = arith.constant 9.99999974E-6 : f32
    %740 = vector.broadcast %cst_278 : f32 to vector<8x1xf32>
    %741 = arith.addf %739, %740 : vector<8x1xf32>
    %742 = math.rsqrt %741 : vector<8x1xf32>
    %743 = vector.broadcast %742 : vector<8x1xf32> to vector<8x32xf32>
    %744 = arith.mulf %734, %743 : vector<8x32xf32>
    %745 = vector.broadcast %726 : vector<1x32xf32> to vector<8x32xf32>
    %746 = arith.mulf %744, %745 : vector<8x32xf32>
    %747 = vector.broadcast %728 : vector<1x32xf32> to vector<8x32xf32>
    %748 = arith.addf %746, %747 : vector<8x32xf32>
    %c0_279 = arith.constant 0 : index
    %c0_280 = arith.constant 0 : index
    %c0_281 = arith.constant 0 : index
    %749 = vector.load %arg39[%c0_279, %c0_280, %c0_281] : memref<2x32x64xbf16, #tpu.memory_space<vmem>>, vector<1x32x64xbf16>
    %750 = vector.shape_cast %749 : vector<1x32x64xbf16> to vector<32x64xbf16>
    %751 = arith.truncf %748 : vector<8x32xf32> to vector<8x32xbf16>
    %cst_282 = arith.constant dense<0.000000e+00> : vector<8x64xf32>
    %752 = tpu.matmul %751, %750, %cst_282 {dimension_numbers = #tpu.dot_dimension_numbers<[1], [0], [0], [1], [0, 0, 1, 1], [], []>} : vector<8x32xbf16>, vector<32x64xbf16>, vector<8x64xf32> -> vector<8x64xf32>
    %c0_283 = arith.constant 0 : index
    %c0_284 = arith.constant 0 : index
    %c0_285 = arith.constant 0 : index
    %753 = vector.load %arg40[%c0_283, %c0_284, %c0_285] : memref<2x1x64xf32, #tpu.memory_space<vmem>>, vector<1x1x64xf32>
    %754 = vector.shape_cast %753 : vector<1x1x64xf32> to vector<1x64xf32>
    %755 = vector.broadcast %754 : vector<1x64xf32> to vector<8x64xf32>
    %756 = arith.addf %752, %755 : vector<8x64xf32>
    %cst_286 = arith.constant 0.000000e+00 : f32
    %757 = vector.broadcast %cst_286 : f32 to vector<8x64xf32>
    %758 = arith.maximumf %756, %757 : vector<8x64xf32>
    %c0_287 = arith.constant 0 : index
    %c0_288 = arith.constant 0 : index
    %c0_289 = arith.constant 0 : index
    %759 = vector.load %arg41[%c0_287, %c0_288, %c0_289] : memref<2x64x32xbf16, #tpu.memory_space<vmem>>, vector<1x64x32xbf16>
    %760 = vector.shape_cast %759 : vector<1x64x32xbf16> to vector<64x32xbf16>
    %761 = arith.truncf %758 : vector<8x64xf32> to vector<8x64xbf16>
    %cst_290 = arith.constant dense<0.000000e+00> : vector<8x32xf32>
    %762 = tpu.matmul %761, %760, %cst_290 {dimension_numbers = #tpu.dot_dimension_numbers<[1], [0], [0], [1], [0, 0, 1, 1], [], []>} : vector<8x64xbf16>, vector<64x32xbf16>, vector<8x32xf32> -> vector<8x32xf32>
    %c0_291 = arith.constant 0 : index
    %c0_292 = arith.constant 0 : index
    %c0_293 = arith.constant 0 : index
    %763 = vector.load %arg42[%c0_291, %c0_292, %c0_293] : memref<2x1x32xf32, #tpu.memory_space<vmem>>, vector<1x1x32xf32>
    %764 = vector.shape_cast %763 : vector<1x1x32xf32> to vector<1x32xf32>
    %765 = vector.broadcast %764 : vector<1x32xf32> to vector<8x32xf32>
    %766 = arith.addf %762, %765 : vector<8x32xf32>
    %767 = arith.addf %748, %766 : vector<8x32xf32>
    %c0_294 = arith.constant 0 : index
    %c0_295 = arith.constant 0 : index
    %c0_296 = arith.constant 0 : index
    %768 = vector.load %arg43[%c0_294, %c0_295, %c0_296] : memref<2x1x32xf32, #tpu.memory_space<vmem>>, vector<1x1x32xf32>
    %769 = vector.shape_cast %768 : vector<1x1x32xf32> to vector<1x32xf32>
    %c0_297 = arith.constant 0 : index
    %c0_298 = arith.constant 0 : index
    %c0_299 = arith.constant 0 : index
    %770 = vector.load %arg44[%c0_297, %c0_298, %c0_299] : memref<2x1x32xf32, #tpu.memory_space<vmem>>, vector<1x1x32xf32>
    %771 = vector.shape_cast %770 : vector<1x1x32xf32> to vector<1x32xf32>
    %cst_300 = arith.constant dense<0.000000e+00> : vector<8xf32>
    %772 = vector.multi_reduction <add>, %767, %cst_300 [1] : vector<8x32xf32> to vector<8xf32>
    %773 = vector.shape_cast %772 : vector<8xf32> to vector<8x1xf32>
    %cst_301 = arith.constant 3.200000e+01 : f32
    %774 = vector.broadcast %cst_301 : f32 to vector<8x1xf32>
    %775 = arith.divf %773, %774 : vector<8x1xf32>
    %776 = vector.broadcast %775 : vector<8x1xf32> to vector<8x32xf32>
    %777 = arith.subf %767, %776 : vector<8x32xf32>
    %778 = arith.mulf %777, %777 : vector<8x32xf32>
    %cst_302 = arith.constant dense<0.000000e+00> : vector<8xf32>
    %779 = vector.multi_reduction <add>, %778, %cst_302 [1] : vector<8x32xf32> to vector<8xf32>
    %780 = vector.shape_cast %779 : vector<8xf32> to vector<8x1xf32>
    %cst_303 = arith.constant 3.200000e+01 : f32
    %781 = vector.broadcast %cst_303 : f32 to vector<8x1xf32>
    %782 = arith.divf %780, %781 : vector<8x1xf32>
    %cst_304 = arith.constant 9.99999974E-6 : f32
    %783 = vector.broadcast %cst_304 : f32 to vector<8x1xf32>
    %784 = arith.addf %782, %783 : vector<8x1xf32>
    %785 = math.rsqrt %784 : vector<8x1xf32>
    %786 = vector.broadcast %785 : vector<8x1xf32> to vector<8x32xf32>
    %787 = arith.mulf %777, %786 : vector<8x32xf32>
    %788 = vector.broadcast %769 : vector<1x32xf32> to vector<8x32xf32>
    %789 = arith.mulf %787, %788 : vector<8x32xf32>
    %790 = vector.broadcast %771 : vector<1x32xf32> to vector<8x32xf32>
    %791 = arith.addf %789, %790 : vector<8x32xf32>
    %c1_305 = arith.constant 1 : index
    %c0_306 = arith.constant 0 : index
    %c0_307 = arith.constant 0 : index
    %792 = vector.load %arg25[%c1_305, %c0_306, %c0_307] : memref<2x32x96xbf16, #tpu.memory_space<vmem>>, vector<1x32x96xbf16>
    %793 = vector.shape_cast %792 : vector<1x32x96xbf16> to vector<32x96xbf16>
    %794 = arith.truncf %791 : vector<8x32xf32> to vector<8x32xbf16>
    %cst_308 = arith.constant dense<0.000000e+00> : vector<8x96xf32>
    %795 = tpu.matmul %794, %793, %cst_308 {dimension_numbers = #tpu.dot_dimension_numbers<[1], [0], [0], [1], [0, 0, 1, 1], [], []>} : vector<8x32xbf16>, vector<32x96xbf16>, vector<8x96xf32> -> vector<8x96xf32>
    %c1_309 = arith.constant 1 : index
    %c0_310 = arith.constant 0 : index
    %c0_311 = arith.constant 0 : index
    %796 = vector.load %arg26[%c1_309, %c0_310, %c0_311] : memref<2x1x96xf32, #tpu.memory_space<vmem>>, vector<1x1x96xf32>
    %797 = vector.shape_cast %796 : vector<1x1x96xf32> to vector<1x96xf32>
    %798 = vector.broadcast %797 : vector<1x96xf32> to vector<8x96xf32>
    %799 = arith.addf %795, %798 : vector<8x96xf32>
    %800 = vector.extract_strided_slice %799 {offsets = [0, 0], sizes = [8, 32], strides = [1, 1]} : vector<8x96xf32> to vector<8x32xf32>
    %cst_312 = arith.constant 0.353553385 : f32
    %801 = vector.broadcast %cst_312 : f32 to vector<8x32xf32>
    %802 = arith.mulf %800, %801 : vector<8x32xf32>
    %803 = vector.extract_strided_slice %799 {offsets = [0, 32], sizes = [8, 32], strides = [1, 1]} : vector<8x96xf32> to vector<8x32xf32>
    %804 = vector.extract_strided_slice %799 {offsets = [0, 64], sizes = [8, 32], strides = [1, 1]} : vector<8x96xf32> to vector<8x32xf32>
    %c1_313 = arith.constant 1 : index
    %c0_314 = arith.constant 0 : index
    %c0_315 = arith.constant 0 : index
    %805 = vector.load %arg27[%c1_313, %c0_314, %c0_315] : memref<2x32x32xf32, #tpu.memory_space<vmem>>, vector<1x32x32xf32>
    %806 = vector.shape_cast %805 : vector<1x32x32xf32> to vector<32x32xf32>
    %cst_316 = arith.constant 0.000000e+00 : f32
    %807 = vector.broadcast %cst_316 : f32 to vector<8x32xf32>
    %808 = vector.extract_strided_slice %802 {offsets = [0, 0], sizes = [8, 8], strides = [1, 1]} : vector<8x32xf32> to vector<8x8xf32>
    %809 = arith.truncf %808 : vector<8x8xf32> to vector<8x8xbf16>
    %810 = vector.extract_strided_slice %803 {offsets = [0, 0], sizes = [8, 8], strides = [1, 1]} : vector<8x32xf32> to vector<8x8xf32>
    %811 = arith.truncf %810 : vector<8x8xf32> to vector<8x8xbf16>
    %812 = vector.extract_strided_slice %804 {offsets = [0, 0], sizes = [8, 8], strides = [1, 1]} : vector<8x32xf32> to vector<8x8xf32>
    %813 = arith.truncf %812 : vector<8x8xf32> to vector<8x8xbf16>
    %cst_317 = arith.constant dense<0.000000e+00> : vector<8x8xf32>
    %814 = tpu.matmul %809, %811, %cst_317 {dimension_numbers = #tpu.dot_dimension_numbers<[1], [1], [0], [0], [0, 0, 1, 0], [], []>} : vector<8x8xbf16>, vector<8x8xbf16>, vector<8x8xf32> -> vector<8x8xf32>
    %815 = arith.addf %814, %445 : vector<8x8xf32>
    %cst_318 = arith.constant dense<0xFF800000> : vector<8xf32>
    %816 = vector.multi_reduction <maximumf>, %815, %cst_318 [1] : vector<8x8xf32> to vector<8xf32>
    %817 = vector.shape_cast %816 : vector<8xf32> to vector<8x1xf32>
    %818 = vector.broadcast %817 : vector<8x1xf32> to vector<8x8xf32>
    %819 = arith.subf %815, %818 : vector<8x8xf32>
    %820 = math.exp %819 : vector<8x8xf32>
    %cst_319 = arith.constant dense<0.000000e+00> : vector<8xf32>
    %821 = vector.multi_reduction <add>, %820, %cst_319 [1] : vector<8x8xf32> to vector<8xf32>
    %822 = vector.shape_cast %821 : vector<8xf32> to vector<8x1xf32>
    %823 = arith.truncf %820 : vector<8x8xf32> to vector<8x8xbf16>
    %cst_320 = arith.constant dense<0.000000e+00> : vector<8x8xf32>
    %824 = tpu.matmul %823, %813, %cst_320 {dimension_numbers = #tpu.dot_dimension_numbers<[1], [0], [0], [1], [0, 0, 1, 1], [], []>} : vector<8x8xbf16>, vector<8x8xbf16>, vector<8x8xf32> -> vector<8x8xf32>
    %825 = tpu.reciprocal %822 {approx = true} : vector<8x1xf32> -> vector<8x1xf32>
    %826 = vector.broadcast %825 : vector<8x1xf32> to vector<8x8xf32>
    %827 = arith.mulf %824, %826 : vector<8x8xf32>
    %828 = arith.truncf %827 : vector<8x8xf32> to vector<8x8xbf16>
    %829 = vector.extract_strided_slice %806 {offsets = [0, 0], sizes = [8, 32], strides = [1, 1]} : vector<32x32xf32> to vector<8x32xf32>
    %830 = arith.truncf %829 : vector<8x32xf32> to vector<8x32xbf16>
    %cst_321 = arith.constant dense<0.000000e+00> : vector<8x32xf32>
    %831 = tpu.matmul %828, %830, %cst_321 {dimension_numbers = #tpu.dot_dimension_numbers<[1], [0], [0], [1], [0, 0, 1, 1], [], []>} : vector<8x8xbf16>, vector<8x32xbf16>, vector<8x32xf32> -> vector<8x32xf32>
    %832 = arith.addf %807, %831 : vector<8x32xf32>
    %833 = vector.extract_strided_slice %802 {offsets = [0, 8], sizes = [8, 8], strides = [1, 1]} : vector<8x32xf32> to vector<8x8xf32>
    %834 = arith.truncf %833 : vector<8x8xf32> to vector<8x8xbf16>
    %835 = vector.extract_strided_slice %803 {offsets = [0, 8], sizes = [8, 8], strides = [1, 1]} : vector<8x32xf32> to vector<8x8xf32>
    %836 = arith.truncf %835 : vector<8x8xf32> to vector<8x8xbf16>
    %837 = vector.extract_strided_slice %804 {offsets = [0, 8], sizes = [8, 8], strides = [1, 1]} : vector<8x32xf32> to vector<8x8xf32>
    %838 = arith.truncf %837 : vector<8x8xf32> to vector<8x8xbf16>
    %cst_322 = arith.constant dense<0.000000e+00> : vector<8x8xf32>
    %839 = tpu.matmul %834, %836, %cst_322 {dimension_numbers = #tpu.dot_dimension_numbers<[1], [1], [0], [0], [0, 0, 1, 0], [], []>} : vector<8x8xbf16>, vector<8x8xbf16>, vector<8x8xf32> -> vector<8x8xf32>
    %840 = arith.addf %839, %445 : vector<8x8xf32>
    %cst_323 = arith.constant dense<0xFF800000> : vector<8xf32>
    %841 = vector.multi_reduction <maximumf>, %840, %cst_323 [1] : vector<8x8xf32> to vector<8xf32>
    %842 = vector.shape_cast %841 : vector<8xf32> to vector<8x1xf32>
    %843 = vector.broadcast %842 : vector<8x1xf32> to vector<8x8xf32>
    %844 = arith.subf %840, %843 : vector<8x8xf32>
    %845 = math.exp %844 : vector<8x8xf32>
    %cst_324 = arith.constant dense<0.000000e+00> : vector<8xf32>
    %846 = vector.multi_reduction <add>, %845, %cst_324 [1] : vector<8x8xf32> to vector<8xf32>
    %847 = vector.shape_cast %846 : vector<8xf32> to vector<8x1xf32>
    %848 = arith.truncf %845 : vector<8x8xf32> to vector<8x8xbf16>
    %cst_325 = arith.constant dense<0.000000e+00> : vector<8x8xf32>
    %849 = tpu.matmul %848, %838, %cst_325 {dimension_numbers = #tpu.dot_dimension_numbers<[1], [0], [0], [1], [0, 0, 1, 1], [], []>} : vector<8x8xbf16>, vector<8x8xbf16>, vector<8x8xf32> -> vector<8x8xf32>
    %850 = tpu.reciprocal %847 {approx = true} : vector<8x1xf32> -> vector<8x1xf32>
    %851 = vector.broadcast %850 : vector<8x1xf32> to vector<8x8xf32>
    %852 = arith.mulf %849, %851 : vector<8x8xf32>
    %853 = arith.truncf %852 : vector<8x8xf32> to vector<8x8xbf16>
    %854 = vector.extract_strided_slice %806 {offsets = [8, 0], sizes = [8, 32], strides = [1, 1]} : vector<32x32xf32> to vector<8x32xf32>
    %855 = arith.truncf %854 : vector<8x32xf32> to vector<8x32xbf16>
    %cst_326 = arith.constant dense<0.000000e+00> : vector<8x32xf32>
    %856 = tpu.matmul %853, %855, %cst_326 {dimension_numbers = #tpu.dot_dimension_numbers<[1], [0], [0], [1], [0, 0, 1, 1], [], []>} : vector<8x8xbf16>, vector<8x32xbf16>, vector<8x32xf32> -> vector<8x32xf32>
    %857 = arith.addf %832, %856 : vector<8x32xf32>
    %858 = vector.extract_strided_slice %802 {offsets = [0, 16], sizes = [8, 8], strides = [1, 1]} : vector<8x32xf32> to vector<8x8xf32>
    %859 = arith.truncf %858 : vector<8x8xf32> to vector<8x8xbf16>
    %860 = vector.extract_strided_slice %803 {offsets = [0, 16], sizes = [8, 8], strides = [1, 1]} : vector<8x32xf32> to vector<8x8xf32>
    %861 = arith.truncf %860 : vector<8x8xf32> to vector<8x8xbf16>
    %862 = vector.extract_strided_slice %804 {offsets = [0, 16], sizes = [8, 8], strides = [1, 1]} : vector<8x32xf32> to vector<8x8xf32>
    %863 = arith.truncf %862 : vector<8x8xf32> to vector<8x8xbf16>
    %cst_327 = arith.constant dense<0.000000e+00> : vector<8x8xf32>
    %864 = tpu.matmul %859, %861, %cst_327 {dimension_numbers = #tpu.dot_dimension_numbers<[1], [1], [0], [0], [0, 0, 1, 0], [], []>} : vector<8x8xbf16>, vector<8x8xbf16>, vector<8x8xf32> -> vector<8x8xf32>
    %865 = arith.addf %864, %445 : vector<8x8xf32>
    %cst_328 = arith.constant dense<0xFF800000> : vector<8xf32>
    %866 = vector.multi_reduction <maximumf>, %865, %cst_328 [1] : vector<8x8xf32> to vector<8xf32>
    %867 = vector.shape_cast %866 : vector<8xf32> to vector<8x1xf32>
    %868 = vector.broadcast %867 : vector<8x1xf32> to vector<8x8xf32>
    %869 = arith.subf %865, %868 : vector<8x8xf32>
    %870 = math.exp %869 : vector<8x8xf32>
    %cst_329 = arith.constant dense<0.000000e+00> : vector<8xf32>
    %871 = vector.multi_reduction <add>, %870, %cst_329 [1] : vector<8x8xf32> to vector<8xf32>
    %872 = vector.shape_cast %871 : vector<8xf32> to vector<8x1xf32>
    %873 = arith.truncf %870 : vector<8x8xf32> to vector<8x8xbf16>
    %cst_330 = arith.constant dense<0.000000e+00> : vector<8x8xf32>
    %874 = tpu.matmul %873, %863, %cst_330 {dimension_numbers = #tpu.dot_dimension_numbers<[1], [0], [0], [1], [0, 0, 1, 1], [], []>} : vector<8x8xbf16>, vector<8x8xbf16>, vector<8x8xf32> -> vector<8x8xf32>
    %875 = tpu.reciprocal %872 {approx = true} : vector<8x1xf32> -> vector<8x1xf32>
    %876 = vector.broadcast %875 : vector<8x1xf32> to vector<8x8xf32>
    %877 = arith.mulf %874, %876 : vector<8x8xf32>
    %878 = arith.truncf %877 : vector<8x8xf32> to vector<8x8xbf16>
    %879 = vector.extract_strided_slice %806 {offsets = [16, 0], sizes = [8, 32], strides = [1, 1]} : vector<32x32xf32> to vector<8x32xf32>
    %880 = arith.truncf %879 : vector<8x32xf32> to vector<8x32xbf16>
    %cst_331 = arith.constant dense<0.000000e+00> : vector<8x32xf32>
    %881 = tpu.matmul %878, %880, %cst_331 {dimension_numbers = #tpu.dot_dimension_numbers<[1], [0], [0], [1], [0, 0, 1, 1], [], []>} : vector<8x8xbf16>, vector<8x32xbf16>, vector<8x32xf32> -> vector<8x32xf32>
    %882 = arith.addf %857, %881 : vector<8x32xf32>
    %883 = vector.extract_strided_slice %802 {offsets = [0, 24], sizes = [8, 8], strides = [1, 1]} : vector<8x32xf32> to vector<8x8xf32>
    %884 = arith.truncf %883 : vector<8x8xf32> to vector<8x8xbf16>
    %885 = vector.extract_strided_slice %803 {offsets = [0, 24], sizes = [8, 8], strides = [1, 1]} : vector<8x32xf32> to vector<8x8xf32>
    %886 = arith.truncf %885 : vector<8x8xf32> to vector<8x8xbf16>
    %887 = vector.extract_strided_slice %804 {offsets = [0, 24], sizes = [8, 8], strides = [1, 1]} : vector<8x32xf32> to vector<8x8xf32>
    %888 = arith.truncf %887 : vector<8x8xf32> to vector<8x8xbf16>
    %cst_332 = arith.constant dense<0.000000e+00> : vector<8x8xf32>
    %889 = tpu.matmul %884, %886, %cst_332 {dimension_numbers = #tpu.dot_dimension_numbers<[1], [1], [0], [0], [0, 0, 1, 0], [], []>} : vector<8x8xbf16>, vector<8x8xbf16>, vector<8x8xf32> -> vector<8x8xf32>
    %890 = arith.addf %889, %445 : vector<8x8xf32>
    %cst_333 = arith.constant dense<0xFF800000> : vector<8xf32>
    %891 = vector.multi_reduction <maximumf>, %890, %cst_333 [1] : vector<8x8xf32> to vector<8xf32>
    %892 = vector.shape_cast %891 : vector<8xf32> to vector<8x1xf32>
    %893 = vector.broadcast %892 : vector<8x1xf32> to vector<8x8xf32>
    %894 = arith.subf %890, %893 : vector<8x8xf32>
    %895 = math.exp %894 : vector<8x8xf32>
    %cst_334 = arith.constant dense<0.000000e+00> : vector<8xf32>
    %896 = vector.multi_reduction <add>, %895, %cst_334 [1] : vector<8x8xf32> to vector<8xf32>
    %897 = vector.shape_cast %896 : vector<8xf32> to vector<8x1xf32>
    %898 = arith.truncf %895 : vector<8x8xf32> to vector<8x8xbf16>
    %cst_335 = arith.constant dense<0.000000e+00> : vector<8x8xf32>
    %899 = tpu.matmul %898, %888, %cst_335 {dimension_numbers = #tpu.dot_dimension_numbers<[1], [0], [0], [1], [0, 0, 1, 1], [], []>} : vector<8x8xbf16>, vector<8x8xbf16>, vector<8x8xf32> -> vector<8x8xf32>
    %900 = tpu.reciprocal %897 {approx = true} : vector<8x1xf32> -> vector<8x1xf32>
    %901 = vector.broadcast %900 : vector<8x1xf32> to vector<8x8xf32>
    %902 = arith.mulf %899, %901 : vector<8x8xf32>
    %903 = arith.truncf %902 : vector<8x8xf32> to vector<8x8xbf16>
    %904 = vector.extract_strided_slice %806 {offsets = [24, 0], sizes = [8, 32], strides = [1, 1]} : vector<32x32xf32> to vector<8x32xf32>
    %905 = arith.truncf %904 : vector<8x32xf32> to vector<8x32xbf16>
    %cst_336 = arith.constant dense<0.000000e+00> : vector<8x32xf32>
    %906 = tpu.matmul %903, %905, %cst_336 {dimension_numbers = #tpu.dot_dimension_numbers<[1], [0], [0], [1], [0, 0, 1, 1], [], []>} : vector<8x8xbf16>, vector<8x32xbf16>, vector<8x32xf32> -> vector<8x32xf32>
    %907 = arith.addf %882, %906 : vector<8x32xf32>
    %c1_337 = arith.constant 1 : index
    %c0_338 = arith.constant 0 : index
    %c0_339 = arith.constant 0 : index
    %908 = vector.load %arg28[%c1_337, %c0_338, %c0_339] : memref<2x1x32xf32, #tpu.memory_space<vmem>>, vector<1x1x32xf32>
    %909 = vector.shape_cast %908 : vector<1x1x32xf32> to vector<1x32xf32>
    %910 = vector.broadcast %909 : vector<1x32xf32> to vector<8x32xf32>
    %911 = arith.addf %907, %910 : vector<8x32xf32>
    %912 = arith.addf %791, %911 : vector<8x32xf32>
    %c1_340 = arith.constant 1 : index
    %c0_341 = arith.constant 0 : index
    %c0_342 = arith.constant 0 : index
    %913 = vector.load %arg29[%c1_340, %c0_341, %c0_342] : memref<2x1x32xf32, #tpu.memory_space<vmem>>, vector<1x1x32xf32>
    %914 = vector.shape_cast %913 : vector<1x1x32xf32> to vector<1x32xf32>
    %c1_343 = arith.constant 1 : index
    %c0_344 = arith.constant 0 : index
    %c0_345 = arith.constant 0 : index
    %915 = vector.load %arg30[%c1_343, %c0_344, %c0_345] : memref<2x1x32xf32, #tpu.memory_space<vmem>>, vector<1x1x32xf32>
    %916 = vector.shape_cast %915 : vector<1x1x32xf32> to vector<1x32xf32>
    %cst_346 = arith.constant dense<0.000000e+00> : vector<8xf32>
    %917 = vector.multi_reduction <add>, %912, %cst_346 [1] : vector<8x32xf32> to vector<8xf32>
    %918 = vector.shape_cast %917 : vector<8xf32> to vector<8x1xf32>
    %cst_347 = arith.constant 3.200000e+01 : f32
    %919 = vector.broadcast %cst_347 : f32 to vector<8x1xf32>
    %920 = arith.divf %918, %919 : vector<8x1xf32>
    %921 = vector.broadcast %920 : vector<8x1xf32> to vector<8x32xf32>
    %922 = arith.subf %912, %921 : vector<8x32xf32>
    %923 = arith.mulf %922, %922 : vector<8x32xf32>
    %cst_348 = arith.constant dense<0.000000e+00> : vector<8xf32>
    %924 = vector.multi_reduction <add>, %923, %cst_348 [1] : vector<8x32xf32> to vector<8xf32>
    %925 = vector.shape_cast %924 : vector<8xf32> to vector<8x1xf32>
    %cst_349 = arith.constant 3.200000e+01 : f32
    %926 = vector.broadcast %cst_349 : f32 to vector<8x1xf32>
    %927 = arith.divf %925, %926 : vector<8x1xf32>
    %cst_350 = arith.constant 9.99999974E-6 : f32
    %928 = vector.broadcast %cst_350 : f32 to vector<8x1xf32>
    %929 = arith.addf %927, %928 : vector<8x1xf32>
    %930 = math.rsqrt %929 : vector<8x1xf32>
    %931 = vector.broadcast %930 : vector<8x1xf32> to vector<8x32xf32>
    %932 = arith.mulf %922, %931 : vector<8x32xf32>
    %933 = vector.broadcast %914 : vector<1x32xf32> to vector<8x32xf32>
    %934 = arith.mulf %932, %933 : vector<8x32xf32>
    %935 = vector.broadcast %916 : vector<1x32xf32> to vector<8x32xf32>
    %936 = arith.addf %934, %935 : vector<8x32xf32>
    %c1_351 = arith.constant 1 : index
    %c0_352 = arith.constant 0 : index
    %c0_353 = arith.constant 0 : index
    %937 = vector.load %arg31[%c1_351, %c0_352, %c0_353] : memref<2x32x32xbf16, #tpu.memory_space<vmem>>, vector<1x32x32xbf16>
    %938 = vector.shape_cast %937 : vector<1x32x32xbf16> to vector<32x32xbf16>
    %939 = arith.truncf %936 : vector<8x32xf32> to vector<8x32xbf16>
    %cst_354 = arith.constant dense<0.000000e+00> : vector<8x32xf32>
    %940 = tpu.matmul %939, %938, %cst_354 {dimension_numbers = #tpu.dot_dimension_numbers<[1], [0], [0], [1], [0, 0, 1, 1], [], []>} : vector<8x32xbf16>, vector<32x32xbf16>, vector<8x32xf32> -> vector<8x32xf32>
    %c1_355 = arith.constant 1 : index
    %c0_356 = arith.constant 0 : index
    %c0_357 = arith.constant 0 : index
    %941 = vector.load %arg32[%c1_355, %c0_356, %c0_357] : memref<2x1x32xf32, #tpu.memory_space<vmem>>, vector<1x1x32xf32>
    %942 = vector.shape_cast %941 : vector<1x1x32xf32> to vector<1x32xf32>
    %943 = vector.broadcast %942 : vector<1x32xf32> to vector<8x32xf32>
    %944 = arith.addf %940, %943 : vector<8x32xf32>
    %cst_358 = arith.constant 0.353553385 : f32
    %945 = vector.broadcast %cst_358 : f32 to vector<8x32xf32>
    %946 = arith.mulf %944, %945 : vector<8x32xf32>
    %c1_359 = arith.constant 1 : index
    %c0_360 = arith.constant 0 : index
    %c0_361 = arith.constant 0 : index
    %947 = vector.load %arg33[%c1_359, %c0_360, %c0_361] : memref<2x32x64xbf16, #tpu.memory_space<vmem>>, vector<1x32x64xbf16>
    %948 = vector.shape_cast %947 : vector<1x32x64xbf16> to vector<32x64xbf16>
    %949 = arith.truncf %440 : vector<8x32xf32> to vector<8x32xbf16>
    %cst_362 = arith.constant dense<0.000000e+00> : vector<8x64xf32>
    %950 = tpu.matmul %949, %948, %cst_362 {dimension_numbers = #tpu.dot_dimension_numbers<[1], [0], [0], [1], [0, 0, 1, 1], [], []>} : vector<8x32xbf16>, vector<32x64xbf16>, vector<8x64xf32> -> vector<8x64xf32>
    %c1_363 = arith.constant 1 : index
    %c0_364 = arith.constant 0 : index
    %c0_365 = arith.constant 0 : index
    %951 = vector.load %arg34[%c1_363, %c0_364, %c0_365] : memref<2x1x64xf32, #tpu.memory_space<vmem>>, vector<1x1x64xf32>
    %952 = vector.shape_cast %951 : vector<1x1x64xf32> to vector<1x64xf32>
    %953 = vector.broadcast %952 : vector<1x64xf32> to vector<8x64xf32>
    %954 = arith.addf %950, %953 : vector<8x64xf32>
    %955 = vector.extract_strided_slice %954 {offsets = [0, 0], sizes = [8, 32], strides = [1, 1]} : vector<8x64xf32> to vector<8x32xf32>
    %956 = vector.extract_strided_slice %954 {offsets = [0, 32], sizes = [8, 32], strides = [1, 1]} : vector<8x64xf32> to vector<8x32xf32>
    %c1_366 = arith.constant 1 : index
    %c0_367 = arith.constant 0 : index
    %c0_368 = arith.constant 0 : index
    %957 = vector.load %arg35[%c1_366, %c0_367, %c0_368] : memref<2x32x32xf32, #tpu.memory_space<vmem>>, vector<1x32x32xf32>
    %958 = vector.shape_cast %957 : vector<1x32x32xf32> to vector<32x32xf32>
    %cst_369 = arith.constant 0.000000e+00 : f32
    %959 = vector.broadcast %cst_369 : f32 to vector<8x32xf32>
    %960 = vector.extract_strided_slice %946 {offsets = [0, 0], sizes = [8, 8], strides = [1, 1]} : vector<8x32xf32> to vector<8x8xf32>
    %961 = arith.truncf %960 : vector<8x8xf32> to vector<8x8xbf16>
    %962 = vector.extract_strided_slice %955 {offsets = [0, 0], sizes = [8, 8], strides = [1, 1]} : vector<8x32xf32> to vector<8x8xf32>
    %963 = arith.truncf %962 : vector<8x8xf32> to vector<8x8xbf16>
    %964 = vector.extract_strided_slice %956 {offsets = [0, 0], sizes = [8, 8], strides = [1, 1]} : vector<8x32xf32> to vector<8x8xf32>
    %965 = arith.truncf %964 : vector<8x8xf32> to vector<8x8xbf16>
    %cst_370 = arith.constant dense<0.000000e+00> : vector<8x8xf32>
    %966 = tpu.matmul %961, %963, %cst_370 {dimension_numbers = #tpu.dot_dimension_numbers<[1], [1], [0], [0], [0, 0, 1, 0], [], []>} : vector<8x8xbf16>, vector<8x8xbf16>, vector<8x8xf32> -> vector<8x8xf32>
    %967 = vector.broadcast %1 : vector<1x8xf32> to vector<8x8xf32>
    %968 = arith.addf %966, %967 : vector<8x8xf32>
    %cst_371 = arith.constant dense<0xFF800000> : vector<8xf32>
    %969 = vector.multi_reduction <maximumf>, %968, %cst_371 [1] : vector<8x8xf32> to vector<8xf32>
    %970 = vector.shape_cast %969 : vector<8xf32> to vector<8x1xf32>
    %971 = vector.broadcast %970 : vector<8x1xf32> to vector<8x8xf32>
    %972 = arith.subf %968, %971 : vector<8x8xf32>
    %973 = math.exp %972 : vector<8x8xf32>
    %cst_372 = arith.constant dense<0.000000e+00> : vector<8xf32>
    %974 = vector.multi_reduction <add>, %973, %cst_372 [1] : vector<8x8xf32> to vector<8xf32>
    %975 = vector.shape_cast %974 : vector<8xf32> to vector<8x1xf32>
    %976 = arith.truncf %973 : vector<8x8xf32> to vector<8x8xbf16>
    %cst_373 = arith.constant dense<0.000000e+00> : vector<8x8xf32>
    %977 = tpu.matmul %976, %965, %cst_373 {dimension_numbers = #tpu.dot_dimension_numbers<[1], [0], [0], [1], [0, 0, 1, 1], [], []>} : vector<8x8xbf16>, vector<8x8xbf16>, vector<8x8xf32> -> vector<8x8xf32>
    %978 = tpu.reciprocal %975 {approx = true} : vector<8x1xf32> -> vector<8x1xf32>
    %979 = vector.broadcast %978 : vector<8x1xf32> to vector<8x8xf32>
    %980 = arith.mulf %977, %979 : vector<8x8xf32>
    %981 = arith.truncf %980 : vector<8x8xf32> to vector<8x8xbf16>
    %982 = vector.extract_strided_slice %958 {offsets = [0, 0], sizes = [8, 32], strides = [1, 1]} : vector<32x32xf32> to vector<8x32xf32>
    %983 = arith.truncf %982 : vector<8x32xf32> to vector<8x32xbf16>
    %cst_374 = arith.constant dense<0.000000e+00> : vector<8x32xf32>
    %984 = tpu.matmul %981, %983, %cst_374 {dimension_numbers = #tpu.dot_dimension_numbers<[1], [0], [0], [1], [0, 0, 1, 1], [], []>} : vector<8x8xbf16>, vector<8x32xbf16>, vector<8x32xf32> -> vector<8x32xf32>
    %985 = arith.addf %959, %984 : vector<8x32xf32>
    %986 = vector.extract_strided_slice %946 {offsets = [0, 8], sizes = [8, 8], strides = [1, 1]} : vector<8x32xf32> to vector<8x8xf32>
    %987 = arith.truncf %986 : vector<8x8xf32> to vector<8x8xbf16>
    %988 = vector.extract_strided_slice %955 {offsets = [0, 8], sizes = [8, 8], strides = [1, 1]} : vector<8x32xf32> to vector<8x8xf32>
    %989 = arith.truncf %988 : vector<8x8xf32> to vector<8x8xbf16>
    %990 = vector.extract_strided_slice %956 {offsets = [0, 8], sizes = [8, 8], strides = [1, 1]} : vector<8x32xf32> to vector<8x8xf32>
    %991 = arith.truncf %990 : vector<8x8xf32> to vector<8x8xbf16>
    %cst_375 = arith.constant dense<0.000000e+00> : vector<8x8xf32>
    %992 = tpu.matmul %987, %989, %cst_375 {dimension_numbers = #tpu.dot_dimension_numbers<[1], [1], [0], [0], [0, 0, 1, 0], [], []>} : vector<8x8xbf16>, vector<8x8xbf16>, vector<8x8xf32> -> vector<8x8xf32>
    %993 = vector.broadcast %1 : vector<1x8xf32> to vector<8x8xf32>
    %994 = arith.addf %992, %993 : vector<8x8xf32>
    %cst_376 = arith.constant dense<0xFF800000> : vector<8xf32>
    %995 = vector.multi_reduction <maximumf>, %994, %cst_376 [1] : vector<8x8xf32> to vector<8xf32>
    %996 = vector.shape_cast %995 : vector<8xf32> to vector<8x1xf32>
    %997 = vector.broadcast %996 : vector<8x1xf32> to vector<8x8xf32>
    %998 = arith.subf %994, %997 : vector<8x8xf32>
    %999 = math.exp %998 : vector<8x8xf32>
    %cst_377 = arith.constant dense<0.000000e+00> : vector<8xf32>
    %1000 = vector.multi_reduction <add>, %999, %cst_377 [1] : vector<8x8xf32> to vector<8xf32>
    %1001 = vector.shape_cast %1000 : vector<8xf32> to vector<8x1xf32>
    %1002 = arith.truncf %999 : vector<8x8xf32> to vector<8x8xbf16>
    %cst_378 = arith.constant dense<0.000000e+00> : vector<8x8xf32>
    %1003 = tpu.matmul %1002, %991, %cst_378 {dimension_numbers = #tpu.dot_dimension_numbers<[1], [0], [0], [1], [0, 0, 1, 1], [], []>} : vector<8x8xbf16>, vector<8x8xbf16>, vector<8x8xf32> -> vector<8x8xf32>
    %1004 = tpu.reciprocal %1001 {approx = true} : vector<8x1xf32> -> vector<8x1xf32>
    %1005 = vector.broadcast %1004 : vector<8x1xf32> to vector<8x8xf32>
    %1006 = arith.mulf %1003, %1005 : vector<8x8xf32>
    %1007 = arith.truncf %1006 : vector<8x8xf32> to vector<8x8xbf16>
    %1008 = vector.extract_strided_slice %958 {offsets = [8, 0], sizes = [8, 32], strides = [1, 1]} : vector<32x32xf32> to vector<8x32xf32>
    %1009 = arith.truncf %1008 : vector<8x32xf32> to vector<8x32xbf16>
    %cst_379 = arith.constant dense<0.000000e+00> : vector<8x32xf32>
    %1010 = tpu.matmul %1007, %1009, %cst_379 {dimension_numbers = #tpu.dot_dimension_numbers<[1], [0], [0], [1], [0, 0, 1, 1], [], []>} : vector<8x8xbf16>, vector<8x32xbf16>, vector<8x32xf32> -> vector<8x32xf32>
    %1011 = arith.addf %985, %1010 : vector<8x32xf32>
    %1012 = vector.extract_strided_slice %946 {offsets = [0, 16], sizes = [8, 8], strides = [1, 1]} : vector<8x32xf32> to vector<8x8xf32>
    %1013 = arith.truncf %1012 : vector<8x8xf32> to vector<8x8xbf16>
    %1014 = vector.extract_strided_slice %955 {offsets = [0, 16], sizes = [8, 8], strides = [1, 1]} : vector<8x32xf32> to vector<8x8xf32>
    %1015 = arith.truncf %1014 : vector<8x8xf32> to vector<8x8xbf16>
    %1016 = vector.extract_strided_slice %956 {offsets = [0, 16], sizes = [8, 8], strides = [1, 1]} : vector<8x32xf32> to vector<8x8xf32>
    %1017 = arith.truncf %1016 : vector<8x8xf32> to vector<8x8xbf16>
    %cst_380 = arith.constant dense<0.000000e+00> : vector<8x8xf32>
    %1018 = tpu.matmul %1013, %1015, %cst_380 {dimension_numbers = #tpu.dot_dimension_numbers<[1], [1], [0], [0], [0, 0, 1, 0], [], []>} : vector<8x8xbf16>, vector<8x8xbf16>, vector<8x8xf32> -> vector<8x8xf32>
    %1019 = vector.broadcast %1 : vector<1x8xf32> to vector<8x8xf32>
    %1020 = arith.addf %1018, %1019 : vector<8x8xf32>
    %cst_381 = arith.constant dense<0xFF800000> : vector<8xf32>
    %1021 = vector.multi_reduction <maximumf>, %1020, %cst_381 [1] : vector<8x8xf32> to vector<8xf32>
    %1022 = vector.shape_cast %1021 : vector<8xf32> to vector<8x1xf32>
    %1023 = vector.broadcast %1022 : vector<8x1xf32> to vector<8x8xf32>
    %1024 = arith.subf %1020, %1023 : vector<8x8xf32>
    %1025 = math.exp %1024 : vector<8x8xf32>
    %cst_382 = arith.constant dense<0.000000e+00> : vector<8xf32>
    %1026 = vector.multi_reduction <add>, %1025, %cst_382 [1] : vector<8x8xf32> to vector<8xf32>
    %1027 = vector.shape_cast %1026 : vector<8xf32> to vector<8x1xf32>
    %1028 = arith.truncf %1025 : vector<8x8xf32> to vector<8x8xbf16>
    %cst_383 = arith.constant dense<0.000000e+00> : vector<8x8xf32>
    %1029 = tpu.matmul %1028, %1017, %cst_383 {dimension_numbers = #tpu.dot_dimension_numbers<[1], [0], [0], [1], [0, 0, 1, 1], [], []>} : vector<8x8xbf16>, vector<8x8xbf16>, vector<8x8xf32> -> vector<8x8xf32>
    %1030 = tpu.reciprocal %1027 {approx = true} : vector<8x1xf32> -> vector<8x1xf32>
    %1031 = vector.broadcast %1030 : vector<8x1xf32> to vector<8x8xf32>
    %1032 = arith.mulf %1029, %1031 : vector<8x8xf32>
    %1033 = arith.truncf %1032 : vector<8x8xf32> to vector<8x8xbf16>
    %1034 = vector.extract_strided_slice %958 {offsets = [16, 0], sizes = [8, 32], strides = [1, 1]} : vector<32x32xf32> to vector<8x32xf32>
    %1035 = arith.truncf %1034 : vector<8x32xf32> to vector<8x32xbf16>
    %cst_384 = arith.constant dense<0.000000e+00> : vector<8x32xf32>
    %1036 = tpu.matmul %1033, %1035, %cst_384 {dimension_numbers = #tpu.dot_dimension_numbers<[1], [0], [0], [1], [0, 0, 1, 1], [], []>} : vector<8x8xbf16>, vector<8x32xbf16>, vector<8x32xf32> -> vector<8x32xf32>
    %1037 = arith.addf %1011, %1036 : vector<8x32xf32>
    %1038 = vector.extract_strided_slice %946 {offsets = [0, 24], sizes = [8, 8], strides = [1, 1]} : vector<8x32xf32> to vector<8x8xf32>
    %1039 = arith.truncf %1038 : vector<8x8xf32> to vector<8x8xbf16>
    %1040 = vector.extract_strided_slice %955 {offsets = [0, 24], sizes = [8, 8], strides = [1, 1]} : vector<8x32xf32> to vector<8x8xf32>
    %1041 = arith.truncf %1040 : vector<8x8xf32> to vector<8x8xbf16>
    %1042 = vector.extract_strided_slice %956 {offsets = [0, 24], sizes = [8, 8], strides = [1, 1]} : vector<8x32xf32> to vector<8x8xf32>
    %1043 = arith.truncf %1042 : vector<8x8xf32> to vector<8x8xbf16>
    %cst_385 = arith.constant dense<0.000000e+00> : vector<8x8xf32>
    %1044 = tpu.matmul %1039, %1041, %cst_385 {dimension_numbers = #tpu.dot_dimension_numbers<[1], [1], [0], [0], [0, 0, 1, 0], [], []>} : vector<8x8xbf16>, vector<8x8xbf16>, vector<8x8xf32> -> vector<8x8xf32>
    %1045 = vector.broadcast %1 : vector<1x8xf32> to vector<8x8xf32>
    %1046 = arith.addf %1044, %1045 : vector<8x8xf32>
    %cst_386 = arith.constant dense<0xFF800000> : vector<8xf32>
    %1047 = vector.multi_reduction <maximumf>, %1046, %cst_386 [1] : vector<8x8xf32> to vector<8xf32>
    %1048 = vector.shape_cast %1047 : vector<8xf32> to vector<8x1xf32>
    %1049 = vector.broadcast %1048 : vector<8x1xf32> to vector<8x8xf32>
    %1050 = arith.subf %1046, %1049 : vector<8x8xf32>
    %1051 = math.exp %1050 : vector<8x8xf32>
    %cst_387 = arith.constant dense<0.000000e+00> : vector<8xf32>
    %1052 = vector.multi_reduction <add>, %1051, %cst_387 [1] : vector<8x8xf32> to vector<8xf32>
    %1053 = vector.shape_cast %1052 : vector<8xf32> to vector<8x1xf32>
    %1054 = arith.truncf %1051 : vector<8x8xf32> to vector<8x8xbf16>
    %cst_388 = arith.constant dense<0.000000e+00> : vector<8x8xf32>
    %1055 = tpu.matmul %1054, %1043, %cst_388 {dimension_numbers = #tpu.dot_dimension_numbers<[1], [0], [0], [1], [0, 0, 1, 1], [], []>} : vector<8x8xbf16>, vector<8x8xbf16>, vector<8x8xf32> -> vector<8x8xf32>
    %1056 = tpu.reciprocal %1053 {approx = true} : vector<8x1xf32> -> vector<8x1xf32>
    %1057 = vector.broadcast %1056 : vector<8x1xf32> to vector<8x8xf32>
    %1058 = arith.mulf %1055, %1057 : vector<8x8xf32>
    %1059 = arith.truncf %1058 : vector<8x8xf32> to vector<8x8xbf16>
    %1060 = vector.extract_strided_slice %958 {offsets = [24, 0], sizes = [8, 32], strides = [1, 1]} : vector<32x32xf32> to vector<8x32xf32>
    %1061 = arith.truncf %1060 : vector<8x32xf32> to vector<8x32xbf16>
    %cst_389 = arith.constant dense<0.000000e+00> : vector<8x32xf32>
    %1062 = tpu.matmul %1059, %1061, %cst_389 {dimension_numbers = #tpu.dot_dimension_numbers<[1], [0], [0], [1], [0, 0, 1, 1], [], []>} : vector<8x8xbf16>, vector<8x32xbf16>, vector<8x32xf32> -> vector<8x32xf32>
    %1063 = arith.addf %1037, %1062 : vector<8x32xf32>
    %c1_390 = arith.constant 1 : index
    %c0_391 = arith.constant 0 : index
    %c0_392 = arith.constant 0 : index
    %1064 = vector.load %arg36[%c1_390, %c0_391, %c0_392] : memref<2x1x32xf32, #tpu.memory_space<vmem>>, vector<1x1x32xf32>
    %1065 = vector.shape_cast %1064 : vector<1x1x32xf32> to vector<1x32xf32>
    %1066 = vector.broadcast %1065 : vector<1x32xf32> to vector<8x32xf32>
    %1067 = arith.addf %1063, %1066 : vector<8x32xf32>
    %1068 = arith.addf %936, %1067 : vector<8x32xf32>
    %c1_393 = arith.constant 1 : index
    %c0_394 = arith.constant 0 : index
    %c0_395 = arith.constant 0 : index
    %1069 = vector.load %arg37[%c1_393, %c0_394, %c0_395] : memref<2x1x32xf32, #tpu.memory_space<vmem>>, vector<1x1x32xf32>
    %1070 = vector.shape_cast %1069 : vector<1x1x32xf32> to vector<1x32xf32>
    %c1_396 = arith.constant 1 : index
    %c0_397 = arith.constant 0 : index
    %c0_398 = arith.constant 0 : index
    %1071 = vector.load %arg38[%c1_396, %c0_397, %c0_398] : memref<2x1x32xf32, #tpu.memory_space<vmem>>, vector<1x1x32xf32>
    %1072 = vector.shape_cast %1071 : vector<1x1x32xf32> to vector<1x32xf32>
    %cst_399 = arith.constant dense<0.000000e+00> : vector<8xf32>
    %1073 = vector.multi_reduction <add>, %1068, %cst_399 [1] : vector<8x32xf32> to vector<8xf32>
    %1074 = vector.shape_cast %1073 : vector<8xf32> to vector<8x1xf32>
    %cst_400 = arith.constant 3.200000e+01 : f32
    %1075 = vector.broadcast %cst_400 : f32 to vector<8x1xf32>
    %1076 = arith.divf %1074, %1075 : vector<8x1xf32>
    %1077 = vector.broadcast %1076 : vector<8x1xf32> to vector<8x32xf32>
    %1078 = arith.subf %1068, %1077 : vector<8x32xf32>
    %1079 = arith.mulf %1078, %1078 : vector<8x32xf32>
    %cst_401 = arith.constant dense<0.000000e+00> : vector<8xf32>
    %1080 = vector.multi_reduction <add>, %1079, %cst_401 [1] : vector<8x32xf32> to vector<8xf32>
    %1081 = vector.shape_cast %1080 : vector<8xf32> to vector<8x1xf32>
    %cst_402 = arith.constant 3.200000e+01 : f32
    %1082 = vector.broadcast %cst_402 : f32 to vector<8x1xf32>
    %1083 = arith.divf %1081, %1082 : vector<8x1xf32>
    %cst_403 = arith.constant 9.99999974E-6 : f32
    %1084 = vector.broadcast %cst_403 : f32 to vector<8x1xf32>
    %1085 = arith.addf %1083, %1084 : vector<8x1xf32>
    %1086 = math.rsqrt %1085 : vector<8x1xf32>
    %1087 = vector.broadcast %1086 : vector<8x1xf32> to vector<8x32xf32>
    %1088 = arith.mulf %1078, %1087 : vector<8x32xf32>
    %1089 = vector.broadcast %1070 : vector<1x32xf32> to vector<8x32xf32>
    %1090 = arith.mulf %1088, %1089 : vector<8x32xf32>
    %1091 = vector.broadcast %1072 : vector<1x32xf32> to vector<8x32xf32>
    %1092 = arith.addf %1090, %1091 : vector<8x32xf32>
    %c1_404 = arith.constant 1 : index
    %c0_405 = arith.constant 0 : index
    %c0_406 = arith.constant 0 : index
    %1093 = vector.load %arg39[%c1_404, %c0_405, %c0_406] : memref<2x32x64xbf16, #tpu.memory_space<vmem>>, vector<1x32x64xbf16>
    %1094 = vector.shape_cast %1093 : vector<1x32x64xbf16> to vector<32x64xbf16>
    %1095 = arith.truncf %1092 : vector<8x32xf32> to vector<8x32xbf16>
    %cst_407 = arith.constant dense<0.000000e+00> : vector<8x64xf32>
    %1096 = tpu.matmul %1095, %1094, %cst_407 {dimension_numbers = #tpu.dot_dimension_numbers<[1], [0], [0], [1], [0, 0, 1, 1], [], []>} : vector<8x32xbf16>, vector<32x64xbf16>, vector<8x64xf32> -> vector<8x64xf32>
    %c1_408 = arith.constant 1 : index
    %c0_409 = arith.constant 0 : index
    %c0_410 = arith.constant 0 : index
    %1097 = vector.load %arg40[%c1_408, %c0_409, %c0_410] : memref<2x1x64xf32, #tpu.memory_space<vmem>>, vector<1x1x64xf32>
    %1098 = vector.shape_cast %1097 : vector<1x1x64xf32> to vector<1x64xf32>
    %1099 = vector.broadcast %1098 : vector<1x64xf32> to vector<8x64xf32>
    %1100 = arith.addf %1096, %1099 : vector<8x64xf32>
    %cst_411 = arith.constant 0.000000e+00 : f32
    %1101 = vector.broadcast %cst_411 : f32 to vector<8x64xf32>
    %1102 = arith.maximumf %1100, %1101 : vector<8x64xf32>
    %c1_412 = arith.constant 1 : index
    %c0_413 = arith.constant 0 : index
    %c0_414 = arith.constant 0 : index
    %1103 = vector.load %arg41[%c1_412, %c0_413, %c0_414] : memref<2x64x32xbf16, #tpu.memory_space<vmem>>, vector<1x64x32xbf16>
    %1104 = vector.shape_cast %1103 : vector<1x64x32xbf16> to vector<64x32xbf16>
    %1105 = arith.truncf %1102 : vector<8x64xf32> to vector<8x64xbf16>
    %cst_415 = arith.constant dense<0.000000e+00> : vector<8x32xf32>
    %1106 = tpu.matmul %1105, %1104, %cst_415 {dimension_numbers = #tpu.dot_dimension_numbers<[1], [0], [0], [1], [0, 0, 1, 1], [], []>} : vector<8x64xbf16>, vector<64x32xbf16>, vector<8x32xf32> -> vector<8x32xf32>
    %c1_416 = arith.constant 1 : index
    %c0_417 = arith.constant 0 : index
    %c0_418 = arith.constant 0 : index
    %1107 = vector.load %arg42[%c1_416, %c0_417, %c0_418] : memref<2x1x32xf32, #tpu.memory_space<vmem>>, vector<1x1x32xf32>
    %1108 = vector.shape_cast %1107 : vector<1x1x32xf32> to vector<1x32xf32>
    %1109 = vector.broadcast %1108 : vector<1x32xf32> to vector<8x32xf32>
    %1110 = arith.addf %1106, %1109 : vector<8x32xf32>
    %1111 = arith.addf %1092, %1110 : vector<8x32xf32>
    %c1_419 = arith.constant 1 : index
    %c0_420 = arith.constant 0 : index
    %c0_421 = arith.constant 0 : index
    %1112 = vector.load %arg43[%c1_419, %c0_420, %c0_421] : memref<2x1x32xf32, #tpu.memory_space<vmem>>, vector<1x1x32xf32>
    %1113 = vector.shape_cast %1112 : vector<1x1x32xf32> to vector<1x32xf32>
    %c1_422 = arith.constant 1 : index
    %c0_423 = arith.constant 0 : index
    %c0_424 = arith.constant 0 : index
    %1114 = vector.load %arg44[%c1_422, %c0_423, %c0_424] : memref<2x1x32xf32, #tpu.memory_space<vmem>>, vector<1x1x32xf32>
    %1115 = vector.shape_cast %1114 : vector<1x1x32xf32> to vector<1x32xf32>
    %cst_425 = arith.constant dense<0.000000e+00> : vector<8xf32>
    %1116 = vector.multi_reduction <add>, %1111, %cst_425 [1] : vector<8x32xf32> to vector<8xf32>
    %1117 = vector.shape_cast %1116 : vector<8xf32> to vector<8x1xf32>
    %cst_426 = arith.constant 3.200000e+01 : f32
    %1118 = vector.broadcast %cst_426 : f32 to vector<8x1xf32>
    %1119 = arith.divf %1117, %1118 : vector<8x1xf32>
    %1120 = vector.broadcast %1119 : vector<8x1xf32> to vector<8x32xf32>
    %1121 = arith.subf %1111, %1120 : vector<8x32xf32>
    %1122 = arith.mulf %1121, %1121 : vector<8x32xf32>
    %cst_427 = arith.constant dense<0.000000e+00> : vector<8xf32>
    %1123 = vector.multi_reduction <add>, %1122, %cst_427 [1] : vector<8x32xf32> to vector<8xf32>
    %1124 = vector.shape_cast %1123 : vector<8xf32> to vector<8x1xf32>
    %cst_428 = arith.constant 3.200000e+01 : f32
    %1125 = vector.broadcast %cst_428 : f32 to vector<8x1xf32>
    %1126 = arith.divf %1124, %1125 : vector<8x1xf32>
    %cst_429 = arith.constant 9.99999974E-6 : f32
    %1127 = vector.broadcast %cst_429 : f32 to vector<8x1xf32>
    %1128 = arith.addf %1126, %1127 : vector<8x1xf32>
    %1129 = math.rsqrt %1128 : vector<8x1xf32>
    %1130 = vector.broadcast %1129 : vector<8x1xf32> to vector<8x32xf32>
    %1131 = arith.mulf %1121, %1130 : vector<8x32xf32>
    %1132 = vector.broadcast %1113 : vector<1x32xf32> to vector<8x32xf32>
    %1133 = arith.mulf %1131, %1132 : vector<8x32xf32>
    %1134 = vector.broadcast %1115 : vector<1x32xf32> to vector<8x32xf32>
    %1135 = arith.addf %1133, %1134 : vector<8x32xf32>
    %c0_430 = arith.constant 0 : index
    %c0_431 = arith.constant 0 : index
    %1136 = vector.load %arg45[%c0_430, %c0_431] : memref<1x32xf32, #tpu.memory_space<vmem>>, vector<1x32xf32>
    %c0_432 = arith.constant 0 : index
    %c0_433 = arith.constant 0 : index
    %1137 = vector.load %arg46[%c0_432, %c0_433] : memref<1x32xf32, #tpu.memory_space<vmem>>, vector<1x32xf32>
    %cst_434 = arith.constant dense<0.000000e+00> : vector<8xf32>
    %1138 = vector.multi_reduction <add>, %1135, %cst_434 [1] : vector<8x32xf32> to vector<8xf32>
    %1139 = vector.shape_cast %1138 : vector<8xf32> to vector<8x1xf32>
    %cst_435 = arith.constant 3.200000e+01 : f32
    %1140 = vector.broadcast %cst_435 : f32 to vector<8x1xf32>
    %1141 = arith.divf %1139, %1140 : vector<8x1xf32>
    %1142 = vector.broadcast %1141 : vector<8x1xf32> to vector<8x32xf32>
    %1143 = arith.subf %1135, %1142 : vector<8x32xf32>
    %1144 = arith.mulf %1143, %1143 : vector<8x32xf32>
    %cst_436 = arith.constant dense<0.000000e+00> : vector<8xf32>
    %1145 = vector.multi_reduction <add>, %1144, %cst_436 [1] : vector<8x32xf32> to vector<8xf32>
    %1146 = vector.shape_cast %1145 : vector<8xf32> to vector<8x1xf32>
    %cst_437 = arith.constant 3.200000e+01 : f32
    %1147 = vector.broadcast %cst_437 : f32 to vector<8x1xf32>
    %1148 = arith.divf %1146, %1147 : vector<8x1xf32>
    %cst_438 = arith.constant 9.99999974E-6 : f32
    %1149 = vector.broadcast %cst_438 : f32 to vector<8x1xf32>
    %1150 = arith.addf %1148, %1149 : vector<8x1xf32>
    %1151 = math.rsqrt %1150 : vector<8x1xf32>
    %1152 = vector.broadcast %1151 : vector<8x1xf32> to vector<8x32xf32>
    %1153 = arith.mulf %1143, %1152 : vector<8x32xf32>
    %1154 = vector.broadcast %1136 : vector<1x32xf32> to vector<8x32xf32>
    %1155 = arith.mulf %1153, %1154 : vector<8x32xf32>
    %1156 = vector.broadcast %1137 : vector<1x32xf32> to vector<8x32xf32>
    %1157 = arith.addf %1155, %1156 : vector<8x32xf32>
    %c0_439 = arith.constant 0 : index
    %c0_440 = arith.constant 0 : index
    %1158 = vector.load %arg47[%c0_439, %c0_440] : memref<32x128xbf16, #tpu.memory_space<vmem>>, vector<32x128xbf16>
    %1159 = arith.truncf %1157 : vector<8x32xf32> to vector<8x32xbf16>
    %cst_441 = arith.constant dense<0.000000e+00> : vector<8x128xf32>
    %1160 = tpu.matmul %1159, %1158, %cst_441 {dimension_numbers = #tpu.dot_dimension_numbers<[1], [0], [0], [1], [0, 0, 1, 1], [], []>} : vector<8x32xbf16>, vector<32x128xbf16>, vector<8x128xf32> -> vector<8x128xf32>
    %c0_442 = arith.constant 0 : index
    %c0_443 = arith.constant 0 : index
    %1161 = vector.load %arg48[%c0_442, %c0_443] : memref<1x128xf32, #tpu.memory_space<vmem>>, vector<1x128xf32>
    %1162 = vector.broadcast %1161 : vector<1x128xf32> to vector<8x128xf32>
    %1163 = arith.addf %1160, %1162 : vector<8x128xf32>
    %c0_444 = arith.constant 0 : index
    %c0_445 = arith.constant 0 : index
    %c0_446 = arith.constant 0 : index
    %1164 = vector.load %arg49[%c0_444, %c0_445, %c0_446] : memref<1x8x128xf32, #tpu.memory_space<vmem>>, vector<1x8x128xf32>
    %1165 = vector.shape_cast %1164 : vector<1x8x128xf32> to vector<8x128xf32>
    %1166 = vector.shape_cast %1163 : vector<8x128xf32> to vector<1x8x128xf32>
    tpu.vector_store %arg49[%c0_444, %c0_445, %c0_446], %1166 {strides = array<i32>} : memref<1x8x128xf32, #tpu.memory_space<vmem>>, vector<1x8x128xf32>,
    return
  }
  func.func @transform_0(%arg0: i32) -> (i32, i32, i32) {
    %c0_i32 = arith.constant 0 : i32
    %c0_i32_0 = arith.constant 0 : i32
    %c0_i32_1 = arith.constant 0 : i32
    return %arg0, %c0_i32, %c0_i32_0 : i32, i32, i32
  }
  func.func @transform_1(%arg0: i32) -> (i32, i32, i32) {
    %c0_i32 = arith.constant 0 : i32
    %c0_i32_0 = arith.constant 0 : i32
    %c0_i32_1 = arith.constant 0 : i32
    return %arg0, %c0_i32, %c0_i32_0 : i32, i32, i32
  }
  func.func @transform_2(%arg0: i32) -> (i32, i32, i32) {
    %c0_i32 = arith.constant 0 : i32
    %c0_i32_0 = arith.constant 0 : i32
    %c0_i32_1 = arith.constant 0 : i32
    return %arg0, %c0_i32, %c0_i32_0 : i32, i32, i32
  }
  func.func @transform_3(%arg0: i32) -> (i32, i32, i32) {
    %c0_i32 = arith.constant 0 : i32
    %c0_i32_0 = arith.constant 0 : i32
    %c0_i32_1 = arith.constant 0 : i32
    return %arg0, %c0_i32, %c0_i32_0 : i32, i32, i32
  }
  func.func @transform_4(%arg0: i32) -> (i32, i32) {
    %c0_i32 = arith.constant 0 : i32
    %c0_i32_0 = arith.constant 0 : i32
    %c0_i32_1 = arith.constant 0 : i32
    return %c0_i32, %c0_i32_0 : i32, i32
  }
  func.func @transform_5(%arg0: i32) -> (i32, i32) {
    %c0_i32 = arith.constant 0 : i32
    %c0_i32_0 = arith.constant 0 : i32
    %c0_i32_1 = arith.constant 0 : i32
    return %c0_i32, %c0_i32_0 : i32, i32
  }
  func.func @transform_6(%arg0: i32) -> (i32, i32) {
    %c0_i32 = arith.constant 0 : i32
    %c0_i32_0 = arith.constant 0 : i32
    %c0_i32_1 = arith.constant 0 : i32
    return %c0_i32, %c0_i32_0 : i32, i32
  }
  func.func @transform_7(%arg0: i32) -> (i32, i32) {
    %c0_i32 = arith.constant 0 : i32
    %c0_i32_0 = arith.constant 0 : i32
    %c0_i32_1 = arith.constant 0 : i32
    return %c0_i32, %c0_i32_0 : i32, i32
  }
  func.func @transform_8(%arg0: i32) -> (i32, i32) {
    %c0_i32 = arith.constant 0 : i32
    %c0_i32_0 = arith.constant 0 : i32
    %c0_i32_1 = arith.constant 0 : i32
    return %c0_i32, %c0_i32_0 : i32, i32
  }
  func.func @transform_9(%arg0: i32) -> (i32, i32) {
    %c0_i32 = arith.constant 0 : i32
    %c0_i32_0 = arith.constant 0 : i32
    %c0_i32_1 = arith.constant 0 : i32
    return %c0_i32, %c0_i32_0 : i32, i32
  }
  func.func @transform_10(%arg0: i32) -> (i32, i32, i32) {
    %c0_i32 = arith.constant 0 : i32
    %c0_i32_0 = arith.constant 0 : i32
    %c0_i32_1 = arith.constant 0 : i32
    %c0_i32_2 = arith.constant 0 : i32
    return %c0_i32, %c0_i32_0, %c0_i32_1 : i32, i32, i32
  }
  func.func @transform_11(%arg0: i32) -> (i32, i32, i32) {
    %c0_i32 = arith.constant 0 : i32
    %c0_i32_0 = arith.constant 0 : i32
    %c0_i32_1 = arith.constant 0 : i32
    %c0_i32_2 = arith.constant 0 : i32
    return %c0_i32, %c0_i32_0, %c0_i32_1 : i32, i32, i32
  }
  func.func @transform_12(%arg0: i32) -> (i32, i32, i32) {
    %c0_i32 = arith.constant 0 : i32
    %c0_i32_0 = arith.constant 0 : i32
    %c0_i32_1 = arith.constant 0 : i32
    %c0_i32_2 = arith.constant 0 : i32
    return %c0_i32, %c0_i32_0, %c0_i32_1 : i32, i32, i32
  }
  func.func @transform_13(%arg0: i32) -> (i32, i32, i32) {
    %c0_i32 = arith.constant 0 : i32
    %c0_i32_0 = arith.constant 0 : i32
    %c0_i32_1 = arith.constant 0 : i32
    %c0_i32_2 = arith.constant 0 : i32
    return %c0_i32, %c0_i32_0, %c0_i32_1 : i32, i32, i32
  }
  func.func @transform_14(%arg0: i32) -> (i32, i32, i32) {
    %c0_i32 = arith.constant 0 : i32
    %c0_i32_0 = arith.constant 0 : i32
    %c0_i32_1 = arith.constant 0 : i32
    %c0_i32_2 = arith.constant 0 : i32
    return %c0_i32, %c0_i32_0, %c0_i32_1 : i32, i32, i32
  }
  func.func @transform_15(%arg0: i32) -> (i32, i32, i32) {
    %c0_i32 = arith.constant 0 : i32
    %c0_i32_0 = arith.constant 0 : i32
    %c0_i32_1 = arith.constant 0 : i32
    %c0_i32_2 = arith.constant 0 : i32
    return %c0_i32, %c0_i32_0, %c0_i32_1 : i32, i32, i32
  }
  func.func @transform_16(%arg0: i32) -> (i32, i32, i32) {
    %c0_i32 = arith.constant 0 : i32
    %c0_i32_0 = arith.constant 0 : i32
    %c0_i32_1 = arith.constant 0 : i32
    %c0_i32_2 = arith.constant 0 : i32
    return %c0_i32, %c0_i32_0, %c0_i32_1 : i32, i32, i32
  }
  func.func @transform_17(%arg0: i32) -> (i32, i32, i32) {
    %c0_i32 = arith.constant 0 : i32
    %c0_i32_0 = arith.constant 0 : i32
    %c0_i32_1 = arith.constant 0 : i32
    %c0_i32_2 = arith.constant 0 : i32
    return %c0_i32, %c0_i32_0, %c0_i32_1 : i32, i32, i32
  }
  func.func @transform_18(%arg0: i32) -> (i32, i32, i32) {
    %c0_i32 = arith.constant 0 : i32
    %c0_i32_0 = arith.constant 0 : i32
    %c0_i32_1 = arith.constant 0 : i32
    %c0_i32_2 = arith.constant 0 : i32
    return %c0_i32, %c0_i32_0, %c0_i32_1 : i32, i32, i32
  }
  func.func @transform_19(%arg0: i32) -> (i32, i32, i32) {
    %c0_i32 = arith.constant 0 : i32
    %c0_i32_0 = arith.constant 0 : i32
    %c0_i32_1 = arith.constant 0 : i32
    %c0_i32_2 = arith.constant 0 : i32
    return %c0_i32, %c0_i32_0, %c0_i32_1 : i32, i32, i32
  }
  func.func @transform_20(%arg0: i32) -> (i32, i32, i32) {
    %c0_i32 = arith.constant 0 : i32
    %c0_i32_0 = arith.constant 0 : i32
    %c0_i32_1 = arith.constant 0 : i32
    %c0_i32_2 = arith.constant 0 : i32
    return %c0_i32, %c0_i32_0, %c0_i32_1 : i32, i32, i32
  }
  func.func @transform_21(%arg0: i32) -> (i32, i32, i32) {
    %c0_i32 = arith.constant 0 : i32
    %c0_i32_0 = arith.constant 0 : i32
    %c0_i32_1 = arith.constant 0 : i32
    %c0_i32_2 = arith.constant 0 : i32
    return %c0_i32, %c0_i32_0, %c0_i32_1 : i32, i32, i32
  }
  func.func @transform_22(%arg0: i32) -> (i32, i32) {
    %c0_i32 = arith.constant 0 : i32
    %c0_i32_0 = arith.constant 0 : i32
    %c0_i32_1 = arith.constant 0 : i32
    return %c0_i32, %c0_i32_0 : i32, i32
  }
  func.func @transform_23(%arg0: i32) -> (i32, i32) {
    %c0_i32 = arith.constant 0 : i32
    %c0_i32_0 = arith.constant 0 : i32
    %c0_i32_1 = arith.constant 0 : i32
    return %c0_i32, %c0_i32_0 : i32, i32
  }
  func.func @transform_24(%arg0: i32) -> (i32, i32, i32) {
    %c0_i32 = arith.constant 0 : i32
    %c0_i32_0 = arith.constant 0 : i32
    %c0_i32_1 = arith.constant 0 : i32
    %c0_i32_2 = arith.constant 0 : i32
    return %c0_i32, %c0_i32_0, %c0_i32_1 : i32, i32, i32
  }
  func.func @transform_25(%arg0: i32) -> (i32, i32, i32) {
    %c0_i32 = arith.constant 0 : i32
    %c0_i32_0 = arith.constant 0 : i32
    %c0_i32_1 = arith.constant 0 : i32
    %c0_i32_2 = arith.constant 0 : i32
    return %c0_i32, %c0_i32_0, %c0_i32_1 : i32, i32, i32
  }
  func.func @transform_26(%arg0: i32) -> (i32, i32, i32) {
    %c0_i32 = arith.constant 0 : i32
    %c0_i32_0 = arith.constant 0 : i32
    %c0_i32_1 = arith.constant 0 : i32
    %c0_i32_2 = arith.constant 0 : i32
    return %c0_i32, %c0_i32_0, %c0_i32_1 : i32, i32, i32
  }
  func.func @transform_27(%arg0: i32) -> (i32, i32, i32) {
    %c0_i32 = arith.constant 0 : i32
    %c0_i32_0 = arith.constant 0 : i32
    %c0_i32_1 = arith.constant 0 : i32
    %c0_i32_2 = arith.constant 0 : i32
    return %c0_i32, %c0_i32_0, %c0_i32_1 : i32, i32, i32
  }
  func.func @transform_28(%arg0: i32) -> (i32, i32, i32) {
    %c0_i32 = arith.constant 0 : i32
    %c0_i32_0 = arith.constant 0 : i32
    %c0_i32_1 = arith.constant 0 : i32
    %c0_i32_2 = arith.constant 0 : i32
    return %c0_i32, %c0_i32_0, %c0_i32_1 : i32, i32, i32
  }
  func.func @transform_29(%arg0: i32) -> (i32, i32, i32) {
    %c0_i32 = arith.constant 0 : i32
    %c0_i32_0 = arith.constant 0 : i32
    %c0_i32_1 = arith.constant 0 : i32
    %c0_i32_2 = arith.constant 0 : i32
    return %c0_i32, %c0_i32_0, %c0_i32_1 : i32, i32, i32
  }
  func.func @transform_30(%arg0: i32) -> (i32, i32, i32) {
    %c0_i32 = arith.constant 0 : i32
    %c0_i32_0 = arith.constant 0 : i32
    %c0_i32_1 = arith.constant 0 : i32
    %c0_i32_2 = arith.constant 0 : i32
    return %c0_i32, %c0_i32_0, %c0_i32_1 : i32, i32, i32
  }
  func.func @transform_31(%arg0: i32) -> (i32, i32, i32) {
    %c0_i32 = arith.constant 0 : i32
    %c0_i32_0 = arith.constant 0 : i32
    %c0_i32_1 = arith.constant 0 : i32
    %c0_i32_2 = arith.constant 0 : i32
    return %c0_i32, %c0_i32_0, %c0_i32_1 : i32, i32, i32
  }
  func.func @transform_32(%arg0: i32) -> (i32, i32, i32) {
    %c0_i32 = arith.constant 0 : i32
    %c0_i32_0 = arith.constant 0 : i32
    %c0_i32_1 = arith.constant 0 : i32
    %c0_i32_2 = arith.constant 0 : i32
    return %c0_i32, %c0_i32_0, %c0_i32_1 : i32, i32, i32
  }
  func.func @transform_33(%arg0: i32) -> (i32, i32, i32) {
    %c0_i32 = arith.constant 0 : i32
    %c0_i32_0 = arith.constant 0 : i32
    %c0_i32_1 = arith.constant 0 : i32
    %c0_i32_2 = arith.constant 0 : i32
    return %c0_i32, %c0_i32_0, %c0_i32_1 : i32, i32, i32
  }
  func.func @transform_34(%arg0: i32) -> (i32, i32, i32) {
    %c0_i32 = arith.constant 0 : i32
    %c0_i32_0 = arith.constant 0 : i32
    %c0_i32_1 = arith.constant 0 : i32
    %c0_i32_2 = arith.constant 0 : i32
    return %c0_i32, %c0_i32_0, %c0_i32_1 : i32, i32, i32
  }
  func.func @transform_35(%arg0: i32) -> (i32, i32, i32) {
    %c0_i32 = arith.constant 0 : i32
    %c0_i32_0 = arith.constant 0 : i32
    %c0_i32_1 = arith.constant 0 : i32
    %c0_i32_2 = arith.constant 0 : i32
    return %c0_i32, %c0_i32_0, %c0_i32_1 : i32, i32, i32
  }
  func.func @transform_36(%arg0: i32) -> (i32, i32, i32) {
    %c0_i32 = arith.constant 0 : i32
    %c0_i32_0 = arith.constant 0 : i32
    %c0_i32_1 = arith.constant 0 : i32
    %c0_i32_2 = arith.constant 0 : i32
    return %c0_i32, %c0_i32_0, %c0_i32_1 : i32, i32, i32
  }
  func.func @transform_37(%arg0: i32) -> (i32, i32, i32) {
    %c0_i32 = arith.constant 0 : i32
    %c0_i32_0 = arith.constant 0 : i32
    %c0_i32_1 = arith.constant 0 : i32
    %c0_i32_2 = arith.constant 0 : i32
    return %c0_i32, %c0_i32_0, %c0_i32_1 : i32, i32, i32
  }
  func.func @transform_38(%arg0: i32) -> (i32, i32, i32) {
    %c0_i32 = arith.constant 0 : i32
    %c0_i32_0 = arith.constant 0 : i32
    %c0_i32_1 = arith.constant 0 : i32
    %c0_i32_2 = arith.constant 0 : i32
    return %c0_i32, %c0_i32_0, %c0_i32_1 : i32, i32, i32
  }
  func.func @transform_39(%arg0: i32) -> (i32, i32, i32) {
    %c0_i32 = arith.constant 0 : i32
    %c0_i32_0 = arith.constant 0 : i32
    %c0_i32_1 = arith.constant 0 : i32
    %c0_i32_2 = arith.constant 0 : i32
    return %c0_i32, %c0_i32_0, %c0_i32_1 : i32, i32, i32
  }
  func.func @transform_40(%arg0: i32) -> (i32, i32, i32) {
    %c0_i32 = arith.constant 0 : i32
    %c0_i32_0 = arith.constant 0 : i32
    %c0_i32_1 = arith.constant 0 : i32
    %c0_i32_2 = arith.constant 0 : i32
    return %c0_i32, %c0_i32_0, %c0_i32_1 : i32, i32, i32
  }
  func.func @transform_41(%arg0: i32) -> (i32, i32, i32) {
    %c0_i32 = arith.constant 0 : i32
    %c0_i32_0 = arith.constant 0 : i32
    %c0_i32_1 = arith.constant 0 : i32
    %c0_i32_2 = arith.constant 0 : i32
    return %c0_i32, %c0_i32_0, %c0_i32_1 : i32, i32, i32
  }
  func.func @transform_42(%arg0: i32) -> (i32, i32, i32) {
    %c0_i32 = arith.constant 0 : i32
    %c0_i32_0 = arith.constant 0 : i32
    %c0_i32_1 = arith.constant 0 : i32
    %c0_i32_2 = arith.constant 0 : i32
    return %c0_i32, %c0_i32_0, %c0_i32_1 : i32, i32, i32
  }
  func.func @transform_43(%arg0: i32) -> (i32, i32, i32) {
    %c0_i32 = arith.constant 0 : i32
    %c0_i32_0 = arith.constant 0 : i32
    %c0_i32_1 = arith.constant 0 : i32
    %c0_i32_2 = arith.constant 0 : i32
    return %c0_i32, %c0_i32_0, %c0_i32_1 : i32, i32, i32
  }
  func.func @transform_44(%arg0: i32) -> (i32, i32) {
    %c0_i32 = arith.constant 0 : i32
    %c0_i32_0 = arith.constant 0 : i32
    %c0_i32_1 = arith.constant 0 : i32
    return %c0_i32, %c0_i32_0 : i32, i32
  }
  func.func @transform_45(%arg0: i32) -> (i32, i32) {
    %c0_i32 = arith.constant 0 : i32
    %c0_i32_0 = arith.constant 0 : i32
    %c0_i32_1 = arith.constant 0 : i32
    return %c0_i32, %c0_i32_0 : i32, i32
  }
  func.func @transform_46(%arg0: i32) -> (i32, i32) {
    %c0_i32 = arith.constant 0 : i32
    %c0_i32_0 = arith.constant 0 : i32
    %c0_i32_1 = arith.constant 0 : i32
    return %c0_i32, %c0_i32_0 : i32, i32
  }
  func.func @transform_47(%arg0: i32) -> (i32, i32) {
    %c0_i32 = arith.constant 0 : i32
    %c0_i32_0 = arith.constant 0 : i32
    %c0_i32_1 = arith.constant 0 : i32
    return %c0_i32, %c0_i32_0 : i32, i32
  }
  func.func @transform_48(%arg0: i32) -> (i32, i32, i32) {
    %c0_i32 = arith.constant 0 : i32
    %c0_i32_0 = arith.constant 0 : i32
    %c0_i32_1 = arith.constant 0 : i32
    return %arg0, %c0_i32, %c0_i32_0 : i32, i32, i32
  }
}

</mosaic_0001>

<bundles_post_ra>
// kernel: _lambda_.1
= control target key start
LH: loop header
LB: loop body
LE: loop exit
PB: predicated region body
PF: predicated region fallthrough
CT: control target
= control target key end

     0   :  { %s6176_s6 = smov 1   ;;  %s6177_s10 = smov 2   ;;  %s7322_s0 = inlined_call_operand.smem [shape: u32[49], index: -1, kind: input, shape index: {}] }
   0x1   :  { %s6258_s5 = sld [smem:[%s7322_s0]]   ;;  %s6178_s14 = smov 3  }
   0x2   :  { %s6263_s9 = sld [smem:[%s7322_s0 + %s6176_s6]]   ;;  %s6179_s18 = smov 4  }
   0x3   :  { %s6268_s13 = sld [smem:[%s7322_s0 + %s6177_s10]]   ;;  %s6180_s22 = smov 5  }
   0x4   :  { %s6273_s17 = sld [smem:[%s7322_s0 + %s6178_s14]]   ;;  %s6181_s26 = smov 6  }
   0x5   :  { %s6278_s21 = sld [smem:[%s7322_s0 + %s6179_s18]]   ;;  %s6182_s30 = smov 7  }
   0x6   :  { %s6283_s25 = sld [smem:[%s7322_s0 + %s6180_s22]]   ;;  %s6183_s4 = smov 8  }
   0x7   :  { %7410 = sst [smem:[#allocation27_spill]] %s6258_s5  ;;  %s6184_s10 = smov 9  }
   0x8   :  { %7411 = sst [smem:[#allocation28_spill]] %s6263_s9  ;;  %s6185_s15 = smov 10  }
   0x9   :  { %7412 = sst [smem:[#allocation29_spill]] %s6268_s13  ;;  %s6186_s20 = smov 11  }
   0xa   :  { %7413 = sst [smem:[#allocation30_spill]] %s6273_s17  ;;  %s6188_s1 = smov 13  }
   0xb   :  { %7414 = sst [smem:[#allocation31_spill]] %s6278_s21  ;;  %s6189_s7 = smov 14  }
   0xc   :  { %7415 = sst [smem:[#allocation32_spill]] %s6283_s25  ;;  %s6191_s22 = smov 16  }
   0xd   :  { %s6288_s29 = sld [smem:[%s7322_s0 + %s6181_s26]]   ;;  %s6187_s26 = smov 12  }
   0xe   :  { %s6293_s3 = sld [smem:[%s7322_s0 + %s6182_s30]]   ;;  %s6192_s28 = smov 17  }
   0xf   :  { %s6298_s8 = sld [smem:[%s7322_s0 + %s6183_s4]]  }
  0x10   :  { %s6303_s14 = sld [smem:[%s7322_s0 + %s6184_s10]]  }
  0x11   :  { %s6308_s19 = sld [smem:[%s7322_s0 + %s6185_s15]]   ;;  %s6190_s15 = smov 15  }
  0x12   :  { %s6313_s24 = sld [smem:[%s7322_s0 + %s6186_s20]]  }
  0x13   :  { %7416 = sst [smem:[#allocation33_spill]] %s6288_s29 }
  0x14   :  { %7417 = sst [smem:[#allocation34_spill]] %s6293_s3 }
  0x15   :  { %7418 = sst [smem:[#allocation35_spill]] %s6298_s8 }
  0x16   :  { %7419 = sst [smem:[#allocation36_spill]] %s6303_s14 }
  0x17   :  { %7420 = sst [smem:[#allocation37_spill]] %s6308_s19 }
  0x18   :  { %7421 = sst [smem:[#allocation38_spill]] %s6313_s24 }
  0x19   :  { %s6318_s30 = sld [smem:[%s7322_s0 + %s6187_s26]]  }
  0x1a   :  { %s6323_s6 = sld [smem:[%s7322_s0 + %s6188_s1]]  }
  0x1b   :  { %s6328_s12 = sld [smem:[%s7322_s0 + %s6189_s7]]   ;;  %s6193_s7 = smov 18  }
  0x1c   :  { %s6333_s20 = sld [smem:[%s7322_s0 + %s6190_s15]]   ;;  %s6194_s15 = smov 19  }
  0x1d   :  { %s6338_s27 = sld [smem:[%s7322_s0 + %s6191_s22]]   ;;  %s6195_s22 = smov 20  }
  0x1e   :  { %s6343_s4 = sld [smem:[%s7322_s0 + %s6192_s28]]   ;;  %s6196_s28 = smov 21  }
  0x1f   :  { %7422 = sst [smem:[#allocation39_spill]] %s6318_s30 }
  0x20   :  { %7423 = sst [smem:[#allocation40_spill]] %s6323_s6 }
  0x21   :  { %7424 = sst [smem:[#allocation41_spill]] %s6328_s12 }
  0x22   :  { %7425 = sst [smem:[#allocation42_spill]] %s6333_s20 }
  0x23   :  { %7426 = sst [smem:[#allocation43_spill]] %s6338_s27 }
  0x24   :  { %7427 = sst [smem:[#allocation44_spill]] %s6343_s4 }
  0x25   :  { %s6348_s21 = sld [smem:[%s7322_s0 + %s6193_s7]]   ;;  %s6197_s7 = smov 22  }
  0x26   :  { %s6353_s9 = sld [smem:[%s7322_s0 + %s6194_s15]]   ;;  %s6198_s15 = smov 23  }
  0x27   :  { %s6358_s20 = sld [smem:[%s7322_s0 + %s6195_s22]]   ;;  %s6199_s22 = smov 24  }
  0x28   :  { %s6363_s4 = sld [smem:[%s7322_s0 + %s6196_s28]]   ;;  %s6200_s28 = smov 25  }
  0x29   :  { %s6368_s12 = sld [smem:[%s7322_s0 + %s6197_s7]]   ;;  %s6201_s7 = smov 26  }
  0x2b   :  { %7428 = sst [smem:[#allocation45_spill]] %s6348_s21 }
  0x2c   :  { %7429 = sst [smem:[#allocation46_spill]] %s6353_s9 }
  0x2d   :  { %7430 = sst [smem:[#allocation47_spill]] %s6358_s20 }
  0x2e   :  { %7431 = sst [smem:[#allocation48_spill]] %s6363_s4 }
  0x2f   :  { %7432 = sst [smem:[#allocation49_spill]] %s6368_s12 }
  0x30   :  { %s6373_s9 = sld [smem:[%s7322_s0 + %s6198_s15]]   ;;  %s6202_s15 = smov 27  }
  0x31   :  { %s6378_s20 = sld [smem:[%s7322_s0 + %s6199_s22]]   ;;  %s6203_s22 = smov 28  }
  0x32   :  { %s6383_s4 = sld [smem:[%s7322_s0 + %s6200_s28]]   ;;  %s6204_s28 = smov 29  }
  0x33   :  { %s6388_s21 = sld [smem:[%s7322_s0 + %s6201_s7]]   ;;  %s6205_s7 = smov 30  }
  0x34   :  { %s6393_s27 = sld [smem:[%s7322_s0 + %s6202_s15]]   ;;  %s6206_s15 = smov 31  }
  0x36   :  { %7433 = sst [smem:[#allocation50_spill]] %s6373_s9 }
  0x37   :  { %7434 = sst [smem:[#allocation51_spill]] %s6378_s20 }
  0x38   :  { %7435 = sst [smem:[#allocation52_spill]] %s6383_s4 }
  0x39   :  { %7436 = sst [smem:[#allocation53_spill]] %s6388_s21 }
  0x3a   :  { %7437 = sst [smem:[#allocation54_spill]] %s6393_s27 }
  0x3b   :  { %s6398_s20 = sld [smem:[%s7322_s0 + %s6203_s22]]   ;;  %s6207_s22 = smov 32  }
  0x3c   :  { %s6403_s4 = sld [smem:[%s7322_s0 + %s6204_s28]]   ;;  %s6208_s28 = smov 33  }
  0x3d   :  { %s6408_s21 = sld [smem:[%s7322_s0 + %s6205_s7]]   ;;  %s6209_s7 = smov 34  }
  0x3e   :  { %s6413_s27 = sld [smem:[%s7322_s0 + %s6206_s15]]   ;;  %s6210_s15 = smov 35  }
  0x41   :  { %7438 = sst [smem:[#allocation55_spill]] %s6398_s20 }
  0x42   :  { %7439 = sst [smem:[#allocation56_spill]] %s6403_s4 }
  0x43   :  { %7440 = sst [smem:[#allocation57_spill]] %s6408_s21 }
  0x44   :  { %7441 = sst [smem:[#allocation58_spill]] %s6413_s27 }
  0x45   :  { %s6418_s20 = sld [smem:[%s7322_s0 + %s6207_s22]]   ;;  %s6211_s22 = smov 36  }
  0x46   :  { %s6423_s4 = sld [smem:[%s7322_s0 + %s6208_s28]]   ;;  %s6212_s28 = smov 37  }
  0x47   :  { %s6428_s21 = sld [smem:[%s7322_s0 + %s6209_s7]]   ;;  %s6213_s7 = smov 38  }
  0x48   :  { %s6433_s27 = sld [smem:[%s7322_s0 + %s6210_s15]]   ;;  %s6214_s15 = smov 39  }
  0x49   :  { %s6438_s6 = sld [smem:[%s7322_s0 + %s6211_s22]]   ;;  %s6215_s22 = smov 40  }
  0x4b   :  { %7442 = sst [smem:[#allocation59_spill]] %s6418_s20 }
  0x4c   :  { %7443 = sst [smem:[#allocation60_spill]] %s6423_s4 }
  0x4d   :  { %7444 = sst [smem:[#allocation61_spill]] %s6428_s21 }
  0x4e   :  { %7445 = sst [smem:[#allocation62_spill]] %s6433_s27 }
  0x4f   :  { %7446 = sst [smem:[#allocation63_spill]] %s6438_s6 }
  0x50   :  { %s6443_s4 = sld [smem:[%s7322_s0 + %s6212_s28]]   ;;  %s6216_s28 = smov 41  }
  0x51   :  { %s6448_s21 = sld [smem:[%s7322_s0 + %s6213_s7]]   ;;  %s6217_s7 = smov 42  }
  0x52   :  { %s6453_s27 = sld [smem:[%s7322_s0 + %s6214_s15]]   ;;  %s6218_s15 = smov 43  }
  0x53   :  { %s6458_s6 = sld [smem:[%s7322_s0 + %s6215_s22]]   ;;  %s6219_s22 = smov 44  }
  0x54   :  { %s6468_s30 = sld [smem:[%s7322_s0 + %s6217_s7]]   ;;  %s6221_s7 = smov 46  }
  0x56   :  { %7447 = sst [smem:[#allocation64_spill]] %s6443_s4 }
  0x57   :  { %7448 = sst [smem:[#allocation65_spill]] %s6448_s21 }
  0x58   :  { %7449 = sst [smem:[#allocation66_spill]] %s6453_s27 }
  0x59   :  { %7450 = sst [smem:[#allocation67_spill]] %s6458_s6 }
  0x5a   :  { %s6463_s4 = sld [smem:[%s7322_s0 + %s6216_s28]]   ;;  %s6220_s28 = smov 45  }
  0x5b   :  { %7452 = sst [smem:[#allocation69_spill]] %s6468_s30 }
  0x5c   :  { %s6473_s27 = sld [smem:[%s7322_s0 + %s6218_s15]]   ;;  %s6222_s15 = smov 47  }
  0x5d   :  { %s6478_s6 = sld [smem:[%s7322_s0 + %s6219_s22]]   ;;  %s6223_s22 = smov 48  }
  0x5e   :  { %s6483_s24 = sld [smem:[%s7322_s0 + %s6220_s28]]  }
  0x5f   :  { %s6488_s30 = sld [smem:[%s7322_s0 + %s6221_s7]]  }
  0x60   :  { %7451 = sst [smem:[#allocation68_spill]] %s6463_s4 }
  0x61   :  { %s6498_s14 = sld [smem:[%s7322_s0 + %s6223_s22]]  }
  0x62   :  { %7453 = sst [smem:[#allocation70_spill]] %s6473_s27 }
  0x63   :  { %7454 = sst [smem:[#allocation71_spill]] %s6478_s6 }
  0x64   :  { %7455 = sst [smem:[#allocation72_spill]] %s6483_s24 }
  0x65   :  { %7456 = sst [smem:[#allocation73_spill]] %s6488_s30 }
  0x66   :  { %s6493_s27 = sld [smem:[%s7322_s0 + %s6222_s15]]  }
  0x67   :  { %7458 = sst [smem:[#allocation75_spill]] %s6498_s14 }
  0x6c   :  { %7457 = sst [smem:[#allocation74_spill]] %s6493_s27 }
  0x6d   :  { %102 = vsyncpa [#allocation3], 0 }
  0x6e   :  { %103 = vsyncpa [#allocation6], 0 }
  0x6f   :  { %104 = vsyncpa [#allocation9], 0 }
  0x70   :  { %105 = vsyncpa [#allocation12], 0 }
  0x71   :  { %106 = vsyncpa [#allocation15], 0 }
  0x72   :  { %107 = vsyncpa [#allocation18], 0 }
  0x73   :  { %108 = vsyncpa [#allocation4], 0 }
  0x74   :  { %110 = vsyncpa [#allocation4 + $0x1], 0  ;;  %s6500_s28 = smov 0   ;;  %s6502_s1 = smov 0  }
  0x75   :  { %s6504_s2 = smov 0   ;;  %s6506_s7 = smov 0  }
  0x76 LB: > { %s7459_s17 = sld [smem:[#allocation30_spill]]  ;;  %s6521_s0 = sadd.s32 4294967295, %s6174_s7   ;;  %s6174_s7 = sphi %s6506_s7, %s7550_s7   ;;  %s6170_s2 = sphi %s6504_s2, %s7552_s2   ;;  %s6166_s1 = sphi %s6502_s1, %s7554_s1   ;;  %s6162_s28 = sphi %s6500_s28, %s7553_s28  }
  0x77   : > { %s7460_s27 = sld [smem:[#allocation74_spill]]  ;;  %s5012_s10 = sadd.s32 4294967294, %s6174_s7  }
  0x78   : > { %s7461_s24 = sld [smem:[#allocation72_spill]]  ;;  %s6525_s11 = sadd.s32 1, %s6174_s7  }
  0x79   : > { %s7462_s21 = sld [smem:[#allocation65_spill]]  ;;  %s1151_s15 = sadd.s32 1, %s6170_s2 }
  0x7a   : > { %s7463_s20 = sld [smem:[#allocation59_spill]]  ;;  %s1148_s16 = ssub.s32 %s6174_s7, %s6525_s11 }
  0x7b   : > { %s7464_s19 = sld [smem:[#allocation37_spill]]  ;;  %p1161_p0 = scmp.ne.s32.totalorder %s6170_s2, %s6166_s1 }
  0x7c   : > { %s7465_s12 = sld [smem:[#allocation49_spill]]  ;;  %p1149_p1 = scmp.eq.s32.totalorder %s1148_s16, 0 }
  0x7d   : > { %s7466_s6 = sld [smem:[#allocation71_spill]]  ;;  %p1162_p2 = scmp.eq.s32.totalorder %s6521_s0, 1 }
  0x7e   : > { %s7467_s4 = sld [smem:[#allocation68_spill]]  ;;  %p1167_p3 = scmp.ne.s32.totalorder %s6166_s1, %s6162_s28 }
  0x7f   : > { %s7468_s3 = sld [smem:[#allocation34_spill]]  ;;  %p1168_p4 = scmp.eq.s32.totalorder %s5012_s10, 1 }
  0x80   : > { %s7469_s9 = sld [smem:[#allocation50_spill]]  ;;  %p6538_p5 = por %p1162_p2, %p1161_p0 }
  0x81   : > { %s7470_s8 = sld [smem:[#allocation35_spill]]  ;;  %p6542_p6 = por %p1168_p4, %p1167_p3 }
  0x82   : > { %7471 = sst [smem:[#allocation76_spill]] %s6162_s28  ;;  %p5013_p7 = scmp.ge.s32.totalorder %s6174_s7, 1 }
  0x83   : > { %7472 = sst [smem:[#allocation77_spill]] %s6170_s2  ;;  %p1175_p8 = scmp.lt.s32.totalorder %s6174_s7, 3 }
  0x84   : > { %7473 = sst [smem:[#allocation78_spill]] %s6174_s7  ;;  %p5484_p9 = scmp.eq.s32.totalorder %s6521_s0, 0 }
  0x85   : > { %7474 = sst [smem:[#allocation79_spill]] %s6521_s0  ;;  %p6549_p10 = pnand %p5013_p7, %p1175_p8 }
  0x86   : > { %7475 = sst [smem:[#allocation80_spill]] %s6525_s11  ;;  %s6224_s10 = smov [#allocation5]  }
  0x87   : > { %s6536_s18 = scalar_select %p1149_p1, %s6170_s2, %s1151_s15  }
  0x88   : > { %s7477_s22 = scalar_select %p6538_p5, 1, 0 }
  0x89   : > { %7476 = sst [smem:[#allocation81_spill]] %s6536_s18  ;;  %s1208_s16 = sshll.u32 %s7470_s8, 4  ;;  %s1209_s16 = int_to_ptr.hbm [resolvable:$true] %s1208_s16 }
  0x8a   : > { %7478 = sst [smem:[#allocation82_spill]] %s7477_s22  ;;  %p5449_p11 = pneg %p6549_p10 }
  0x8b   : > { %s7479_s23 = scalar_select %p6542_p6, 1, 0 }
  0x8c   : > { %s1210_s15 = sshll.u32 %s6224_s10, 4  ;;  %s1271_s18 = sshll.u32 %s7469_s9, 4  ;;  %s1211_s15 = int_to_ptr.vmem [resolvable:$true] %s1210_s15  ;;  %s6563_s18 = int_to_ptr.hbm [resolvable:$true] %s1271_s18 }
  0x8d   : > { %7480 = sst [smem:[#allocation83_spill]] %s7479_s23  ;;  %p6559_p12 = pnand %p5484_p9, %p5449_p11 }
  0x8e   : > { %s6225_s11 = smov [#allocation8]   ;;  %s5788_s28 = sshra.s32 %s1209_s16, 4  ;;  %s5789_s28 = int_to_ptr.hbm [resolvable:$true] %s5788_s28 }
  0x8f   : > { %s6565_s23 = sshll.u32 %s6225_s11, 4  ;;  %s5790_s7 = scalar_lea.hbm %s5789_s28, 1  ;;  %s1274_s23 = int_to_ptr.vmem [resolvable:$true] %s6565_s23 }
  0x90   : > { %p5791_p13 = scmp.ne.s32.totalorder %s5789_s28, %s5790_s7  ;;  %p6569_p0 = pneg %p6559_p12 }
  0x91   : > { %s5795_s22 = scalar_lea.hbm %s7470_s8, 1  ;;  %p5796_p3 = scmp.lt.s32.totalorder %s5789_s28, %s7470_s8 }
  0x92   : > { %p5793_p1 = pnand %p6569_p0, %p5791_p13  ;;  %p5797_p4 = scmp.lt.s32.totalorder %s5795_s22, %s5790_s7 }
  0x94   : > { %p5794_p2 = pneg %p5793_p1  ;;  %p5798_p7 = por %p5797_p4, %p5796_p3 }
  0x96   : > { %p5799_p8 = pnand %p5798_p7, %p5794_p2 }
  0x98   : > { %5802 = shalt.err (!%p5799_p8)
}
  0x99   : > { %5455 = dma.hbm_to_vmem [thread:$0]  (!%p6559_p12), %s1209_s16, 16, %s1211_s15, [#allocation6]  }
  0x9a   : > { %s5818_s11 = sshra.s32 %s6563_s18, 4  ;;  %s5825_s28 = scalar_lea.hbm %s7469_s9, 1  ;;  %s5819_s11 = int_to_ptr.hbm [resolvable:$true] %s5818_s11 }
  0x9b   : > { %s5820_s14 = scalar_lea.hbm %s5819_s11, 1  ;;  %p5826_p3 = scmp.lt.s32.totalorder %s5819_s11, %s7469_s9 }
  0x9c   : > { %p5821_p11 = scmp.ne.s32.totalorder %s5819_s11, %s5820_s14  ;;  %p5827_p2 = scmp.lt.s32.totalorder %s5825_s28, %s5820_s14 }
  0x9e   : > { %p5823_p13 = pnand %p5821_p11, %p6569_p0  ;;  %p5828_p4 = por %p5827_p2, %p5826_p3 }
  0xa0   : > { %p5824_p1 = pneg %p5823_p13 }
  0xa2   : > { %p5829_p7 = pnand %p5828_p4, %p5824_p1 }
  0xa4   : > { %5832 = shalt.err (!%p5829_p7)
}
  0xa5   : > { %5461 = dma.hbm_to_vmem [thread:$0]  (!%p6559_p12), %s6563_s18, 16, %s1274_s23, [#allocation9]  }
  0xa6   : > { %s1335_s7 = sshll.u32 %s7462_s21, 4  ;;  %s6226_s22 = smov [#allocation11]   ;;  %s1336_s7 = int_to_ptr.hbm [resolvable:$true] %s1335_s7 }
  0xa7   : > { %s1337_s16 = sshll.u32 %s6226_s22, 4  ;;  %s1376_s15 = sshll.u32 %s7466_s6, 4  ;;  %s1338_s16 = int_to_ptr.vmem [resolvable:$true] %s1337_s16  ;;  %s1377_s15 = int_to_ptr.hbm [resolvable:$true] %s1376_s15 }
  0xa8   : > { %s5848_s11 = sshra.s32 %s1336_s7, 4  ;;  %s5855_s28 = scalar_lea.hbm %s7462_s21, 32  ;;  %s5849_s11 = int_to_ptr.hbm [resolvable:$true] %s5848_s11 }
  0xa9   : > { %s5850_s14 = scalar_lea.hbm %s5849_s11, 32  ;;  %p5856_p1 = scmp.lt.s32.totalorder %s5849_s11, %s7462_s21 }
  0xaa   : > { %p5851_p8 = scmp.ne.s32.totalorder %s5849_s11, %s5850_s14  ;;  %p5857_p3 = scmp.lt.s32.totalorder %s5855_s28, %s5850_s14 }
  0xac   : > { %p5853_p11 = pnand %p5851_p8, %p6569_p0  ;;  %p5858_p2 = por %p5857_p3, %p5856_p1 }
  0xae   : > { %p5854_p13 = pneg %p5853_p11 }
  0xb0   : > { %p5859_p4 = pnand %p5858_p2, %p5854_p13 }
  0xb2   : > { %5862 = shalt.err (!%p5859_p4)
}
  0xb3   : > { %s7362_s18 = smov 64   ;;  %s6228_s23 = smov 4  }
  0xb4   : > { %5467 = dma.hbm_to_vmem [thread:$0]  (!%p6559_p12), %s1336_s7, 512, %s1338_s16, [#allocation12], %s7362_s18, %s7362_s18, %s6228_s23  }
  0xb5   : > { %s6229_s22 = smov [#allocation14]   ;;  %s1196_s11 = sshll.u32 %s7468_s3, 4  ;;  %s6600_s11 = int_to_ptr.hbm [resolvable:$true] %s1196_s11 }
  0xb6   : > { %s1378_s8 = sshll.u32 %s6229_s22, 4  ;;  %s5878_s14 = sshra.s32 %s1377_s15, 4  ;;  %s1379_s8 = int_to_ptr.vmem [resolvable:$true] %s1378_s8  ;;  %s5879_s14 = int_to_ptr.hbm [resolvable:$true] %s5878_s14 }
  0xb7   : > { %s5880_s28 = scalar_lea.hbm %s5879_s14, 1  ;;  %s5885_s9 = scalar_lea.hbm %s7466_s6, 1 }
  0xb8   : > { %p5881_p7 = scmp.ne.s32.totalorder %s5879_s14, %s5880_s28  ;;  %p5886_p13 = scmp.lt.s32.totalorder %s5879_s14, %s7466_s6 }
  0xb9   : > { %p5887_p1 = scmp.lt.s32.totalorder %s5885_s9, %s5880_s28 }
  0xba   : > { %p5883_p8 = pnand %p5881_p7, %p6569_p0 }
  0xbb   : > { %p5888_p3 = por %p5887_p1, %p5886_p13 }
  0xbc   : > { %p5884_p11 = pneg %p5883_p8 }
  0xbe   : > { %p5889_p2 = pnand %p5888_p3, %p5884_p11 }
  0xc0   : > { %5892 = shalt.err (!%p5889_p2)
}
  0xc1   : > { %5473 = dma.hbm_to_vmem [thread:$0]  (!%p6559_p12), %s1377_s15, 16, %s1379_s8, [#allocation15]  }
  0xc2   : > { %s1259_s7 = sshll.u32 %s7465_s12, 4  ;;  %s6230_s16 = smov [#allocation2]   ;;  %s6609_s7 = int_to_ptr.hbm [resolvable:$true] %s1259_s7 }
  0xc3   : > { %s1198_s22 = sshll.u32 %s6230_s16, 4  ;;  %s5908_s18 = sshra.s32 %s6600_s11, 4  ;;  %s1199_s22 = int_to_ptr.vmem [resolvable:$true] %s1198_s22  ;;  %s5909_s18 = int_to_ptr.hbm [resolvable:$true] %s5908_s18 }
  0xc4   : > { %s5910_s9 = scalar_lea.hbm %s5909_s18, 1  ;;  %s5915_s14 = scalar_lea.hbm %s7468_s3, 1 }
  0xc5   : > { %p5911_p4 = scmp.ne.s32.totalorder %s5909_s18, %s5910_s9  ;;  %p5916_p11 = scmp.lt.s32.totalorder %s5909_s18, %s7468_s3 }
  0xc6   : > { %p5917_p13 = scmp.lt.s32.totalorder %s5915_s14, %s5910_s9 }
  0xc7   : > { %p5913_p7 = pnand %p5911_p4, %p6569_p0 }
  0xc8   : > { %p5918_p1 = por %p5917_p13, %p5916_p11 }
  0xc9   : > { %p5914_p8 = pneg %p5913_p7 }
  0xcb   : > { %p5919_p3 = pnand %p5918_p1, %p5914_p8 }
  0xcd   : > { %5922 = shalt.err (!%p5919_p3)
}
  0xce   : > { %5452 = dma.hbm_to_vmem [thread:$0]  (!%p6559_p12), %s6600_s11, 16, %s1199_s22, [#allocation3]  }
  0xcf   : > { %s6231_s8 = smov [#allocation7]   ;;  %s1306_s28 = sshll.u32 %s7463_s20, 4  ;;  %s6620_s28 = int_to_ptr.hbm [resolvable:$true] %s1306_s28 }
  0xd0   : > { %s1261_s15 = sshll.u32 %s6231_s8, 4  ;;  %s5938_s18 = sshra.s32 %s6609_s7, 4  ;;  %s1262_s15 = int_to_ptr.vmem [resolvable:$true] %s1261_s15  ;;  %s5939_s18 = int_to_ptr.hbm [resolvable:$true] %s5938_s18 }
  0xd1   : > { %s5940_s16 = scalar_lea.hbm %s5939_s18, 1  ;;  %s5945_s9 = scalar_lea.hbm %s7465_s12, 1 }
  0xd2   : > { %p5941_p2 = scmp.ne.s32.totalorder %s5939_s18, %s5940_s16  ;;  %p5946_p8 = scmp.lt.s32.totalorder %s5939_s18, %s7465_s12 }
  0xd3   : > { %p5947_p11 = scmp.lt.s32.totalorder %s5945_s9, %s5940_s16 }
  0xd4   : > { %p5943_p4 = pnand %p5941_p2, %p6569_p0 }
  0xd5   : > { %p5948_p13 = por %p5947_p11, %p5946_p8 }
  0xd6   : > { %p5944_p7 = pneg %p5943_p4 }
  0xd8   : > { %p5949_p1 = pnand %p5948_p13, %p5944_p7 }
  0xda   : > { %5952 = shalt.err (!%p5949_p1)
}
  0xdb   : > { %5458 = dma.hbm_to_vmem [thread:$0]  (!%p6559_p12), %s6609_s7, 16, %s1262_s15, [#allocation6]  }
  0xdc   : > { %s1355_s11 = sshll.u32 %s7467_s4, 4  ;;  %s6232_s22 = smov [#allocation10]   ;;  %s6631_s11 = int_to_ptr.hbm [resolvable:$true] %s1355_s11 }
  0xdd   : > { %s1308_s14 = sshll.u32 %s6232_s22, 4  ;;  %s5968_s8 = sshra.s32 %s6620_s28, 4  ;;  %s1309_s14 = int_to_ptr.vmem [resolvable:$true] %s1308_s14  ;;  %s5969_s8 = int_to_ptr.hbm [resolvable:$true] %s5968_s8 }
  0xde   : > { %s5970_s18 = scalar_lea.hbm %s5969_s8, 32  ;;  %s5975_s16 = scalar_lea.hbm %s7463_s20, 32 }
  0xdf   : > { %p5971_p3 = scmp.ne.s32.totalorder %s5969_s8, %s5970_s18  ;;  %p5976_p7 = scmp.lt.s32.totalorder %s5969_s8, %s7463_s20 }
  0xe0   : > { %p5977_p8 = scmp.lt.s32.totalorder %s5975_s16, %s5970_s18 }
  0xe1   : > { %p5973_p2 = pnand %p5971_p3, %p6569_p0 }
  0xe2   : > { %p5978_p11 = por %p5977_p8, %p5976_p7 }
  0xe3   : > { %p5974_p4 = pneg %p5973_p2 }
  0xe5   : > { %p5979_p13 = pnand %p5978_p11, %p5974_p4 }
  0xe7   : > { %5982 = shalt.err (!%p5979_p13)
}
  0xe8   : > { %s7484_s7 = smov 64   ;;  %s6233_s15 = smov [#allocation13]  }
  0xe9   : > { %5464 = dma.hbm_to_vmem [thread:$0]  (!%p6559_p12), %s6620_s28, 512, %s1309_s14, [#allocation9], %s7484_s7, %s7484_s7, %s6228_s23  }
  0xea   : > { %s1357_s9 = sshll.u32 %s6233_s15, 4  ;;  %s5998_s22 = sshra.s32 %s6631_s11, 4  ;;  %s1358_s9 = int_to_ptr.vmem [resolvable:$true] %s1357_s9  ;;  %s5999_s22 = int_to_ptr.hbm [resolvable:$true] %s5998_s22 }
  0xeb   : > { %s6000_s8 = scalar_lea.hbm %s5999_s22, 2  ;;  %s6005_s18 = scalar_lea.hbm %s7467_s4, 2 }
  0xec   : > { %p6001_p1 = scmp.ne.s32.totalorder %s5999_s22, %s6000_s8  ;;  %p6006_p4 = scmp.lt.s32.totalorder %s5999_s22, %s7467_s4 }
  0xed   : > { %p6007_p7 = scmp.lt.s32.totalorder %s6005_s18, %s6000_s8 }
  0xee   : > { %p6003_p3 = pnand %p6001_p1, %p6569_p0 }
  0xef   : > { %p6008_p8 = por %p6007_p7, %p6006_p4 }
  0xf0   : > { %p6004_p2 = pneg %p6003_p3 }
  0xf2   : > { %p6009_p11 = pnand %p6008_p8, %p6004_p2 }
  0xf4   : > { %6012 = shalt.err (!%p6009_p11)
}
  0xf5   : > { %s6234_s16 = smov 16   ;;  %s6235_s23 = smov 1  }
  0xf6   : > { %5470 = dma.hbm_to_vmem [thread:$0]  (!%p6559_p12), %s6631_s11, 32, %s1358_s9, [#allocation12], %s6234_s16, %s6234_s16, %s6235_s23  }
  0xf7   : > { %s1388_s28 = sshll.u32 %s7461_s24, 4  ;;  %s6236_s14 = smov [#allocation16]   ;;  %s1389_s28 = int_to_ptr.hbm [resolvable:$true] %s1388_s28 }
  0xf8   : > { %s1390_s7 = sshll.u32 %s6236_s14, 4  ;;  %s1403_s15 = sshll.u32 %s7460_s27, 4  ;;  %s1391_s7 = int_to_ptr.vmem [resolvable:$true] %s1390_s7  ;;  %s1404_s15 = int_to_ptr.hbm [resolvable:$true] %s1403_s15 }
  0xf9   : > { %s6028_s22 = sshra.s32 %s1389_s28, 4  ;;  %s6035_s18 = scalar_lea.hbm %s7461_s24, 1  ;;  %s6029_s22 = int_to_ptr.hbm [resolvable:$true] %s6028_s22 }
  0xfa   : > { %s6030_s8 = scalar_lea.hbm %s6029_s22, 1  ;;  %p6036_p2 = scmp.lt.s32.totalorder %s6029_s22, %s7461_s24 }
  0xfb   : > { %p6031_p13 = scmp.ne.s32.totalorder %s6029_s22, %s6030_s8  ;;  %p6037_p4 = scmp.lt.s32.totalorder %s6035_s18, %s6030_s8 }
  0xfd   : > { %p6033_p1 = pnand %p6031_p13, %p6569_p0  ;;  %p6038_p7 = por %p6037_p4, %p6036_p2 }
  0xff   : > { %p6034_p3 = pneg %p6033_p1 }
 0x101   : > { %p6039_p8 = pnand %p6038_p7, %p6034_p3 }
 0x103   : > { %6042 = shalt.err (!%p6039_p8)
}
 0x104   : > { %5476 = dma.hbm_to_vmem [thread:$0]  (!%p6559_p12), %s1389_s28, 16, %s1391_s7, [#allocation15]  }
 0x105   : > { %s6237_s11 = smov [#allocation17]   ;;  %s6058_s16 = sshra.s32 %s1404_s15, 4  ;;  %s6059_s16 = int_to_ptr.hbm [resolvable:$true] %s6058_s16 }
 0x106   : > { %s1405_s9 = sshll.u32 %s6237_s11, 4  ;;  %s6060_s23 = scalar_lea.hbm %s6059_s16, 1  ;;  %s1406_s9 = int_to_ptr.vmem [resolvable:$true] %s1405_s9 }
 0x107   : > { %p6061_p11 = scmp.ne.s32.totalorder %s6059_s16, %s6060_s23  ;;  %s6065_s14 = scalar_lea.hbm %s7460_s27, 1 }
 0x108   : > { %p6066_p3 = scmp.lt.s32.totalorder %s6059_s16, %s7460_s27  ;;  %p6067_p2 = scmp.lt.s32.totalorder %s6065_s14, %s6060_s23 }
 0x109   : > { %p6063_p13 = pnand %p6061_p11, %p6569_p0 }
 0x10a   : > { %p6068_p4 = por %p6067_p2, %p6066_p3 }
 0x10b   : > { %p6064_p1 = pneg %p6063_p13 }
 0x10d   : > { %p6069_p7 = pnand %p6068_p4, %p6064_p1 }
 0x10f   : > { %6072 = shalt.err (!%p6069_p7)
}
 0x110   : > { %5479 = dma.hbm_to_vmem [thread:$0]  (!%p6559_p12), %s1404_s15, 16, %s1406_s9, [#allocation18]  }
 0x111   : > { %1444 = sbr.rel (%p6549_p10) target bundleno = 10758 (0x2a06), region = 212 }
 0x116   : > { %6133 = dma.done.wait (%p5484_p9), [#allocation3], 16  }
 0x117   : > { %6135 = vsyncadd (%p5484_p9), [#allocation3], 4294967280 }
 0x118   : > { %6137 = dma.done.wait (%p5484_p9), [#allocation6], 32  }
 0x119   : > { %6139 = vsyncadd (%p5484_p9), [#allocation6], 4294967264 }
 0x11a   : > { %6141 = dma.done.wait (%p5484_p9), [#allocation9], 528  }
 0x11b   : > { %6143 = vsyncadd (%p5484_p9), [#allocation9], 4294966768 }
 0x11c   : > { %6145 = dma.done.wait (%p5484_p9), [#allocation12], 544  }
 0x11d   : > { %6147 = vsyncadd (%p5484_p9), [#allocation12], 4294966752 }
 0x11e   : > { %6149 = dma.done.wait (%p5484_p9), [#allocation15], 32  }
 0x11f   : > { %6151 = vsyncadd (%p5484_p9), [#allocation15], 4294967264 }
 0x120   : > { %6153 = dma.done.wait (%p5484_p9), [#allocation18], 16  }
 0x121   : > { %6155 = vsyncadd (%p5484_p9), [#allocation18], 4294967280  ;;  %s7485_s5 = sld [smem:[#allocation27_spill]]  ;;  %p1613_p10 = scmp.lt.s32.totalorder %s6521_s0, 1  ;;  %vm1641_vm0 = vcmask 1041408   ;;  %vm1637_vm1 = vcmask 31744  }
 0x122   : > { %s7486_s13 = sld [smem:[#allocation29_spill]]  ;;  %vm1660_vm2 = vcmask 261120   ;;  %v6238_v10 = vmov 32.0   ;;  %v5366_v22 = vld [vmem:[%s7464_s19 + $0x8] sm:$0xff]  ;;  %v5365_v23 = vld [vmem:[%s7464_s19] sm:$0xff]  ;;  %s7384_s8 = smov 88  }
 0x123   : > { %s7487_s25 = sld [smem:[#allocation32_spill]]  ;;  %5663 = vrcp.f32 %v6238_v10  ;;  %1730 = vmatpush.bf16.msra.mxu1 %v5366_v22  ;;  %v5614_v33 = vld [vmem:[#allocation2] ss:$0 sm:$0xff]  ;;  %v5615_v36 = vld [vmem:[#allocation5] ss:$0 sm:$0xff]  ;;  %s7378_s18 = smov 64  }
 0x124   : > { %s7488_s29 = sld [smem:[#allocation33_spill]]  ;;  %s7382_s9 = smov 96   ;;  %vm1785_vm7 = vcmask 1043456   ;;  %vm1750_vm8 = vcmask 64512   ;;  %vm2172_vm12 = vcmask 523264  }
 0x125   : > { %s6694_s2 = scalar_select %p1613_p10, %s6521_s0, 1 }
 0x126   : > { %s7489_s15 = sld [smem:[#allocation36_spill]]  ;;  %s7376_s16 = smov 120  }
 0x127   : > { %s7363_s26 = sshll.u32 %s6694_s2, 3  ;;  %1731 = vmatpush.bf16.msra.mxu1 %v5365_v23  ;;  %s7490_s22 = sld [smem:[#allocation38_spill]] }
 0x128   : > { %s1616_s10 = scalar_lea.vmem %s7485_s5, %s7363_s26  ;;  %s6702_s28 = scalar_lea.vmem %s7486_s13, %s6694_s2 }
 0x129   : > { %v1630_v0 = vld [vmem:[%s7487_s25] sm:$0xf]  ;;  %v5664_v11 = vpop.eup %5663  ;;  %s7491_s11 = sld [smem:[#allocation39_spill]]  ;;  %s7380_s23 = smov 72  }
 0x12a   : > { %v1629_v1 = vld [vmem:[%s1616_s10] sm:$0xff]  ;;  %v1632_v2 = vpack.c.bf16 %v1630_v0, %v1630_v0  ;;  %v1665_v12 = vmul.f32 32.0, %v5664_v11  ;;  %vm1669_vm3 = vweird.f32 %v5664_v11  ;;  %s7372_s14 = smov 112   ;;  %s7364_s10 = smov 48  }
 0x12b   : > { %v1631_v4 = vpack.c.bf16 %v1629_v1, %v1629_v1  ;;  %v5613_v5 = vld [vmem:[%s7488_s29] ss:$0 sm:$0xff]  ;;  %s7374_s7 = smov 80   ;;  %s7368_s26 = smov 56  }
 0x12c   : > { %v1643_v3 = vsel %vm1641_vm0, %v1632_v2, 0  ;;  %v1666_v13 = vsub.f32 1.0, %v1665_v12  ;;  %v1698_v38 = vld [vmem:[%s7489_s15] sm:$0xff]  ;;  %s7370_s15 = smov 104   ;;  %s7503_s3 = smov 88  }
 0x12d   : > { %1652 = vmatpush.bf16.msra.mxu0 %v1643_v3  ;;  %v5616_v42 = vld [vmem:[%s7490_s22] ss:$0 sm:$0xff]  ;;  %s7505_s4 = smov 72   ;;  %s7506_s5 = smov 64  }
 0x12e   : > { %v1667_v14 = vmul.f32 %v5664_v11, %v1666_v13  ;;  %v6744_v61 = vld [vmem:[%s6702_s28] ss:$0 sm:$0xff]  ;;  %s7507_s6 = smov 120   ;;  %s7508_s12 = smov 80  }
 0x12f   : > { %v1738_v51 = vld [vmem:[%s7491_s11] sm:$0xff]  ;;  %s7509_s13 = smov 112   ;;  %s7511_s20 = smov 56  }
 0x130   : > { %5039 = vmatmul.msk.bf16.vlgmr.msra.gmra.mxu0 %vm1637_vm1, %v1631_v4  ;;  %v1668_v15 = vadd.f32 %v5664_v11, %v1667_v14  ;;  %v1805_v52 = vpack.c.bf16 %v1738_v51, %v1738_v51  ;;  %s7512_s21 = smov 40   ;;  %s7514_s24 = sld [smem:[#allocation51_spill]] }
 0x131   : > { %s7515_s25 = sld [smem:[#allocation28_spill]]  ;;  %s7516_s27 = sshll.u32 %s6694_s2, 3 }
 0x132   : > { %v6709_v16 = vsel %vm1669_vm3, %v5664_v11, %v1668_v15  ;;  %v1888_v56 = vsel %vm1785_vm7, %v1805_v52, 0  ;;  %s7517_s0 = sld [smem:[#allocation52_spill]] }
 0x137   : > { %s1620_s29 = scalar_lea.vmem %s7515_s25, %s7516_s27  ;;  %s7518_s25 = sld [smem:[#allocation31_spill]] }
 0x138   : > { %s7520_s27 = sld [smem:[#allocation53_spill]] }
 0x1ad   : > { %v1654_v6 = vpop.f32.mrf.mxu0 }
 0x1ae   : > { %v1655_v7 = vadd.f32 %v5613_v5, %v1654_v6 }
 0x1b0   : > { %v1661_v8 = vsel %vm1660_vm2, %v1655_v7, 0.0 }
 0x1b1   : > { %1662 = vadd.xlane.f32.xlu0 %v1661_v8 }
 0x1b5   : > { %v1656_v9 = vpop.f32.mrf.mxu0 }
 0x224   : > { %v1663_v17 = vpop.xlane.xlu0 %1662 }
 0x225   : > { %v1671_v18 = vmul.f32 %v6709_v16, %v1663_v17 }
 0x227   : > { %v1672_v19 = vsub.f32 %v1655_v7, %v1671_v18 }
 0x229   : > { %v1673_v20 = vmul.f32 %v1672_v19, %v1672_v19 }
 0x22b   : > { %v1674_v21 = vsel %vm1660_vm2, %v1673_v20, 0.0 }
 0x22c   : > { %1675 = vadd.xlane.f32.xlu0 %v1674_v21 }
 0x29f   : > { %v1676_v24 = vpop.xlane.xlu0 %1675 }
 0x2a0   : > { %v1677_v25 = vmul.f32 %v1676_v24, %v6709_v16 }
 0x2a2   : > { %v1678_v26 = vadd.f32 1e-05, %v1677_v25 }
 0x2a4   : > { %5665 = vrsqrt.f32 %v1678_v26  ;;  %vm1685_vm5 = vweird.f32 %v1678_v26 }
 0x2aa   : > { %v5666_v27 = vpop.eup %5665 }
 0x2ab   : > { %v1680_v28 = vmul.f32 %v5666_v27, %v1678_v26  ;;  %vm1686_vm4 = vweird.f32 %v5666_v27 }
 0x2ac   : > { %vm1687_vm6 = vmor %vm1685_vm5, %vm1686_vm4 }
 0x2ad   : > { %v1681_v29 = vmul.f32 %v5666_v27, %v1680_v28 }
 0x2af   : > { %v1682_v30 = vmul.f32 0.5, %v1681_v29 }
 0x2b1   : > { %v1683_v31 = vsub.f32 1.5, %v1682_v30 }
 0x2b3   : > { %v1684_v32 = vmul.f32 %v5666_v27, %v1683_v31 }
 0x2b5   : > { %v1688_v34 = vsel %vm1687_vm6, %v5666_v27, %v1684_v32 }
 0x2b6   : > { %v1689_v35 = vmul.f32 %v1688_v34, %v1672_v19 }
 0x2b8   : > { %v1693_v37 = vmul.f32 %v5614_v33, %v1689_v35  ;;  %v1739_v33 = vld [vmem:[%s7491_s11 + $0x8] sm:$0xff] }
 0x2b9   : > { %v1864_v34 = vpack.c.bf16 %v1739_v33, %v1739_v33 }
 0x2ba   : > { %v1697_v39 = vadd.f32 %v5615_v36, %v1693_v37 }
 0x2bb   : > { %v1869_v35 = vsel %vm1785_vm7, %v1864_v34, 0 }
 0x2bc   : > { %v6717_v40 = vadd.f32 %v1698_v38, %v1697_v39  ;;  %1878 = vmatpush.bf16.msrb.mxu1 %v1869_v35 }
 0x2be   : > { %v1704_v41 = vpack.c.bf16 %v6717_v40, %v6717_v40 }
 0x2c0   : > { %5048 = vmatmul.msk.bf16.vlgmr.msra.gmra.mxu1 %vm1660_vm2, %v1704_v41 }
 0x33d   : > { %v1733_v43 = vpop.f32.mrf.mxu1 }
 0x33e   : > { %v1734_v44 = vadd.f32 %v5616_v42, %v1733_v43 }
 0x340   : > { %v6723_v45 = vpack.c.bf16 %v1734_v44, %v1734_v44  ;;  %v1737_v46 = vmul.f32 0.35355338, %v1734_v44 }
 0x342   : > { %1809 = vrot.lane.b32.xlu0 %v6723_v45, %s7384_s8  ;;  %1780 = vrot.lane.b32.xlu2 %v6723_v45, %s7378_s18  ;;  %v1742_v48 = vpack.c.bf16 %v1737_v46, %v1737_v46  ;;  %s7498_s18 = sld [smem:[#allocation44_spill]] }
 0x343   : > { %1748 = vrot.lane.b32.xlu1 %v6723_v45, %s7382_s9  ;;  %s7502_s8 = sld [smem:[#allocation48_spill]] }
 0x345   : > { %v1735_v47 = vpop.f32.mrf.mxu1 }
 0x34a   : > { %1807 = vrot.lane.b32.xlu0 %v1742_v48, %s7376_s16 }
 0x352   : > { %1983 = vrot.lane.b32.xlu0 %v6723_v45, %s7380_s23  ;;  %s7499_s23 = sld [smem:[#allocation46_spill]] }
 0x35a   : > { %1903 = vrot.lane.b32.xlu0 %v1742_v48, %s7372_s14  ;;  %s7495_s14 = sld [smem:[#allocation41_spill]] }
 0x39c   : > { %v1781_v49 = vpop.permute.xlu2 %1780 }
 0x39d   : > { %v1787_v50 = vsel %vm1785_vm7, %v1781_v49, 0 }
 0x39e   : > { %1796 = vmatpush.bf16.msra.mxu3 %v1787_v50 }
 0x3b4   : > { %v1810_v53 = vpop.permute.xlu0 %1809 }
 0x3b5   : > { %v1749_v54 = vpop.permute.xlu1 %1748  ;;  %v1815_v55 = vsel %vm1750_vm8, %v1810_v53, 0 }
 0x3b6   : > { %v1755_v57 = vsel %vm1750_vm8, %v1749_v54, 0  ;;  %1824 = vmatpush.bf16.xpose.msrb.mxu0 %v1815_v55 }
 0x3b7   : > { %1764 = vmatpush.bf16.xpose.msra.mxu2 %v1755_v57 }
 0x3bc   : > { %v1808_v58 = vpop.permute.xlu0 %1807 }
 0x3bd   : > { %5051 = vmatmul.msk.bf16.vlgmr.msrb.gmra.mxu0 %vm1750_vm8, %v1808_v58 }
 0x3be   : > { %5049 = vmatmul.msk.bf16.vlgmr.msra.gmra.mxu2 %vm1750_vm8, %v1742_v48 }
 0x3bf   : > { %1897 = vmatpush.bf16.msrb.mxu2 %v1888_v56 }
 0x3c4   : > { %v1984_v59 = vpop.permute.xlu0 %1983 }
 0x3c5   : > { %v1989_v60 = vsel %vm1750_vm8, %v1984_v59, 0 }
 0x3c6   : > { %1998 = vmatpush.bf16.xpose.msra.mxu2 %v1989_v60 }
 0x3cc   : > { %v1904_v6 = vpop.permute.xlu0 %1903 }
 0x43a   : > { %v1826_v62 = vpop.f32.mrf.mxu0 }
 0x43b   : > { %v1827_v63 = vadd.f32 %v6744_v61, %v1826_v62 }
 0x43d   : > { %v1830_v0 = vsel %vm1750_vm8, %v1827_v63, -inf }
 0x43e   : > { %1831 = vmax.xlane.f32.xlu0 %v1830_v0 }
 0x441   : > { %v1766_v1 = vpop.f32.mrf.mxu2 }
 0x442   : > { %v1767_v2 = vadd.f32 %v6744_v61, %v1766_v1  ;;  %v1828_v3 = vpop.f32.mrf.mxu0 }
 0x444   : > { %v1770_v4 = vsel %vm1750_vm8, %v1767_v2, -inf }
 0x445   : > { %1771 = vmax.xlane.f32.xlu1 %v1770_v4 }
 0x449   : > { %v1768_v5 = vpop.f32.mrf.mxu2 }
 0x452   : > { %1936 = vrot.lane.b32.xlu0 %v6723_v45, %s7364_s10  ;;  %s7366_s10 = smov 40  }
 0x45e   : > { %1981 = vrot.lane.b32.xlu1 %v1742_v48, %s7370_s15  ;;  %s7494_s15 = sld [smem:[#allocation45_spill]] }
 0x4b1   : > { %v1832_v7 = vpop.xlane.xlu0 %1831 }
 0x4b2   : > { %v1833_v8 = vsub.f32 %v1827_v63, %v1832_v7 }
 0x4b4   : > { %v1834_v9 = vmul.f32 1.442695, %v1833_v8 }
 0x4b6   : > { %5667 = vpow2.f32 %v1834_v9  ;;  %v1740_v9 = vld [vmem:[%s7491_s11 + $0x10] sm:$0xff] }
 0x4b8   : > { %v1772_v10 = vpop.xlane.xlu1 %1771 }
 0x4b9   : > { %v1773_v11 = vsub.f32 %v1767_v2, %v1772_v10  ;;  %v1960_v10 = vpack.c.bf16 %v1740_v9, %v1740_v9 }
 0x4bb   : > { %v1774_v12 = vmul.f32 1.442695, %v1773_v11  ;;  %v1965_v11 = vsel %vm1785_vm7, %v1960_v10, 0 }
 0x4bc   : > { %v5668_v13 = vpop.eup %5667  ;;  %1974 = vmatpush.bf16.msra.mxu1 %v1965_v11 }
 0x4bd   : > { %5669 = vpow2.f32 %v1774_v12  ;;  %v1836_v14 = vsel %vm1750_vm8, %v5668_v13, 0.0  ;;  %v1839_v29 = vpack.c.bf16 %v5668_v13, %v5668_v13 }
 0x4be   : > { %1837 = vadd.xlane.f32.xlu0 %v1836_v14 }
 0x4c3   : > { %v5670_v15 = vpop.eup %5669 }
 0x4c4   : > { %v1776_v17 = vsel %vm1750_vm8, %v5670_v15, 0.0  ;;  %v1779_v18 = vpack.c.bf16 %v5670_v15, %v5670_v15  ;;  %v1937_v22 = vpop.permute.xlu0 %1936 }
 0x4c5   : > { %1777 = vadd.xlane.f32.xlu2 %v1776_v17  ;;  %v1942_v27 = vsel %vm1785_vm7, %v1937_v22, 0 }
 0x4c6   : > { %5050 = vmatmul.msk.bf16.vlgmr.msra.gmra.mxu3 %vm1750_vm8, %v1779_v18 }
 0x4d0   : > { %v1982_v32 = vpop.permute.xlu1 %1981 }
 0x4dd   : > { %1905 = vrot.lane.b32.xlu2 %v6723_v45, %s7374_s7  ;;  %s7496_s7 = sld [smem:[#allocation42_spill]] }
 0x4e3   : > { %s7497_s16 = smov %s7496_s7 }
 0x4e5   : > { %1840 = vrot.lane.b32.xlu2 %v6723_v45, %s7368_s26  ;;  %s7493_s26 = sld [smem:[#allocation43_spill]] }
 0x531   : > { %v1838_v37 = vpop.xlane.xlu0 %1837 }
 0x538   : > { %v1778_v19 = vpop.xlane.xlu2 %1777 }
 0x539   : > { %5671 = vrcp.f32 %v1778_v19 }
 0x53a   : > { %5673 = vrcp.f32 %v1838_v37 }
 0x53f   : > { %v5672_v24 = vpop.eup %5671 }
 0x540   : > { %v1906_v20 = vpop.permute.xlu2 %1905  ;;  %v5674_v42 = vpop.eup %5673 }
 0x541   : > { %v1911_v21 = vsel %vm1750_vm8, %v1906_v20, 0 }
 0x542   : > { %1920 = vmatpush.bf16.xpose.msra.mxu0 %v1911_v21 }
 0x548   : > { %v1841_v23 = vpop.permute.xlu2 %1840 }
 0x549   : > { %v1798_v25 = vpop.f32.mrf.mxu3  ;;  %5055 = vmatmul.msk.bf16.vlgmr.msra.gmra.mxu0 %vm1750_vm8, %v1904_v6  ;;  %v1846_v26 = vsel %vm1785_vm7, %v1841_v23, 0  ;;  %v1741_v6 = vld [vmem:[%s7491_s11 + $0x18] sm:$0xff] }
 0x54a   : > { %v1803_v28 = vmul.f32 %v5672_v24, %v1798_v25  ;;  %1855 = vmatpush.bf16.msrb.mxu3 %v1846_v26  ;;  %v2038_v7 = vpack.c.bf16 %v1741_v6, %v1741_v6  ;;  %v5621_v6 = vld [vmem:[%s7499_s23] ss:$0 sm:$0xff] }
 0x54c   : > { %v1804_v30 = vpack.c.bf16 %v1803_v28, %v1803_v28  ;;  %v2043_v8 = vsel %vm1785_vm7, %v2038_v7, 0 }
 0x54d   : > { %5052 = vmatmul.msk.bf16.vlgmr.msrb.gmra.mxu3 %vm1750_vm8, %v1839_v29 }
 0x54e   : > { %1951 = vmatpush.bf16.msra.mxu3 %v1942_v27  ;;  %5054 = vmatmul.msk.bf16.vlgmr.msrb.gmra.mxu2 %vm1750_vm8, %v1804_v30 }
 0x551   : > { %v1800_v31 = vpop.f32.mrf.mxu3 }
 0x552   : > { %2052 = vmatpush.bf16.msrb.mxu3 %v2043_v8 }
 0x55e   : > { %5058 = vmatmul.msk.bf16.vlgmr.msra.gmra.mxu2 %vm1750_vm8, %v1982_v32 }
 0x5c6   : > { %v1922_v36 = vpop.f32.mrf.mxu0 }
 0x5c7   : > { %v1923_v38 = vadd.f32 %v6744_v61, %v1922_v36 }
 0x5c9   : > { %v1926_v39 = vsel %vm1750_vm8, %v1923_v38, -inf }
 0x5ca   : > { %1927 = vmax.xlane.f32.xlu1 %v1926_v39 }
 0x5ce   : > { %v1924_v41 = vpop.f32.mrf.mxu0 }
 0x5d0   : > { %v1857_v43 = vpop.f32.mrf.mxu3 }
 0x5d1   : > { %v1862_v44 = vmul.f32 %v5674_v42, %v1857_v43  ;;  %v1899_v46 = vpop.f32.mrf.mxu2  ;;  %v5368_v42 = vld [vmem:[%s7493_s26 + $0x8] sm:$0xff]  ;;  %v5367_v43 = vld [vmem:[%s7493_s26] sm:$0xff] }
 0x5d3   : > { %v1863_v47 = vpack.c.bf16 %v1862_v44, %v1862_v44  ;;  %v5372_v44 = vld [vmem:[%s7494_s15 + $0x18] sm:$0xff] }
 0x5d4   : > { %2180 = vmatpush.bf16.msrb.mxu2 %v5372_v44 }
 0x5d5   : > { %5053 = vmatmul.msk.bf16.vlgmr.msrb.gmra.mxu1 %vm1750_vm8, %v1863_v47  ;;  %v5371_v47 = vld [vmem:[%s7494_s15 + $0x10] sm:$0xff] }
 0x5d6   : > { %2127 = vmatpush.bf16.msrb.mxu1 %v5368_v42 }
 0x5d8   : > { %v1859_v48 = vpop.f32.mrf.mxu3  ;;  %2181 = vmatpush.bf16.msrb.mxu2 %v5371_v47 }
 0x5d9   : > { %v1901_v49 = vpop.f32.mrf.mxu2 }
 0x5da   : > { %2128 = vmatpush.bf16.msrb.mxu1 %v5367_v43 }
 0x5e1   : > { %v2000_v50 = vpop.f32.mrf.mxu2 }
 0x5e2   : > { %v2001_v51 = vadd.f32 %v6744_v61, %v2000_v50 }
 0x5e3   : > { %2014 = vrot.lane.b32.xlu1 %v6723_v45, %s7366_s10  ;;  %s7492_s10 = sld [smem:[#allocation40_spill]] }
 0x5e4   : > { %v2004_v52 = vsel %vm1750_vm8, %v2001_v51, -inf }
 0x5e5   : > { %2005 = vmax.xlane.f32.xlu2 %v2004_v52 }
 0x5e9   : > { %v2002_v53 = vpop.f32.mrf.mxu2  ;;  %v5617_v28 = vld [vmem:[%s7492_s10] ss:$0 sm:$0xff] }
 0x63d   : > { %v1928_v54 = vpop.xlane.xlu1 %1927 }
 0x63e   : > { %v1929_v55 = vsub.f32 %v1923_v38, %v1928_v54 }
 0x640   : > { %v1930_v56 = vmul.f32 1.442695, %v1929_v55  ;;  %v5618_v55 = vld [vmem:[%s7495_s14] ss:$0 sm:$0xff] }
 0x642   : > { %5675 = vpow2.f32 %v1930_v56 }
 0x648   : > { %v5676_v57 = vpop.eup %5675 }
 0x649   : > { %v1935_v58 = vpack.c.bf16 %v5676_v57, %v5676_v57  ;;  %v1932_v5 = vsel %vm1750_vm8, %v5676_v57, 0.0  ;;  %v5619_v57 = vld [vmem:[%s7496_s7] ss:$0 sm:$0xff]  ;;  %s7500_s7 = sld [smem:[#allocation47_spill]] }
 0x64b   : > { %5056 = vmatmul.msk.bf16.vlgmr.msra.gmra.mxu3 %vm1750_vm8, %v1935_v58 }
 0x64f   : > { %s7501_s9 = smov %s7500_s7 }
 0x652   : > { %v1880_v59 = vpop.f32.mrf.mxu1 }
 0x653   : > { %v1900_v25 = vadd.f32 %v1899_v46, %v1880_v59 }
 0x655   : > { %v2015_v60 = vpop.permute.xlu1 %2014 }
 0x656   : > { %v2020_v62 = vsel %vm1785_vm7, %v2015_v60, 0 }
 0x657   : > { %2029 = vmatpush.bf16.msrb.mxu0 %v2020_v62 }
 0x658   : > { %v2006_v63 = vpop.xlane.xlu2 %2005 }
 0x659   : > { %v2007_v45 = vsub.f32 %v2001_v51, %v2006_v63  ;;  %v5370_v63 = vld [vmem:[%s7494_s15 + $0x8] sm:$0xff] }
 0x65a   : > { %v1882_v0 = vpop.f32.mrf.mxu1  ;;  %2182 = vmatpush.bf16.msrb.mxu2 %v5370_v63 }
 0x65b   : > { %v2008_v1 = vmul.f32 1.442695, %v2007_v45  ;;  %v5369_v45 = vld [vmem:[%s7494_s15] sm:$0xff] }
 0x65c   : > { %v5620_v0 = vld [vmem:[%s7498_s18] ss:$0 sm:$0xff] }
 0x65d   : > { %5677 = vpow2.f32 %v2008_v1 }
 0x65e   : > { %2183 = vmatpush.bf16.msrb.mxu2 %v5369_v45 }
 0x663   : > { %v5678_v2 = vpop.eup %5677 }
 0x664   : > { %v2013_v3 = vpack.c.bf16 %v5678_v2, %v5678_v2  ;;  %v2010_v4 = vsel %vm1750_vm8, %v5678_v2, 0.0 }
 0x665   : > { %2011 = vadd.xlane.f32.xlu2 %v2010_v4 }
 0x666   : > { %5059 = vmatmul.msk.bf16.vlgmr.msrb.gmra.mxu0 %vm1750_vm8, %v2013_v3 }
 0x66d   : > { %1933 = vadd.xlane.f32.xlu2 %v1932_v5 }
 0x6ce   : > { %v1953_v12 = vpop.f32.mrf.mxu3 }
 0x6d6   : > { %v1955_v13 = vpop.f32.mrf.mxu3 }
 0x6d8   : > { %v2012_v14 = vpop.xlane.xlu2 %2011 }
 0x6d9   : > { %5679 = vrcp.f32 %v2012_v14 }
 0x6df   : > { %v5680_v17 = vpop.eup %5679 }
 0x6e0   : > { %v1934_v15 = vpop.xlane.xlu2 %1933 }
 0x6e1   : > { %5681 = vrcp.f32 %v1934_v15 }
 0x6e3   : > { %v2031_v18 = vpop.f32.mrf.mxu0 }
 0x6e4   : > { %v2036_v19 = vmul.f32 %v5680_v17, %v2031_v18  ;;  %v5374_v18 = vld [vmem:[%s7464_s19 + $0x18] sm:$0xff] }
 0x6e5   : > { %2254 = vmatpush.bf16.msra.mxu0 %v5374_v18 }
 0x6e6   : > { %v2037_v20 = vpack.c.bf16 %v2036_v19, %v2036_v19  ;;  %v5373_v19 = vld [vmem:[%s7464_s19 + $0x10] sm:$0xff]  ;;  %s7510_s19 = smov 104  }
 0x6e7   : > { %v5682_v21 = vpop.eup %5681 }
 0x6e8   : > { %v1958_v22 = vmul.f32 %v5682_v21, %v1953_v12  ;;  %5060 = vmatmul.msk.bf16.vlgmr.msrb.gmra.mxu3 %vm1750_vm8, %v2037_v20 }
 0x6e9   : > { %2255 = vmatpush.bf16.msra.mxu0 %v5373_v19 }
 0x6ea   : > { %v1959_v23 = vpack.c.bf16 %v1958_v22, %v1958_v22 }
 0x6eb   : > { %v2033_v24 = vpop.f32.mrf.mxu0 }
 0x6ec   : > { %5057 = vmatmul.msk.bf16.vlgmr.msra.gmra.mxu1 %vm1750_vm8, %v1959_v23 }
 0x769   : > { %v1976_v26 = vpop.f32.mrf.mxu1 }
 0x76a   : > { %v1980_v27 = vadd.f32 %v1976_v26, %v1900_v25 }
 0x76b   : > { %v2054_v29 = vpop.f32.mrf.mxu3 }
 0x76c   : > { %v2058_v30 = vadd.f32 %v2054_v29, %v1980_v27  ;;  %v5622_v29 = vld [vmem:[%s7500_s7] ss:$0 sm:$0xff]  ;;  %s7504_s7 = smov 96  }
 0x76e   : > { %v2063_v31 = vadd.f32 %v5617_v28, %v2058_v30 }
 0x770   : > { %v2064_v32 = vadd.f32 %v2063_v31, %v6717_v40  ;;  %v5623_v31 = vld [vmem:[%s7502_s8] ss:$0 sm:$0xff] }
 0x771   : > { %v1978_v33 = vpop.f32.mrf.mxu1 }
 0x772   : > { %v2067_v34 = vsel %vm1660_vm2, %v2064_v32, 0.0 }
 0x773   : > { %2068 = vadd.xlane.f32.xlu2 %v2067_v34  ;;  %v2056_v35 = vpop.f32.mrf.mxu3 }
 0x7e6   : > { %v2069_v36 = vpop.xlane.xlu2 %2068 }
 0x7e7   : > { %v2070_v37 = vmul.f32 %v2069_v36, %v6709_v16  ;;  %v5624_v36 = vld [vmem:[%s7490_s22 + $0x1] ss:$0 sm:$0xff]  ;;  %s7513_s22 = smov 48  }
 0x7e9   : > { %v2071_v38 = vsub.f32 %v2064_v32, %v2070_v37 }
 0x7eb   : > { %v2072_v39 = vmul.f32 %v2071_v38, %v2071_v38 }
 0x7ed   : > { %v2073_v41 = vsel %vm1660_vm2, %v2072_v39, 0.0 }
 0x7ee   : > { %2074 = vadd.xlane.f32.xlu1 %v2073_v41 }
 0x861   : > { %v2075_v40 = vpop.xlane.xlu1 %2074 }
 0x862   : > { %v2076_v46 = vmul.f32 %v2075_v40, %v6709_v16 }
 0x864   : > { %v2077_v48 = vadd.f32 1e-05, %v2076_v46 }
 0x866   : > { %5683 = vrsqrt.f32 %v2077_v48  ;;  %vm2084_vm10 = vweird.f32 %v2077_v48 }
 0x86c   : > { %v5684_v49 = vpop.eup %5683 }
 0x86d   : > { %v2079_v50 = vmul.f32 %v5684_v49, %v2077_v48  ;;  %vm2085_vm9 = vweird.f32 %v5684_v49 }
 0x86e   : > { %vm2086_vm11 = vmor %vm2084_vm10, %vm2085_vm9 }
 0x86f   : > { %v2080_v51 = vmul.f32 %v5684_v49, %v2079_v50 }
 0x871   : > { %v2081_v52 = vmul.f32 0.5, %v2080_v51 }
 0x873   : > { %v2082_v53 = vsub.f32 1.5, %v2081_v52 }
 0x875   : > { %v2083_v54 = vmul.f32 %v5684_v49, %v2082_v53 }
 0x877   : > { %v2087_v56 = vsel %vm2086_vm11, %v5684_v49, %v2083_v54 }
 0x878   : > { %v2088_v58 = vmul.f32 %v2087_v56, %v2071_v38 }
 0x87a   : > { %v2092_v59 = vmul.f32 %v5618_v55, %v2088_v58 }
 0x87c   : > { %v2096_v60 = vadd.f32 %v5619_v57, %v2092_v59  ;;  %v5101_v57 = vld [vmem:[%s7491_s11 + $0x20] sm:$0xff] }
 0x87d   : > { %v2325_v58 = vpack.c.bf16 %v5101_v57, %v5101_v57 }
 0x87e   : > { %v2101_v62 = vpack.c.bf16 %v2096_v60, %v2096_v60 }
 0x880   : > { %5069 = vmatmul.msk.bf16.vlgmr.msrb.gmra.mxu1 %vm1660_vm2, %v2101_v62 }
 0x8fd   : > { %v2130_v1 = vpop.f32.mrf.mxu1 }
 0x8fe   : > { %v2131_v2 = vadd.f32 %v5620_v0, %v2130_v1 }
 0x900   : > { %v2134_v3 = vmax.f32 %v2131_v2, 0.0 }
 0x902   : > { %v2143_v4 = vpack.c.bf16 %v2134_v3, %v2134_v3 }
 0x904   : > { %5086 = vmatmul.msk.bf16.vlgmr.msrb.gmra.mxu2 %vm2172_vm12, %v2143_v4 }
 0x905   : > { %v2132_v5 = vpop.f32.mrf.mxu1 }
 0x987   : > { %v2185_v7 = vpop.f32.mrf.mxu2 }
 0x988   : > { %v2186_v8 = vadd.f32 %v5621_v6, %v2185_v7 }
 0x98a   : > { %v2189_v9 = vadd.f32 %v2186_v8, %v2096_v60  ;;  %v2408_v60 = vsel %vm1785_vm7, %v2325_v58, 0 }
 0x98c   : > { %v2192_v10 = vsel %vm1660_vm2, %v2189_v9, 0.0 }
 0x98d   : > { %2193 = vadd.xlane.f32.xlu2 %v2192_v10 }
 0x98f   : > { %v2187_v11 = vpop.f32.mrf.mxu2 }
 0xa00   : > { %v2194_v12 = vpop.xlane.xlu2 %2193 }
 0xa01   : > { %v2195_v13 = vmul.f32 %v2194_v12, %v6709_v16 }
 0xa03   : > { %v2196_v14 = vsub.f32 %v2189_v9, %v2195_v13 }
 0xa05   : > { %v2197_v15 = vmul.f32 %v2196_v14, %v2196_v14 }
 0xa07   : > { %v2198_v17 = vsel %vm1660_vm2, %v2197_v15, 0.0 }
 0xa08   : > { %2199 = vadd.xlane.f32.xlu2 %v2198_v17 }
 0xa7b   : > { %v2200_v20 = vpop.xlane.xlu2 %2199 }
 0xa7c   : > { %v2201_v21 = vmul.f32 %v2200_v20, %v6709_v16 }
 0xa7e   : > { %v2202_v22 = vadd.f32 1e-05, %v2201_v21 }
 0xa80   : > { %5685 = vrsqrt.f32 %v2202_v22  ;;  %vm2209_vm14 = vweird.f32 %v2202_v22 }
 0xa86   : > { %v5686_v23 = vpop.eup %5685 }
 0xa87   : > { %v2204_v24 = vmul.f32 %v5686_v23, %v2202_v22  ;;  %vm2210_vm13 = vweird.f32 %v5686_v23 }
 0xa88   : > { %vm2211_vm15 = vmor %vm2209_vm14, %vm2210_vm13 }
 0xa89   : > { %v2205_v25 = vmul.f32 %v5686_v23, %v2204_v24 }
 0xa8b   : > { %v2206_v26 = vmul.f32 0.5, %v2205_v25 }
 0xa8d   : > { %v2207_v27 = vsub.f32 1.5, %v2206_v26 }
 0xa8f   : > { %v2208_v28 = vmul.f32 %v5686_v23, %v2207_v27 }
 0xa91   : > { %v2212_v30 = vsel %vm2211_vm15, %v5686_v23, %v2208_v28 }
 0xa92   : > { %v2213_v32 = vmul.f32 %v2212_v30, %v2196_v14 }
 0xa94   : > { %v2217_v33 = vmul.f32 %v5622_v29, %v2213_v32 }
 0xa96   : > { %v6813_v34 = vadd.f32 %v5623_v31, %v2217_v33 }
 0xa98   : > { %v2227_v35 = vpack.c.bf16 %v6813_v34, %v6813_v34 }
 0xa9a   : > { %5100 = vmatmul.msk.bf16.vlgmr.msra.gmra.mxu0 %vm1660_vm2, %v2227_v35 }
 0xb17   : > { %v2257_v37 = vpop.f32.mrf.mxu0 }
 0xb18   : > { %v2258_v38 = vadd.f32 %v5624_v36, %v2257_v37 }
 0xb1a   : > { %v6819_v39 = vpack.c.bf16 %v2258_v38, %v2258_v38  ;;  %v2261_v44 = vmul.f32 0.35355338, %v2258_v38 }
 0xb1c   : > { %2329 = vrot.lane.b32.xlu1 %v6819_v39, %s7503_s3  ;;  %2270 = vrot.lane.b32.xlu2 %v6819_v39, %s7504_s7  ;;  %v2267_v40 = vpack.c.bf16 %v2261_v44, %v2261_v44 }
 0xb1f   : > { %v2259_v41 = vpop.f32.mrf.mxu0 }
 0xb24   : > { %2503 = vrot.lane.b32.xlu1 %v6819_v39, %s7505_s4 }
 0xb76   : > { %v2271_v42 = vpop.permute.xlu2 %2270 }
 0xb77   : > { %v2276_v43 = vsel %vm1750_vm8, %v2271_v42, 0 }
 0xb78   : > { %2285 = vmatpush.bf16.xpose.msra.mxu3 %v2276_v43 }
 0xb7f   : > { %5105 = vmatmul.msk.bf16.vlgmr.msra.gmra.mxu3 %vm1750_vm8, %v2267_v40 }
 0xb8e   : > { %v2330_v46 = vpop.permute.xlu1 %2329 }
 0xb8f   : > { %v2335_v47 = vsel %vm1750_vm8, %v2330_v46, 0  ;;  %v5102_v46 = vld [vmem:[%s7491_s11 + $0x28] sm:$0xff] }
 0xb90   : > { %2344 = vmatpush.bf16.xpose.msra.mxu2 %v2335_v47  ;;  %v2384_v47 = vpack.c.bf16 %v5102_v46, %v5102_v46 }
 0xb96   : > { %v2504_v63 = vpop.permute.xlu1 %2503 }
 0xb97   : > { %v2509_v0 = vsel %vm1750_vm8, %v2504_v63, 0 }
 0xc02   : > { %v2287_v48 = vpop.f32.mrf.mxu3 }
 0xc03   : > { %v2288_v49 = vadd.f32 %v6744_v61, %v2287_v48  ;;  %v2389_v48 = vsel %vm1785_vm7, %v2384_v47, 0 }
 0xc04   : > { %2398 = vmatpush.bf16.msrb.mxu3 %v2389_v48 }
 0xc05   : > { %v2291_v50 = vsel %vm1750_vm8, %v2288_v49, -inf }
 0xc06   : > { %2292 = vmax.xlane.f32.xlu0 %v2291_v50 }
 0xc0a   : > { %v2289_v51 = vpop.f32.mrf.mxu3 }
 0xc1a   : > { %2301 = vrot.lane.b32.xlu0 %v6819_v39, %s7506_s5 }
 0xc22   : > { %2327 = vrot.lane.b32.xlu0 %v2267_v40, %s7507_s6 }
 0xc2a   : > { %2425 = vrot.lane.b32.xlu0 %v6819_v39, %s7508_s12 }
 0xc32   : > { %2423 = vrot.lane.b32.xlu0 %v2267_v40, %s7509_s13 }
 0xc3a   : > { %2501 = vrot.lane.b32.xlu0 %v2267_v40, %s7510_s19 }
 0xc42   : > { %2360 = vrot.lane.b32.xlu0 %v6819_v39, %s7511_s20 }
 0xc79   : > { %v2293_v52 = vpop.xlane.xlu0 %2292 }
 0xc7a   : > { %v2294_v53 = vsub.f32 %v2288_v49, %v2293_v52  ;;  %v5103_v49 = vld [vmem:[%s7491_s11 + $0x30] sm:$0xff]  ;;  %v5382_v52 = vld [vmem:[%s7514_s24 + $0x8] sm:$0xff] }
 0xc7b   : > { %v2480_v50 = vpack.c.bf16 %v5103_v49, %v5103_v49 }
 0xc7c   : > { %v2295_v54 = vmul.f32 1.442695, %v2294_v53  ;;  %v5381_v53 = vld [vmem:[%s7514_s24] sm:$0xff] }
 0xc7d   : > { %v2485_v51 = vsel %vm1785_vm7, %v2480_v50, 0 }
 0xc7e   : > { %5687 = vpow2.f32 %v2295_v54  ;;  %2494 = vmatpush.bf16.msra.mxu3 %v2485_v51 }
 0xc84   : > { %v5688_v55 = vpop.eup %5687 }
 0xc85   : > { %v2297_v56 = vsel %vm1750_vm8, %v5688_v55, 0.0  ;;  %v2300_v45 = vpack.c.bf16 %v5688_v55, %v5688_v55 }
 0xc86   : > { %2298 = vadd.xlane.f32.xlu2 %v2297_v56 }
 0xc8c   : > { %v2302_v59 = vpop.permute.xlu0 %2301 }
 0xc8d   : > { %v2307_v62 = vsel %vm1785_vm7, %v2302_v59, 0 }
 0xc8e   : > { %2316 = vmatpush.bf16.msra.mxu1 %v2307_v62 }
 0xc91   : > { %5106 = vmatmul.msk.bf16.vlgmr.msra.gmra.mxu1 %vm1750_vm8, %v2300_v45 }
 0xc92   : > { %2417 = vmatpush.bf16.msrb.mxu1 %v2408_v60 }
 0xc94   : > { %v2328_v1 = vpop.permute.xlu0 %2327 }
 0xc95   : > { %5107 = vmatmul.msk.bf16.vlgmr.msra.gmra.mxu2 %vm1750_vm8, %v2328_v1 }
 0xc96   : > { %2518 = vmatpush.bf16.xpose.msra.mxu1 %v2509_v0 }
 0xc9c   : > { %v2426_v2 = vpop.permute.xlu0 %2425 }
 0xc9d   : > { %v2431_v3 = vsel %vm1750_vm8, %v2426_v2, 0 }
 0xc9e   : > { %2440 = vmatpush.bf16.xpose.msrb.mxu2 %v2431_v3 }
 0xca4   : > { %v2424_v4 = vpop.permute.xlu0 %2423 }
 0xca5   : > { %5111 = vmatmul.msk.bf16.vlgmr.msrb.gmra.mxu2 %vm1750_vm8, %v2424_v4 }
 0xcac   : > { %v2502_v5 = vpop.permute.xlu0 %2501 }
 0xcb4   : > { %v2361_v6 = vpop.permute.xlu0 %2360 }
 0xcb5   : > { %v2366_v7 = vsel %vm1785_vm7, %v2361_v6, 0 }
 0xcb6   : > { %2375 = vmatpush.bf16.msrb.mxu0 %v2366_v7  ;;  %v6883_v7 = vld [vmem:[%s1620_s29] sm:$0xff]  ;;  %s7519_s29 = scalar_lea.vmem %s7459_s17, %s6694_s2  ;;  %s7521_s2 = sld [smem:[#allocation54_spill]] }
 0xcf9   : > { %v2299_v8 = vpop.xlane.xlu2 %2298 }
 0xcfa   : > { %5689 = vrcp.f32 %v2299_v8  ;;  %v2793_v8 = vpack.c.bf16 %v6883_v7, %v6883_v7 }
 0xd00   : > { %v5690_v9 = vpop.eup %5689 }
 0xd0e   : > { %v2318_v10 = vpop.f32.mrf.mxu1 }
 0xd0f   : > { %v2323_v11 = vmul.f32 %v5690_v9, %v2318_v10  ;;  %v5104_v10 = vld [vmem:[%s7491_s11 + $0x38] sm:$0xff]  ;;  %s7528_s11 = sld [smem:[#allocation58_spill]] }
 0xd11   : > { %v2324_v12 = vpack.c.bf16 %v2323_v11, %v2323_v11  ;;  %v2558_v11 = vpack.c.bf16 %v5104_v10, %v5104_v10 }
 0xd13   : > { %5110 = vmatmul.msk.bf16.vlgmr.msrb.gmra.mxu1 %vm1750_vm8, %v2324_v12  ;;  %v2563_v12 = vsel %vm1785_vm7, %v2558_v11, 0 }
 0xd16   : > { %v2320_v13 = vpop.f32.mrf.mxu1 }
 0xd18   : > { %v2346_v14 = vpop.f32.mrf.mxu2 }
 0xd19   : > { %v2347_v15 = vadd.f32 %v6744_v61, %v2346_v14 }
 0xd1b   : > { %v2350_v17 = vsel %vm1750_vm8, %v2347_v15, -inf }
 0xd1c   : > { %2351 = vmax.xlane.f32.xlu1 %v2350_v17 }
 0xd20   : > { %v2348_v18 = vpop.f32.mrf.mxu2 }
 0xd23   : > { %5114 = vmatmul.msk.bf16.vlgmr.msra.gmra.mxu1 %vm1750_vm8, %v2502_v5 }
 0xd28   : > { %v2442_v19 = vpop.f32.mrf.mxu2 }
 0xd29   : > { %v2443_v20 = vadd.f32 %v6744_v61, %v2442_v19 }
 0xd2b   : > { %v2446_v21 = vsel %vm1750_vm8, %v2443_v20, -inf }
 0xd2c   : > { %2447 = vmax.xlane.f32.xlu2 %v2446_v21 }
 0xd30   : > { %v2444_v22 = vpop.f32.mrf.mxu2 }
 0xd35   : > { %2534 = vrot.lane.b32.xlu1 %v6819_v39, %s7512_s21 }
 0xd44   : > { %2456 = vrot.lane.b32.xlu2 %v6819_v39, %s7513_s22 }
 0xd8f   : > { %v2352_v23 = vpop.xlane.xlu1 %2351 }
 0xd90   : > { %v2353_v24 = vsub.f32 %v2347_v15, %v2352_v23  ;;  %v6861_v25 = vpop.f32.mrf.mxu1 }
 0xd92   : > { %v2354_v26 = vmul.f32 1.442695, %v2353_v24 }
 0xd94   : > { %5691 = vpow2.f32 %v2354_v26  ;;  %v5625_v26 = vld [vmem:[%s7517_s0] ss:$0 sm:$0xff] }
 0xd98   : > { %v2421_v27 = vpop.f32.mrf.mxu1 }
 0xd9a   : > { %v5692_v28 = vpop.eup %5691 }
 0xd9b   : > { %v2359_v29 = vpack.c.bf16 %v5692_v28, %v5692_v28  ;;  %v2356_v30 = vsel %vm1750_vm8, %v5692_v28, 0.0 }
 0xd9c   : > { %2357 = vadd.xlane.f32.xlu2 %v2356_v30 }
 0xd9d   : > { %5108 = vmatmul.msk.bf16.vlgmr.msrb.gmra.mxu0 %vm1750_vm8, %v2359_v29 }
 0xd9f   : > { %v2448_v31 = vpop.xlane.xlu2 %2447 }
 0xda0   : > { %v2449_v32 = vsub.f32 %v2443_v20, %v2448_v31  ;;  %v2520_v33 = vpop.f32.mrf.mxu1 }
 0xda1   : > { %v2521_v35 = vadd.f32 %v6744_v61, %v2520_v33  ;;  %v5376_v33 = vld [vmem:[%s7493_s26 + $0x18] sm:$0xff] }
 0xda2   : > { %v2450_v36 = vmul.f32 1.442695, %v2449_v32 }
 0xda3   : > { %v2524_v37 = vsel %vm1750_vm8, %v2521_v35, -inf }
 0xda4   : > { %5693 = vpow2.f32 %v2450_v36  ;;  %2525 = vmax.xlane.f32.xlu0 %v2524_v37  ;;  %v5375_v36 = vld [vmem:[%s7493_s26 + $0x10] sm:$0xff] }
 0xda7   : > { %v2535_v38 = vpop.permute.xlu1 %2534  ;;  %v2457_v39 = vpop.permute.xlu2 %2456 }
 0xda8   : > { %v2540_v41 = vsel %vm1785_vm7, %v2535_v38, 0  ;;  %v2462_v42 = vsel %vm1785_vm7, %v2457_v39, 0  ;;  %v2522_v43 = vpop.f32.mrf.mxu1 }
 0xda9   : > { %2471 = vmatpush.bf16.msra.mxu0 %v2462_v42  ;;  %2549 = vmatpush.bf16.msra.mxu2 %v2540_v41  ;;  %v5626_v41 = vld [vmem:[%s7492_s10 + $0x1] ss:$0 sm:$0xff]  ;;  %s7527_s10 = sld [smem:[#allocation60_spill]] }
 0xdaa   : > { %v5694_v44 = vpop.eup %5693 }
 0xdab   : > { %v2455_v61 = vpack.c.bf16 %v5694_v44, %v5694_v44  ;;  %v2452_v40 = vsel %vm1750_vm8, %v5694_v44, 0.0 }
 0xdac   : > { %2453 = vadd.xlane.f32.xlu0 %v2452_v40 }
 0xdad   : > { %5112 = vmatmul.msk.bf16.vlgmr.msra.gmra.mxu0 %vm1750_vm8, %v2455_v61  ;;  %2819 = vmatpush.bf16.msrb.mxu2 %v5382_v52 }
 0xdae   : > { %2572 = vmatpush.bf16.msrb.mxu0 %v2563_v12 }
 0xdb1   : > { %2820 = vmatpush.bf16.msrb.mxu2 %v5381_v53 }
 0xe0f   : > { %v2358_v54 = vpop.xlane.xlu2 %2357 }
 0xe10   : > { %5695 = vrcp.f32 %v2358_v54 }
 0xe16   : > { %v5696_v57 = vpop.eup %5695 }
 0xe17   : > { %v2526_v55 = vpop.xlane.xlu0 %2525 }
 0xe18   : > { %v2527_v56 = vsub.f32 %v2521_v35, %v2526_v55 }
 0xe1a   : > { %v2528_v58 = vmul.f32 1.442695, %v2527_v56  ;;  %v2377_v59 = vpop.f32.mrf.mxu0  ;;  %v5612_v56 = vld [vmem:[%s7519_s29] ss:$0 sm:$0xff]  ;;  %s7523_s29 = sld [smem:[#allocation57_spill]] }
 0xe1b   : > { %v2382_v60 = vmul.f32 %v5696_v57, %v2377_v59  ;;  %v2783_v57 = vld [vmem:[%s7518_s25] sm:$0xff]  ;;  %s7522_s25 = smov %s7521_s2 }
 0xe1c   : > { %5697 = vpow2.f32 %v2528_v58  ;;  %v6927_v58 = vadd.f32 %v5612_v56, %v2783_v57 }
 0xe1d   : > { %v2383_v62 = vpack.c.bf16 %v2382_v60, %v2382_v60 }
 0xe1f   : > { %5109 = vmatmul.msk.bf16.vlgmr.msrb.gmra.mxu3 %vm1750_vm8, %v2383_v62  ;;  %v2454_v63 = vpop.xlane.xlu0 %2453 }
 0xe20   : > { %5699 = vrcp.f32 %v2454_v63  ;;  %2652 = vmatpush.bf16.msrb.mxu3 %v5376_v33 }
 0xe22   : > { %v5698_v45 = vpop.eup %5697  ;;  %v2379_v0 = vpop.f32.mrf.mxu0 }
 0xe23   : > { %v2533_v1 = vpack.c.bf16 %v5698_v45, %v5698_v45  ;;  %v2530_v2 = vsel %vm1750_vm8, %v5698_v45, 0.0  ;;  %v5380_v45 = vld [vmem:[%s7494_s15 + $0x38] sm:$0xff]  ;;  %v5379_v0 = vld [vmem:[%s7494_s15 + $0x30] sm:$0xff] }
 0xe24   : > { %2531 = vadd.xlane.f32.xlu0 %v2530_v2  ;;  %2653 = vmatpush.bf16.msrb.mxu3 %v5375_v36  ;;  %v5377_v2 = vld [vmem:[%s7494_s15 + $0x20] sm:$0xff] }
 0xe25   : > { %5115 = vmatmul.msk.bf16.vlgmr.msra.gmra.mxu2 %vm1750_vm8, %v2533_v1  ;;  %2706 = vmatpush.bf16.msrb.mxu1 %v5380_v45  ;;  %v5378_v1 = vld [vmem:[%s7494_s15 + $0x28] sm:$0xff]  ;;  %v5629_v36 = vld [vmem:[%s7498_s18 + $0x1] ss:$0 sm:$0xff]  ;;  %s7537_s18 = sld [smem:[#allocation64_spill]] }
 0xe26   : > { %v5700_v3 = vpop.eup %5699 }
 0xe29   : > { %2707 = vmatpush.bf16.msrb.mxu1 %v5379_v0 }
 0xe2a   : > { %v2473_v4 = vpop.f32.mrf.mxu0 }
 0xe2b   : > { %v2478_v5 = vmul.f32 %v5700_v3, %v2473_v4 }
 0xe2d   : > { %v2479_v6 = vpack.c.bf16 %v2478_v5, %v2478_v5  ;;  %2708 = vmatpush.bf16.msrb.mxu1 %v5378_v1 }
 0xe2f   : > { %5113 = vmatmul.msk.bf16.vlgmr.msra.gmra.mxu3 %vm1750_vm8, %v2479_v6 }
 0xe31   : > { %2709 = vmatpush.bf16.msrb.mxu1 %v5377_v2 }
 0xe32   : > { %v2475_v9 = vpop.f32.mrf.mxu0 }
 0xe35   : > { %5170 = vmatmul.msk.bf16.vlgmr.msrb.gmra.mxu2 %vm1660_vm2, %v2793_v8 }
 0xe97   : > { %v2532_v13 = vpop.xlane.xlu0 %2531 }
 0xe98   : > { %5701 = vrcp.f32 %v2532_v13 }
 0xe9e   : > { %v5702_v15 = vpop.eup %5701 }
 0xea2   : > { %v2400_v14 = vpop.f32.mrf.mxu3 }
 0xea3   : > { %v2420_v22 = vadd.f32 %v6861_v25, %v2400_v14 }
 0xea8   : > { %v2551_v17 = vpop.f32.mrf.mxu2 }
 0xea9   : > { %v2556_v18 = vmul.f32 %v5702_v15, %v2551_v17  ;;  %v5627_v17 = vld [vmem:[%s7495_s14 + $0x1] ss:$0 sm:$0xff] }
 0xeaa   : > { %v2402_v19 = vpop.f32.mrf.mxu3 }
 0xeab   : > { %v2557_v20 = vpack.c.bf16 %v2556_v18, %v2556_v18  ;;  %v2827_v19 = vld [vmem:[%s7520_s27] sm:$0xff] }
 0xead   : > { %5116 = vmatmul.msk.bf16.vlgmr.msrb.gmra.mxu0 %vm1750_vm8, %v2557_v20 }
 0xeb0   : > { %v2553_v21 = vpop.f32.mrf.mxu2 }
 0xeb1   : > { %v5628_v21 = vld [vmem:[%s7497_s16 + $0x1] ss:$0 sm:$0xff] }
 0xeb2   : > { %v2496_v23 = vpop.f32.mrf.mxu3 }
 0xeb3   : > { %v2500_v24 = vadd.f32 %v2496_v23, %v2420_v22 }
 0xeb8   : > { %v2822_v27 = vpop.f32.mrf.mxu2 }
 0xeb9   : > { %v2823_v28 = vadd.f32 %v5625_v26, %v2822_v27  ;;  %v2889_v26 = vpack.c.bf16 %v2827_v19, %v2827_v19 }
 0xeba   : > { %v2498_v29 = vpop.f32.mrf.mxu3 }
 0xebb   : > { %v6894_v30 = vpack.c.bf16 %v2823_v28, %v2823_v28  ;;  %v2826_v31 = vmul.f32 0.35355338, %v2823_v28  ;;  %v2972_v29 = vsel %vm1785_vm7, %v2889_v26, 0 }
 0xebd   : > { %2834 = vrot.lane.b32.xlu1 %v6894_v30, %s7504_s7  ;;  %2865 = vrot.lane.b32.xlu2 %v6894_v30, %s7506_s5  ;;  %v2831_v25 = vpack.c.bf16 %v2826_v31, %v2826_v31 }
 0xec0   : > { %v2824_v32 = vpop.f32.mrf.mxu2 }
 0xec5   : > { %2891 = vrot.lane.b32.xlu2 %v2831_v25, %s7507_s6 }
 0xecd   : > { %3067 = vrot.lane.b32.xlu2 %v6894_v30, %s7505_s4 }
 0xed5   : > { %2987 = vrot.lane.b32.xlu2 %v2831_v25, %s7509_s13 }
 0xedd   : > { %2924 = vrot.lane.b32.xlu2 %v6894_v30, %s7511_s20 }
 0xf17   : > { %v2866_v35 = vpop.permute.xlu2 %2865 }
 0xf18   : > { %v2871_v37 = vsel %vm1785_vm7, %v2866_v35, 0 }
 0xf19   : > { %2880 = vmatpush.bf16.msra.mxu3 %v2871_v37 }
 0xf1f   : > { %v6909_v38 = vpop.permute.xlu2 %2891 }
 0xf27   : > { %v6911_v39 = vpop.permute.xlu2 %3067 }
 0xf28   : > { %v3073_v33 = vsel %vm1750_vm8, %v6911_v39, 0 }
 0xf2a   : > { %v2574_v42 = vpop.f32.mrf.mxu0 }
 0xf2b   : > { %v2578_v43 = vadd.f32 %v2574_v42, %v2500_v24 }
 0xf2d   : > { %v2584_v44 = vadd.f32 %v5626_v41, %v2578_v43 }
 0xf2f   : > { %v2835_v61 = vpop.permute.xlu1 %2834  ;;  %v6914_v40 = vpop.permute.xlu2 %2987  ;;  %v2585_v46 = vadd.f32 %v2584_v44, %v6813_v34 }
 0xf30   : > { %v2840_v47 = vsel %vm1750_vm8, %v2835_v61, 0 }
 0xf31   : > { %2849 = vmatpush.bf16.xpose.msra.mxu0 %v2840_v47  ;;  %v2590_v48 = vsel %vm1660_vm2, %v2585_v46, 0.0 }
 0xf32   : > { %2591 = vadd.xlane.f32.xlu0 %v2590_v48  ;;  %v2576_v49 = vpop.f32.mrf.mxu0 }
 0xf37   : > { %v2925_v50 = vpop.permute.xlu2 %2924 }
 0xf38   : > { %v2930_v51 = vsel %vm1785_vm7, %v2925_v50, 0  ;;  %5171 = vmatmul.msk.bf16.vlgmr.msra.gmra.mxu0 %vm1750_vm8, %v2831_v25 }
 0xf39   : > { %2939 = vmatpush.bf16.msra.mxu2 %v2930_v51 }
 0xfa5   : > { %v2592_v52 = vpop.xlane.xlu0 %2591 }
 0xfa6   : > { %v2593_v34 = vmul.f32 %v2592_v52, %v6709_v16 }
 0xfa8   : > { %v2594_v53 = vsub.f32 %v2585_v46, %v2593_v34 }
 0xfaa   : > { %v2595_v54 = vmul.f32 %v2594_v53, %v2594_v53 }
 0xfac   : > { %v2596_v55 = vsel %vm1660_vm2, %v2595_v54, 0.0 }
 0xfad   : > { %2597 = vadd.xlane.f32.xlu1 %v2596_v55 }
 0xfb5   : > { %v2851_v59 = vpop.f32.mrf.mxu0 }
 0xfb6   : > { %v2852_v60 = vadd.f32 %v2851_v59, %v6927_v58 }
 0xfb8   : > { %v2855_v62 = vsel %vm1750_vm8, %v2852_v60, -inf }
 0xfb9   : > { %2856 = vmax.xlane.f32.xlu0 %v2855_v62 }
 0xfbd   : > { %v2853_v63 = vpop.f32.mrf.mxu0 }
 0xfc6   : > { %3065 = vrot.lane.b32.xlu1 %v2831_v25, %s7510_s19 }
 0xfcd   : > { %2893 = vrot.lane.b32.xlu0 %v6894_v30, %s7503_s3 }
0x1020   : > { %v2598_v3 = vpop.xlane.xlu1 %2597 }
0x1021   : > { %v2599_v4 = vmul.f32 %v2598_v3, %v6709_v16 }
0x1023   : > { %v2600_v5 = vadd.f32 1e-05, %v2599_v4 }
0x1025   : > { %5703 = vrsqrt.f32 %v2600_v5  ;;  %vm2607_vm1 = vweird.f32 %v2600_v5 }
0x102b   : > { %v5704_v6 = vpop.eup %5703 }
0x102c   : > { %v2602_v8 = vmul.f32 %v5704_v6, %v2600_v5  ;;  %v2857_v9 = vpop.xlane.xlu0 %2856  ;;  %vm2608_vm0 = vweird.f32 %v5704_v6 }
0x102d   : > { %v2858_v10 = vsub.f32 %v2852_v60, %v2857_v9  ;;  %vm2609_vm3 = vmor %vm2607_vm1, %vm2608_vm0 }
0x102e   : > { %v2603_v11 = vmul.f32 %v5704_v6, %v2602_v8 }
0x102f   : > { %v2859_v12 = vmul.f32 1.442695, %v2858_v10 }
0x1030   : > { %v2604_v13 = vmul.f32 0.5, %v2603_v11 }
0x1031   : > { %5705 = vpow2.f32 %v2859_v12 }
0x1032   : > { %v2605_v14 = vsub.f32 1.5, %v2604_v13 }
0x1034   : > { %v2606_v15 = vmul.f32 %v5704_v6, %v2605_v14 }
0x1036   : > { %v2610_v18 = vsel %vm2609_vm3, %v5704_v6, %v2606_v15 }
0x1037   : > { %v5706_v20 = vpop.eup %5705  ;;  %v2611_v22 = vmul.f32 %v2610_v18, %v2594_v53 }
0x1038   : > { %v2861_v23 = vsel %vm1750_vm8, %v5706_v20, 0.0  ;;  %v2864_v25 = vpack.c.bf16 %v5706_v20, %v5706_v20  ;;  %v3066_v51 = vpop.permute.xlu1 %3065 }
0x1039   : > { %v2615_v24 = vmul.f32 %v5627_v17, %v2611_v22  ;;  %2862 = vadd.xlane.f32.xlu0 %v2861_v23  ;;  %v5630_v17 = vld [vmem:[%s7499_s23 + $0x1] ss:$0 sm:$0xff]  ;;  %s7538_s23 = sld [smem:[#allocation66_spill]] }
0x103b   : > { %v6943_v27 = vadd.f32 %v5628_v21, %v2615_v24 }
0x103d   : > { %v2625_v28 = vpack.c.bf16 %v6943_v27, %v6943_v27 }
0x103f   : > { %5133 = vmatmul.msk.bf16.vlgmr.msrb.gmra.mxu3 %vm1660_vm2, %v2625_v28  ;;  %v2894_v31 = vpop.permute.xlu0 %2893 }
0x1040   : > { %v2899_v32 = vsel %vm1750_vm8, %v2894_v31, 0  ;;  %2981 = vmatpush.bf16.msrb.mxu3 %v2972_v29 }
0x1041   : > { %2908 = vmatpush.bf16.xpose.msra.mxu1 %v2899_v32  ;;  %v2828_v32 = vld [vmem:[%s7520_s27 + $0x8] sm:$0xff] }
0x104d   : > { %2989 = vrot.lane.b32.xlu0 %v6894_v30, %s7508_s12 }
0x104f   : > { %5172 = vmatmul.msk.bf16.vlgmr.msra.gmra.mxu3 %vm1750_vm8, %v2864_v25  ;;  %v2948_v25 = vpack.c.bf16 %v2828_v32, %v2828_v32 }
0x1050   : > { %3082 = vmatpush.bf16.xpose.msra.mxu3 %v3073_v33 }
0x1051   : > { %v2953_v33 = vsel %vm1785_vm7, %v2948_v25, 0 }
0x1052   : > { %2962 = vmatpush.bf16.msrb.mxu0 %v2953_v33 }
0x10ac   : > { %v2863_v35 = vpop.xlane.xlu0 %2862 }
0x10ad   : > { %5707 = vrcp.f32 %v2863_v35  ;;  %v2830_v35 = vld [vmem:[%s7520_s27 + $0x18] sm:$0xff] }
0x10b3   : > { %v5708_v47 = vpop.eup %5707 }
0x10bf   : > { %v2990_v43 = vpop.permute.xlu0 %2989 }
0x10c0   : > { %v2995_v61 = vsel %vm1750_vm8, %v2990_v43, 0 }
0x10c2   : > { %v2655_v37 = vpop.f32.mrf.mxu3 }
0x10c3   : > { %v2656_v41 = vadd.f32 %v5629_v36, %v2655_v37  ;;  %v3122_v36 = vpack.c.bf16 %v2830_v35, %v2830_v35  ;;  %v2829_v37 = vld [vmem:[%s7520_s27 + $0x10] sm:$0xff] }
0x10c5   : > { %v2659_v42 = vmax.f32 %v2656_v41, 0.0  ;;  %v3127_v41 = vsel %vm1785_vm7, %v3122_v36, 0 }
0x10c7   : > { %v2669_v44 = vpack.c.bf16 %v2659_v42, %v2659_v42  ;;  %v3044_v42 = vpack.c.bf16 %v2829_v37, %v2829_v37 }
0x10c9   : > { %5159 = vmatmul.msk.bf16.vlgmr.msrb.gmra.mxu1 %vm2172_vm12, %v2669_v44 }
0x10ca   : > { %3004 = vmatpush.bf16.xpose.msrb.mxu1 %v2995_v61  ;;  %v2657_v46 = vpop.f32.mrf.mxu3 }
0x10d2   : > { %v2882_v48 = vpop.f32.mrf.mxu3 }
0x10d3   : > { %v2887_v39 = vmul.f32 %v5708_v47, %v2882_v48 }
0x10d5   : > { %v2888_v49 = vpack.c.bf16 %v2887_v39, %v2887_v39 }
0x10d7   : > { %5176 = vmatmul.msk.bf16.vlgmr.msrb.gmra.mxu3 %vm1750_vm8, %v2888_v49 }
0x10d9   : > { %5173 = vmatmul.msk.bf16.vlgmr.msra.gmra.mxu1 %vm1750_vm8, %v6909_v38 }
0x10da   : > { %v2884_v50 = vpop.f32.mrf.mxu3 }
0x10e7   : > { %5180 = vmatmul.msk.bf16.vlgmr.msra.gmra.mxu3 %vm1750_vm8, %v3066_v51 }
0x10e9   : > { %5177 = vmatmul.msk.bf16.vlgmr.msrb.gmra.mxu1 %vm1750_vm8, %v6914_v40 }
0x1146   : > { %v2711_v52 = vpop.f32.mrf.mxu1 }
0x1147   : > { %v2712_v21 = vadd.f32 %v5630_v17, %v2711_v52 }
0x1149   : > { %v2715_v29 = vadd.f32 %v2712_v21, %v6943_v27  ;;  %v3049_v27 = vsel %vm1785_vm7, %v3044_v42, 0 }
0x114a   : > { %3058 = vmatpush.bf16.msra.mxu0 %v3049_v27 }
0x114b   : > { %v2720_v31 = vsel %vm1660_vm2, %v2715_v29, 0.0 }
0x114e   : > { %v2713_v34 = vpop.f32.mrf.mxu1 }
0x1156   : > { %v2910_v53 = vpop.f32.mrf.mxu1 }
0x1157   : > { %v2911_v54 = vadd.f32 %v2910_v53, %v6927_v58 }
0x1159   : > { %v2914_v55 = vsel %vm1750_vm8, %v2911_v54, -inf }
0x115a   : > { %2915 = vmax.xlane.f32.xlu0 %v2914_v55  ;;  %v6966_v56 = vpop.f32.mrf.mxu3 }
0x115e   : > { %v2912_v57 = vpop.f32.mrf.mxu1 }
0x1162   : > { %v2985_v59 = vpop.f32.mrf.mxu3 }
0x1166   : > { %v3006_v38 = vpop.f32.mrf.mxu1 }
0x1167   : > { %v3007_v60 = vadd.f32 %v3006_v38, %v6927_v58 }
0x1169   : > { %v3010_v62 = vsel %vm1750_vm8, %v3007_v60, -inf }
0x116a   : > { %v3084_v63 = vpop.f32.mrf.mxu3  ;;  %3011 = vmax.xlane.f32.xlu2 %v3010_v62 }
0x116b   : > { %v3085_v40 = vadd.f32 %v3084_v63, %v6927_v58 }
0x116d   : > { %v3088_v45 = vsel %vm1750_vm8, %v3085_v40, -inf }
0x116e   : > { %3020 = vrot.lane.b32.xlu0 %v6894_v30, %s7513_s22  ;;  %3089 = vmax.xlane.f32.xlu1 %v3088_v45  ;;  %v3008_v0 = vpop.f32.mrf.mxu1 }
0x1172   : > { %v3086_v1 = vpop.f32.mrf.mxu3 }
0x1182   : > { %3098 = vrot.lane.b32.xlu2 %v6894_v30, %s7512_s21 }
0x11cd   : > { %v2916_v2 = vpop.xlane.xlu0 %2915 }
0x11ce   : > { %v2917_v3 = vsub.f32 %v2911_v54, %v2916_v2 }
0x11d0   : > { %v2918_v4 = vmul.f32 1.442695, %v2917_v3 }
0x11d2   : > { %5709 = vpow2.f32 %v2918_v4 }
0x11d8   : > { %v5710_v5 = vpop.eup %5709 }
0x11d9   : > { %v2923_v6 = vpack.c.bf16 %v5710_v5, %v5710_v5  ;;  %v2920_v8 = vsel %vm1750_vm8, %v5710_v5, 0.0 }
0x11da   : > { %2921 = vadd.xlane.f32.xlu1 %v2920_v8 }
0x11db   : > { %5174 = vmatmul.msk.bf16.vlgmr.msra.gmra.mxu2 %vm1750_vm8, %v2923_v6 }
0x11dd   : > { %v3012_v9 = vpop.xlane.xlu2 %3011 }
0x11de   : > { %v3013_v10 = vsub.f32 %v3007_v60, %v3012_v9 }
0x11e0   : > { %v3014_v11 = vmul.f32 1.442695, %v3013_v10  ;;  %v3021_v12 = vpop.permute.xlu0 %3020 }
0x11e1   : > { %v3026_v13 = vsel %vm1785_vm7, %v3021_v12, 0  ;;  %v3090_v14 = vpop.xlane.xlu1 %3089 }
0x11e2   : > { %5711 = vpow2.f32 %v3014_v11  ;;  %v3091_v30 = vsub.f32 %v3085_v40, %v3090_v14  ;;  %3035 = vmatpush.bf16.msrb.mxu2 %v3026_v13 }
0x11e4   : > { %v3092_v15 = vmul.f32 1.442695, %v3091_v30  ;;  %v5632_v30 = vld [vmem:[%s7501_s9 + $0x1] ss:$0 sm:$0xff]  ;;  %s7526_s9 = sld [smem:[#allocation56_spill]] }
0x11e5   : > { %v3099_v18 = vpop.permute.xlu2 %3098 }
0x11e6   : > { %5713 = vpow2.f32 %v3092_v15  ;;  %v3104_v19 = vsel %vm1785_vm7, %v3099_v18, 0  ;;  %3136 = vmatpush.bf16.msra.mxu2 %v3127_v41 }
0x11e7   : > { %3113 = vmatpush.bf16.msra.mxu1 %v3104_v19  ;;  %v5633_v19 = vld [vmem:[%s7502_s8 + $0x1] ss:$0 sm:$0xff] }
0x11e8   : > { %v5712_v20 = vpop.eup %5711 }
0x11e9   : > { %v3019_v22 = vpack.c.bf16 %v5712_v20, %v5712_v20  ;;  %v3016_v23 = vsel %vm1750_vm8, %v5712_v20, 0.0 }
0x11ea   : > { %3017 = vadd.xlane.f32.xlu1 %v3016_v23 }
0x11eb   : > { %5178 = vmatmul.msk.bf16.vlgmr.msrb.gmra.mxu2 %vm1750_vm8, %v3019_v22  ;;  %v5631_v22 = vld [vmem:[%s7521_s2] ss:$0 sm:$0xff]  ;;  %s7524_s2 = sld [smem:[#allocation55_spill]] }
0x11ec   : > { %v5714_v24 = vpop.eup %5713 }
0x11ed   : > { %v3097_v26 = vpack.c.bf16 %v5714_v24, %v5714_v24  ;;  %v3094_v28 = vsel %vm1750_vm8, %v5714_v24, 0.0 }
0x11ee   : > { %3095 = vadd.xlane.f32.xlu0 %v3094_v28 }
0x11ef   : > { %5181 = vmatmul.msk.bf16.vlgmr.msra.gmra.mxu1 %vm1750_vm8, %v3097_v26 }
0x11f1   : > { %s7525_s8 = smov %s7524_s2 }
0x11f2   : > { %2721 = vadd.xlane.f32.xlu1 %v2720_v31 }
0x124d   : > { %v2922_v43 = vpop.xlane.xlu1 %2921 }
0x124e   : > { %5715 = vrcp.f32 %v2922_v43  ;;  %v5386_v43 = vld [vmem:[#allocation10 + $0x8] sm:$0xff] }
0x124f   : > { %3249 = vmatpush.bf16.msrb.mxu3 %v5386_v43 }
0x1254   : > { %v5716_v61 = vpop.eup %5715 }
0x125d   : > { %v3018_v44 = vpop.xlane.xlu1 %3017 }
0x125e   : > { %v2941_v46 = vpop.f32.mrf.mxu2 }
0x125f   : > { %v2946_v47 = vmul.f32 %v5716_v61, %v2941_v46  ;;  %v5384_v61 = vld [vmem:[%s7523_s29 + $0x8] sm:$0xff] }
0x1261   : > { %v2947_v48 = vpack.c.bf16 %v2946_v47, %v2946_v47  ;;  %v3096_v39 = vpop.xlane.xlu0 %3095 }
0x1262   : > { %5717 = vrcp.f32 %v3096_v39  ;;  %v5383_v39 = vld [vmem:[%s7523_s29] sm:$0xff] }
0x1263   : > { %5175 = vmatmul.msk.bf16.vlgmr.msrb.gmra.mxu0 %vm1750_vm8, %v2947_v48  ;;  %5719 = vrcp.f32 %v3018_v44  ;;  %v5385_v44 = vld [vmem:[#allocation10] sm:$0xff] }
0x1264   : > { %3250 = vmatpush.bf16.msrb.mxu3 %v5385_v44  ;;  %3211 = vmatpush.bf16.msrb.mxu0 %v5384_v61 }
0x1265   : > { %v2722_v49 = vpop.xlane.xlu1 %2721 }
0x1266   : > { %v2723_v50 = vmul.f32 %v2722_v49, %v6709_v16  ;;  %v2943_v51 = vpop.f32.mrf.mxu2 }
0x1268   : > { %v2724_v52 = vsub.f32 %v2715_v29, %v2723_v50  ;;  %v5718_v53 = vpop.eup %5717  ;;  %3212 = vmatpush.bf16.msrb.mxu0 %v5383_v39 }
0x1269   : > { %v5720_v59 = vpop.eup %5719 }
0x126a   : > { %v2725_v34 = vmul.f32 %v2724_v52, %v2724_v52 }
0x126c   : > { %v3115_v54 = vpop.f32.mrf.mxu1  ;;  %v2726_v55 = vsel %vm1660_vm2, %v2725_v34, 0.0 }
0x126d   : > { %v3120_v57 = vmul.f32 %v5718_v53, %v3115_v54  ;;  %2727 = vadd.xlane.f32.xlu2 %v2726_v55 }
0x126e   : > { %v3037_v38 = vpop.f32.mrf.mxu2 }
0x126f   : > { %v3121_v60 = vpack.c.bf16 %v3120_v57, %v3120_v57  ;;  %v3042_v62 = vmul.f32 %v5720_v59, %v3037_v38 }
0x1271   : > { %v3043_v63 = vpack.c.bf16 %v3042_v62, %v3042_v62  ;;  %5182 = vmatmul.msk.bf16.vlgmr.msra.gmra.mxu2 %vm1750_vm8, %v3121_v60  ;;  %v5634_v60 = vld [vmem:[#allocation7] ss:$0 sm:$0xff] }
0x1273   : > { %5179 = vmatmul.msk.bf16.vlgmr.msra.gmra.mxu0 %vm1750_vm8, %v3043_v63 }
0x1274   : > { %v3117_v40 = vpop.f32.mrf.mxu1 }
0x1276   : > { %v3039_v45 = vpop.f32.mrf.mxu2 }
0x1277   : > { %v5637_v45 = vld [vmem:[#allocation8] ss:$0 sm:$0xff] }
0x12e0   : > { %v2964_v0 = vpop.f32.mrf.mxu0  ;;  %v2728_v1 = vpop.xlane.xlu2 %2727 }
0x12e1   : > { %v2729_v2 = vmul.f32 %v2728_v1, %v6709_v16  ;;  %v2984_v14 = vadd.f32 %v6966_v56, %v2964_v0 }
0x12e3   : > { %v2730_v3 = vadd.f32 1e-05, %v2729_v2 }
0x12e5   : > { %5721 = vrsqrt.f32 %v2730_v3  ;;  %vm2737_vm5 = vweird.f32 %v2730_v3 }
0x12e8   : > { %v2966_v4 = vpop.f32.mrf.mxu0 }
0x12eb   : > { %v5722_v5 = vpop.eup %5721 }
0x12ec   : > { %v2732_v6 = vmul.f32 %v5722_v5, %v2730_v3  ;;  %vm2738_vm4 = vweird.f32 %v5722_v5 }
0x12ed   : > { %vm2739_vm6 = vmor %vm2737_vm5, %vm2738_vm4 }
0x12ee   : > { %v2733_v8 = vmul.f32 %v5722_v5, %v2732_v6 }
0x12f0   : > { %v2734_v9 = vmul.f32 0.5, %v2733_v8  ;;  %v3060_v10 = vpop.f32.mrf.mxu0 }
0x12f1   : > { %v3064_v17 = vadd.f32 %v3060_v10, %v2984_v14  ;;  %v5638_v14 = vld [vmem:[%s7527_s10] ss:$0 sm:$0xff] }
0x12f2   : > { %v2735_v11 = vsub.f32 1.5, %v2734_v9  ;;  %v5636_v9 = vld [vmem:[%s7526_s9] ss:$0 sm:$0xff] }
0x12f4   : > { %v2736_v12 = vmul.f32 %v5722_v5, %v2735_v11  ;;  %v3138_v13 = vpop.f32.mrf.mxu2 }
0x12f5   : > { %v3142_v21 = vadd.f32 %v3138_v13, %v3064_v17 }
0x12f6   : > { %v2740_v15 = vsel %vm2739_vm6, %v5722_v5, %v2736_v12  ;;  %v5635_v5 = vld [vmem:[%s7524_s2] ss:$0 sm:$0xff]  ;;  %s7529_s2 = sld [smem:[#allocation61_spill]] }
0x12f7   : > { %v2741_v18 = vmul.f32 %v2740_v15, %v2724_v52  ;;  %v3147_v28 = vadd.f32 %v5631_v22, %v3142_v21 }
0x12f8   : > { %v3062_v20 = vpop.f32.mrf.mxu0 }
0x12f9   : > { %v2745_v23 = vmul.f32 %v5632_v30, %v2741_v18  ;;  %v3148_v31 = vadd.f32 %v3147_v28, %v6883_v7  ;;  %v5639_v30 = vld [vmem:[%s7528_s11] ss:$0 sm:$0xff] }
0x12fb   : > { %v2749_v24 = vadd.f32 %v5633_v19, %v2745_v23  ;;  %v3151_v56 = vsel %vm1660_vm2, %v3148_v31, 0.0 }
0x12fc   : > { %v3140_v26 = vpop.f32.mrf.mxu2  ;;  %s7530_s14 = smov %s7529_s2  ;;  %v3256_v44 = vld [vmem:[%s7529_s2] sm:$0xff]  ;;  %s7533_s2 = sld [smem:[#allocation67_spill]] }
0x12fd   : > { %v2752_v29 = vsel %vm1660_vm2, %v2749_v24, 0.0  ;;  %v3316_v61 = vpack.c.bf16 %v3256_v44, %v3256_v44 }
0x12fe   : > { %2753 = vadd.xlane.f32.xlu1 %v2752_v29 }
0x1302   : > { %s7534_s16 = smov %s7533_s2 }
0x1306   : > { %3152 = vadd.xlane.f32.xlu1 %v3151_v56 }
0x1371   : > { %v2754_v32 = vpop.xlane.xlu1 %2753 }
0x1372   : > { %v2755_v25 = vmul.f32 %v2754_v32, %v6709_v16 }
0x1374   : > { %v2756_v33 = vsub.f32 %v2749_v24, %v2755_v25 }
0x1376   : > { %v2757_v35 = vmul.f32 %v2756_v33, %v2756_v33 }
0x1378   : > { %v2758_v36 = vsel %vm1660_vm2, %v2757_v35, 0.0 }
0x1379   : > { %2759 = vadd.xlane.f32.xlu1 %v2758_v36  ;;  %v3153_v37 = vpop.xlane.xlu1 %3152 }
0x137a   : > { %v3154_v41 = vmul.f32 %v3153_v37, %v6709_v16 }
0x137c   : > { %v3155_v42 = vsub.f32 %v3148_v31, %v3154_v41 }
0x137e   : > { %v3156_v27 = vmul.f32 %v3155_v42, %v3155_v42 }
0x1380   : > { %v3157_v7 = vsel %vm1660_vm2, %v3156_v27, 0.0 }
0x1381   : > { %3158 = vadd.xlane.f32.xlu0 %v3157_v7 }
0x13ec   : > { %v2760_v46 = vpop.xlane.xlu1 %2759 }
0x13ed   : > { %v2761_v47 = vmul.f32 %v2760_v46, %v6709_v16  ;;  %v3399_v46 = vsel %vm1785_vm7, %v3316_v61, 0  ;;  %v3259_v61 = vld [vmem:[%s7530_s14 + $0x18] sm:$0xff] }
0x13ef   : > { %v2762_v48 = vadd.f32 1e-05, %v2761_v47 }
0x13f1   : > { %5723 = vrsqrt.f32 %v2762_v48  ;;  %vm2769_vm10 = vweird.f32 %v2762_v48 }
0x13f4   : > { %v3159_v49 = vpop.xlane.xlu0 %3158 }
0x13f5   : > { %v3160_v50 = vmul.f32 %v3159_v49, %v6709_v16 }
0x13f7   : > { %v5724_v51 = vpop.eup %5723  ;;  %v3161_v52 = vadd.f32 1e-05, %v3160_v50 }
0x13f8   : > { %v2764_v34 = vmul.f32 %v5724_v51, %v2762_v48  ;;  %vm2770_vm9 = vweird.f32 %v5724_v51 }
0x13f9   : > { %5725 = vrsqrt.f32 %v3161_v52  ;;  %vm2771_vm11 = vmor %vm2769_vm10, %vm2770_vm9  ;;  %vm3168_vm14 = vweird.f32 %v3161_v52 }
0x13fa   : > { %v2765_v53 = vmul.f32 %v5724_v51, %v2764_v34 }
0x13fc   : > { %v2766_v54 = vmul.f32 0.5, %v2765_v53 }
0x13fe   : > { %v2767_v55 = vsub.f32 1.5, %v2766_v54 }
0x13ff   : > { %v5726_v57 = vpop.eup %5725 }
0x1400   : > { %v2768_v59 = vmul.f32 %v5724_v51, %v2767_v55  ;;  %v3163_v38 = vmul.f32 %v5726_v57, %v3161_v52  ;;  %vm3169_vm13 = vweird.f32 %v5726_v57 }
0x1401   : > { %vm3170_vm15 = vmor %vm3168_vm14, %vm3169_vm13 }
0x1402   : > { %v2772_v62 = vsel %vm2771_vm11, %v5724_v51, %v2768_v59  ;;  %v3164_v63 = vmul.f32 %v5726_v57, %v3163_v38 }
0x1403   : > { %v2773_v40 = vmul.f32 %v2772_v62, %v2756_v33 }
0x1404   : > { %v3165_v0 = vmul.f32 0.5, %v3164_v63 }
0x1405   : > { %v2777_v1 = vmul.f32 %v5634_v60, %v2773_v40 }
0x1406   : > { %v3166_v2 = vsub.f32 1.5, %v3165_v0 }
0x1407   : > { %v2781_v3 = vadd.f32 %v5637_v45, %v2777_v1 }
0x1408   : > { %v3167_v4 = vmul.f32 %v5726_v57, %v3166_v2 }
0x1409   : > { %v7015_v6 = vpack.c.bf16 %v2781_v3, %v2781_v3 }
0x140a   : > { %v3171_v8 = vsel %vm3170_vm15, %v5726_v57, %v3167_v4 }
0x140b   : > { %v3172_v10 = vmul.f32 %v3171_v8, %v3155_v42  ;;  %5200 = vmatmul.msk.bf16.vlgmr.msrb.gmra.mxu3 %vm1660_vm2, %v7015_v6  ;;  %v7049_v42 = vld [vmem:[%s6702_s28] ss:$0 sm:$0xff]  ;;  %s7531_s28 = sld [smem:[#allocation62_spill]] }
0x140d   : > { %v3176_v11 = vmul.f32 %v5635_v5, %v3172_v10 }
0x140f   : > { %v7020_v12 = vadd.f32 %v5636_v9, %v3176_v11 }
0x1411   : > { %v3185_v13 = vpack.c.bf16 %v7020_v12, %v7020_v12  ;;  %s7532_s15 = smov %s7531_s28 }
0x1413   : > { %5191 = vmatmul.msk.bf16.vlgmr.msrb.gmra.mxu0 %vm1660_vm2, %v3185_v13 }
0x148e   : > { %v3252_v15 = vpop.f32.mrf.mxu3 }
0x148f   : > { %v3253_v17 = vadd.f32 %v5638_v14, %v3252_v15 }
0x1490   : > { %v3214_v18 = vpop.f32.mrf.mxu0 }
0x1491   : > { %v7027_v19 = vpack.c.bf16 %v3253_v17, %v3253_v17  ;;  %v3215_v20 = vadd.f32 %v5639_v30, %v3214_v18 }
0x1493   : > { %3320 = vrot.lane.b32.xlu2 %v7027_v19, %s7507_s6  ;;  %3292 = vrot.lane.b32.xlu0 %v7027_v19, %s7504_s7  ;;  %v3266_v21 = vsel %vm1750_vm8, %v7027_v19, 0  ;;  %v3218_v22 = vmul.f32 0.35355338, %v3215_v20 }
0x1494   : > { %3275 = vmatpush.bf16.xpose.msrb.mxu1 %v3266_v21 }
0x1495   : > { %v3260_v26 = vpack.c.bf16 %v3218_v22, %v3218_v22 }
0x1496   : > { %v3254_v23 = vpop.f32.mrf.mxu3 }
0x1498   : > { %v3216_v24 = vpop.f32.mrf.mxu0 }
0x149b   : > { %3492 = vrot.lane.b32.xlu2 %v3260_v26, %s7510_s19  ;;  %3494 = vrot.lane.b32.xlu0 %v7027_v19, %s7510_s19 }
0x149c   : > { %5201 = vmatmul.msk.bf16.vlgmr.msrb.gmra.mxu1 %vm1750_vm8, %v3260_v26 }
0x14a3   : > { %3351 = vrot.lane.b32.xlu2 %v7027_v19, %s7503_s3  ;;  %3416 = vrot.lane.b32.xlu0 %v7027_v19, %s7509_s13 }
0x14ab   : > { %3414 = vrot.lane.b32.xlu0 %v3260_v26, %s7509_s13 }
0x14ed   : > { %v3321_v28 = vpop.permute.xlu2 %3320 }
0x14ee   : > { %v3326_v29 = vsel %vm1750_vm8, %v3321_v28, 0 }
0x14ef   : > { %3335 = vmatpush.bf16.xpose.msra.mxu0 %v3326_v29 }
0x14f5   : > { %v3493_v31 = vpop.permute.xlu2 %3492 }
0x14fd   : > { %v3352_v56 = vpop.permute.xlu2 %3351 }
0x14fe   : > { %v3357_v32 = vsel %vm1785_vm7, %v3352_v56, 0 }
0x14ff   : > { %3366 = vmatpush.bf16.msra.mxu3 %v3357_v32 }
0x1505   : > { %v3293_v25 = vpop.permute.xlu0 %3292 }
0x1506   : > { %v3298_v33 = vsel %vm1785_vm7, %v3293_v25, 0 }
0x1507   : > { %3307 = vmatpush.bf16.msrb.mxu2 %v3298_v33 }
0x150b   : > { %3408 = vmatpush.bf16.msra.mxu2 %v3399_v46  ;;  %v3549_v46 = vpack.c.bf16 %v3259_v61, %v3259_v61  ;;  %v5389_v61 = vld [vmem:[%s7534_s16] sm:$0xff] }
0x150d   : > { %v3495_v35 = vpop.permute.xlu0 %3494 }
0x150e   : > { %v3500_v52 = vsel %vm1750_vm8, %v3495_v35, 0 }
0x1515   : > { %v3417_v36 = vpop.permute.xlu0 %3416 }
0x1516   : > { %v3422_v37 = vsel %vm1750_vm8, %v3417_v36, 0 }
0x1517   : > { %3431 = vmatpush.bf16.xpose.msrb.mxu0 %v3422_v37  ;;  %v3257_v37 = vld [vmem:[%s7530_s14 + $0x8] sm:$0xff] }
0x1519   : > { %v3277_v41 = vpop.f32.mrf.mxu1 }
0x151a   : > { %v3278_v27 = vadd.f32 %v7049_v42, %v3277_v41  ;;  %v3375_v41 = vpack.c.bf16 %v3257_v37, %v3257_v37  ;;  %v5642_v37 = vld [vmem:[%s7537_s18] ss:$0 sm:$0xff] }
0x151c   : > { %v3281_v7 = vsel %vm1750_vm8, %v3278_v27, -inf }
0x151d   : > { %3282 = vmax.xlane.f32.xlu1 %v3281_v7  ;;  %v3415_v60 = vpop.permute.xlu0 %3414  ;;  %v3258_v7 = vld [vmem:[%s7530_s14 + $0x10] sm:$0xff] }
0x1521   : > { %v3279_v43 = vpop.f32.mrf.mxu1 }
0x1522   : > { %v3471_v43 = vpack.c.bf16 %v3258_v7, %v3258_v7 }
0x1524   : > { %v3476_v44 = vsel %vm1785_vm7, %v3471_v43, 0 }
0x1590   : > { %v3283_v47 = vpop.xlane.xlu1 %3282 }
0x1591   : > { %v3284_v48 = vsub.f32 %v3278_v27, %v3283_v47  ;;  %v3380_v27 = vsel %vm1785_vm7, %v3375_v41, 0  ;;  %v3554_v47 = vsel %vm1785_vm7, %v3549_v46, 0  ;;  %v5643_v46 = vld [vmem:[%s7538_s23] ss:$0 sm:$0xff] }
0x1592   : > { %3389 = vmatpush.bf16.msra.mxu1 %v3380_v27 }
0x1593   : > { %v3285_v39 = vmul.f32 1.442695, %v3284_v48 }
0x1595   : > { %5727 = vpow2.f32 %v3285_v39 }
0x1596   : > { %3485 = vmatpush.bf16.msrb.mxu1 %v3476_v44  ;;  %v5390_v44 = vld [vmem:[%s7534_s16 + $0x8] sm:$0xff] }
0x159b   : > { %v5728_v49 = vpop.eup %5727 }
0x159c   : > { %v3290_v50 = vpack.c.bf16 %v5728_v49, %v5728_v49  ;;  %v3287_v51 = vsel %vm1750_vm8, %v5728_v49, 0.0 }
0x159d   : > { %3288 = vadd.xlane.f32.xlu1 %v3287_v51 }
0x159e   : > { %5202 = vmatmul.msk.bf16.vlgmr.msrb.gmra.mxu2 %vm1750_vm8, %v3290_v50 }
0x159f   : > { %3509 = vmatpush.bf16.xpose.msrb.mxu2 %v3500_v52 }
0x15b6   : > { %3318 = vrot.lane.b32.xlu1 %v3260_v26, %s7507_s6 }
0x1610   : > { %v3289_v34 = vpop.xlane.xlu1 %3288 }
0x1611   : > { %5729 = vrcp.f32 %v3289_v34 }
0x1617   : > { %v5730_v53 = vpop.eup %5729 }
0x1621   : > { %v3309_v54 = vpop.f32.mrf.mxu2 }
0x1622   : > { %v3314_v55 = vmul.f32 %v5730_v53, %v3309_v54 }
0x1624   : > { %v3315_v57 = vpack.c.bf16 %v3314_v55, %v3314_v55 }
0x1626   : > { %5206 = vmatmul.msk.bf16.vlgmr.msra.gmra.mxu2 %vm1750_vm8, %v3315_v57 }
0x1628   : > { %v3319_v59 = vpop.permute.xlu1 %3318 }
0x1629   : > { %v3311_v38 = vpop.f32.mrf.mxu2  ;;  %5203 = vmatmul.msk.bf16.vlgmr.msra.gmra.mxu0 %vm1750_vm8, %v3319_v59 }
0x1636   : > { %5210 = vmatmul.msk.bf16.vlgmr.msrb.gmra.mxu2 %vm1750_vm8, %v3493_v31 }
0x1639   : > { %5207 = vmatmul.msk.bf16.vlgmr.msrb.gmra.mxu0 %vm1750_vm8, %v3415_v60 }
0x16a6   : > { %v3337_v62 = vpop.f32.mrf.mxu0 }
0x16a7   : > { %v3338_v63 = vadd.f32 %v7049_v42, %v3337_v62 }
0x16a9   : > { %v7064_v40 = vpop.f32.mrf.mxu2  ;;  %v3341_v45 = vsel %vm1750_vm8, %v3338_v63, -inf }
0x16aa   : > { %3342 = vmax.xlane.f32.xlu1 %v3341_v45 }
0x16ae   : > { %v3339_v0 = vpop.f32.mrf.mxu0 }
0x16b1   : > { %v3412_v1 = vpop.f32.mrf.mxu2 }
0x16b6   : > { %v3433_v2 = vpop.f32.mrf.mxu0 }
0x16b7   : > { %v3434_v3 = vadd.f32 %v7049_v42, %v3433_v2 }
0x16b9   : > { %v3511_v4 = vpop.f32.mrf.mxu2  ;;  %v3437_v5 = vsel %vm1750_vm8, %v3434_v3, -inf }
0x16ba   : > { %v3512_v8 = vadd.f32 %v7049_v42, %v3511_v4  ;;  %3438 = vmax.xlane.f32.xlu0 %v3437_v5 }
0x16bc   : > { %v3515_v9 = vsel %vm1750_vm8, %v3512_v8, -inf }
0x16bd   : > { %3516 = vmax.xlane.f32.xlu2 %v3515_v9  ;;  %v5640_v9 = vld [vmem:[%s7531_s28] ss:$0 sm:$0xff]  ;;  %s7535_s28 = sld [smem:[#allocation63_spill]] }
0x16be   : > { %v3435_v10 = vpop.f32.mrf.mxu0 }
0x16c1   : > { %v3513_v11 = vpop.f32.mrf.mxu2 }
0x16c3   : > { %3447 = vrot.lane.b32.xlu1 %v7027_v19, %s7508_s12  ;;  %s7536_s17 = smov %s7535_s28 }
0x16ce   : > { %3525 = vrot.lane.b32.xlu0 %v7027_v19, %s7505_s4 }
0x171d   : > { %v3343_v13 = vpop.xlane.xlu1 %3342 }
0x171e   : > { %v3344_v14 = vsub.f32 %v3338_v63, %v3343_v13 }
0x1720   : > { %v3345_v30 = vmul.f32 1.442695, %v3344_v14 }
0x1722   : > { %5731 = vpow2.f32 %v3345_v30 }
0x1728   : > { %v5732_v15 = vpop.eup %5731 }
0x1729   : > { %v3350_v17 = vpack.c.bf16 %v5732_v15, %v5732_v15  ;;  %v3347_v18 = vsel %vm1750_vm8, %v5732_v15, 0.0 }
0x172a   : > { %3348 = vadd.xlane.f32.xlu2 %v3347_v18 }
0x172b   : > { %5204 = vmatmul.msk.bf16.vlgmr.msra.gmra.mxu3 %vm1750_vm8, %v3350_v17 }
0x172d   : > { %v3439_v20 = vpop.xlane.xlu0 %3438 }
0x172e   : > { %v3440_v21 = vsub.f32 %v3434_v3, %v3439_v20 }
0x1730   : > { %v3441_v22 = vmul.f32 1.442695, %v3440_v21  ;;  %v3517_v23 = vpop.xlane.xlu2 %3516 }
0x1731   : > { %v3518_v24 = vsub.f32 %v3512_v8, %v3517_v23  ;;  %v5387_v23 = vld [vmem:[#allocation11] sm:$0xff] }
0x1732   : > { %5733 = vpow2.f32 %v3441_v22  ;;  %v5388_v22 = vld [vmem:[#allocation11 + $0x8] sm:$0xff] }
0x1733   : > { %v3519_v26 = vmul.f32 1.442695, %v3518_v24  ;;  %v5392_v24 = vld [vmem:[%s7533_s2 + $0x18] sm:$0xff]  ;;  %s7539_s2 = sld [smem:[#allocation69_spill]] }
0x1734   : > { %3690 = vmatpush.bf16.msra.mxu2 %v5392_v24 }
0x1735   : > { %5735 = vpow2.f32 %v3519_v26  ;;  %v3448_v19 = vpop.permute.xlu1 %3447 }
0x1736   : > { %v3453_v28 = vsel %vm1785_vm7, %v3448_v19, 0  ;;  %v5391_v19 = vld [vmem:[%s7534_s16 + $0x10] sm:$0xff] }
0x1737   : > { %3462 = vmatpush.bf16.msrb.mxu3 %v3453_v28 }
0x1738   : > { %v5734_v29 = vpop.eup %5733  ;;  %3691 = vmatpush.bf16.msra.mxu2 %v5391_v19 }
0x1739   : > { %v3446_v31 = vpack.c.bf16 %v5734_v29, %v5734_v29  ;;  %v3443_v56 = vsel %vm1750_vm8, %v5734_v29, 0.0  ;;  %s7540_s26 = smov %s7539_s2 }
0x173a   : > { %3444 = vadd.xlane.f32.xlu1 %v3443_v56 }
0x173b   : > { %v5736_v32 = vpop.eup %5735  ;;  %5208 = vmatmul.msk.bf16.vlgmr.msrb.gmra.mxu3 %vm1750_vm8, %v3446_v31 }
0x173c   : > { %v3521_v25 = vsel %vm1750_vm8, %v5736_v32, 0.0  ;;  %v3524_v36 = vpack.c.bf16 %v5736_v32, %v5736_v32  ;;  %3563 = vmatpush.bf16.msra.mxu3 %v3554_v47  ;;  %3692 = vmatpush.bf16.msra.mxu2 %v5390_v44 }
0x173d   : > { %3522 = vadd.xlane.f32.xlu2 %v3521_v25 }
0x1740   : > { %v3526_v33 = vpop.permute.xlu0 %3525  ;;  %3693 = vmatpush.bf16.msra.mxu2 %v5389_v61 }
0x1741   : > { %v3531_v35 = vsel %vm1785_vm7, %v3526_v33, 0 }
0x1742   : > { %3540 = vmatpush.bf16.msra.mxu0 %v3531_v35  ;;  %v5641_v35 = vld [vmem:[%s7535_s28] ss:$0 sm:$0xff]  ;;  %s7541_s28 = sld [smem:[#allocation70_spill]] }
0x1745   : > { %5211 = vmatmul.msk.bf16.vlgmr.msra.gmra.mxu0 %vm1750_vm8, %v3524_v36 }
0x1748   : > { %s7542_s30 = smov %s7541_s28 }
0x179d   : > { %v3349_v48 = vpop.xlane.xlu2 %3348 }
0x179e   : > { %5737 = vrcp.f32 %v3349_v48 }
0x17a4   : > { %v5738_v39 = vpop.eup %5737 }
0x17ad   : > { %v3445_v52 = vpop.xlane.xlu1 %3444 }
0x17ae   : > { %v3368_v49 = vpop.f32.mrf.mxu3  ;;  %5739 = vrcp.f32 %v3445_v52 }
0x17af   : > { %v3373_v50 = vmul.f32 %v5738_v39, %v3368_v49 }
0x17b0   : > { %v3523_v53 = vpop.xlane.xlu2 %3522 }
0x17b1   : > { %v3374_v51 = vpack.c.bf16 %v3373_v50, %v3373_v50  ;;  %5741 = vrcp.f32 %v3523_v53 }
0x17b3   : > { %5205 = vmatmul.msk.bf16.vlgmr.msra.gmra.mxu1 %vm1750_vm8, %v3374_v51  ;;  %v5644_v51 = vld [vmem:[#allocation13] ss:$0 sm:$0xff] }
0x17b4   : > { %v5740_v54 = vpop.eup %5739  ;;  %3638 = vmatpush.bf16.msra.mxu1 %v5388_v22 }
0x17b6   : > { %v3370_v34 = vpop.f32.mrf.mxu3 }
0x17b7   : > { %v5742_v38 = vpop.eup %5741 }
0x17b8   : > { %3639 = vmatpush.bf16.msra.mxu1 %v5387_v23 }
0x17be   : > { %v3464_v55 = vpop.f32.mrf.mxu3 }
0x17bf   : > { %v3469_v57 = vmul.f32 %v5740_v54, %v3464_v55 }
0x17c1   : > { %v3470_v59 = vpack.c.bf16 %v3469_v57, %v3469_v57 }
0x17c2   : > { %v3542_v60 = vpop.f32.mrf.mxu0 }
0x17c3   : > { %v3547_v62 = vmul.f32 %v5742_v38, %v3542_v60  ;;  %5209 = vmatmul.msk.bf16.vlgmr.msrb.gmra.mxu1 %vm1750_vm8, %v3470_v59 }
0x17c5   : > { %v3548_v63 = vpack.c.bf16 %v3547_v62, %v3547_v62 }
0x17c6   : > { %v3466_v45 = vpop.f32.mrf.mxu3 }
0x17c7   : > { %5212 = vmatmul.msk.bf16.vlgmr.msra.gmra.mxu3 %vm1750_vm8, %v3548_v63  ;;  %v5394_v63 = vld [vmem:[%s7514_s24 + $0x18] sm:$0xff]  ;;  %v5393_v45 = vld [vmem:[%s7514_s24 + $0x10] sm:$0xff] }
0x17c8   : > { %3764 = vmatpush.bf16.msrb.mxu0 %v5394_v63 }
0x17ca   : > { %v3544_v0 = vpop.f32.mrf.mxu0 }
0x17cc   : > { %3765 = vmatpush.bf16.msrb.mxu0 %v5393_v45 }
0x1830   : > { %v3391_v1 = vpop.f32.mrf.mxu1 }
0x1831   : > { %v3411_v4 = vadd.f32 %v7064_v40, %v3391_v1 }
0x1838   : > { %v3393_v2 = vpop.f32.mrf.mxu1 }
0x1840   : > { %v3487_v3 = vpop.f32.mrf.mxu1 }
0x1841   : > { %v3491_v8 = vadd.f32 %v3487_v3, %v3411_v4 }
0x1848   : > { %v3489_v5 = vpop.f32.mrf.mxu1 }
0x184a   : > { %v3565_v10 = vpop.f32.mrf.mxu3 }
0x184b   : > { %v3569_v11 = vadd.f32 %v3565_v10, %v3491_v8 }
0x184d   : > { %v3574_v13 = vadd.f32 %v5640_v9, %v3569_v11  ;;  %v5645_v11 = vld [vmem:[%s7539_s2] ss:$0 sm:$0xff] }
0x184f   : > { %v3575_v14 = vadd.f32 %v3574_v13, %v7020_v12 }
0x1851   : > { %v3578_v30 = vsel %vm1660_vm2, %v3575_v14, 0.0 }
0x1852   : > { %3579 = vadd.xlane.f32.xlu2 %v3578_v30  ;;  %v3567_v15 = vpop.f32.mrf.mxu3 }
0x18c5   : > { %v3580_v17 = vpop.xlane.xlu2 %3579 }
0x18c6   : > { %v3581_v18 = vmul.f32 %v3580_v17, %v6709_v16 }
0x18c8   : > { %v3582_v20 = vsub.f32 %v3575_v14, %v3581_v18  ;;  %v5646_v14 = vld [vmem:[%s7541_s28] ss:$0 sm:$0xff] }
0x18ca   : > { %v3583_v21 = vmul.f32 %v3582_v20, %v3582_v20 }
0x18cc   : > { %v3584_v40 = vsel %vm1660_vm2, %v3583_v21, 0.0 }
0x18cd   : > { %3585 = vadd.xlane.f32.xlu0 %v3584_v40 }
0x1940   : > { %v3586_v12 = vpop.xlane.xlu0 %3585 }
0x1941   : > { %v3587_v26 = vmul.f32 %v3586_v12, %v6709_v16 }
0x1943   : > { %v3588_v28 = vadd.f32 1e-05, %v3587_v26 }
0x1945   : > { %5743 = vrsqrt.f32 %v3588_v28  ;;  %vm3595_vm1 = vweird.f32 %v3588_v28 }
0x194b   : > { %v5744_v29 = vpop.eup %5743 }
0x194c   : > { %v3590_v31 = vmul.f32 %v5744_v29, %v3588_v28  ;;  %vm3596_vm0 = vweird.f32 %v5744_v29 }
0x194d   : > { %vm3597_vm3 = vmor %vm3595_vm1, %vm3596_vm0 }
0x194e   : > { %v3591_v56 = vmul.f32 %v5744_v29, %v3590_v31 }
0x1950   : > { %v3592_v32 = vmul.f32 0.5, %v3591_v56 }
0x1952   : > { %v3593_v25 = vsub.f32 1.5, %v3592_v32 }
0x1954   : > { %v3594_v33 = vmul.f32 %v5744_v29, %v3593_v25 }
0x1956   : > { %v3598_v36 = vsel %vm3597_vm3, %v5744_v29, %v3594_v33  ;;  %v5253_v33 = vld [vmem:[%s7520_s27 + $0x20] sm:$0xff] }
0x1957   : > { %v3599_v41 = vmul.f32 %v3598_v36, %v3582_v20  ;;  %v5647_v20 = vld [vmem:[%s7517_s0 + $0x1] ss:$0 sm:$0xff] }
0x1959   : > { %v3603_v27 = vmul.f32 %v5641_v35, %v3599_v41  ;;  %v3835_v35 = vpack.c.bf16 %v5253_v33, %v5253_v33 }
0x195b   : > { %v3607_v7 = vadd.f32 %v5642_v37, %v3603_v27  ;;  %v3918_v36 = vsel %vm1785_vm7, %v3835_v35, 0 }
0x195d   : > { %v3612_v43 = vpack.c.bf16 %v3607_v7, %v3607_v7 }
0x195f   : > { %5221 = vmatmul.msk.bf16.vlgmr.msra.gmra.mxu1 %vm1660_vm2, %v3612_v43 }
0x19dc   : > { %v3641_v47 = vpop.f32.mrf.mxu1 }
0x19dd   : > { %v3642_v48 = vadd.f32 %v5643_v46, %v3641_v47 }
0x19df   : > { %v3645_v39 = vmax.f32 %v3642_v48, 0.0 }
0x19e1   : > { %v3654_v49 = vpack.c.bf16 %v3645_v39, %v3645_v39 }
0x19e3   : > { %5238 = vmatmul.msk.bf16.vlgmr.msra.gmra.mxu2 %vm2172_vm12, %v3654_v49 }
0x19e4   : > { %v3643_v50 = vpop.f32.mrf.mxu1 }
0x1a66   : > { %v3695_v52 = vpop.f32.mrf.mxu2 }
0x1a67   : > { %v3696_v34 = vadd.f32 %v5644_v51, %v3695_v52 }
0x1a69   : > { %v3699_v53 = vadd.f32 %v3696_v34, %v3607_v7 }
0x1a6b   : > { %v3702_v54 = vsel %vm1660_vm2, %v3699_v53, 0.0 }
0x1a6c   : > { %3703 = vadd.xlane.f32.xlu2 %v3702_v54 }
0x1a6e   : > { %v3697_v55 = vpop.f32.mrf.mxu2 }
0x1adf   : > { %v3704_v57 = vpop.xlane.xlu2 %3703 }
0x1ae0   : > { %v3705_v59 = vmul.f32 %v3704_v57, %v6709_v16 }
0x1ae2   : > { %v3706_v38 = vsub.f32 %v3699_v53, %v3705_v59 }
0x1ae4   : > { %v3707_v60 = vmul.f32 %v3706_v38, %v3706_v38 }
0x1ae6   : > { %v3708_v62 = vsel %vm1660_vm2, %v3707_v60, 0.0 }
0x1ae7   : > { %3709 = vadd.xlane.f32.xlu2 %v3708_v62  ;;  %v5397_v62 = vld [vmem:[#allocation10 + $0x10] sm:$0xff] }
0x1b5a   : > { %v3710_v0 = vpop.xlane.xlu2 %3709 }
0x1b5b   : > { %v3711_v1 = vmul.f32 %v3710_v0, %v6709_v16 }
0x1b5d   : > { %v3712_v2 = vadd.f32 1e-05, %v3711_v1 }
0x1b5f   : > { %5745 = vrsqrt.f32 %v3712_v2  ;;  %vm3719_vm5 = vweird.f32 %v3712_v2 }
0x1b65   : > { %v5746_v3 = vpop.eup %5745 }
0x1b66   : > { %v3714_v4 = vmul.f32 %v5746_v3, %v3712_v2  ;;  %vm3720_vm4 = vweird.f32 %v5746_v3 }
0x1b67   : > { %vm3721_vm6 = vmor %vm3719_vm5, %vm3720_vm4 }
0x1b68   : > { %v3715_v5 = vmul.f32 %v5746_v3, %v3714_v4 }
0x1b6a   : > { %v3716_v8 = vmul.f32 0.5, %v3715_v5 }
0x1b6c   : > { %v3717_v9 = vsub.f32 1.5, %v3716_v8 }
0x1b6e   : > { %v3718_v10 = vmul.f32 %v5746_v3, %v3717_v9 }
0x1b70   : > { %v3722_v13 = vsel %vm3721_vm6, %v5746_v3, %v3718_v10 }
0x1b71   : > { %v3723_v30 = vmul.f32 %v3722_v13, %v3706_v38  ;;  %v5398_v38 = vld [vmem:[#allocation10 + $0x18] sm:$0xff] }
0x1b73   : > { %v3727_v15 = vmul.f32 %v5645_v11, %v3723_v30 }
0x1b75   : > { %v7116_v17 = vadd.f32 %v5646_v14, %v3727_v15 }
0x1b77   : > { %v3737_v18 = vpack.c.bf16 %v7116_v17, %v7116_v17 }
0x1b79   : > { %5252 = vmatmul.msk.bf16.vlgmr.msrb.gmra.mxu0 %vm1660_vm2, %v3737_v18 }
0x1bf6   : > { %v3767_v21 = vpop.f32.mrf.mxu0 }
0x1bf7   : > { %v3768_v40 = vadd.f32 %v5647_v20, %v3767_v21 }
0x1bf9   : > { %v7122_v22 = vpack.c.bf16 %v3768_v40, %v3768_v40  ;;  %v3771_v23 = vmul.f32 0.35355338, %v3768_v40 }
0x1bfb   : > { %3811 = vrot.lane.b32.xlu0 %v7122_v22, %s7506_s5  ;;  %3780 = vrot.lane.b32.xlu2 %v7122_v22, %s7504_s7  ;;  %v3777_v12 = vpack.c.bf16 %v3771_v23, %v3771_v23  ;;  %s7543_s5 = sld [smem:[#allocation73_spill]] }
0x1bfe   : > { %v3769_v24 = vpop.f32.mrf.mxu0 }
0x1c03   : > { %3837 = vrot.lane.b32.xlu0 %v3777_v12, %s7507_s6 }
0x1c0b   : > { %3935 = vrot.lane.b32.xlu0 %v7122_v22, %s7508_s12 }
0x1c13   : > { %4013 = vrot.lane.b32.xlu0 %v7122_v22, %s7505_s4 }
0x1c55   : > { %v3781_v26 = vpop.permute.xlu2 %3780 }
0x1c56   : > { %v3786_v19 = vsel %vm1750_vm8, %v3781_v26, 0  ;;  %v5648_v26 = vld [vmem:[%s7527_s10 + $0x1] ss:$0 sm:$0xff] }
0x1c57   : > { %3795 = vmatpush.bf16.xpose.msrb.mxu3 %v3786_v19 }
0x1c5e   : > { %5257 = vmatmul.msk.bf16.vlgmr.msrb.gmra.mxu3 %vm1750_vm8, %v3777_v12 }
0x1c6d   : > { %v3812_v28 = vpop.permute.xlu0 %3811 }
0x1c6e   : > { %v3817_v29 = vsel %vm1785_vm7, %v3812_v28, 0 }
0x1c6f   : > { %3826 = vmatpush.bf16.msrb.mxu1 %v3817_v29 }
0x1c73   : > { %3927 = vmatpush.bf16.msra.mxu1 %v3918_v36 }
0x1c75   : > { %v3838_v37 = vpop.permute.xlu0 %3837 }
0x1c7d   : > { %v3936_v27 = vpop.permute.xlu0 %3935 }
0x1c7e   : > { %v3941_v50 = vsel %vm1750_vm8, %v3936_v27, 0 }
0x1c85   : > { %v4014_v61 = vpop.permute.xlu0 %4013 }
0x1c86   : > { %v4019_v48 = vsel %vm1750_vm8, %v4014_v61, 0 }
0x1ce1   : > { %v3797_v31 = vpop.f32.mrf.mxu3 }
0x1ce2   : > { %v3798_v56 = vadd.f32 %v3797_v31, %v6927_v58 }
0x1ce4   : > { %v3801_v32 = vsel %vm1750_vm8, %v3798_v56, -inf }
0x1ce5   : > { %3802 = vmax.xlane.f32.xlu1 %v3801_v32 }
0x1ce9   : > { %v3799_v25 = vpop.f32.mrf.mxu3 }
0x1cfe   : > { %3839 = vrot.lane.b32.xlu1 %v7122_v22, %s7503_s3 }
0x1d06   : > { %3933 = vrot.lane.b32.xlu1 %v3777_v12, %s7509_s13 }
0x1d0e   : > { %4011 = vrot.lane.b32.xlu1 %v3777_v12, %s7510_s19 }
0x1d16   : > { %3870 = vrot.lane.b32.xlu1 %v7122_v22, %s7511_s20 }
0x1d58   : > { %v3803_v41 = vpop.xlane.xlu1 %3802 }
0x1d59   : > { %v3804_v7 = vsub.f32 %v3798_v56, %v3803_v41 }
0x1d5b   : > { %v3805_v43 = vmul.f32 1.442695, %v3804_v7 }
0x1d5d   : > { %5747 = vpow2.f32 %v3805_v43 }
0x1d63   : > { %v5748_v44 = vpop.eup %5747 }
0x1d64   : > { %v3810_v46 = vpack.c.bf16 %v5748_v44, %v5748_v44  ;;  %v3807_v47 = vsel %vm1750_vm8, %v5748_v44, 0.0  ;;  %v5255_v44 = vld [vmem:[%s7520_s27 + $0x30] sm:$0xff] }
0x1d65   : > { %3808 = vadd.xlane.f32.xlu2 %v3807_v47  ;;  %v3990_v61 = vpack.c.bf16 %v5255_v44, %v5255_v44  ;;  %v5651_v44 = vld [vmem:[%s7526_s9 + $0x1] ss:$0 sm:$0xff] }
0x1d66   : > { %5258 = vmatmul.msk.bf16.vlgmr.msrb.gmra.mxu1 %vm1750_vm8, %v3810_v46 }
0x1d67   : > { %4028 = vmatpush.bf16.xpose.msrb.mxu1 %v4019_v48  ;;  %v3995_v47 = vsel %vm1785_vm7, %v3990_v61, 0 }
0x1d70   : > { %v3840_v39 = vpop.permute.xlu1 %3839 }
0x1d71   : > { %v3845_v49 = vsel %vm1750_vm8, %v3840_v39, 0 }
0x1d72   : > { %3854 = vmatpush.bf16.xpose.msrb.mxu2 %v3845_v49 }
0x1d78   : > { %v3934_v51 = vpop.permute.xlu1 %3933 }
0x1d79   : > { %5259 = vmatmul.msk.bf16.vlgmr.msrb.gmra.mxu2 %vm1750_vm8, %v3838_v37  ;;  %v5254_v37 = vld [vmem:[%s7520_s27 + $0x28] sm:$0xff] }
0x1d7a   : > { %3950 = vmatpush.bf16.xpose.msra.mxu2 %v3941_v50  ;;  %v3894_v41 = vpack.c.bf16 %v5254_v37, %v5254_v37 }
0x1d7c   : > { %v3899_v27 = vsel %vm1785_vm7, %v3894_v41, 0 }
0x1d7d   : > { %3908 = vmatpush.bf16.msra.mxu3 %v3899_v27 }
0x1d80   : > { %v4012_v52 = vpop.permute.xlu1 %4011 }
0x1d81   : > { %4004 = vmatpush.bf16.msrb.mxu3 %v3995_v47 }
0x1d88   : > { %v3871_v34 = vpop.permute.xlu1 %3870 }
0x1d89   : > { %v3876_v53 = vsel %vm1785_vm7, %v3871_v34, 0  ;;  %5263 = vmatmul.msk.bf16.vlgmr.msra.gmra.mxu2 %vm1750_vm8, %v3934_v51 }
0x1d8a   : > { %3885 = vmatpush.bf16.msra.mxu0 %v3876_v53 }
0x1dd8   : > { %v3809_v54 = vpop.xlane.xlu2 %3808 }
0x1dd9   : > { %5749 = vrcp.f32 %v3809_v54 }
0x1ddf   : > { %v5750_v55 = vpop.eup %5749 }
0x1de3   : > { %v3828_v57 = vpop.f32.mrf.mxu1 }
0x1de4   : > { %v3833_v59 = vmul.f32 %v5750_v55, %v3828_v57 }
0x1de6   : > { %v3834_v60 = vpack.c.bf16 %v3833_v59, %v3833_v59 }
0x1de8   : > { %5262 = vmatmul.msk.bf16.vlgmr.msra.gmra.mxu1 %vm1750_vm8, %v3834_v60 }
0x1de9   : > { %4198 = vmatpush.bf16.msra.mxu1 %v5398_v38 }
0x1deb   : > { %v3830_v63 = vpop.f32.mrf.mxu1 }
0x1dec   : > { %v5256_v63 = vld [vmem:[%s7520_s27 + $0x38] sm:$0xff] }
0x1ded   : > { %4199 = vmatpush.bf16.msra.mxu1 %v5397_v62 }
0x1df8   : > { %5266 = vmatmul.msk.bf16.vlgmr.msrb.gmra.mxu1 %vm1750_vm8, %v4012_v52 }
0x1dfc   : > { %v3856_v45 = vpop.f32.mrf.mxu2 }
0x1dfd   : > { %v3857_v0 = vadd.f32 %v3856_v45, %v6927_v58  ;;  %v4068_v45 = vpack.c.bf16 %v5256_v63, %v5256_v63 }
0x1dff   : > { %v3860_v1 = vsel %vm1750_vm8, %v3857_v0, -inf }
0x1e00   : > { %3861 = vmax.xlane.f32.xlu0 %v3860_v1 }
0x1e04   : > { %v3858_v2 = vpop.f32.mrf.mxu2 }
0x1e08   : > { %5295 = vmatmul.msk.bf16.vlgmr.msra.gmra.mxu1 %vm1660_vm2, %v7015_v6 }
0x1e0c   : > { %v3952_v3 = vpop.f32.mrf.mxu2 }
0x1e0d   : > { %v3953_v4 = vadd.f32 %v3952_v3, %v6927_v58 }
0x1e0f   : > { %v3956_v5 = vsel %vm1750_vm8, %v3953_v4, -inf }
0x1e10   : > { %3957 = vmax.xlane.f32.xlu2 %v3956_v5 }
0x1e14   : > { %v3954_v8 = vpop.f32.mrf.mxu2 }
0x1e28   : > { %3966 = vrot.lane.b32.xlu2 %v7122_v22, %s7513_s22 }
0x1e30   : > { %4044 = vrot.lane.b32.xlu2 %v7122_v22, %s7512_s21  ;;  %s7545_s21 = sld [smem:[#allocation75_spill]] }
0x1e65   : > { %v7166_v9 = vpop.f32.mrf.mxu1 }
0x1e6d   : > { %v3931_v10 = vpop.f32.mrf.mxu1 }
0x1e73   : > { %v3862_v11 = vpop.xlane.xlu0 %3861 }
0x1e74   : > { %v3863_v13 = vsub.f32 %v3857_v0, %v3862_v11  ;;  %v4073_v0 = vsel %vm1785_vm7, %v4068_v45, 0 }
0x1e75   : > { %v4030_v14 = vpop.f32.mrf.mxu1 }
0x1e76   : > { %v3864_v6 = vmul.f32 1.442695, %v3863_v13  ;;  %v4031_v30 = vadd.f32 %v4030_v14, %v6927_v58 }
0x1e78   : > { %5751 = vpow2.f32 %v3864_v6  ;;  %v4034_v15 = vsel %vm1750_vm8, %v4031_v30, -inf }
0x1e79   : > { %4035 = vmax.xlane.f32.xlu1 %v4034_v15  ;;  %v5649_v15 = vld [vmem:[%s7522_s25 + $0x1] ss:$0 sm:$0xff] }
0x1e7d   : > { %v4032_v18 = vpop.f32.mrf.mxu1 }
0x1e7e   : > { %v5752_v20 = vpop.eup %5751 }
0x1e7f   : > { %v3869_v21 = vpack.c.bf16 %v5752_v20, %v5752_v20  ;;  %v3866_v40 = vsel %vm1750_vm8, %v5752_v20, 0.0 }
0x1e80   : > { %3867 = vadd.xlane.f32.xlu0 %v3866_v40 }
0x1e81   : > { %5260 = vmatmul.msk.bf16.vlgmr.msra.gmra.mxu0 %vm1750_vm8, %v3869_v21 }
0x1e83   : > { %v3958_v22 = vpop.xlane.xlu2 %3957 }
0x1e84   : > { %v3959_v23 = vsub.f32 %v3953_v4, %v3958_v22 }
0x1e85   : > { %v4201_v24 = vpop.f32.mrf.mxu1 }
0x1e86   : > { %v3960_v12 = vmul.f32 1.442695, %v3959_v23  ;;  %v4202_v28 = vadd.f32 %v5648_v26, %v4201_v24 }
0x1e88   : > { %5753 = vpow2.f32 %v3960_v12  ;;  %v7175_v25 = vpack.c.bf16 %v4202_v28, %v4202_v28  ;;  %v5395_v28 = vld [vmem:[%s7523_s29 + $0x10] sm:$0xff] }
0x1e8a   : > { %v4216_v36 = vsel %vm1750_vm8, %v7175_v25, 0 }
0x1e8b   : > { %v3967_v19 = vpop.permute.xlu2 %3966 }
0x1e8c   : > { %v3972_v58 = vsel %vm1785_vm7, %v3967_v19, 0 }
0x1e8d   : > { %3981 = vmatpush.bf16.msrb.mxu0 %v3972_v58  ;;  %v4203_v29 = vpop.f32.mrf.mxu1  ;;  %v5396_v58 = vld [vmem:[%s7523_s29 + $0x18] sm:$0xff] }
0x1e8e   : > { %v5754_v31 = vpop.eup %5753 }
0x1e8f   : > { %v3965_v56 = vpack.c.bf16 %v5754_v31, %v5754_v31  ;;  %v3962_v32 = vsel %vm1750_vm8, %v5754_v31, 0.0 }
0x1e90   : > { %3963 = vadd.xlane.f32.xlu2 %v3962_v32 }
0x1e91   : > { %5264 = vmatmul.msk.bf16.vlgmr.msrb.gmra.mxu0 %vm1750_vm8, %v3965_v56 }
0x1e92   : > { %4082 = vmatpush.bf16.msra.mxu0 %v4073_v0 }
0x1e93   : > { %v4045_v33 = vpop.permute.xlu2 %4044 }
0x1e94   : > { %v4050_v35 = vsel %vm1785_vm7, %v4045_v33, 0 }
0x1e95   : > { %4059 = vmatpush.bf16.msrb.mxu2 %v4050_v35 }
0x1e99   : > { %4225 = vmatpush.bf16.xpose.msra.mxu2 %v4216_v36 }
0x1eec   : > { %v4036_v7 = vpop.xlane.xlu1 %4035 }
0x1eed   : > { %v4037_v43 = vsub.f32 %v4031_v30, %v4036_v7  ;;  %v5650_v7 = vld [vmem:[%s7525_s8 + $0x1] ss:$0 sm:$0xff] }
0x1eef   : > { %v4038_v46 = vmul.f32 1.442695, %v4037_v43 }
0x1ef1   : > { %5755 = vpow2.f32 %v4038_v46 }
0x1ef3   : > { %v3868_v48 = vpop.xlane.xlu0 %3867 }
0x1ef4   : > { %5757 = vrcp.f32 %v3868_v48 }
0x1ef7   : > { %v5756_v39 = vpop.eup %5755 }
0x1ef8   : > { %v4043_v49 = vpack.c.bf16 %v5756_v39, %v5756_v39  ;;  %v4040_v50 = vsel %vm1750_vm8, %v5756_v39, 0.0  ;;  %v5652_v39 = vld [vmem:[%s7528_s11 + $0x1] ss:$0 sm:$0xff] }
0x1ef9   : > { %4041 = vadd.xlane.f32.xlu0 %v4040_v50 }
0x1efa   : > { %5267 = vmatmul.msk.bf16.vlgmr.msrb.gmra.mxu2 %vm1750_vm8, %v4043_v49  ;;  %v5758_v51 = vpop.eup %5757 }
0x1efe   : > { %v3887_v52 = vpop.f32.mrf.mxu0 }
0x1eff   : > { %v3892_v34 = vmul.f32 %v5758_v51, %v3887_v52 }
0x1f01   : > { %v3893_v53 = vpack.c.bf16 %v3892_v34, %v3892_v34 }
0x1f03   : > { %5261 = vmatmul.msk.bf16.vlgmr.msra.gmra.mxu3 %vm1750_vm8, %v3893_v53  ;;  %v3964_v54 = vpop.xlane.xlu2 %3963 }
0x1f04   : > { %5759 = vrcp.f32 %v3964_v54  ;;  %4162 = vmatpush.bf16.msra.mxu3 %v5396_v58 }
0x1f06   : > { %v3889_v55 = vpop.f32.mrf.mxu0 }
0x1f08   : > { %4163 = vmatpush.bf16.msra.mxu3 %v5395_v28 }
0x1f0a   : > { %v5760_v57 = vpop.eup %5759 }
0x1f0e   : > { %v3983_v59 = vpop.f32.mrf.mxu0 }
0x1f0f   : > { %v3988_v38 = vmul.f32 %v5760_v57, %v3983_v59  ;;  %v5296_v59 = vld [vmem:[%s7530_s14 + $0x20] sm:$0xff] }
0x1f11   : > { %v3989_v60 = vpack.c.bf16 %v3988_v38, %v3988_v38  ;;  %v4266_v38 = vpack.c.bf16 %v5296_v59, %v5296_v59 }
0x1f13   : > { %5265 = vmatmul.msk.bf16.vlgmr.msrb.gmra.mxu3 %vm1750_vm8, %v3989_v60  ;;  %v4349_v60 = vsel %vm1785_vm7, %v4266_v38, 0 }
0x1f16   : > { %v3985_v62 = vpop.f32.mrf.mxu0 }
0x1f6c   : > { %v4042_v1 = vpop.xlane.xlu0 %4041 }
0x1f6d   : > { %5761 = vrcp.f32 %v4042_v1 }
0x1f73   : > { %v5762_v2 = vpop.eup %5761 }
0x1f7d   : > { %v4061_v3 = vpop.f32.mrf.mxu2 }
0x1f7e   : > { %v4066_v4 = vmul.f32 %v5762_v2, %v4061_v3 }
0x1f80   : > { %v4067_v5 = vpack.c.bf16 %v4066_v4, %v4066_v4 }
0x1f82   : > { %5268 = vmatmul.msk.bf16.vlgmr.msra.gmra.mxu0 %vm1750_vm8, %v4067_v5 }
0x1f85   : > { %v4063_v8 = vpop.f32.mrf.mxu2 }
0x1f86   : > { %v3910_v10 = vpop.f32.mrf.mxu3 }
0x1f87   : > { %v3930_v13 = vadd.f32 %v7166_v9, %v3910_v10 }
0x1f8e   : > { %v3912_v11 = vpop.f32.mrf.mxu3 }
0x1f96   : > { %v4006_v14 = vpop.f32.mrf.mxu3 }
0x1f97   : > { %v4010_v6 = vadd.f32 %v4006_v14, %v3930_v13 }
0x1f9e   : > { %v4008_v30 = vpop.f32.mrf.mxu3 }
0x1fff   : > { %v4084_v18 = vpop.f32.mrf.mxu0 }
0x2000   : > { %v4088_v20 = vadd.f32 %v4084_v18, %v4010_v6 }
0x2002   : > { %v4094_v21 = vadd.f32 %v5649_v15, %v4088_v20 }
0x2004   : > { %v4095_v40 = vadd.f32 %v4094_v21, %v7116_v17 }
0x2006   : > { %v4100_v22 = vsel %vm1660_vm2, %v4095_v40, 0.0 }
0x2007   : > { %4101 = vadd.xlane.f32.xlu1 %v4100_v22  ;;  %v4086_v23 = vpop.f32.mrf.mxu0 }
0x207a   : > { %v4102_v24 = vpop.xlane.xlu1 %4101 }
0x207b   : > { %v4103_v12 = vmul.f32 %v4102_v24, %v6709_v16 }
0x207d   : > { %v4104_v26 = vsub.f32 %v4095_v40, %v4103_v12 }
0x207f   : > { %v4105_v9 = vmul.f32 %v4104_v26, %v4104_v26 }
0x2081   : > { %v4106_v19 = vsel %vm1660_vm2, %v4105_v9, 0.0 }
0x2082   : > { %4107 = vadd.xlane.f32.xlu0 %v4106_v19 }
0x2096   : > { %4242 = vrot.lane.b32.xlu0 %v7175_v25, %s7504_s7 }
0x20f5   : > { %v4108_v17 = vpop.xlane.xlu0 %4107 }
0x20f6   : > { %v4109_v29 = vmul.f32 %v4108_v17, %v6709_v16 }
0x20f8   : > { %v4110_v31 = vadd.f32 1e-05, %v4109_v29 }
0x20fa   : > { %5763 = vrsqrt.f32 %v4110_v31  ;;  %vm4117_vm10 = vweird.f32 %v4110_v31 }
0x2100   : > { %v5764_v56 = vpop.eup %5763 }
0x2101   : > { %v4112_v32 = vmul.f32 %v5764_v56, %v4110_v31  ;;  %vm4118_vm9 = vweird.f32 %v5764_v56 }
0x2102   : > { %vm4119_vm11 = vmor %vm4117_vm10, %vm4118_vm9 }
0x2103   : > { %v4113_v33 = vmul.f32 %v5764_v56, %v4112_v32 }
0x2105   : > { %v4114_v35 = vmul.f32 0.5, %v4113_v33 }
0x2107   : > { %v4115_v36 = vsub.f32 1.5, %v4114_v35 }
0x2108   : > { %v4243_v37 = vpop.permute.xlu0 %4242 }
0x2109   : > { %v4116_v41 = vmul.f32 %v5764_v56, %v4115_v36  ;;  %v4248_v27 = vsel %vm1785_vm7, %v4243_v37, 0 }
0x210a   : > { %4257 = vmatpush.bf16.msrb.mxu0 %v4248_v27 }
0x210b   : > { %v4120_v43 = vsel %vm4119_vm11, %v5764_v56, %v4116_v41 }
0x210c   : > { %v4121_v61 = vmul.f32 %v4120_v43, %v4104_v26 }
0x210e   : > { %v4125_v46 = vmul.f32 %v5650_v7, %v4121_v61  ;;  %4358 = vmatpush.bf16.msra.mxu0 %v4349_v60 }
0x2110   : > { %v7206_v47 = vadd.f32 %v5651_v44, %v4125_v46 }
0x2112   : > { %v4135_v48 = vpack.c.bf16 %v7206_v47, %v7206_v47 }
0x2114   : > { %5285 = vmatmul.msk.bf16.vlgmr.msra.gmra.mxu3 %vm1660_vm2, %v4135_v48 }
0x2197   : > { %v4165_v49 = vpop.f32.mrf.mxu3 }
0x2198   : > { %v4166_v50 = vadd.f32 %v5652_v39, %v4165_v49 }
0x219a   : > { %v4169_v51 = vmul.f32 0.35355338, %v4166_v50 }
0x219c   : > { %v4210_v52 = vpack.c.bf16 %v4169_v51, %v4169_v51 }
0x219e   : > { %4268 = vrot.lane.b32.xlu0 %v4210_v52, %s7507_s6  ;;  %5300 = vmatmul.msk.bf16.vlgmr.msra.gmra.mxu2 %vm1750_vm8, %v4210_v52 }
0x219f   : > { %v4167_v34 = vpop.f32.mrf.mxu3 }
0x21a6   : > { %4444 = vrot.lane.b32.xlu0 %v7175_v25, %s7510_s19 }
0x2210   : > { %v4269_v63 = vpop.permute.xlu0 %4268 }
0x2218   : > { %v4445_v2 = vpop.permute.xlu0 %4444 }
0x2219   : > { %v4450_v5 = vsel %vm1750_vm8, %v4445_v2, 0 }
0x2221   : > { %v4227_v53 = vpop.f32.mrf.mxu2 }
0x2222   : > { %v4228_v54 = vadd.f32 %v7049_v42, %v4227_v53 }
0x2224   : > { %v4231_v55 = vsel %vm1750_vm8, %v4228_v54, -inf }
0x2225   : > { %4232 = vmax.xlane.f32.xlu1 %v4231_v55 }
0x2229   : > { %v4229_v57 = vpop.f32.mrf.mxu2 }
0x223e   : > { %4270 = vrot.lane.b32.xlu1 %v7175_v25, %s7507_s6 }
0x2246   : > { %4364 = vrot.lane.b32.xlu1 %v4210_v52, %s7509_s13 }
0x224e   : > { %4442 = vrot.lane.b32.xlu1 %v4210_v52, %s7510_s19 }
0x2256   : > { %4301 = vrot.lane.b32.xlu1 %v7175_v25, %s7503_s3  ;;  %s1610_s3 = sand.u32 1, %s6166_s1  }
0x2257   : > { %s5036_s6 = sshll.u32 %s1610_s3, 3  ;;  %s4762_s2 = scalar_lea.sflag [#allocation4], %s1610_s3 }
0x2298   : > { %v4233_v62 = vpop.xlane.xlu1 %4232 }
0x2299   : > { %v4234_v45 = vsub.f32 %v4228_v54, %v4233_v62 }
0x229b   : > { %v4235_v0 = vmul.f32 1.442695, %v4234_v45 }
0x229d   : > { %5765 = vpow2.f32 %v4235_v0 }
0x22a3   : > { %v5766_v1 = vpop.eup %5765 }
0x22a4   : > { %v4240_v3 = vpack.c.bf16 %v5766_v1, %v5766_v1  ;;  %v4237_v4 = vsel %vm1750_vm8, %v5766_v1, 0.0 }
0x22a5   : > { %4238 = vadd.xlane.f32.xlu2 %v4237_v4 }
0x22a6   : > { %5301 = vmatmul.msk.bf16.vlgmr.msrb.gmra.mxu0 %vm1750_vm8, %v4240_v3  ;;  %v5298_v3 = vld [vmem:[%s7530_s14 + $0x30] sm:$0xff] }
0x22a7   : > { %4459 = vmatpush.bf16.xpose.msrb.mxu0 %v4450_v5  ;;  %v4421_v4 = vpack.c.bf16 %v5298_v3, %v5298_v3 }
0x22a9   : > { %v4426_v5 = vsel %vm1785_vm7, %v4421_v4, 0  ;;  %v5657_v4 = vld [vmem:[#allocation13 + $0x1] ss:$0 sm:$0xff] }
0x22b0   : > { %v4271_v8 = vpop.permute.xlu1 %4270 }
0x22b1   : > { %v4276_v10 = vsel %vm1750_vm8, %v4271_v8, 0  ;;  %v5299_v8 = vld [vmem:[%s7530_s14 + $0x38] sm:$0xff] }
0x22b2   : > { %4285 = vmatpush.bf16.xpose.msrb.mxu3 %v4276_v10  ;;  %v4499_v10 = vpack.c.bf16 %v5299_v8, %v5299_v8 }
0x22b8   : > { %v4365_v11 = vpop.permute.xlu1 %4364 }
0x22b9   : > { %5302 = vmatmul.msk.bf16.vlgmr.msrb.gmra.mxu3 %vm1750_vm8, %v4269_v63 }
0x22bd   : > { %4366 = vrot.lane.b32.xlu2 %v7175_v25, %s7509_s13  ;;  %s7544_s13 = sld [smem:[#allocation79_spill]] }
0x22c0   : > { %v4443_v13 = vpop.permute.xlu1 %4442 }
0x22c3   : > { %s5362_s19 = sshll.u32 %s7544_s13, 3  ;;  %s6108_s13 = scalar_lea.hbm %s7545_s21, 16 }
0x22c4   : > { %s4772_s20 = scalar_lea.hbm %s7545_s21, %s5362_s19 }
0x22c5   : > { %s4776_s7 = sshll.u32 %s4772_s20, 4  ;;  %s4777_s7 = int_to_ptr.hbm [resolvable:$true] %s4776_s7 }
0x22c6   : > { %s6102_s28 = sshra.s32 %s4777_s7, 4  ;;  %s6103_s28 = int_to_ptr.hbm [resolvable:$true] %s6102_s28 }
0x22c7   : > { %s6104_s0 = scalar_lea.hbm %s6103_s28, 8  ;;  %p6109_p8 = scmp.lt.s32.totalorder %s6103_s28, %s7545_s21 }
0x22c8   : > { %v4302_v14 = vpop.permute.xlu1 %4301  ;;  %p6105_p9 = scmp.ne.s32.totalorder %s6103_s28, %s6104_s0  ;;  %p6110_p11 = scmp.lt.s32.totalorder %s6108_s13, %s6104_s0 }
0x22c9   : > { %v4307_v6 = vsel %vm1785_vm7, %v4302_v14, 0 }
0x22ca   : > { %4316 = vmatpush.bf16.msrb.mxu1 %v4307_v6  ;;  %p6106_p12 = pnand %p6105_p9, %p6538_p5  ;;  %p6111_p13 = por %p6110_p11, %p6109_p8 }
0x22cc   : > { %p6107_p0 = pneg %p6106_p12 }
0x22ce   : > { %p6112_p1 = pnand %p6111_p13, %p6107_p0 }
0x2318   : > { %v4239_v30 = vpop.xlane.xlu2 %4238 }
0x2319   : > { %5767 = vrcp.f32 %v4239_v30 }
0x231f   : > { %v5768_v20 = vpop.eup %5767 }
0x2320   : > { %v4367_v15 = vpop.permute.xlu2 %4366 }
0x2321   : > { %v4372_v18 = vsel %vm1750_vm8, %v4367_v15, 0 }
0x2322   : > { %4381 = vmatpush.bf16.xpose.msra.mxu3 %v4372_v18 }
0x2323   : > { %v4259_v21 = vpop.f32.mrf.mxu0 }
0x2324   : > { %v4264_v40 = vmul.f32 %v5768_v20, %v4259_v21 }
0x2326   : > { %v4265_v22 = vpack.c.bf16 %v4264_v40, %v4264_v40 }
0x2328   : > { %5305 = vmatmul.msk.bf16.vlgmr.msra.gmra.mxu0 %vm1750_vm8, %v4265_v22 }
0x2329   : > { %5306 = vmatmul.msk.bf16.vlgmr.msra.gmra.mxu3 %vm1750_vm8, %v4365_v11  ;;  %v4504_v11 = vsel %vm1785_vm7, %v4499_v10, 0 }
0x232b   : > { %v4261_v23 = vpop.f32.mrf.mxu0 }
0x2338   : > { %5309 = vmatmul.msk.bf16.vlgmr.msrb.gmra.mxu0 %vm1750_vm8, %v4443_v13 }
0x233c   : > { %v4287_v24 = vpop.f32.mrf.mxu3 }
0x233d   : > { %v4288_v12 = vadd.f32 %v7049_v42, %v4287_v24 }
0x233f   : > { %v4291_v26 = vsel %vm1750_vm8, %v4288_v12, -inf }
0x2340   : > { %4292 = vmax.xlane.f32.xlu0 %v4291_v26 }
0x2344   : > { %v4289_v9 = vpop.f32.mrf.mxu3 }
0x2354   : > { %4397 = vrot.lane.b32.xlu0 %v7175_v25, %s7508_s12 }
0x23a5   : > { %v7242_v19 = vpop.f32.mrf.mxu0 }
0x23ac   : > { %v4383_v58 = vpop.f32.mrf.mxu3 }
0x23ad   : > { %v4384_v28 = vadd.f32 %v7049_v42, %v4383_v58  ;;  %v4362_v17 = vpop.f32.mrf.mxu0 }
0x23af   : > { %v4387_v29 = vsel %vm1750_vm8, %v4384_v28, -inf }
0x23b0   : > { %4388 = vmax.xlane.f32.xlu2 %v4387_v29  ;;  %v5653_v29 = vld [vmem:[%s7532_s15 + $0x1] ss:$0 sm:$0xff] }
0x23b3   : > { %v4293_v31 = vpop.xlane.xlu0 %4292 }
0x23b4   : > { %v4294_v56 = vsub.f32 %v4288_v12, %v4293_v31  ;;  %v4385_v32 = vpop.f32.mrf.mxu3 }
0x23b5   : > { %v4461_v33 = vpop.f32.mrf.mxu0 }
0x23b6   : > { %v4295_v35 = vmul.f32 1.442695, %v4294_v56  ;;  %v4462_v36 = vadd.f32 %v7049_v42, %v4461_v33  ;;  %v5297_v42 = vld [vmem:[%s7530_s14 + $0x28] sm:$0xff] }
0x23b7   : > { %v4325_v46 = vpack.c.bf16 %v5297_v42, %v5297_v42 }
0x23b8   : > { %5769 = vpow2.f32 %v4295_v35  ;;  %v4465_v37 = vsel %vm1750_vm8, %v4462_v36, -inf }
0x23b9   : > { %4466 = vmax.xlane.f32.xlu1 %v4465_v37  ;;  %v4330_v48 = vsel %vm1785_vm7, %v4325_v46, 0  ;;  %v5403_v46 = vld [vmem:[%s7534_s16 + $0x30] sm:$0xff] }
0x23ba   : > { %4339 = vmatpush.bf16.msrb.mxu2 %v4330_v48 }
0x23bd   : > { %v4463_v41 = vpop.f32.mrf.mxu0 }
0x23be   : > { %v5770_v27 = vpop.eup %5769  ;;  %4435 = vmatpush.bf16.msra.mxu2 %v4426_v5 }
0x23bf   : > { %v4300_v7 = vpack.c.bf16 %v5770_v27, %v5770_v27  ;;  %v4297_v43 = vsel %vm1750_vm8, %v5770_v27, 0.0 }
0x23c1   : > { %5303 = vmatmul.msk.bf16.vlgmr.msrb.gmra.mxu1 %vm1750_vm8, %v4300_v7  ;;  %4298 = vadd.xlane.f32.xlu1 %v4297_v43  ;;  %v5400_v43 = vld [vmem:[#allocation11 + $0x18] sm:$0xff] }
0x23c6   : > { %v4398_v44 = vpop.permute.xlu0 %4397 }
0x23c7   : > { %v4403_v61 = vsel %vm1785_vm7, %v4398_v44, 0  ;;  %v5399_v44 = vld [vmem:[#allocation11 + $0x10] sm:$0xff] }
0x23c8   : > { %4475 = vrot.lane.b32.xlu2 %v7175_v25, %s7505_s4  ;;  %4412 = vmatpush.bf16.msra.mxu1 %v4403_v61  ;;  %v5404_v61 = vld [vmem:[%s7534_s16 + $0x38] sm:$0xff]  ;;  %s1612_s4 = scalar_lea.vmem [#allocation19], %s5036_s6 }
0x23c9   : > { %4647 = vmatpush.bf16.msra.mxu0 %v5404_v61  ;;  %s4774_s22 = sshll.u32 %s1612_s4, 4  ;;  %s4775_s22 = int_to_ptr.vmem [resolvable:$true] %s4774_s22 }
0x23cc   : > { %4513 = vmatpush.bf16.msrb.mxu1 %v4504_v11 }
0x23cd   : > { %4648 = vmatpush.bf16.msra.mxu0 %v5403_v46 }
0x2423   : > { %v4389_v39 = vpop.xlane.xlu2 %4388 }
0x2424   : > { %v4390_v49 = vsub.f32 %v4384_v28, %v4389_v39 }
0x2426   : > { %v4391_v50 = vmul.f32 1.442695, %v4390_v49 }
0x2428   : > { %5771 = vpow2.f32 %v4391_v50 }
0x242b   : > { %v4476_v51 = vpop.permute.xlu2 %4475 }
0x242c   : > { %v4481_v52 = vsel %vm1785_vm7, %v4476_v51, 0  ;;  %v4467_v34 = vpop.xlane.xlu1 %4466 }
0x242d   : > { %v4468_v53 = vsub.f32 %v4462_v36, %v4467_v34  ;;  %4490 = vmatpush.bf16.msrb.mxu3 %v4481_v52 }
0x242e   : > { %v5772_v54 = vpop.eup %5771 }
0x242f   : > { %v4396_v55 = vpack.c.bf16 %v5772_v54, %v5772_v54  ;;  %v4469_v57 = vmul.f32 1.442695, %v4468_v53  ;;  %v4393_v25 = vsel %vm1750_vm8, %v5772_v54, 0.0  ;;  %v5654_v53 = vld [vmem:[%s7536_s17 + $0x1] ss:$0 sm:$0xff] }
0x2430   : > { %4394 = vadd.xlane.f32.xlu0 %v4393_v25 }
0x2431   : > { %5773 = vpow2.f32 %v4469_v57  ;;  %5307 = vmatmul.msk.bf16.vlgmr.msra.gmra.mxu1 %vm1750_vm8, %v4396_v55  ;;  %v5655_v55 = vld [vmem:[%s7537_s18 + $0x1] ss:$0 sm:$0xff] }
0x2434   : > { %v4299_v59 = vpop.xlane.xlu1 %4298 }
0x2435   : > { %5775 = vrcp.f32 %v4299_v59 }
0x2437   : > { %v5774_v38 = vpop.eup %5773 }
0x2438   : > { %v4474_v60 = vpack.c.bf16 %v5774_v38, %v5774_v38  ;;  %v4471_v62 = vsel %vm1750_vm8, %v5774_v38, 0.0 }
0x2439   : > { %4472 = vadd.xlane.f32.xlu1 %v4471_v62  ;;  %v5401_v62 = vld [vmem:[%s7534_s16 + $0x20] sm:$0xff] }
0x243a   : > { %5310 = vmatmul.msk.bf16.vlgmr.msrb.gmra.mxu3 %vm1750_vm8, %v4474_v60  ;;  %v5402_v60 = vld [vmem:[%s7534_s16 + $0x28] sm:$0xff] }
0x243b   : > { %v5776_v63 = vpop.eup %5775  ;;  %4649 = vmatpush.bf16.msra.mxu0 %v5402_v60 }
0x243e   : > { %v4318_v45 = vpop.f32.mrf.mxu1 }
0x243f   : > { %v4323_v0 = vmul.f32 %v5776_v63, %v4318_v45  ;;  %4650 = vmatpush.bf16.msra.mxu0 %v5401_v62  ;;  %v5656_v63 = vld [vmem:[%s7538_s23 + $0x1] ss:$0 sm:$0xff] }
0x2441   : > { %v4324_v1 = vpack.c.bf16 %v4323_v0, %v4323_v0 }
0x2443   : > { %5304 = vmatmul.msk.bf16.vlgmr.msrb.gmra.mxu2 %vm1750_vm8, %v4324_v1 }
0x2444   : > { %4593 = vmatpush.bf16.msrb.mxu2 %v5400_v43 }
0x2446   : > { %v4320_v2 = vpop.f32.mrf.mxu1 }
0x2448   : > { %4594 = vmatpush.bf16.msrb.mxu2 %v5399_v44 }
0x24a3   : > { %v4395_v13 = vpop.xlane.xlu0 %4394 }
0x24a4   : > { %5777 = vrcp.f32 %v4395_v13 }
0x24aa   : > { %v5778_v14 = vpop.eup %5777 }
0x24ac   : > { %v4473_v18 = vpop.xlane.xlu1 %4472 }
0x24ad   : > { %5779 = vrcp.f32 %v4473_v18 }
0x24ae   : > { %v4414_v6 = vpop.f32.mrf.mxu1 }
0x24af   : > { %v4419_v30 = vmul.f32 %v5778_v14, %v4414_v6 }
0x24b1   : > { %v4420_v15 = vpack.c.bf16 %v4419_v30, %v4419_v30 }
0x24b3   : > { %5308 = vmatmul.msk.bf16.vlgmr.msra.gmra.mxu2 %vm1750_vm8, %v4420_v15  ;;  %v5780_v21 = vpop.eup %5779 }
0x24b6   : > { %v4416_v20 = vpop.f32.mrf.mxu1 }
0x24bd   : > { %v4492_v40 = vpop.f32.mrf.mxu3 }
0x24be   : > { %v4497_v22 = vmul.f32 %v5780_v21, %v4492_v40 }
0x24c0   : > { %v4498_v23 = vpack.c.bf16 %v4497_v22, %v4497_v22 }
0x24c2   : > { %5311 = vmatmul.msk.bf16.vlgmr.msrb.gmra.mxu1 %vm1750_vm8, %v4498_v23 }
0x24c5   : > { %v4494_v24 = vpop.f32.mrf.mxu3 }
0x24c6   : > { %v4341_v12 = vpop.f32.mrf.mxu2 }
0x24c7   : > { %v4361_v58 = vadd.f32 %v7242_v19, %v4341_v12 }
0x24ce   : > { %v4343_v26 = vpop.f32.mrf.mxu2 }
0x2536   : > { %v4437_v9 = vpop.f32.mrf.mxu2 }
0x2537   : > { %v4441_v28 = vadd.f32 %v4437_v9, %v4361_v58  ;;  %v5658_v58 = vld [vmem:[%s7540_s26 + $0x1] ss:$0 sm:$0xff] }
0x253e   : > { %v4439_v17 = vpop.f32.mrf.mxu2 }
0x253f   : > { %v4515_v31 = vpop.f32.mrf.mxu1 }
0x2540   : > { %v4519_v56 = vadd.f32 %v4515_v31, %v4441_v28 }
0x2542   : > { %v4525_v32 = vadd.f32 %v5653_v29, %v4519_v56  ;;  %v5659_v29 = vld [vmem:[%s7542_s30 + $0x1] ss:$0 sm:$0xff] }
0x2544   : > { %v4526_v33 = vadd.f32 %v4525_v32, %v7206_v47 }
0x2546   : > { %v4531_v35 = vsel %vm1660_vm2, %v4526_v33, 0.0 }
0x2547   : > { %4532 = vadd.xlane.f32.xlu1 %v4531_v35  ;;  %v4517_v36 = vpop.f32.mrf.mxu1 }
0x25ba   : > { %v4533_v37 = vpop.xlane.xlu1 %4532 }
0x25bb   : > { %v4534_v41 = vmul.f32 %v4533_v37, %v6709_v16 }
0x25bd   : > { %v4535_v27 = vsub.f32 %v4526_v33, %v4534_v41 }
0x25bf   : > { %v4536_v7 = vmul.f32 %v4535_v27, %v4535_v27 }
0x25c1   : > { %v4537_v19 = vsel %vm1660_vm2, %v4536_v7, 0.0  ;;  %v5405_v7 = vld [vmem:[%s7543_s5] sm:$0xff] }
0x25c2   : > { %4538 = vadd.xlane.f32.xlu2 %v4537_v19 }
0x2635   : > { %v4539_v47 = vpop.xlane.xlu2 %4538 }
0x2636   : > { %v4540_v42 = vmul.f32 %v4539_v47, %v6709_v16 }
0x2638   : > { %v4541_v48 = vadd.f32 1e-05, %v4540_v42 }
0x263a   : > { %5781 = vrsqrt.f32 %v4541_v48  ;;  %vm4548_vm8 = vweird.f32 %v4541_v48 }
0x2640   : > { %v5782_v39 = vpop.eup %5781 }
0x2641   : > { %v4543_v49 = vmul.f32 %v5782_v39, %v4541_v48  ;;  %vm4549_vm7 = vweird.f32 %v5782_v39 }
0x2642   : > { %vm4550_vm13 = vmor %vm4548_vm8, %vm4549_vm7 }
0x2643   : > { %v4544_v50 = vmul.f32 %v5782_v39, %v4543_v49  ;;  %v5660_v49 = vld [vmem:[#allocation14] ss:$0 sm:$0xff] }
0x2645   : > { %v4545_v51 = vmul.f32 0.5, %v4544_v50 }
0x2647   : > { %v4546_v52 = vsub.f32 1.5, %v4545_v51  ;;  %v5661_v51 = vld [vmem:[#allocation16] ss:$0 sm:$0xff] }
0x2649   : > { %v4547_v34 = vmul.f32 %v5782_v39, %v4546_v52 }
0x264b   : > { %v4551_v54 = vsel %vm4550_vm13, %v5782_v39, %v4547_v34 }
0x264c   : > { %v4552_v57 = vmul.f32 %v4551_v54, %v4535_v27  ;;  %v5406_v27 = vld [vmem:[%s7543_s5 + $0x8] sm:$0xff] }
0x264d   : > { %4753 = vmatpush.bf16.msra.mxu3 %v5406_v27  ;;  %v5662_v54 = vld [vmem:[#allocation17] ss:$0 sm:$0xff] }
0x264e   : > { %v4556_v25 = vmul.f32 %v5654_v53, %v4552_v57 }
0x2650   : > { %v4560_v59 = vadd.f32 %v5655_v55, %v4556_v25 }
0x2651   : > { %4754 = vmatpush.bf16.msra.mxu3 %v5405_v7 }
0x2652   : > { %v4566_v38 = vpack.c.bf16 %v4560_v59, %v4560_v59 }
0x2654   : > { %5324 = vmatmul.msk.bf16.vlgmr.msrb.gmra.mxu2 %vm1660_vm2, %v4566_v38 }
0x26d7   : > { %v4596_v45 = vpop.f32.mrf.mxu2 }
0x26d8   : > { %v4597_v0 = vadd.f32 %v5656_v63, %v4596_v45 }
0x26da   : > { %v4600_v1 = vmax.f32 %v4597_v0, 0.0 }
0x26dc   : > { %v4610_v2 = vpack.c.bf16 %v4600_v1, %v4600_v1 }
0x26de   : > { %5349 = vmatmul.msk.bf16.vlgmr.msra.gmra.mxu0 %vm2172_vm12, %v4610_v2 }
0x26df   : > { %v4598_v3 = vpop.f32.mrf.mxu2 }
0x275b   : > { %v4652_v5 = vpop.f32.mrf.mxu0 }
0x275c   : > { %v4653_v8 = vadd.f32 %v5657_v4, %v4652_v5 }
0x275e   : > { %v4656_v10 = vadd.f32 %v4653_v8, %v4560_v59 }
0x2760   : > { %v4661_v11 = vsel %vm1660_vm2, %v4656_v10, 0.0 }
0x2761   : > { %4662 = vadd.xlane.f32.xlu1 %v4661_v11 }
0x2763   : > { %v4654_v13 = vpop.f32.mrf.mxu0 }
0x27d4   : > { %v4663_v14 = vpop.xlane.xlu1 %4662 }
0x27d5   : > { %v4664_v6 = vmul.f32 %v4663_v14, %v6709_v16 }
0x27d7   : > { %v4665_v30 = vsub.f32 %v4656_v10, %v4664_v6 }
0x27d9   : > { %v4666_v15 = vmul.f32 %v4665_v30, %v4665_v30 }
0x27db   : > { %v4667_v18 = vsel %vm1660_vm2, %v4666_v15, 0.0 }
0x27dc   : > { %4668 = vadd.xlane.f32.xlu1 %v4667_v18 }
0x284f   : > { %v4669_v20 = vpop.xlane.xlu1 %4668 }
0x2850   : > { %v4670_v21 = vmul.f32 %v4669_v20, %v6709_v16 }
0x2852   : > { %v4671_v40 = vadd.f32 1e-05, %v4670_v21 }
0x2854   : > { %5783 = vrsqrt.f32 %v4671_v40  ;;  %vm4678_vm14 = vweird.f32 %v4671_v40 }
0x285a   : > { %v5784_v22 = vpop.eup %5783 }
0x285b   : > { %v4673_v23 = vmul.f32 %v5784_v22, %v4671_v40  ;;  %vm4679_vm12 = vweird.f32 %v5784_v22 }
0x285c   : > { %vm4680_vm15 = vmor %vm4678_vm14, %vm4679_vm12 }
0x285d   : > { %v4674_v24 = vmul.f32 %v5784_v22, %v4673_v23 }
0x285f   : > { %v4675_v12 = vmul.f32 0.5, %v4674_v24 }
0x2861   : > { %v4676_v26 = vsub.f32 1.5, %v4675_v12 }
0x2863   : > { %v4677_v9 = vmul.f32 %v5784_v22, %v4676_v26 }
0x2865   : > { %v4681_v28 = vsel %vm4680_vm15, %v5784_v22, %v4677_v9 }
0x2866   : > { %v4682_v17 = vmul.f32 %v4681_v28, %v4665_v30 }
0x2868   : > { %v4686_v31 = vmul.f32 %v5658_v58, %v4682_v17 }
0x286a   : > { %v4690_v56 = vadd.f32 %v5659_v29, %v4686_v31 }
0x286c   : > { %v4693_v32 = vsel %vm1660_vm2, %v4690_v56, 0.0 }
0x286d   : > { %4694 = vadd.xlane.f32.xlu1 %v4693_v32 }
0x28e0   : > { %v4695_v33 = vpop.xlane.xlu1 %4694 }
0x28e1   : > { %v4696_v35 = vmul.f32 %v4695_v33, %v6709_v16 }
0x28e3   : > { %v4697_v36 = vsub.f32 %v4690_v56, %v4696_v35 }
0x28e5   : > { %v4698_v37 = vmul.f32 %v4697_v36, %v4697_v36 }
0x28e7   : > { %v4699_v41 = vsel %vm1660_vm2, %v4698_v37, 0.0 }
0x28e8   : > { %4700 = vadd.xlane.f32.xlu0 %v4699_v41 }
0x295b   : > { %v4701_v19 = vpop.xlane.xlu0 %4700 }
0x295c   : > { %v4702_v43 = vmul.f32 %v4701_v19, %v6709_v16 }
0x295e   : > { %v4703_v44 = vadd.f32 1e-05, %v4702_v43 }
0x2960   : > { %5785 = vrsqrt.f32 %v4703_v44  ;;  %vm4710_vm1 = vweird.f32 %v4703_v44 }
0x2966   : > { %v5786_v61 = vpop.eup %5785 }
0x2967   : > { %v4705_v47 = vmul.f32 %v5786_v61, %v4703_v44  ;;  %vm4711_vm0 = vweird.f32 %v5786_v61 }
0x2968   : > { %vm4712_vm3 = vmor %vm4710_vm1, %vm4711_vm0 }
0x2969   : > { %v4706_v42 = vmul.f32 %v5786_v61, %v4705_v47 }
0x296b   : > { %v4707_v46 = vmul.f32 0.5, %v4706_v42 }
0x296d   : > { %v4708_v48 = vsub.f32 1.5, %v4707_v46 }
0x296f   : > { %v4709_v39 = vmul.f32 %v5786_v61, %v4708_v48 }
0x2971   : > { %v4713_v50 = vsel %vm4712_vm3, %v5786_v61, %v4709_v39 }
0x2972   : > { %v4714_v52 = vmul.f32 %v4713_v50, %v4697_v36 }
0x2974   : > { %v4718_v34 = vmul.f32 %v5660_v49, %v4714_v52 }
0x2976   : > { %v4722_v16 = vadd.f32 %v5661_v51, %v4718_v34 }
0x2978   : > { %v4727_v53 = vpack.c.bf16 %v4722_v16, %v4722_v16 }
0x297a   : > { %5360 = vmatmul.msk.bf16.vlgmr.msra.gmra.mxu3 %vm1660_vm2, %v4727_v53 }
0x29fd   : > { %v4756_v55 = vpop.f32.mrf.mxu3 }
0x29fe   : > { %v4757_v57 = vadd.f32 %v5662_v54, %v4756_v55 }
0x2a00   : > { %4760 = vst [vmem:[%s1612_s4] sm:$0xff] %v4757_v57 }
0x2a01   : > { %6115 = shalt.err (!%p6112_p1)
}
0x2a02   : > { %5447 = dma.vmem_to_hbm [thread:$0]  (%p6538_p5), %s4775_s22, 128, %s4777_s7, %s4762_s2  }
0x2a05   : > { %v4758_v25 = vpop.f32.mrf.mxu3 }
0x2a06 PF: > { %s7547_s19 = sld [smem:[#allocation78_spill]] }
0x2a07   : > { %s7548_s3 = sld [smem:[#allocation76_spill]] }
0x2a0c   : > { %p5504_p3 = scmp.ge.s32.totalorder %s7547_s19, 2 }
0x2a0d   : > { %s4788_s20 = sand.u32 1, %s7548_s3  }
0x2a0e   : > { %p5481_p2 = pnand %p5504_p3, %p6542_p6  ;;  %s4789_s4 = scalar_lea.sflag [#allocation4], %s4788_s20 }
0x2a10   : > { %p5482_p4 = pneg %p5481_p2 }
0x2a12   : > { %6157 = dma.done.wait (%p5482_p4), %s4789_s4, 128  }
0x2a13   : > { %6159 = vsyncadd (%p5482_p4), %s4789_s4, 4294967168  ;;  %s7550_s7 = sld [smem:[#allocation80_spill]]  ;;  %s7553_s28 = smov %s6166_s1 }
0x2a14   : > { %s7551_s0 = sld [smem:[#allocation77_spill]] }
0x2a15   : > { %s7552_s2 = sld [smem:[#allocation81_spill]] }
0x2a19   : > { %p113_p7 = scmp.ge.s32.totalorder %s7550_s7, 4  }
0x2a1a   : > { %s7554_s1 = smov %s7551_s0 }
0x2a1b   :  { %115 = sbr.rel (!%p113_p7) target bundleno = 118 (0x76), region = 377 }
0x2a20   :  { %4795 = vsyncpa [#allocation3], 1 }
0x2a21   :  { %4797 = vsyncpa [#allocation3 + $0x1], 1 }
0x2a22   :  { %4798 = vsyncpa [#allocation6], 1 }
0x2a23   :  { %4799 = vsyncpa [#allocation9], 1 }
0x2a24   :  { %4800 = vsyncpa [#allocation12], 1 }
0x2a25   :  { %4801 = vsyncpa [#allocation15], 1 }
0x2a26   :  { %4802 = vsyncpa [#allocation18], 1 }
0x2a27   :  { %4803 = vsyncpa [#allocation4], 1 }
0x2a28   :  { %4805 = vsyncpa [#allocation4 + $0x1], 1 }

</bundles_post_ra>
